<compile_context>
chip_gen: v6e
topology: v6e:2x2x1
jax: 0.10.0
libtpu: 0.0.40
codegen_flags: <defaults>
</compile_context>

<pallas_src>
import numpy as np

import jax
import jax.numpy as jnp
from jax import lax
from jax.experimental import pallas as pl
from jax.experimental.pallas import tpu as pltpu

# ----------------------------------------------------------------------------
# Scaled-down hyperparameters (same structure as the PyTorch module, smaller).
# ----------------------------------------------------------------------------
IMAGE_SIZE = 16      # PyTorch module uses 128
N_CHANNELS = 3
N_CLASSES = 5
NDF = 8              # PyTorch module uses 128
LRELU_SLOPE = 0.2
LN_EPS = 1e-5
N_TAPS = 16          # 4x4 conv kernel
N_HEADS = 1 + N_CLASSES   # [adv | aux] fused


# ----------------------------------------------------------------------------
# Fused Pallas kernel (one grid step == one sample).
# ----------------------------------------------------------------------------
def _disc_kernel(x_ref,
                 s1_ref, w1_ref,
                 s2_ref, w2_ref, g2_ref, b2_ref,
                 s3_ref, w3_ref, g3_ref, b3_ref,
                 s4_ref, w4_ref, g4_ref, b4_ref,
                 wh_ref, bh_ref,
                 o_ref):
    """Full Discriminator forward for one sample, activations kept on-chip."""

    def conv(x_f32, s_ref, w_ref):
        # x_f32: (HW_in, Cin) f32.  s_ref: (16, M_out, HW_in) bf16 0/1 gather.
        # w_ref: (16, Cin, Cout) bf16.  Returns (M_out, Cout) f32.
        xb = x_f32.astype(jnp.bfloat16)
        m_out = s_ref.shape[1]
        c_out = w_ref.shape[2]
        acc = jnp.zeros((m_out, c_out), jnp.float32)
        for t in range(N_TAPS):                      # static unroll (16 taps)
            patch = jnp.dot(s_ref[t], xb,
                            preferred_element_type=jnp.float32)     # (M, Cin)
            acc = acc + jnp.dot(patch.astype(jnp.bfloat16), w_ref[t],
                                preferred_element_type=jnp.float32)  # (M, Cout)
        return acc

    def full_mean(z):
        # mean over all elements of a 2-D tile, result shape (1, 1)
        s = jnp.sum(z, axis=1, keepdims=True)
        s = jnp.sum(s, axis=0, keepdims=True)
        return s * (1.0 / float(z.shape[0] * z.shape[1]))

    def lrelu(y):
        return jnp.where(y > 0, y, LRELU_SLOPE * y)

    def ln_lrelu(y, g_ref, b_ref):
        # LayerNorm over the whole per-sample feature map (= all of y), biased
        # variance, eps=1e-5, per-element affine -- matches nn.LayerNorm.
        mu = full_mean(y)
        var = full_mean((y - mu) * (y - mu))
        yn = (y - mu) * lax.rsqrt(var + LN_EPS)
        yn = yn * g_ref[...] + b_ref[...]
        return lrelu(yn)

    x = x_ref[0]                                           # (H*W, C_in) f32

    y = lrelu(conv(x, s1_ref, w1_ref))                     # conv1 + LReLU
    y = ln_lrelu(conv(y, s2_ref, w2_ref), g2_ref, b2_ref)  # conv2 + LN + LReLU
    y = ln_lrelu(conv(y, s3_ref, w3_ref), g3_ref, b3_ref)  # conv3 + LN + LReLU
    y = ln_lrelu(conv(y, s4_ref, w4_ref), g4_ref, b4_ref)  # conv4 + LN + LReLU

    # Fused heads: single matmul producing [adv(1) | aux(5)].
    m4 = wh_ref.shape[0]                                   # final H*W (=1 here)
    heads = jnp.zeros((1, N_HEADS), jnp.float32)
    for m in range(m4):                                    # static unroll
        heads = heads + jnp.dot(y[m:m + 1].astype(jnp.bfloat16), wh_ref[m],
                                preferred_element_type=jnp.float32)
    heads = heads + bh_ref[...]
    # sigmoid only on the aux lanes (lane >= 1); adv head stays linear.
    sig = 1.0 / (1.0 + jnp.exp(-heads))
    lane = lax.broadcasted_iota(jnp.int32, heads.shape, 1)
    heads = jnp.where(lane >= 1, sig, heads)

    o_ref[0] = heads.astype(o_ref.dtype)


# ----------------------------------------------------------------------------
# Host-side constant construction (done once, not per forward call).
# ----------------------------------------------------------------------------
def _make_tap_selectors(h, w):
    """0/1 gather matrices S[t, m, n] for a 4x4 / stride-2 / pad-1 conv.

    m = oh*OW + ow (output pixel), n = ih*W + iw (input pixel); out-of-bounds
    taps get all-zero rows, which implements the zero padding.
    """
    oh, ow = h // 2, w // 2
    s = np.zeros((N_TAPS, oh * ow, h * w), np.float32)
    for i in range(4):
        for j in range(4):
            t = i * 4 + j
            for r in range(oh):
                ih = 2 * r + i - 1
                if ih < 0 or ih >= h:
                    continue
                for c in range(ow):
                    iw = 2 * c + j - 1
                    if 0 <= iw < w:
                        s[t, r * ow + c, ih * w + iw] = 1.0
    return s


def init_params(key):
    """Parameters in PyTorch layout (deterministic)."""
    ks = jax.random.split(key, 6)
    s = IMAGE_SIZE
    feat = NDF * 8 * (s // 16) ** 2
    p = {
        "w1": 0.02 * jax.random.normal(ks[0], (NDF, N_CHANNELS, 4, 4), jnp.float32),
        "w2": 0.02 * jax.random.normal(ks[1], (NDF * 2, NDF, 4, 4), jnp.float32),
        "w3": 0.02 * jax.random.normal(ks[2], (NDF * 4, NDF * 2, 4, 4), jnp.float32),
        "w4": 0.02 * jax.random.normal(ks[3], (NDF * 8, NDF * 4, 4, 4), jnp.float32),
        # LayerNorm affine (PyTorch default init: gamma=1, beta=0)
        "g2": jnp.ones((NDF * 2, s // 4, s // 4), jnp.float32),
        "b2": jnp.zeros((NDF * 2, s // 4, s // 4), jnp.float32),
        "g3": jnp.ones((NDF * 4, s // 8, s // 8), jnp.float32),
        "b3": jnp.zeros((NDF * 4, s // 8, s // 8), jnp.float32),
        "g4": jnp.ones((NDF * 8, s // 16, s // 16), jnp.float32),
        "b4": jnp.zeros((NDF * 8, s // 16, s // 16), jnp.float32),
        "adv_w": 0.02 * jax.random.normal(ks[4], (1, feat), jnp.float32),
        "adv_b": jnp.zeros((1,), jnp.float32),
        "aux_w": 0.02 * jax.random.normal(ks[5], (N_CLASSES, feat), jnp.float32),
        "aux_b": jnp.zeros((N_CLASSES,), jnp.float32),
    }
    return p


def prepare_kernel_params(p):
    """Pre-transpose / pre-pack all parameters into the kernel layout once."""
    s = IMAGE_SIZE
    kp = {}

    def conv_w(w):
        # torch (Cout, Cin, 4, 4) -> (16, Cin, Cout), tap index t = i*4 + j
        cout, cin = w.shape[0], w.shape[1]
        return jnp.transpose(w, (2, 3, 1, 0)).reshape(N_TAPS, cin, cout).astype(jnp.bfloat16)

    def ln_aff(a):
        # torch (C, H, W) -> (H*W, C) to match the in-kernel (rows=HW, lanes=C)
        c, h, w = a.shape
        return jnp.transpose(a, (1, 2, 0)).reshape(h * w, c).astype(jnp.float32)

    kp["s1"] = jnp.asarray(_make_tap_selectors(s, s), jnp.bfloat16)
    kp["s2"] = jnp.asarray(_make_tap_selectors(s // 2, s // 2), jnp.bfloat16)
    kp["s3"] = jnp.asarray(_make_tap_selectors(s // 4, s // 4), jnp.bfloat16)
    kp["s4"] = jnp.asarray(_make_tap_selectors(s // 8, s // 8), jnp.bfloat16)

    kp["w1"], kp["w2"] = conv_w(p["w1"]), conv_w(p["w2"])
    kp["w3"], kp["w4"] = conv_w(p["w3"]), conv_w(p["w4"])
    kp["g2"], kp["b2"] = ln_aff(p["g2"]), ln_aff(p["b2"])
    kp["g3"], kp["b3"] = ln_aff(p["g3"]), ln_aff(p["b3"])
    kp["g4"], kp["b4"] = ln_aff(p["g4"]), ln_aff(p["b4"])

    # Fused head weights.  torch Linear weight is (out, feat) with feat index
    # c*M4 + m (NCHW flatten); in-kernel feature layout is (m rows, c lanes).
    c4 = NDF * 8
    m4 = (s // 16) ** 2
    w_all = jnp.concatenate([p["adv_w"], p["aux_w"]], axis=0)   # (6, feat)
    w_all = w_all.reshape(N_HEADS, c4, m4)
    kp["wh"] = jnp.transpose(w_all, (2, 1, 0)).astype(jnp.bfloat16)   # (m4, c4, 6)
    kp["bh"] = jnp.concatenate([p["adv_b"], p["aux_b"]]).reshape(1, N_HEADS).astype(jnp.float32)
    return kp


# ----------------------------------------------------------------------------
# Forward pass: one pallas_call for the whole network.
# ----------------------------------------------------------------------------
_CONST_ORDER = ["s1", "w1", "s2", "w2", "g2", "b2", "s3", "w3", "g3", "b3",
                "s4", "w4", "g4", "b4", "wh", "bh"]


def discriminator_forward(x_nchw, kp):
    b = x_nchw.shape[0]
    hw = IMAGE_SIZE * IMAGE_SIZE
    # NCHW -> (B, H*W, C): channels on the lane dim, flattened spatial on rows.
    x = jnp.transpose(x_nchw, (0, 2, 3, 1)).reshape(b, hw, N_CHANNELS)
    x = x.astype(jnp.float32)

    def const_spec(arr):
        nd = arr.ndim
        return pl.BlockSpec(arr.shape, lambda i, _nd=nd: (0,) * _nd)

    const_args = [kp[k] for k in _CONST_ORDER]
    in_specs = [pl.BlockSpec((1, hw, N_CHANNELS), lambda i: (i, 0, 0))]
    in_specs += [const_spec(a) for a in const_args]

    out = pl.pallas_call(
        _disc_kernel,
        out_shape=jax.ShapeDtypeStruct((b, 1, N_HEADS), jnp.float32),
        grid=(b,),
        in_specs=in_specs,
        out_specs=pl.BlockSpec((1, 1, N_HEADS), lambda i: (i, 0, 0)),
        compiler_params=pltpu.CompilerParams(
            dimension_semantics=("parallel",)),   # v7x: split batch across TCs
    )(x, *const_args)

    out = out[:, 0, :]
    v = out[:, 0:1]                 # adv head (no activation)
    c = out[:, 1:1 + N_CLASSES]     # aux head (sigmoid applied in-kernel)
    return v, c


# ----------------------------------------------------------------------------
if __name__ == "__main__":
    key = jax.random.PRNGKey(0)
    pkey, xkey = jax.random.split(key)

    params = init_params(pkey)
    kparams = prepare_kernel_params(params)

    batch = 2
    x = jax.random.normal(xkey, (batch, N_CHANNELS, IMAGE_SIZE, IMAGE_SIZE),
                          jnp.float32)

    fwd = jax.jit(discriminator_forward)
    v, c = fwd(x, kparams)
    jax.block_until_ready((v, c))

    assert v.shape == (batch, 1)
    assert c.shape == (batch, N_CLASSES)
    assert bool(jnp.all(jnp.isfinite(v))) and bool(jnp.all(jnp.isfinite(c)))
    assert bool(jnp.all(c >= 0.0)) and bool(jnp.all(c <= 1.0))
    print("KERNEL_OK")
</pallas_src>

<mosaic_0001>
module attributes {stable_mosaic.version = 11 : i64} {
  func.func @_disc_kernel(%arg0: i32, %arg1: memref<1x256x3xf32, #tpu.memory_space<vmem>>, %arg2: memref<16x64x256xbf16, #tpu.memory_space<vmem>>, %arg3: memref<16x3x8xbf16, #tpu.memory_space<vmem>>, %arg4: memref<16x16x64xbf16, #tpu.memory_space<vmem>>, %arg5: memref<16x8x16xbf16, #tpu.memory_space<vmem>>, %arg6: memref<16x16xf32, #tpu.memory_space<vmem>>, %arg7: memref<16x16xf32, #tpu.memory_space<vmem>>, %arg8: memref<16x4x16xbf16, #tpu.memory_space<vmem>>, %arg9: memref<16x16x32xbf16, #tpu.memory_space<vmem>>, %arg10: memref<4x32xf32, #tpu.memory_space<vmem>>, %arg11: memref<4x32xf32, #tpu.memory_space<vmem>>, %arg12: memref<16x1x4xbf16, #tpu.memory_space<vmem>>, %arg13: memref<16x32x64xbf16, #tpu.memory_space<vmem>>, %arg14: memref<1x64xf32, #tpu.memory_space<vmem>>, %arg15: memref<1x64xf32, #tpu.memory_space<vmem>>, %arg16: memref<1x64x6xbf16, #tpu.memory_space<vmem>>, %arg17: memref<1x6xf32, #tpu.memory_space<vmem>>, %arg18: memref<1x1x6xf32, #tpu.memory_space<vmem>>) attributes {dimension_semantics = [#tpu.dimension_semantics<parallel>], iteration_bounds = array<i64: 2>, scalar_prefetch = 0 : i64, scratch_operands = 0 : i64, tpu.core_type = #tpu.core_type<tc>, window_params = [{transform_indices = @transform_0, window_bounds = array<i64: 1, 256, 3>}, {pipeline_mode = #tpu.pipeline_mode<synchronous>, transform_indices = @transform_1, window_bounds = array<i64: 16, 64, 256>}, {pipeline_mode = #tpu.pipeline_mode<synchronous>, transform_indices = @transform_2, window_bounds = array<i64: 16, 3, 8>}, {pipeline_mode = #tpu.pipeline_mode<synchronous>, transform_indices = @transform_3, window_bounds = array<i64: 16, 16, 64>}, {pipeline_mode = #tpu.pipeline_mode<synchronous>, transform_indices = @transform_4, window_bounds = array<i64: 16, 8, 16>}, {pipeline_mode = #tpu.pipeline_mode<synchronous>, transform_indices = @transform_5, window_bounds = array<i64: 16, 16>}, {pipeline_mode = #tpu.pipeline_mode<synchronous>, transform_indices = @transform_6, window_bounds = array<i64: 16, 16>}, {pipeline_mode = #tpu.pipeline_mode<synchronous>, transform_indices = @transform_7, window_bounds = array<i64: 16, 4, 16>}, {pipeline_mode = #tpu.pipeline_mode<synchronous>, transform_indices = @transform_8, window_bounds = array<i64: 16, 16, 32>}, {pipeline_mode = #tpu.pipeline_mode<synchronous>, transform_indices = @transform_9, window_bounds = array<i64: 4, 32>}, {pipeline_mode = #tpu.pipeline_mode<synchronous>, transform_indices = @transform_10, window_bounds = array<i64: 4, 32>}, {pipeline_mode = #tpu.pipeline_mode<synchronous>, transform_indices = @transform_11, window_bounds = array<i64: 16, 1, 4>}, {pipeline_mode = #tpu.pipeline_mode<synchronous>, transform_indices = @transform_12, window_bounds = array<i64: 16, 32, 64>}, {pipeline_mode = #tpu.pipeline_mode<synchronous>, transform_indices = @transform_13, window_bounds = array<i64: 1, 64>}, {pipeline_mode = #tpu.pipeline_mode<synchronous>, transform_indices = @transform_14, window_bounds = array<i64: 1, 64>}, {pipeline_mode = #tpu.pipeline_mode<synchronous>, transform_indices = @transform_15, window_bounds = array<i64: 1, 64, 6>}, {pipeline_mode = #tpu.pipeline_mode<synchronous>, transform_indices = @transform_16, window_bounds = array<i64: 1, 6>}, {transform_indices = @transform_17, window_bounds = array<i64: 1, 1, 6>}]} {
    %c0 = arith.constant 0 : index
    %c0_0 = arith.constant 0 : index
    %c0_1 = arith.constant 0 : index
    %0 = vector.load %arg1[%c0, %c0_0, %c0_1] : memref<1x256x3xf32, #tpu.memory_space<vmem>>, vector<1x256x3xf32>
    %1 = vector.shape_cast %0 : vector<1x256x3xf32> to vector<256x3xf32>
    %2 = arith.truncf %1 : vector<256x3xf32> to vector<256x3xbf16>
    %cst = arith.constant 0.000000e+00 : f32
    %3 = vector.broadcast %cst : f32 to vector<64x8xf32>
    %c0_2 = arith.constant 0 : index
    %c0_3 = arith.constant 0 : index
    %c0_4 = arith.constant 0 : index
    %4 = vector.load %arg2[%c0_2, %c0_3, %c0_4] : memref<16x64x256xbf16, #tpu.memory_space<vmem>>, vector<1x64x256xbf16>
    %5 = vector.shape_cast %4 : vector<1x64x256xbf16> to vector<64x256xbf16>
    %cst_5 = arith.constant dense<0.000000e+00> : vector<64x3xf32>
    %6 = tpu.matmul %5, %2, %cst_5 {dimension_numbers = #tpu.dot_dimension_numbers<[1], [0], [0], [1], [0, 0, 1, 1], [], []>} : vector<64x256xbf16>, vector<256x3xbf16>, vector<64x3xf32> -> vector<64x3xf32>
    %7 = arith.truncf %6 : vector<64x3xf32> to vector<64x3xbf16>
    %c0_6 = arith.constant 0 : index
    %c0_7 = arith.constant 0 : index
    %c0_8 = arith.constant 0 : index
    %8 = vector.load %arg3[%c0_6, %c0_7, %c0_8] : memref<16x3x8xbf16, #tpu.memory_space<vmem>>, vector<1x3x8xbf16>
    %9 = vector.shape_cast %8 : vector<1x3x8xbf16> to vector<3x8xbf16>
    %cst_9 = arith.constant dense<0.000000e+00> : vector<64x8xf32>
    %10 = tpu.matmul %7, %9, %cst_9 {dimension_numbers = #tpu.dot_dimension_numbers<[1], [0], [0], [1], [0, 0, 1, 1], [], []>} : vector<64x3xbf16>, vector<3x8xbf16>, vector<64x8xf32> -> vector<64x8xf32>
    %11 = arith.addf %3, %10 : vector<64x8xf32>
    %c1 = arith.constant 1 : index
    %c0_10 = arith.constant 0 : index
    %c0_11 = arith.constant 0 : index
    %12 = vector.load %arg2[%c1, %c0_10, %c0_11] : memref<16x64x256xbf16, #tpu.memory_space<vmem>>, vector<1x64x256xbf16>
    %13 = vector.shape_cast %12 : vector<1x64x256xbf16> to vector<64x256xbf16>
    %cst_12 = arith.constant dense<0.000000e+00> : vector<64x3xf32>
    %14 = tpu.matmul %13, %2, %cst_12 {dimension_numbers = #tpu.dot_dimension_numbers<[1], [0], [0], [1], [0, 0, 1, 1], [], []>} : vector<64x256xbf16>, vector<256x3xbf16>, vector<64x3xf32> -> vector<64x3xf32>
    %15 = arith.truncf %14 : vector<64x3xf32> to vector<64x3xbf16>
    %c1_13 = arith.constant 1 : index
    %c0_14 = arith.constant 0 : index
    %c0_15 = arith.constant 0 : index
    %16 = vector.load %arg3[%c1_13, %c0_14, %c0_15] : memref<16x3x8xbf16, #tpu.memory_space<vmem>>, vector<1x3x8xbf16>
    %17 = vector.shape_cast %16 : vector<1x3x8xbf16> to vector<3x8xbf16>
    %cst_16 = arith.constant dense<0.000000e+00> : vector<64x8xf32>
    %18 = tpu.matmul %15, %17, %cst_16 {dimension_numbers = #tpu.dot_dimension_numbers<[1], [0], [0], [1], [0, 0, 1, 1], [], []>} : vector<64x3xbf16>, vector<3x8xbf16>, vector<64x8xf32> -> vector<64x8xf32>
    %19 = arith.addf %11, %18 : vector<64x8xf32>
    %c2 = arith.constant 2 : index
    %c0_17 = arith.constant 0 : index
    %c0_18 = arith.constant 0 : index
    %20 = vector.load %arg2[%c2, %c0_17, %c0_18] : memref<16x64x256xbf16, #tpu.memory_space<vmem>>, vector<1x64x256xbf16>
    %21 = vector.shape_cast %20 : vector<1x64x256xbf16> to vector<64x256xbf16>
    %cst_19 = arith.constant dense<0.000000e+00> : vector<64x3xf32>
    %22 = tpu.matmul %21, %2, %cst_19 {dimension_numbers = #tpu.dot_dimension_numbers<[1], [0], [0], [1], [0, 0, 1, 1], [], []>} : vector<64x256xbf16>, vector<256x3xbf16>, vector<64x3xf32> -> vector<64x3xf32>
    %23 = arith.truncf %22 : vector<64x3xf32> to vector<64x3xbf16>
    %c2_20 = arith.constant 2 : index
    %c0_21 = arith.constant 0 : index
    %c0_22 = arith.constant 0 : index
    %24 = vector.load %arg3[%c2_20, %c0_21, %c0_22] : memref<16x3x8xbf16, #tpu.memory_space<vmem>>, vector<1x3x8xbf16>
    %25 = vector.shape_cast %24 : vector<1x3x8xbf16> to vector<3x8xbf16>
    %cst_23 = arith.constant dense<0.000000e+00> : vector<64x8xf32>
    %26 = tpu.matmul %23, %25, %cst_23 {dimension_numbers = #tpu.dot_dimension_numbers<[1], [0], [0], [1], [0, 0, 1, 1], [], []>} : vector<64x3xbf16>, vector<3x8xbf16>, vector<64x8xf32> -> vector<64x8xf32>
    %27 = arith.addf %19, %26 : vector<64x8xf32>
    %c3 = arith.constant 3 : index
    %c0_24 = arith.constant 0 : index
    %c0_25 = arith.constant 0 : index
    %28 = vector.load %arg2[%c3, %c0_24, %c0_25] : memref<16x64x256xbf16, #tpu.memory_space<vmem>>, vector<1x64x256xbf16>
    %29 = vector.shape_cast %28 : vector<1x64x256xbf16> to vector<64x256xbf16>
    %cst_26 = arith.constant dense<0.000000e+00> : vector<64x3xf32>
    %30 = tpu.matmul %29, %2, %cst_26 {dimension_numbers = #tpu.dot_dimension_numbers<[1], [0], [0], [1], [0, 0, 1, 1], [], []>} : vector<64x256xbf16>, vector<256x3xbf16>, vector<64x3xf32> -> vector<64x3xf32>
    %31 = arith.truncf %30 : vector<64x3xf32> to vector<64x3xbf16>
    %c3_27 = arith.constant 3 : index
    %c0_28 = arith.constant 0 : index
    %c0_29 = arith.constant 0 : index
    %32 = vector.load %arg3[%c3_27, %c0_28, %c0_29] : memref<16x3x8xbf16, #tpu.memory_space<vmem>>, vector<1x3x8xbf16>
    %33 = vector.shape_cast %32 : vector<1x3x8xbf16> to vector<3x8xbf16>
    %cst_30 = arith.constant dense<0.000000e+00> : vector<64x8xf32>
    %34 = tpu.matmul %31, %33, %cst_30 {dimension_numbers = #tpu.dot_dimension_numbers<[1], [0], [0], [1], [0, 0, 1, 1], [], []>} : vector<64x3xbf16>, vector<3x8xbf16>, vector<64x8xf32> -> vector<64x8xf32>
    %35 = arith.addf %27, %34 : vector<64x8xf32>
    %c4 = arith.constant 4 : index
    %c0_31 = arith.constant 0 : index
    %c0_32 = arith.constant 0 : index
    %36 = vector.load %arg2[%c4, %c0_31, %c0_32] : memref<16x64x256xbf16, #tpu.memory_space<vmem>>, vector<1x64x256xbf16>
    %37 = vector.shape_cast %36 : vector<1x64x256xbf16> to vector<64x256xbf16>
    %cst_33 = arith.constant dense<0.000000e+00> : vector<64x3xf32>
    %38 = tpu.matmul %37, %2, %cst_33 {dimension_numbers = #tpu.dot_dimension_numbers<[1], [0], [0], [1], [0, 0, 1, 1], [], []>} : vector<64x256xbf16>, vector<256x3xbf16>, vector<64x3xf32> -> vector<64x3xf32>
    %39 = arith.truncf %38 : vector<64x3xf32> to vector<64x3xbf16>
    %c4_34 = arith.constant 4 : index
    %c0_35 = arith.constant 0 : index
    %c0_36 = arith.constant 0 : index
    %40 = vector.load %arg3[%c4_34, %c0_35, %c0_36] : memref<16x3x8xbf16, #tpu.memory_space<vmem>>, vector<1x3x8xbf16>
    %41 = vector.shape_cast %40 : vector<1x3x8xbf16> to vector<3x8xbf16>
    %cst_37 = arith.constant dense<0.000000e+00> : vector<64x8xf32>
    %42 = tpu.matmul %39, %41, %cst_37 {dimension_numbers = #tpu.dot_dimension_numbers<[1], [0], [0], [1], [0, 0, 1, 1], [], []>} : vector<64x3xbf16>, vector<3x8xbf16>, vector<64x8xf32> -> vector<64x8xf32>
    %43 = arith.addf %35, %42 : vector<64x8xf32>
    %c5 = arith.constant 5 : index
    %c0_38 = arith.constant 0 : index
    %c0_39 = arith.constant 0 : index
    %44 = vector.load %arg2[%c5, %c0_38, %c0_39] : memref<16x64x256xbf16, #tpu.memory_space<vmem>>, vector<1x64x256xbf16>
    %45 = vector.shape_cast %44 : vector<1x64x256xbf16> to vector<64x256xbf16>
    %cst_40 = arith.constant dense<0.000000e+00> : vector<64x3xf32>
    %46 = tpu.matmul %45, %2, %cst_40 {dimension_numbers = #tpu.dot_dimension_numbers<[1], [0], [0], [1], [0, 0, 1, 1], [], []>} : vector<64x256xbf16>, vector<256x3xbf16>, vector<64x3xf32> -> vector<64x3xf32>
    %47 = arith.truncf %46 : vector<64x3xf32> to vector<64x3xbf16>
    %c5_41 = arith.constant 5 : index
    %c0_42 = arith.constant 0 : index
    %c0_43 = arith.constant 0 : index
    %48 = vector.load %arg3[%c5_41, %c0_42, %c0_43] : memref<16x3x8xbf16, #tpu.memory_space<vmem>>, vector<1x3x8xbf16>
    %49 = vector.shape_cast %48 : vector<1x3x8xbf16> to vector<3x8xbf16>
    %cst_44 = arith.constant dense<0.000000e+00> : vector<64x8xf32>
    %50 = tpu.matmul %47, %49, %cst_44 {dimension_numbers = #tpu.dot_dimension_numbers<[1], [0], [0], [1], [0, 0, 1, 1], [], []>} : vector<64x3xbf16>, vector<3x8xbf16>, vector<64x8xf32> -> vector<64x8xf32>
    %51 = arith.addf %43, %50 : vector<64x8xf32>
    %c6 = arith.constant 6 : index
    %c0_45 = arith.constant 0 : index
    %c0_46 = arith.constant 0 : index
    %52 = vector.load %arg2[%c6, %c0_45, %c0_46] : memref<16x64x256xbf16, #tpu.memory_space<vmem>>, vector<1x64x256xbf16>
    %53 = vector.shape_cast %52 : vector<1x64x256xbf16> to vector<64x256xbf16>
    %cst_47 = arith.constant dense<0.000000e+00> : vector<64x3xf32>
    %54 = tpu.matmul %53, %2, %cst_47 {dimension_numbers = #tpu.dot_dimension_numbers<[1], [0], [0], [1], [0, 0, 1, 1], [], []>} : vector<64x256xbf16>, vector<256x3xbf16>, vector<64x3xf32> -> vector<64x3xf32>
    %55 = arith.truncf %54 : vector<64x3xf32> to vector<64x3xbf16>
    %c6_48 = arith.constant 6 : index
    %c0_49 = arith.constant 0 : index
    %c0_50 = arith.constant 0 : index
    %56 = vector.load %arg3[%c6_48, %c0_49, %c0_50] : memref<16x3x8xbf16, #tpu.memory_space<vmem>>, vector<1x3x8xbf16>
    %57 = vector.shape_cast %56 : vector<1x3x8xbf16> to vector<3x8xbf16>
    %cst_51 = arith.constant dense<0.000000e+00> : vector<64x8xf32>
    %58 = tpu.matmul %55, %57, %cst_51 {dimension_numbers = #tpu.dot_dimension_numbers<[1], [0], [0], [1], [0, 0, 1, 1], [], []>} : vector<64x3xbf16>, vector<3x8xbf16>, vector<64x8xf32> -> vector<64x8xf32>
    %59 = arith.addf %51, %58 : vector<64x8xf32>
    %c7 = arith.constant 7 : index
    %c0_52 = arith.constant 0 : index
    %c0_53 = arith.constant 0 : index
    %60 = vector.load %arg2[%c7, %c0_52, %c0_53] : memref<16x64x256xbf16, #tpu.memory_space<vmem>>, vector<1x64x256xbf16>
    %61 = vector.shape_cast %60 : vector<1x64x256xbf16> to vector<64x256xbf16>
    %cst_54 = arith.constant dense<0.000000e+00> : vector<64x3xf32>
    %62 = tpu.matmul %61, %2, %cst_54 {dimension_numbers = #tpu.dot_dimension_numbers<[1], [0], [0], [1], [0, 0, 1, 1], [], []>} : vector<64x256xbf16>, vector<256x3xbf16>, vector<64x3xf32> -> vector<64x3xf32>
    %63 = arith.truncf %62 : vector<64x3xf32> to vector<64x3xbf16>
    %c7_55 = arith.constant 7 : index
    %c0_56 = arith.constant 0 : index
    %c0_57 = arith.constant 0 : index
    %64 = vector.load %arg3[%c7_55, %c0_56, %c0_57] : memref<16x3x8xbf16, #tpu.memory_space<vmem>>, vector<1x3x8xbf16>
    %65 = vector.shape_cast %64 : vector<1x3x8xbf16> to vector<3x8xbf16>
    %cst_58 = arith.constant dense<0.000000e+00> : vector<64x8xf32>
    %66 = tpu.matmul %63, %65, %cst_58 {dimension_numbers = #tpu.dot_dimension_numbers<[1], [0], [0], [1], [0, 0, 1, 1], [], []>} : vector<64x3xbf16>, vector<3x8xbf16>, vector<64x8xf32> -> vector<64x8xf32>
    %67 = arith.addf %59, %66 : vector<64x8xf32>
    %c8 = arith.constant 8 : index
    %c0_59 = arith.constant 0 : index
    %c0_60 = arith.constant 0 : index
    %68 = vector.load %arg2[%c8, %c0_59, %c0_60] : memref<16x64x256xbf16, #tpu.memory_space<vmem>>, vector<1x64x256xbf16>
    %69 = vector.shape_cast %68 : vector<1x64x256xbf16> to vector<64x256xbf16>
    %cst_61 = arith.constant dense<0.000000e+00> : vector<64x3xf32>
    %70 = tpu.matmul %69, %2, %cst_61 {dimension_numbers = #tpu.dot_dimension_numbers<[1], [0], [0], [1], [0, 0, 1, 1], [], []>} : vector<64x256xbf16>, vector<256x3xbf16>, vector<64x3xf32> -> vector<64x3xf32>
    %71 = arith.truncf %70 : vector<64x3xf32> to vector<64x3xbf16>
    %c8_62 = arith.constant 8 : index
    %c0_63 = arith.constant 0 : index
    %c0_64 = arith.constant 0 : index
    %72 = vector.load %arg3[%c8_62, %c0_63, %c0_64] : memref<16x3x8xbf16, #tpu.memory_space<vmem>>, vector<1x3x8xbf16>
    %73 = vector.shape_cast %72 : vector<1x3x8xbf16> to vector<3x8xbf16>
    %cst_65 = arith.constant dense<0.000000e+00> : vector<64x8xf32>
    %74 = tpu.matmul %71, %73, %cst_65 {dimension_numbers = #tpu.dot_dimension_numbers<[1], [0], [0], [1], [0, 0, 1, 1], [], []>} : vector<64x3xbf16>, vector<3x8xbf16>, vector<64x8xf32> -> vector<64x8xf32>
    %75 = arith.addf %67, %74 : vector<64x8xf32>
    %c9 = arith.constant 9 : index
    %c0_66 = arith.constant 0 : index
    %c0_67 = arith.constant 0 : index
    %76 = vector.load %arg2[%c9, %c0_66, %c0_67] : memref<16x64x256xbf16, #tpu.memory_space<vmem>>, vector<1x64x256xbf16>
    %77 = vector.shape_cast %76 : vector<1x64x256xbf16> to vector<64x256xbf16>
    %cst_68 = arith.constant dense<0.000000e+00> : vector<64x3xf32>
    %78 = tpu.matmul %77, %2, %cst_68 {dimension_numbers = #tpu.dot_dimension_numbers<[1], [0], [0], [1], [0, 0, 1, 1], [], []>} : vector<64x256xbf16>, vector<256x3xbf16>, vector<64x3xf32> -> vector<64x3xf32>
    %79 = arith.truncf %78 : vector<64x3xf32> to vector<64x3xbf16>
    %c9_69 = arith.constant 9 : index
    %c0_70 = arith.constant 0 : index
    %c0_71 = arith.constant 0 : index
    %80 = vector.load %arg3[%c9_69, %c0_70, %c0_71] : memref<16x3x8xbf16, #tpu.memory_space<vmem>>, vector<1x3x8xbf16>
    %81 = vector.shape_cast %80 : vector<1x3x8xbf16> to vector<3x8xbf16>
    %cst_72 = arith.constant dense<0.000000e+00> : vector<64x8xf32>
    %82 = tpu.matmul %79, %81, %cst_72 {dimension_numbers = #tpu.dot_dimension_numbers<[1], [0], [0], [1], [0, 0, 1, 1], [], []>} : vector<64x3xbf16>, vector<3x8xbf16>, vector<64x8xf32> -> vector<64x8xf32>
    %83 = arith.addf %75, %82 : vector<64x8xf32>
    %c10 = arith.constant 10 : index
    %c0_73 = arith.constant 0 : index
    %c0_74 = arith.constant 0 : index
    %84 = vector.load %arg2[%c10, %c0_73, %c0_74] : memref<16x64x256xbf16, #tpu.memory_space<vmem>>, vector<1x64x256xbf16>
    %85 = vector.shape_cast %84 : vector<1x64x256xbf16> to vector<64x256xbf16>
    %cst_75 = arith.constant dense<0.000000e+00> : vector<64x3xf32>
    %86 = tpu.matmul %85, %2, %cst_75 {dimension_numbers = #tpu.dot_dimension_numbers<[1], [0], [0], [1], [0, 0, 1, 1], [], []>} : vector<64x256xbf16>, vector<256x3xbf16>, vector<64x3xf32> -> vector<64x3xf32>
    %87 = arith.truncf %86 : vector<64x3xf32> to vector<64x3xbf16>
    %c10_76 = arith.constant 10 : index
    %c0_77 = arith.constant 0 : index
    %c0_78 = arith.constant 0 : index
    %88 = vector.load %arg3[%c10_76, %c0_77, %c0_78] : memref<16x3x8xbf16, #tpu.memory_space<vmem>>, vector<1x3x8xbf16>
    %89 = vector.shape_cast %88 : vector<1x3x8xbf16> to vector<3x8xbf16>
    %cst_79 = arith.constant dense<0.000000e+00> : vector<64x8xf32>
    %90 = tpu.matmul %87, %89, %cst_79 {dimension_numbers = #tpu.dot_dimension_numbers<[1], [0], [0], [1], [0, 0, 1, 1], [], []>} : vector<64x3xbf16>, vector<3x8xbf16>, vector<64x8xf32> -> vector<64x8xf32>
    %91 = arith.addf %83, %90 : vector<64x8xf32>
    %c11 = arith.constant 11 : index
    %c0_80 = arith.constant 0 : index
    %c0_81 = arith.constant 0 : index
    %92 = vector.load %arg2[%c11, %c0_80, %c0_81] : memref<16x64x256xbf16, #tpu.memory_space<vmem>>, vector<1x64x256xbf16>
    %93 = vector.shape_cast %92 : vector<1x64x256xbf16> to vector<64x256xbf16>
    %cst_82 = arith.constant dense<0.000000e+00> : vector<64x3xf32>
    %94 = tpu.matmul %93, %2, %cst_82 {dimension_numbers = #tpu.dot_dimension_numbers<[1], [0], [0], [1], [0, 0, 1, 1], [], []>} : vector<64x256xbf16>, vector<256x3xbf16>, vector<64x3xf32> -> vector<64x3xf32>
    %95 = arith.truncf %94 : vector<64x3xf32> to vector<64x3xbf16>
    %c11_83 = arith.constant 11 : index
    %c0_84 = arith.constant 0 : index
    %c0_85 = arith.constant 0 : index
    %96 = vector.load %arg3[%c11_83, %c0_84, %c0_85] : memref<16x3x8xbf16, #tpu.memory_space<vmem>>, vector<1x3x8xbf16>
    %97 = vector.shape_cast %96 : vector<1x3x8xbf16> to vector<3x8xbf16>
    %cst_86 = arith.constant dense<0.000000e+00> : vector<64x8xf32>
    %98 = tpu.matmul %95, %97, %cst_86 {dimension_numbers = #tpu.dot_dimension_numbers<[1], [0], [0], [1], [0, 0, 1, 1], [], []>} : vector<64x3xbf16>, vector<3x8xbf16>, vector<64x8xf32> -> vector<64x8xf32>
    %99 = arith.addf %91, %98 : vector<64x8xf32>
    %c12 = arith.constant 12 : index
    %c0_87 = arith.constant 0 : index
    %c0_88 = arith.constant 0 : index
    %100 = vector.load %arg2[%c12, %c0_87, %c0_88] : memref<16x64x256xbf16, #tpu.memory_space<vmem>>, vector<1x64x256xbf16>
    %101 = vector.shape_cast %100 : vector<1x64x256xbf16> to vector<64x256xbf16>
    %cst_89 = arith.constant dense<0.000000e+00> : vector<64x3xf32>
    %102 = tpu.matmul %101, %2, %cst_89 {dimension_numbers = #tpu.dot_dimension_numbers<[1], [0], [0], [1], [0, 0, 1, 1], [], []>} : vector<64x256xbf16>, vector<256x3xbf16>, vector<64x3xf32> -> vector<64x3xf32>
    %103 = arith.truncf %102 : vector<64x3xf32> to vector<64x3xbf16>
    %c12_90 = arith.constant 12 : index
    %c0_91 = arith.constant 0 : index
    %c0_92 = arith.constant 0 : index
    %104 = vector.load %arg3[%c12_90, %c0_91, %c0_92] : memref<16x3x8xbf16, #tpu.memory_space<vmem>>, vector<1x3x8xbf16>
    %105 = vector.shape_cast %104 : vector<1x3x8xbf16> to vector<3x8xbf16>
    %cst_93 = arith.constant dense<0.000000e+00> : vector<64x8xf32>
    %106 = tpu.matmul %103, %105, %cst_93 {dimension_numbers = #tpu.dot_dimension_numbers<[1], [0], [0], [1], [0, 0, 1, 1], [], []>} : vector<64x3xbf16>, vector<3x8xbf16>, vector<64x8xf32> -> vector<64x8xf32>
    %107 = arith.addf %99, %106 : vector<64x8xf32>
    %c13 = arith.constant 13 : index
    %c0_94 = arith.constant 0 : index
    %c0_95 = arith.constant 0 : index
    %108 = vector.load %arg2[%c13, %c0_94, %c0_95] : memref<16x64x256xbf16, #tpu.memory_space<vmem>>, vector<1x64x256xbf16>
    %109 = vector.shape_cast %108 : vector<1x64x256xbf16> to vector<64x256xbf16>
    %cst_96 = arith.constant dense<0.000000e+00> : vector<64x3xf32>
    %110 = tpu.matmul %109, %2, %cst_96 {dimension_numbers = #tpu.dot_dimension_numbers<[1], [0], [0], [1], [0, 0, 1, 1], [], []>} : vector<64x256xbf16>, vector<256x3xbf16>, vector<64x3xf32> -> vector<64x3xf32>
    %111 = arith.truncf %110 : vector<64x3xf32> to vector<64x3xbf16>
    %c13_97 = arith.constant 13 : index
    %c0_98 = arith.constant 0 : index
    %c0_99 = arith.constant 0 : index
    %112 = vector.load %arg3[%c13_97, %c0_98, %c0_99] : memref<16x3x8xbf16, #tpu.memory_space<vmem>>, vector<1x3x8xbf16>
    %113 = vector.shape_cast %112 : vector<1x3x8xbf16> to vector<3x8xbf16>
    %cst_100 = arith.constant dense<0.000000e+00> : vector<64x8xf32>
    %114 = tpu.matmul %111, %113, %cst_100 {dimension_numbers = #tpu.dot_dimension_numbers<[1], [0], [0], [1], [0, 0, 1, 1], [], []>} : vector<64x3xbf16>, vector<3x8xbf16>, vector<64x8xf32> -> vector<64x8xf32>
    %115 = arith.addf %107, %114 : vector<64x8xf32>
    %c14 = arith.constant 14 : index
    %c0_101 = arith.constant 0 : index
    %c0_102 = arith.constant 0 : index
    %116 = vector.load %arg2[%c14, %c0_101, %c0_102] : memref<16x64x256xbf16, #tpu.memory_space<vmem>>, vector<1x64x256xbf16>
    %117 = vector.shape_cast %116 : vector<1x64x256xbf16> to vector<64x256xbf16>
    %cst_103 = arith.constant dense<0.000000e+00> : vector<64x3xf32>
    %118 = tpu.matmul %117, %2, %cst_103 {dimension_numbers = #tpu.dot_dimension_numbers<[1], [0], [0], [1], [0, 0, 1, 1], [], []>} : vector<64x256xbf16>, vector<256x3xbf16>, vector<64x3xf32> -> vector<64x3xf32>
    %119 = arith.truncf %118 : vector<64x3xf32> to vector<64x3xbf16>
    %c14_104 = arith.constant 14 : index
    %c0_105 = arith.constant 0 : index
    %c0_106 = arith.constant 0 : index
    %120 = vector.load %arg3[%c14_104, %c0_105, %c0_106] : memref<16x3x8xbf16, #tpu.memory_space<vmem>>, vector<1x3x8xbf16>
    %121 = vector.shape_cast %120 : vector<1x3x8xbf16> to vector<3x8xbf16>
    %cst_107 = arith.constant dense<0.000000e+00> : vector<64x8xf32>
    %122 = tpu.matmul %119, %121, %cst_107 {dimension_numbers = #tpu.dot_dimension_numbers<[1], [0], [0], [1], [0, 0, 1, 1], [], []>} : vector<64x3xbf16>, vector<3x8xbf16>, vector<64x8xf32> -> vector<64x8xf32>
    %123 = arith.addf %115, %122 : vector<64x8xf32>
    %c15 = arith.constant 15 : index
    %c0_108 = arith.constant 0 : index
    %c0_109 = arith.constant 0 : index
    %124 = vector.load %arg2[%c15, %c0_108, %c0_109] : memref<16x64x256xbf16, #tpu.memory_space<vmem>>, vector<1x64x256xbf16>
    %125 = vector.shape_cast %124 : vector<1x64x256xbf16> to vector<64x256xbf16>
    %cst_110 = arith.constant dense<0.000000e+00> : vector<64x3xf32>
    %126 = tpu.matmul %125, %2, %cst_110 {dimension_numbers = #tpu.dot_dimension_numbers<[1], [0], [0], [1], [0, 0, 1, 1], [], []>} : vector<64x256xbf16>, vector<256x3xbf16>, vector<64x3xf32> -> vector<64x3xf32>
    %127 = arith.truncf %126 : vector<64x3xf32> to vector<64x3xbf16>
    %c15_111 = arith.constant 15 : index
    %c0_112 = arith.constant 0 : index
    %c0_113 = arith.constant 0 : index
    %128 = vector.load %arg3[%c15_111, %c0_112, %c0_113] : memref<16x3x8xbf16, #tpu.memory_space<vmem>>, vector<1x3x8xbf16>
    %129 = vector.shape_cast %128 : vector<1x3x8xbf16> to vector<3x8xbf16>
    %cst_114 = arith.constant dense<0.000000e+00> : vector<64x8xf32>
    %130 = tpu.matmul %127, %129, %cst_114 {dimension_numbers = #tpu.dot_dimension_numbers<[1], [0], [0], [1], [0, 0, 1, 1], [], []>} : vector<64x3xbf16>, vector<3x8xbf16>, vector<64x8xf32> -> vector<64x8xf32>
    %131 = arith.addf %123, %130 : vector<64x8xf32>
    %cst_115 = arith.constant 0.000000e+00 : f32
    %132 = vector.broadcast %cst_115 : f32 to vector<64x8xf32>
    %133 = arith.cmpf ogt, %131, %132 : vector<64x8xf32>
    %cst_116 = arith.constant 2.000000e-01 : f32
    %134 = vector.broadcast %cst_116 : f32 to vector<64x8xf32>
    %135 = arith.mulf %134, %131 : vector<64x8xf32>
    %136 = arith.select %133, %131, %135 : vector<64x8xi1>, vector<64x8xf32>
    %137 = arith.truncf %136 : vector<64x8xf32> to vector<64x8xbf16>
    %cst_117 = arith.constant 0.000000e+00 : f32
    %138 = vector.broadcast %cst_117 : f32 to vector<16x16xf32>
    %c0_118 = arith.constant 0 : index
    %c0_119 = arith.constant 0 : index
    %c0_120 = arith.constant 0 : index
    %139 = vector.load %arg4[%c0_118, %c0_119, %c0_120] : memref<16x16x64xbf16, #tpu.memory_space<vmem>>, vector<1x16x64xbf16>
    %140 = vector.shape_cast %139 : vector<1x16x64xbf16> to vector<16x64xbf16>
    %cst_121 = arith.constant dense<0.000000e+00> : vector<16x8xf32>
    %141 = tpu.matmul %140, %137, %cst_121 {dimension_numbers = #tpu.dot_dimension_numbers<[1], [0], [0], [1], [0, 0, 1, 1], [], []>} : vector<16x64xbf16>, vector<64x8xbf16>, vector<16x8xf32> -> vector<16x8xf32>
    %142 = arith.truncf %141 : vector<16x8xf32> to vector<16x8xbf16>
    %c0_122 = arith.constant 0 : index
    %c0_123 = arith.constant 0 : index
    %c0_124 = arith.constant 0 : index
    %143 = vector.load %arg5[%c0_122, %c0_123, %c0_124] : memref<16x8x16xbf16, #tpu.memory_space<vmem>>, vector<1x8x16xbf16>
    %144 = vector.shape_cast %143 : vector<1x8x16xbf16> to vector<8x16xbf16>
    %cst_125 = arith.constant dense<0.000000e+00> : vector<16x16xf32>
    %145 = tpu.matmul %142, %144, %cst_125 {dimension_numbers = #tpu.dot_dimension_numbers<[1], [0], [0], [1], [0, 0, 1, 1], [], []>} : vector<16x8xbf16>, vector<8x16xbf16>, vector<16x16xf32> -> vector<16x16xf32>
    %146 = arith.addf %138, %145 : vector<16x16xf32>
    %c1_126 = arith.constant 1 : index
    %c0_127 = arith.constant 0 : index
    %c0_128 = arith.constant 0 : index
    %147 = vector.load %arg4[%c1_126, %c0_127, %c0_128] : memref<16x16x64xbf16, #tpu.memory_space<vmem>>, vector<1x16x64xbf16>
    %148 = vector.shape_cast %147 : vector<1x16x64xbf16> to vector<16x64xbf16>
    %cst_129 = arith.constant dense<0.000000e+00> : vector<16x8xf32>
    %149 = tpu.matmul %148, %137, %cst_129 {dimension_numbers = #tpu.dot_dimension_numbers<[1], [0], [0], [1], [0, 0, 1, 1], [], []>} : vector<16x64xbf16>, vector<64x8xbf16>, vector<16x8xf32> -> vector<16x8xf32>
    %150 = arith.truncf %149 : vector<16x8xf32> to vector<16x8xbf16>
    %c1_130 = arith.constant 1 : index
    %c0_131 = arith.constant 0 : index
    %c0_132 = arith.constant 0 : index
    %151 = vector.load %arg5[%c1_130, %c0_131, %c0_132] : memref<16x8x16xbf16, #tpu.memory_space<vmem>>, vector<1x8x16xbf16>
    %152 = vector.shape_cast %151 : vector<1x8x16xbf16> to vector<8x16xbf16>
    %cst_133 = arith.constant dense<0.000000e+00> : vector<16x16xf32>
    %153 = tpu.matmul %150, %152, %cst_133 {dimension_numbers = #tpu.dot_dimension_numbers<[1], [0], [0], [1], [0, 0, 1, 1], [], []>} : vector<16x8xbf16>, vector<8x16xbf16>, vector<16x16xf32> -> vector<16x16xf32>
    %154 = arith.addf %146, %153 : vector<16x16xf32>
    %c2_134 = arith.constant 2 : index
    %c0_135 = arith.constant 0 : index
    %c0_136 = arith.constant 0 : index
    %155 = vector.load %arg4[%c2_134, %c0_135, %c0_136] : memref<16x16x64xbf16, #tpu.memory_space<vmem>>, vector<1x16x64xbf16>
    %156 = vector.shape_cast %155 : vector<1x16x64xbf16> to vector<16x64xbf16>
    %cst_137 = arith.constant dense<0.000000e+00> : vector<16x8xf32>
    %157 = tpu.matmul %156, %137, %cst_137 {dimension_numbers = #tpu.dot_dimension_numbers<[1], [0], [0], [1], [0, 0, 1, 1], [], []>} : vector<16x64xbf16>, vector<64x8xbf16>, vector<16x8xf32> -> vector<16x8xf32>
    %158 = arith.truncf %157 : vector<16x8xf32> to vector<16x8xbf16>
    %c2_138 = arith.constant 2 : index
    %c0_139 = arith.constant 0 : index
    %c0_140 = arith.constant 0 : index
    %159 = vector.load %arg5[%c2_138, %c0_139, %c0_140] : memref<16x8x16xbf16, #tpu.memory_space<vmem>>, vector<1x8x16xbf16>
    %160 = vector.shape_cast %159 : vector<1x8x16xbf16> to vector<8x16xbf16>
    %cst_141 = arith.constant dense<0.000000e+00> : vector<16x16xf32>
    %161 = tpu.matmul %158, %160, %cst_141 {dimension_numbers = #tpu.dot_dimension_numbers<[1], [0], [0], [1], [0, 0, 1, 1], [], []>} : vector<16x8xbf16>, vector<8x16xbf16>, vector<16x16xf32> -> vector<16x16xf32>
    %162 = arith.addf %154, %161 : vector<16x16xf32>
    %c3_142 = arith.constant 3 : index
    %c0_143 = arith.constant 0 : index
    %c0_144 = arith.constant 0 : index
    %163 = vector.load %arg4[%c3_142, %c0_143, %c0_144] : memref<16x16x64xbf16, #tpu.memory_space<vmem>>, vector<1x16x64xbf16>
    %164 = vector.shape_cast %163 : vector<1x16x64xbf16> to vector<16x64xbf16>
    %cst_145 = arith.constant dense<0.000000e+00> : vector<16x8xf32>
    %165 = tpu.matmul %164, %137, %cst_145 {dimension_numbers = #tpu.dot_dimension_numbers<[1], [0], [0], [1], [0, 0, 1, 1], [], []>} : vector<16x64xbf16>, vector<64x8xbf16>, vector<16x8xf32> -> vector<16x8xf32>
    %166 = arith.truncf %165 : vector<16x8xf32> to vector<16x8xbf16>
    %c3_146 = arith.constant 3 : index
    %c0_147 = arith.constant 0 : index
    %c0_148 = arith.constant 0 : index
    %167 = vector.load %arg5[%c3_146, %c0_147, %c0_148] : memref<16x8x16xbf16, #tpu.memory_space<vmem>>, vector<1x8x16xbf16>
    %168 = vector.shape_cast %167 : vector<1x8x16xbf16> to vector<8x16xbf16>
    %cst_149 = arith.constant dense<0.000000e+00> : vector<16x16xf32>
    %169 = tpu.matmul %166, %168, %cst_149 {dimension_numbers = #tpu.dot_dimension_numbers<[1], [0], [0], [1], [0, 0, 1, 1], [], []>} : vector<16x8xbf16>, vector<8x16xbf16>, vector<16x16xf32> -> vector<16x16xf32>
    %170 = arith.addf %162, %169 : vector<16x16xf32>
    %c4_150 = arith.constant 4 : index
    %c0_151 = arith.constant 0 : index
    %c0_152 = arith.constant 0 : index
    %171 = vector.load %arg4[%c4_150, %c0_151, %c0_152] : memref<16x16x64xbf16, #tpu.memory_space<vmem>>, vector<1x16x64xbf16>
    %172 = vector.shape_cast %171 : vector<1x16x64xbf16> to vector<16x64xbf16>
    %cst_153 = arith.constant dense<0.000000e+00> : vector<16x8xf32>
    %173 = tpu.matmul %172, %137, %cst_153 {dimension_numbers = #tpu.dot_dimension_numbers<[1], [0], [0], [1], [0, 0, 1, 1], [], []>} : vector<16x64xbf16>, vector<64x8xbf16>, vector<16x8xf32> -> vector<16x8xf32>
    %174 = arith.truncf %173 : vector<16x8xf32> to vector<16x8xbf16>
    %c4_154 = arith.constant 4 : index
    %c0_155 = arith.constant 0 : index
    %c0_156 = arith.constant 0 : index
    %175 = vector.load %arg5[%c4_154, %c0_155, %c0_156] : memref<16x8x16xbf16, #tpu.memory_space<vmem>>, vector<1x8x16xbf16>
    %176 = vector.shape_cast %175 : vector<1x8x16xbf16> to vector<8x16xbf16>
    %cst_157 = arith.constant dense<0.000000e+00> : vector<16x16xf32>
    %177 = tpu.matmul %174, %176, %cst_157 {dimension_numbers = #tpu.dot_dimension_numbers<[1], [0], [0], [1], [0, 0, 1, 1], [], []>} : vector<16x8xbf16>, vector<8x16xbf16>, vector<16x16xf32> -> vector<16x16xf32>
    %178 = arith.addf %170, %177 : vector<16x16xf32>
    %c5_158 = arith.constant 5 : index
    %c0_159 = arith.constant 0 : index
    %c0_160 = arith.constant 0 : index
    %179 = vector.load %arg4[%c5_158, %c0_159, %c0_160] : memref<16x16x64xbf16, #tpu.memory_space<vmem>>, vector<1x16x64xbf16>
    %180 = vector.shape_cast %179 : vector<1x16x64xbf16> to vector<16x64xbf16>
    %cst_161 = arith.constant dense<0.000000e+00> : vector<16x8xf32>
    %181 = tpu.matmul %180, %137, %cst_161 {dimension_numbers = #tpu.dot_dimension_numbers<[1], [0], [0], [1], [0, 0, 1, 1], [], []>} : vector<16x64xbf16>, vector<64x8xbf16>, vector<16x8xf32> -> vector<16x8xf32>
    %182 = arith.truncf %181 : vector<16x8xf32> to vector<16x8xbf16>
    %c5_162 = arith.constant 5 : index
    %c0_163 = arith.constant 0 : index
    %c0_164 = arith.constant 0 : index
    %183 = vector.load %arg5[%c5_162, %c0_163, %c0_164] : memref<16x8x16xbf16, #tpu.memory_space<vmem>>, vector<1x8x16xbf16>
    %184 = vector.shape_cast %183 : vector<1x8x16xbf16> to vector<8x16xbf16>
    %cst_165 = arith.constant dense<0.000000e+00> : vector<16x16xf32>
    %185 = tpu.matmul %182, %184, %cst_165 {dimension_numbers = #tpu.dot_dimension_numbers<[1], [0], [0], [1], [0, 0, 1, 1], [], []>} : vector<16x8xbf16>, vector<8x16xbf16>, vector<16x16xf32> -> vector<16x16xf32>
    %186 = arith.addf %178, %185 : vector<16x16xf32>
    %c6_166 = arith.constant 6 : index
    %c0_167 = arith.constant 0 : index
    %c0_168 = arith.constant 0 : index
    %187 = vector.load %arg4[%c6_166, %c0_167, %c0_168] : memref<16x16x64xbf16, #tpu.memory_space<vmem>>, vector<1x16x64xbf16>
    %188 = vector.shape_cast %187 : vector<1x16x64xbf16> to vector<16x64xbf16>
    %cst_169 = arith.constant dense<0.000000e+00> : vector<16x8xf32>
    %189 = tpu.matmul %188, %137, %cst_169 {dimension_numbers = #tpu.dot_dimension_numbers<[1], [0], [0], [1], [0, 0, 1, 1], [], []>} : vector<16x64xbf16>, vector<64x8xbf16>, vector<16x8xf32> -> vector<16x8xf32>
    %190 = arith.truncf %189 : vector<16x8xf32> to vector<16x8xbf16>
    %c6_170 = arith.constant 6 : index
    %c0_171 = arith.constant 0 : index
    %c0_172 = arith.constant 0 : index
    %191 = vector.load %arg5[%c6_170, %c0_171, %c0_172] : memref<16x8x16xbf16, #tpu.memory_space<vmem>>, vector<1x8x16xbf16>
    %192 = vector.shape_cast %191 : vector<1x8x16xbf16> to vector<8x16xbf16>
    %cst_173 = arith.constant dense<0.000000e+00> : vector<16x16xf32>
    %193 = tpu.matmul %190, %192, %cst_173 {dimension_numbers = #tpu.dot_dimension_numbers<[1], [0], [0], [1], [0, 0, 1, 1], [], []>} : vector<16x8xbf16>, vector<8x16xbf16>, vector<16x16xf32> -> vector<16x16xf32>
    %194 = arith.addf %186, %193 : vector<16x16xf32>
    %c7_174 = arith.constant 7 : index
    %c0_175 = arith.constant 0 : index
    %c0_176 = arith.constant 0 : index
    %195 = vector.load %arg4[%c7_174, %c0_175, %c0_176] : memref<16x16x64xbf16, #tpu.memory_space<vmem>>, vector<1x16x64xbf16>
    %196 = vector.shape_cast %195 : vector<1x16x64xbf16> to vector<16x64xbf16>
    %cst_177 = arith.constant dense<0.000000e+00> : vector<16x8xf32>
    %197 = tpu.matmul %196, %137, %cst_177 {dimension_numbers = #tpu.dot_dimension_numbers<[1], [0], [0], [1], [0, 0, 1, 1], [], []>} : vector<16x64xbf16>, vector<64x8xbf16>, vector<16x8xf32> -> vector<16x8xf32>
    %198 = arith.truncf %197 : vector<16x8xf32> to vector<16x8xbf16>
    %c7_178 = arith.constant 7 : index
    %c0_179 = arith.constant 0 : index
    %c0_180 = arith.constant 0 : index
    %199 = vector.load %arg5[%c7_178, %c0_179, %c0_180] : memref<16x8x16xbf16, #tpu.memory_space<vmem>>, vector<1x8x16xbf16>
    %200 = vector.shape_cast %199 : vector<1x8x16xbf16> to vector<8x16xbf16>
    %cst_181 = arith.constant dense<0.000000e+00> : vector<16x16xf32>
    %201 = tpu.matmul %198, %200, %cst_181 {dimension_numbers = #tpu.dot_dimension_numbers<[1], [0], [0], [1], [0, 0, 1, 1], [], []>} : vector<16x8xbf16>, vector<8x16xbf16>, vector<16x16xf32> -> vector<16x16xf32>
    %202 = arith.addf %194, %201 : vector<16x16xf32>
    %c8_182 = arith.constant 8 : index
    %c0_183 = arith.constant 0 : index
    %c0_184 = arith.constant 0 : index
    %203 = vector.load %arg4[%c8_182, %c0_183, %c0_184] : memref<16x16x64xbf16, #tpu.memory_space<vmem>>, vector<1x16x64xbf16>
    %204 = vector.shape_cast %203 : vector<1x16x64xbf16> to vector<16x64xbf16>
    %cst_185 = arith.constant dense<0.000000e+00> : vector<16x8xf32>
    %205 = tpu.matmul %204, %137, %cst_185 {dimension_numbers = #tpu.dot_dimension_numbers<[1], [0], [0], [1], [0, 0, 1, 1], [], []>} : vector<16x64xbf16>, vector<64x8xbf16>, vector<16x8xf32> -> vector<16x8xf32>
    %206 = arith.truncf %205 : vector<16x8xf32> to vector<16x8xbf16>
    %c8_186 = arith.constant 8 : index
    %c0_187 = arith.constant 0 : index
    %c0_188 = arith.constant 0 : index
    %207 = vector.load %arg5[%c8_186, %c0_187, %c0_188] : memref<16x8x16xbf16, #tpu.memory_space<vmem>>, vector<1x8x16xbf16>
    %208 = vector.shape_cast %207 : vector<1x8x16xbf16> to vector<8x16xbf16>
    %cst_189 = arith.constant dense<0.000000e+00> : vector<16x16xf32>
    %209 = tpu.matmul %206, %208, %cst_189 {dimension_numbers = #tpu.dot_dimension_numbers<[1], [0], [0], [1], [0, 0, 1, 1], [], []>} : vector<16x8xbf16>, vector<8x16xbf16>, vector<16x16xf32> -> vector<16x16xf32>
    %210 = arith.addf %202, %209 : vector<16x16xf32>
    %c9_190 = arith.constant 9 : index
    %c0_191 = arith.constant 0 : index
    %c0_192 = arith.constant 0 : index
    %211 = vector.load %arg4[%c9_190, %c0_191, %c0_192] : memref<16x16x64xbf16, #tpu.memory_space<vmem>>, vector<1x16x64xbf16>
    %212 = vector.shape_cast %211 : vector<1x16x64xbf16> to vector<16x64xbf16>
    %cst_193 = arith.constant dense<0.000000e+00> : vector<16x8xf32>
    %213 = tpu.matmul %212, %137, %cst_193 {dimension_numbers = #tpu.dot_dimension_numbers<[1], [0], [0], [1], [0, 0, 1, 1], [], []>} : vector<16x64xbf16>, vector<64x8xbf16>, vector<16x8xf32> -> vector<16x8xf32>
    %214 = arith.truncf %213 : vector<16x8xf32> to vector<16x8xbf16>
    %c9_194 = arith.constant 9 : index
    %c0_195 = arith.constant 0 : index
    %c0_196 = arith.constant 0 : index
    %215 = vector.load %arg5[%c9_194, %c0_195, %c0_196] : memref<16x8x16xbf16, #tpu.memory_space<vmem>>, vector<1x8x16xbf16>
    %216 = vector.shape_cast %215 : vector<1x8x16xbf16> to vector<8x16xbf16>
    %cst_197 = arith.constant dense<0.000000e+00> : vector<16x16xf32>
    %217 = tpu.matmul %214, %216, %cst_197 {dimension_numbers = #tpu.dot_dimension_numbers<[1], [0], [0], [1], [0, 0, 1, 1], [], []>} : vector<16x8xbf16>, vector<8x16xbf16>, vector<16x16xf32> -> vector<16x16xf32>
    %218 = arith.addf %210, %217 : vector<16x16xf32>
    %c10_198 = arith.constant 10 : index
    %c0_199 = arith.constant 0 : index
    %c0_200 = arith.constant 0 : index
    %219 = vector.load %arg4[%c10_198, %c0_199, %c0_200] : memref<16x16x64xbf16, #tpu.memory_space<vmem>>, vector<1x16x64xbf16>
    %220 = vector.shape_cast %219 : vector<1x16x64xbf16> to vector<16x64xbf16>
    %cst_201 = arith.constant dense<0.000000e+00> : vector<16x8xf32>
    %221 = tpu.matmul %220, %137, %cst_201 {dimension_numbers = #tpu.dot_dimension_numbers<[1], [0], [0], [1], [0, 0, 1, 1], [], []>} : vector<16x64xbf16>, vector<64x8xbf16>, vector<16x8xf32> -> vector<16x8xf32>
    %222 = arith.truncf %221 : vector<16x8xf32> to vector<16x8xbf16>
    %c10_202 = arith.constant 10 : index
    %c0_203 = arith.constant 0 : index
    %c0_204 = arith.constant 0 : index
    %223 = vector.load %arg5[%c10_202, %c0_203, %c0_204] : memref<16x8x16xbf16, #tpu.memory_space<vmem>>, vector<1x8x16xbf16>
    %224 = vector.shape_cast %223 : vector<1x8x16xbf16> to vector<8x16xbf16>
    %cst_205 = arith.constant dense<0.000000e+00> : vector<16x16xf32>
    %225 = tpu.matmul %222, %224, %cst_205 {dimension_numbers = #tpu.dot_dimension_numbers<[1], [0], [0], [1], [0, 0, 1, 1], [], []>} : vector<16x8xbf16>, vector<8x16xbf16>, vector<16x16xf32> -> vector<16x16xf32>
    %226 = arith.addf %218, %225 : vector<16x16xf32>
    %c11_206 = arith.constant 11 : index
    %c0_207 = arith.constant 0 : index
    %c0_208 = arith.constant 0 : index
    %227 = vector.load %arg4[%c11_206, %c0_207, %c0_208] : memref<16x16x64xbf16, #tpu.memory_space<vmem>>, vector<1x16x64xbf16>
    %228 = vector.shape_cast %227 : vector<1x16x64xbf16> to vector<16x64xbf16>
    %cst_209 = arith.constant dense<0.000000e+00> : vector<16x8xf32>
    %229 = tpu.matmul %228, %137, %cst_209 {dimension_numbers = #tpu.dot_dimension_numbers<[1], [0], [0], [1], [0, 0, 1, 1], [], []>} : vector<16x64xbf16>, vector<64x8xbf16>, vector<16x8xf32> -> vector<16x8xf32>
    %230 = arith.truncf %229 : vector<16x8xf32> to vector<16x8xbf16>
    %c11_210 = arith.constant 11 : index
    %c0_211 = arith.constant 0 : index
    %c0_212 = arith.constant 0 : index
    %231 = vector.load %arg5[%c11_210, %c0_211, %c0_212] : memref<16x8x16xbf16, #tpu.memory_space<vmem>>, vector<1x8x16xbf16>
    %232 = vector.shape_cast %231 : vector<1x8x16xbf16> to vector<8x16xbf16>
    %cst_213 = arith.constant dense<0.000000e+00> : vector<16x16xf32>
    %233 = tpu.matmul %230, %232, %cst_213 {dimension_numbers = #tpu.dot_dimension_numbers<[1], [0], [0], [1], [0, 0, 1, 1], [], []>} : vector<16x8xbf16>, vector<8x16xbf16>, vector<16x16xf32> -> vector<16x16xf32>
    %234 = arith.addf %226, %233 : vector<16x16xf32>
    %c12_214 = arith.constant 12 : index
    %c0_215 = arith.constant 0 : index
    %c0_216 = arith.constant 0 : index
    %235 = vector.load %arg4[%c12_214, %c0_215, %c0_216] : memref<16x16x64xbf16, #tpu.memory_space<vmem>>, vector<1x16x64xbf16>
    %236 = vector.shape_cast %235 : vector<1x16x64xbf16> to vector<16x64xbf16>
    %cst_217 = arith.constant dense<0.000000e+00> : vector<16x8xf32>
    %237 = tpu.matmul %236, %137, %cst_217 {dimension_numbers = #tpu.dot_dimension_numbers<[1], [0], [0], [1], [0, 0, 1, 1], [], []>} : vector<16x64xbf16>, vector<64x8xbf16>, vector<16x8xf32> -> vector<16x8xf32>
    %238 = arith.truncf %237 : vector<16x8xf32> to vector<16x8xbf16>
    %c12_218 = arith.constant 12 : index
    %c0_219 = arith.constant 0 : index
    %c0_220 = arith.constant 0 : index
    %239 = vector.load %arg5[%c12_218, %c0_219, %c0_220] : memref<16x8x16xbf16, #tpu.memory_space<vmem>>, vector<1x8x16xbf16>
    %240 = vector.shape_cast %239 : vector<1x8x16xbf16> to vector<8x16xbf16>
    %cst_221 = arith.constant dense<0.000000e+00> : vector<16x16xf32>
    %241 = tpu.matmul %238, %240, %cst_221 {dimension_numbers = #tpu.dot_dimension_numbers<[1], [0], [0], [1], [0, 0, 1, 1], [], []>} : vector<16x8xbf16>, vector<8x16xbf16>, vector<16x16xf32> -> vector<16x16xf32>
    %242 = arith.addf %234, %241 : vector<16x16xf32>
    %c13_222 = arith.constant 13 : index
    %c0_223 = arith.constant 0 : index
    %c0_224 = arith.constant 0 : index
    %243 = vector.load %arg4[%c13_222, %c0_223, %c0_224] : memref<16x16x64xbf16, #tpu.memory_space<vmem>>, vector<1x16x64xbf16>
    %244 = vector.shape_cast %243 : vector<1x16x64xbf16> to vector<16x64xbf16>
    %cst_225 = arith.constant dense<0.000000e+00> : vector<16x8xf32>
    %245 = tpu.matmul %244, %137, %cst_225 {dimension_numbers = #tpu.dot_dimension_numbers<[1], [0], [0], [1], [0, 0, 1, 1], [], []>} : vector<16x64xbf16>, vector<64x8xbf16>, vector<16x8xf32> -> vector<16x8xf32>
    %246 = arith.truncf %245 : vector<16x8xf32> to vector<16x8xbf16>
    %c13_226 = arith.constant 13 : index
    %c0_227 = arith.constant 0 : index
    %c0_228 = arith.constant 0 : index
    %247 = vector.load %arg5[%c13_226, %c0_227, %c0_228] : memref<16x8x16xbf16, #tpu.memory_space<vmem>>, vector<1x8x16xbf16>
    %248 = vector.shape_cast %247 : vector<1x8x16xbf16> to vector<8x16xbf16>
    %cst_229 = arith.constant dense<0.000000e+00> : vector<16x16xf32>
    %249 = tpu.matmul %246, %248, %cst_229 {dimension_numbers = #tpu.dot_dimension_numbers<[1], [0], [0], [1], [0, 0, 1, 1], [], []>} : vector<16x8xbf16>, vector<8x16xbf16>, vector<16x16xf32> -> vector<16x16xf32>
    %250 = arith.addf %242, %249 : vector<16x16xf32>
    %c14_230 = arith.constant 14 : index
    %c0_231 = arith.constant 0 : index
    %c0_232 = arith.constant 0 : index
    %251 = vector.load %arg4[%c14_230, %c0_231, %c0_232] : memref<16x16x64xbf16, #tpu.memory_space<vmem>>, vector<1x16x64xbf16>
    %252 = vector.shape_cast %251 : vector<1x16x64xbf16> to vector<16x64xbf16>
    %cst_233 = arith.constant dense<0.000000e+00> : vector<16x8xf32>
    %253 = tpu.matmul %252, %137, %cst_233 {dimension_numbers = #tpu.dot_dimension_numbers<[1], [0], [0], [1], [0, 0, 1, 1], [], []>} : vector<16x64xbf16>, vector<64x8xbf16>, vector<16x8xf32> -> vector<16x8xf32>
    %254 = arith.truncf %253 : vector<16x8xf32> to vector<16x8xbf16>
    %c14_234 = arith.constant 14 : index
    %c0_235 = arith.constant 0 : index
    %c0_236 = arith.constant 0 : index
    %255 = vector.load %arg5[%c14_234, %c0_235, %c0_236] : memref<16x8x16xbf16, #tpu.memory_space<vmem>>, vector<1x8x16xbf16>
    %256 = vector.shape_cast %255 : vector<1x8x16xbf16> to vector<8x16xbf16>
    %cst_237 = arith.constant dense<0.000000e+00> : vector<16x16xf32>
    %257 = tpu.matmul %254, %256, %cst_237 {dimension_numbers = #tpu.dot_dimension_numbers<[1], [0], [0], [1], [0, 0, 1, 1], [], []>} : vector<16x8xbf16>, vector<8x16xbf16>, vector<16x16xf32> -> vector<16x16xf32>
    %258 = arith.addf %250, %257 : vector<16x16xf32>
    %c15_238 = arith.constant 15 : index
    %c0_239 = arith.constant 0 : index
    %c0_240 = arith.constant 0 : index
    %259 = vector.load %arg4[%c15_238, %c0_239, %c0_240] : memref<16x16x64xbf16, #tpu.memory_space<vmem>>, vector<1x16x64xbf16>
    %260 = vector.shape_cast %259 : vector<1x16x64xbf16> to vector<16x64xbf16>
    %cst_241 = arith.constant dense<0.000000e+00> : vector<16x8xf32>
    %261 = tpu.matmul %260, %137, %cst_241 {dimension_numbers = #tpu.dot_dimension_numbers<[1], [0], [0], [1], [0, 0, 1, 1], [], []>} : vector<16x64xbf16>, vector<64x8xbf16>, vector<16x8xf32> -> vector<16x8xf32>
    %262 = arith.truncf %261 : vector<16x8xf32> to vector<16x8xbf16>
    %c15_242 = arith.constant 15 : index
    %c0_243 = arith.constant 0 : index
    %c0_244 = arith.constant 0 : index
    %263 = vector.load %arg5[%c15_242, %c0_243, %c0_244] : memref<16x8x16xbf16, #tpu.memory_space<vmem>>, vector<1x8x16xbf16>
    %264 = vector.shape_cast %263 : vector<1x8x16xbf16> to vector<8x16xbf16>
    %cst_245 = arith.constant dense<0.000000e+00> : vector<16x16xf32>
    %265 = tpu.matmul %262, %264, %cst_245 {dimension_numbers = #tpu.dot_dimension_numbers<[1], [0], [0], [1], [0, 0, 1, 1], [], []>} : vector<16x8xbf16>, vector<8x16xbf16>, vector<16x16xf32> -> vector<16x16xf32>
    %266 = arith.addf %258, %265 : vector<16x16xf32>
    %cst_246 = arith.constant dense<0.000000e+00> : vector<16xf32>
    %267 = vector.multi_reduction <add>, %266, %cst_246 [1] : vector<16x16xf32> to vector<16xf32>
    %268 = vector.shape_cast %267 : vector<16xf32> to vector<16x1xf32>
    %cst_247 = arith.constant dense<0.000000e+00> : vector<1xf32>
    %269 = vector.multi_reduction <add>, %268, %cst_247 [0] : vector<16x1xf32> to vector<1xf32>
    %270 = vector.shape_cast %269 : vector<1xf32> to vector<1x1xf32>
    %cst_248 = arith.constant 3.906250e-03 : f32
    %271 = vector.broadcast %cst_248 : f32 to vector<1x1xf32>
    %272 = arith.mulf %270, %271 : vector<1x1xf32>
    %273 = vector.broadcast %272 : vector<1x1xf32> to vector<16x16xf32>
    %274 = arith.subf %266, %273 : vector<16x16xf32>
    %275 = vector.broadcast %272 : vector<1x1xf32> to vector<16x16xf32>
    %276 = arith.subf %266, %275 : vector<16x16xf32>
    %277 = arith.mulf %274, %276 : vector<16x16xf32>
    %cst_249 = arith.constant dense<0.000000e+00> : vector<16xf32>
    %278 = vector.multi_reduction <add>, %277, %cst_249 [1] : vector<16x16xf32> to vector<16xf32>
    %279 = vector.shape_cast %278 : vector<16xf32> to vector<16x1xf32>
    %cst_250 = arith.constant dense<0.000000e+00> : vector<1xf32>
    %280 = vector.multi_reduction <add>, %279, %cst_250 [0] : vector<16x1xf32> to vector<1xf32>
    %281 = vector.shape_cast %280 : vector<1xf32> to vector<1x1xf32>
    %cst_251 = arith.constant 3.906250e-03 : f32
    %282 = vector.broadcast %cst_251 : f32 to vector<1x1xf32>
    %283 = arith.mulf %281, %282 : vector<1x1xf32>
    %284 = vector.broadcast %272 : vector<1x1xf32> to vector<16x16xf32>
    %285 = arith.subf %266, %284 : vector<16x16xf32>
    %cst_252 = arith.constant 9.99999974E-6 : f32
    %286 = vector.broadcast %cst_252 : f32 to vector<1x1xf32>
    %287 = arith.addf %283, %286 : vector<1x1xf32>
    %288 = math.rsqrt %287 : vector<1x1xf32>
    %289 = vector.broadcast %288 : vector<1x1xf32> to vector<16x16xf32>
    %290 = arith.mulf %285, %289 : vector<16x16xf32>
    %c0_253 = arith.constant 0 : index
    %c0_254 = arith.constant 0 : index
    %291 = vector.load %arg6[%c0_253, %c0_254] : memref<16x16xf32, #tpu.memory_space<vmem>>, vector<16x16xf32>
    %292 = arith.mulf %290, %291 : vector<16x16xf32>
    %c0_255 = arith.constant 0 : index
    %c0_256 = arith.constant 0 : index
    %293 = vector.load %arg7[%c0_255, %c0_256] : memref<16x16xf32, #tpu.memory_space<vmem>>, vector<16x16xf32>
    %294 = arith.addf %292, %293 : vector<16x16xf32>
    %cst_257 = arith.constant 0.000000e+00 : f32
    %295 = vector.broadcast %cst_257 : f32 to vector<16x16xf32>
    %296 = arith.cmpf ogt, %294, %295 : vector<16x16xf32>
    %cst_258 = arith.constant 2.000000e-01 : f32
    %297 = vector.broadcast %cst_258 : f32 to vector<16x16xf32>
    %298 = arith.mulf %297, %294 : vector<16x16xf32>
    %299 = arith.select %296, %294, %298 : vector<16x16xi1>, vector<16x16xf32>
    %300 = arith.truncf %299 : vector<16x16xf32> to vector<16x16xbf16>
    %cst_259 = arith.constant 0.000000e+00 : f32
    %301 = vector.broadcast %cst_259 : f32 to vector<4x32xf32>
    %c0_260 = arith.constant 0 : index
    %c0_261 = arith.constant 0 : index
    %c0_262 = arith.constant 0 : index
    %302 = vector.load %arg8[%c0_260, %c0_261, %c0_262] : memref<16x4x16xbf16, #tpu.memory_space<vmem>>, vector<1x4x16xbf16>
    %303 = vector.shape_cast %302 : vector<1x4x16xbf16> to vector<4x16xbf16>
    %cst_263 = arith.constant dense<0.000000e+00> : vector<4x16xf32>
    %304 = tpu.matmul %303, %300, %cst_263 {dimension_numbers = #tpu.dot_dimension_numbers<[1], [0], [0], [1], [0, 0, 1, 1], [], []>} : vector<4x16xbf16>, vector<16x16xbf16>, vector<4x16xf32> -> vector<4x16xf32>
    %305 = arith.truncf %304 : vector<4x16xf32> to vector<4x16xbf16>
    %c0_264 = arith.constant 0 : index
    %c0_265 = arith.constant 0 : index
    %c0_266 = arith.constant 0 : index
    %306 = vector.load %arg9[%c0_264, %c0_265, %c0_266] : memref<16x16x32xbf16, #tpu.memory_space<vmem>>, vector<1x16x32xbf16>
    %307 = vector.shape_cast %306 : vector<1x16x32xbf16> to vector<16x32xbf16>
    %cst_267 = arith.constant dense<0.000000e+00> : vector<4x32xf32>
    %308 = tpu.matmul %305, %307, %cst_267 {dimension_numbers = #tpu.dot_dimension_numbers<[1], [0], [0], [1], [0, 0, 1, 1], [], []>} : vector<4x16xbf16>, vector<16x32xbf16>, vector<4x32xf32> -> vector<4x32xf32>
    %309 = arith.addf %301, %308 : vector<4x32xf32>
    %c1_268 = arith.constant 1 : index
    %c0_269 = arith.constant 0 : index
    %c0_270 = arith.constant 0 : index
    %310 = vector.load %arg8[%c1_268, %c0_269, %c0_270] : memref<16x4x16xbf16, #tpu.memory_space<vmem>>, vector<1x4x16xbf16>
    %311 = vector.shape_cast %310 : vector<1x4x16xbf16> to vector<4x16xbf16>
    %cst_271 = arith.constant dense<0.000000e+00> : vector<4x16xf32>
    %312 = tpu.matmul %311, %300, %cst_271 {dimension_numbers = #tpu.dot_dimension_numbers<[1], [0], [0], [1], [0, 0, 1, 1], [], []>} : vector<4x16xbf16>, vector<16x16xbf16>, vector<4x16xf32> -> vector<4x16xf32>
    %313 = arith.truncf %312 : vector<4x16xf32> to vector<4x16xbf16>
    %c1_272 = arith.constant 1 : index
    %c0_273 = arith.constant 0 : index
    %c0_274 = arith.constant 0 : index
    %314 = vector.load %arg9[%c1_272, %c0_273, %c0_274] : memref<16x16x32xbf16, #tpu.memory_space<vmem>>, vector<1x16x32xbf16>
    %315 = vector.shape_cast %314 : vector<1x16x32xbf16> to vector<16x32xbf16>
    %cst_275 = arith.constant dense<0.000000e+00> : vector<4x32xf32>
    %316 = tpu.matmul %313, %315, %cst_275 {dimension_numbers = #tpu.dot_dimension_numbers<[1], [0], [0], [1], [0, 0, 1, 1], [], []>} : vector<4x16xbf16>, vector<16x32xbf16>, vector<4x32xf32> -> vector<4x32xf32>
    %317 = arith.addf %309, %316 : vector<4x32xf32>
    %c2_276 = arith.constant 2 : index
    %c0_277 = arith.constant 0 : index
    %c0_278 = arith.constant 0 : index
    %318 = vector.load %arg8[%c2_276, %c0_277, %c0_278] : memref<16x4x16xbf16, #tpu.memory_space<vmem>>, vector<1x4x16xbf16>
    %319 = vector.shape_cast %318 : vector<1x4x16xbf16> to vector<4x16xbf16>
    %cst_279 = arith.constant dense<0.000000e+00> : vector<4x16xf32>
    %320 = tpu.matmul %319, %300, %cst_279 {dimension_numbers = #tpu.dot_dimension_numbers<[1], [0], [0], [1], [0, 0, 1, 1], [], []>} : vector<4x16xbf16>, vector<16x16xbf16>, vector<4x16xf32> -> vector<4x16xf32>
    %321 = arith.truncf %320 : vector<4x16xf32> to vector<4x16xbf16>
    %c2_280 = arith.constant 2 : index
    %c0_281 = arith.constant 0 : index
    %c0_282 = arith.constant 0 : index
    %322 = vector.load %arg9[%c2_280, %c0_281, %c0_282] : memref<16x16x32xbf16, #tpu.memory_space<vmem>>, vector<1x16x32xbf16>
    %323 = vector.shape_cast %322 : vector<1x16x32xbf16> to vector<16x32xbf16>
    %cst_283 = arith.constant dense<0.000000e+00> : vector<4x32xf32>
    %324 = tpu.matmul %321, %323, %cst_283 {dimension_numbers = #tpu.dot_dimension_numbers<[1], [0], [0], [1], [0, 0, 1, 1], [], []>} : vector<4x16xbf16>, vector<16x32xbf16>, vector<4x32xf32> -> vector<4x32xf32>
    %325 = arith.addf %317, %324 : vector<4x32xf32>
    %c3_284 = arith.constant 3 : index
    %c0_285 = arith.constant 0 : index
    %c0_286 = arith.constant 0 : index
    %326 = vector.load %arg8[%c3_284, %c0_285, %c0_286] : memref<16x4x16xbf16, #tpu.memory_space<vmem>>, vector<1x4x16xbf16>
    %327 = vector.shape_cast %326 : vector<1x4x16xbf16> to vector<4x16xbf16>
    %cst_287 = arith.constant dense<0.000000e+00> : vector<4x16xf32>
    %328 = tpu.matmul %327, %300, %cst_287 {dimension_numbers = #tpu.dot_dimension_numbers<[1], [0], [0], [1], [0, 0, 1, 1], [], []>} : vector<4x16xbf16>, vector<16x16xbf16>, vector<4x16xf32> -> vector<4x16xf32>
    %329 = arith.truncf %328 : vector<4x16xf32> to vector<4x16xbf16>
    %c3_288 = arith.constant 3 : index
    %c0_289 = arith.constant 0 : index
    %c0_290 = arith.constant 0 : index
    %330 = vector.load %arg9[%c3_288, %c0_289, %c0_290] : memref<16x16x32xbf16, #tpu.memory_space<vmem>>, vector<1x16x32xbf16>
    %331 = vector.shape_cast %330 : vector<1x16x32xbf16> to vector<16x32xbf16>
    %cst_291 = arith.constant dense<0.000000e+00> : vector<4x32xf32>
    %332 = tpu.matmul %329, %331, %cst_291 {dimension_numbers = #tpu.dot_dimension_numbers<[1], [0], [0], [1], [0, 0, 1, 1], [], []>} : vector<4x16xbf16>, vector<16x32xbf16>, vector<4x32xf32> -> vector<4x32xf32>
    %333 = arith.addf %325, %332 : vector<4x32xf32>
    %c4_292 = arith.constant 4 : index
    %c0_293 = arith.constant 0 : index
    %c0_294 = arith.constant 0 : index
    %334 = vector.load %arg8[%c4_292, %c0_293, %c0_294] : memref<16x4x16xbf16, #tpu.memory_space<vmem>>, vector<1x4x16xbf16>
    %335 = vector.shape_cast %334 : vector<1x4x16xbf16> to vector<4x16xbf16>
    %cst_295 = arith.constant dense<0.000000e+00> : vector<4x16xf32>
    %336 = tpu.matmul %335, %300, %cst_295 {dimension_numbers = #tpu.dot_dimension_numbers<[1], [0], [0], [1], [0, 0, 1, 1], [], []>} : vector<4x16xbf16>, vector<16x16xbf16>, vector<4x16xf32> -> vector<4x16xf32>
    %337 = arith.truncf %336 : vector<4x16xf32> to vector<4x16xbf16>
    %c4_296 = arith.constant 4 : index
    %c0_297 = arith.constant 0 : index
    %c0_298 = arith.constant 0 : index
    %338 = vector.load %arg9[%c4_296, %c0_297, %c0_298] : memref<16x16x32xbf16, #tpu.memory_space<vmem>>, vector<1x16x32xbf16>
    %339 = vector.shape_cast %338 : vector<1x16x32xbf16> to vector<16x32xbf16>
    %cst_299 = arith.constant dense<0.000000e+00> : vector<4x32xf32>
    %340 = tpu.matmul %337, %339, %cst_299 {dimension_numbers = #tpu.dot_dimension_numbers<[1], [0], [0], [1], [0, 0, 1, 1], [], []>} : vector<4x16xbf16>, vector<16x32xbf16>, vector<4x32xf32> -> vector<4x32xf32>
    %341 = arith.addf %333, %340 : vector<4x32xf32>
    %c5_300 = arith.constant 5 : index
    %c0_301 = arith.constant 0 : index
    %c0_302 = arith.constant 0 : index
    %342 = vector.load %arg8[%c5_300, %c0_301, %c0_302] : memref<16x4x16xbf16, #tpu.memory_space<vmem>>, vector<1x4x16xbf16>
    %343 = vector.shape_cast %342 : vector<1x4x16xbf16> to vector<4x16xbf16>
    %cst_303 = arith.constant dense<0.000000e+00> : vector<4x16xf32>
    %344 = tpu.matmul %343, %300, %cst_303 {dimension_numbers = #tpu.dot_dimension_numbers<[1], [0], [0], [1], [0, 0, 1, 1], [], []>} : vector<4x16xbf16>, vector<16x16xbf16>, vector<4x16xf32> -> vector<4x16xf32>
    %345 = arith.truncf %344 : vector<4x16xf32> to vector<4x16xbf16>
    %c5_304 = arith.constant 5 : index
    %c0_305 = arith.constant 0 : index
    %c0_306 = arith.constant 0 : index
    %346 = vector.load %arg9[%c5_304, %c0_305, %c0_306] : memref<16x16x32xbf16, #tpu.memory_space<vmem>>, vector<1x16x32xbf16>
    %347 = vector.shape_cast %346 : vector<1x16x32xbf16> to vector<16x32xbf16>
    %cst_307 = arith.constant dense<0.000000e+00> : vector<4x32xf32>
    %348 = tpu.matmul %345, %347, %cst_307 {dimension_numbers = #tpu.dot_dimension_numbers<[1], [0], [0], [1], [0, 0, 1, 1], [], []>} : vector<4x16xbf16>, vector<16x32xbf16>, vector<4x32xf32> -> vector<4x32xf32>
    %349 = arith.addf %341, %348 : vector<4x32xf32>
    %c6_308 = arith.constant 6 : index
    %c0_309 = arith.constant 0 : index
    %c0_310 = arith.constant 0 : index
    %350 = vector.load %arg8[%c6_308, %c0_309, %c0_310] : memref<16x4x16xbf16, #tpu.memory_space<vmem>>, vector<1x4x16xbf16>
    %351 = vector.shape_cast %350 : vector<1x4x16xbf16> to vector<4x16xbf16>
    %cst_311 = arith.constant dense<0.000000e+00> : vector<4x16xf32>
    %352 = tpu.matmul %351, %300, %cst_311 {dimension_numbers = #tpu.dot_dimension_numbers<[1], [0], [0], [1], [0, 0, 1, 1], [], []>} : vector<4x16xbf16>, vector<16x16xbf16>, vector<4x16xf32> -> vector<4x16xf32>
    %353 = arith.truncf %352 : vector<4x16xf32> to vector<4x16xbf16>
    %c6_312 = arith.constant 6 : index
    %c0_313 = arith.constant 0 : index
    %c0_314 = arith.constant 0 : index
    %354 = vector.load %arg9[%c6_312, %c0_313, %c0_314] : memref<16x16x32xbf16, #tpu.memory_space<vmem>>, vector<1x16x32xbf16>
    %355 = vector.shape_cast %354 : vector<1x16x32xbf16> to vector<16x32xbf16>
    %cst_315 = arith.constant dense<0.000000e+00> : vector<4x32xf32>
    %356 = tpu.matmul %353, %355, %cst_315 {dimension_numbers = #tpu.dot_dimension_numbers<[1], [0], [0], [1], [0, 0, 1, 1], [], []>} : vector<4x16xbf16>, vector<16x32xbf16>, vector<4x32xf32> -> vector<4x32xf32>
    %357 = arith.addf %349, %356 : vector<4x32xf32>
    %c7_316 = arith.constant 7 : index
    %c0_317 = arith.constant 0 : index
    %c0_318 = arith.constant 0 : index
    %358 = vector.load %arg8[%c7_316, %c0_317, %c0_318] : memref<16x4x16xbf16, #tpu.memory_space<vmem>>, vector<1x4x16xbf16>
    %359 = vector.shape_cast %358 : vector<1x4x16xbf16> to vector<4x16xbf16>
    %cst_319 = arith.constant dense<0.000000e+00> : vector<4x16xf32>
    %360 = tpu.matmul %359, %300, %cst_319 {dimension_numbers = #tpu.dot_dimension_numbers<[1], [0], [0], [1], [0, 0, 1, 1], [], []>} : vector<4x16xbf16>, vector<16x16xbf16>, vector<4x16xf32> -> vector<4x16xf32>
    %361 = arith.truncf %360 : vector<4x16xf32> to vector<4x16xbf16>
    %c7_320 = arith.constant 7 : index
    %c0_321 = arith.constant 0 : index
    %c0_322 = arith.constant 0 : index
    %362 = vector.load %arg9[%c7_320, %c0_321, %c0_322] : memref<16x16x32xbf16, #tpu.memory_space<vmem>>, vector<1x16x32xbf16>
    %363 = vector.shape_cast %362 : vector<1x16x32xbf16> to vector<16x32xbf16>
    %cst_323 = arith.constant dense<0.000000e+00> : vector<4x32xf32>
    %364 = tpu.matmul %361, %363, %cst_323 {dimension_numbers = #tpu.dot_dimension_numbers<[1], [0], [0], [1], [0, 0, 1, 1], [], []>} : vector<4x16xbf16>, vector<16x32xbf16>, vector<4x32xf32> -> vector<4x32xf32>
    %365 = arith.addf %357, %364 : vector<4x32xf32>
    %c8_324 = arith.constant 8 : index
    %c0_325 = arith.constant 0 : index
    %c0_326 = arith.constant 0 : index
    %366 = vector.load %arg8[%c8_324, %c0_325, %c0_326] : memref<16x4x16xbf16, #tpu.memory_space<vmem>>, vector<1x4x16xbf16>
    %367 = vector.shape_cast %366 : vector<1x4x16xbf16> to vector<4x16xbf16>
    %cst_327 = arith.constant dense<0.000000e+00> : vector<4x16xf32>
    %368 = tpu.matmul %367, %300, %cst_327 {dimension_numbers = #tpu.dot_dimension_numbers<[1], [0], [0], [1], [0, 0, 1, 1], [], []>} : vector<4x16xbf16>, vector<16x16xbf16>, vector<4x16xf32> -> vector<4x16xf32>
    %369 = arith.truncf %368 : vector<4x16xf32> to vector<4x16xbf16>
    %c8_328 = arith.constant 8 : index
    %c0_329 = arith.constant 0 : index
    %c0_330 = arith.constant 0 : index
    %370 = vector.load %arg9[%c8_328, %c0_329, %c0_330] : memref<16x16x32xbf16, #tpu.memory_space<vmem>>, vector<1x16x32xbf16>
    %371 = vector.shape_cast %370 : vector<1x16x32xbf16> to vector<16x32xbf16>
    %cst_331 = arith.constant dense<0.000000e+00> : vector<4x32xf32>
    %372 = tpu.matmul %369, %371, %cst_331 {dimension_numbers = #tpu.dot_dimension_numbers<[1], [0], [0], [1], [0, 0, 1, 1], [], []>} : vector<4x16xbf16>, vector<16x32xbf16>, vector<4x32xf32> -> vector<4x32xf32>
    %373 = arith.addf %365, %372 : vector<4x32xf32>
    %c9_332 = arith.constant 9 : index
    %c0_333 = arith.constant 0 : index
    %c0_334 = arith.constant 0 : index
    %374 = vector.load %arg8[%c9_332, %c0_333, %c0_334] : memref<16x4x16xbf16, #tpu.memory_space<vmem>>, vector<1x4x16xbf16>
    %375 = vector.shape_cast %374 : vector<1x4x16xbf16> to vector<4x16xbf16>
    %cst_335 = arith.constant dense<0.000000e+00> : vector<4x16xf32>
    %376 = tpu.matmul %375, %300, %cst_335 {dimension_numbers = #tpu.dot_dimension_numbers<[1], [0], [0], [1], [0, 0, 1, 1], [], []>} : vector<4x16xbf16>, vector<16x16xbf16>, vector<4x16xf32> -> vector<4x16xf32>
    %377 = arith.truncf %376 : vector<4x16xf32> to vector<4x16xbf16>
    %c9_336 = arith.constant 9 : index
    %c0_337 = arith.constant 0 : index
    %c0_338 = arith.constant 0 : index
    %378 = vector.load %arg9[%c9_336, %c0_337, %c0_338] : memref<16x16x32xbf16, #tpu.memory_space<vmem>>, vector<1x16x32xbf16>
    %379 = vector.shape_cast %378 : vector<1x16x32xbf16> to vector<16x32xbf16>
    %cst_339 = arith.constant dense<0.000000e+00> : vector<4x32xf32>
    %380 = tpu.matmul %377, %379, %cst_339 {dimension_numbers = #tpu.dot_dimension_numbers<[1], [0], [0], [1], [0, 0, 1, 1], [], []>} : vector<4x16xbf16>, vector<16x32xbf16>, vector<4x32xf32> -> vector<4x32xf32>
    %381 = arith.addf %373, %380 : vector<4x32xf32>
    %c10_340 = arith.constant 10 : index
    %c0_341 = arith.constant 0 : index
    %c0_342 = arith.constant 0 : index
    %382 = vector.load %arg8[%c10_340, %c0_341, %c0_342] : memref<16x4x16xbf16, #tpu.memory_space<vmem>>, vector<1x4x16xbf16>
    %383 = vector.shape_cast %382 : vector<1x4x16xbf16> to vector<4x16xbf16>
    %cst_343 = arith.constant dense<0.000000e+00> : vector<4x16xf32>
    %384 = tpu.matmul %383, %300, %cst_343 {dimension_numbers = #tpu.dot_dimension_numbers<[1], [0], [0], [1], [0, 0, 1, 1], [], []>} : vector<4x16xbf16>, vector<16x16xbf16>, vector<4x16xf32> -> vector<4x16xf32>
    %385 = arith.truncf %384 : vector<4x16xf32> to vector<4x16xbf16>
    %c10_344 = arith.constant 10 : index
    %c0_345 = arith.constant 0 : index
    %c0_346 = arith.constant 0 : index
    %386 = vector.load %arg9[%c10_344, %c0_345, %c0_346] : memref<16x16x32xbf16, #tpu.memory_space<vmem>>, vector<1x16x32xbf16>
    %387 = vector.shape_cast %386 : vector<1x16x32xbf16> to vector<16x32xbf16>
    %cst_347 = arith.constant dense<0.000000e+00> : vector<4x32xf32>
    %388 = tpu.matmul %385, %387, %cst_347 {dimension_numbers = #tpu.dot_dimension_numbers<[1], [0], [0], [1], [0, 0, 1, 1], [], []>} : vector<4x16xbf16>, vector<16x32xbf16>, vector<4x32xf32> -> vector<4x32xf32>
    %389 = arith.addf %381, %388 : vector<4x32xf32>
    %c11_348 = arith.constant 11 : index
    %c0_349 = arith.constant 0 : index
    %c0_350 = arith.constant 0 : index
    %390 = vector.load %arg8[%c11_348, %c0_349, %c0_350] : memref<16x4x16xbf16, #tpu.memory_space<vmem>>, vector<1x4x16xbf16>
    %391 = vector.shape_cast %390 : vector<1x4x16xbf16> to vector<4x16xbf16>
    %cst_351 = arith.constant dense<0.000000e+00> : vector<4x16xf32>
    %392 = tpu.matmul %391, %300, %cst_351 {dimension_numbers = #tpu.dot_dimension_numbers<[1], [0], [0], [1], [0, 0, 1, 1], [], []>} : vector<4x16xbf16>, vector<16x16xbf16>, vector<4x16xf32> -> vector<4x16xf32>
    %393 = arith.truncf %392 : vector<4x16xf32> to vector<4x16xbf16>
    %c11_352 = arith.constant 11 : index
    %c0_353 = arith.constant 0 : index
    %c0_354 = arith.constant 0 : index
    %394 = vector.load %arg9[%c11_352, %c0_353, %c0_354] : memref<16x16x32xbf16, #tpu.memory_space<vmem>>, vector<1x16x32xbf16>
    %395 = vector.shape_cast %394 : vector<1x16x32xbf16> to vector<16x32xbf16>
    %cst_355 = arith.constant dense<0.000000e+00> : vector<4x32xf32>
    %396 = tpu.matmul %393, %395, %cst_355 {dimension_numbers = #tpu.dot_dimension_numbers<[1], [0], [0], [1], [0, 0, 1, 1], [], []>} : vector<4x16xbf16>, vector<16x32xbf16>, vector<4x32xf32> -> vector<4x32xf32>
    %397 = arith.addf %389, %396 : vector<4x32xf32>
    %c12_356 = arith.constant 12 : index
    %c0_357 = arith.constant 0 : index
    %c0_358 = arith.constant 0 : index
    %398 = vector.load %arg8[%c12_356, %c0_357, %c0_358] : memref<16x4x16xbf16, #tpu.memory_space<vmem>>, vector<1x4x16xbf16>
    %399 = vector.shape_cast %398 : vector<1x4x16xbf16> to vector<4x16xbf16>
    %cst_359 = arith.constant dense<0.000000e+00> : vector<4x16xf32>
    %400 = tpu.matmul %399, %300, %cst_359 {dimension_numbers = #tpu.dot_dimension_numbers<[1], [0], [0], [1], [0, 0, 1, 1], [], []>} : vector<4x16xbf16>, vector<16x16xbf16>, vector<4x16xf32> -> vector<4x16xf32>
    %401 = arith.truncf %400 : vector<4x16xf32> to vector<4x16xbf16>
    %c12_360 = arith.constant 12 : index
    %c0_361 = arith.constant 0 : index
    %c0_362 = arith.constant 0 : index
    %402 = vector.load %arg9[%c12_360, %c0_361, %c0_362] : memref<16x16x32xbf16, #tpu.memory_space<vmem>>, vector<1x16x32xbf16>
    %403 = vector.shape_cast %402 : vector<1x16x32xbf16> to vector<16x32xbf16>
    %cst_363 = arith.constant dense<0.000000e+00> : vector<4x32xf32>
    %404 = tpu.matmul %401, %403, %cst_363 {dimension_numbers = #tpu.dot_dimension_numbers<[1], [0], [0], [1], [0, 0, 1, 1], [], []>} : vector<4x16xbf16>, vector<16x32xbf16>, vector<4x32xf32> -> vector<4x32xf32>
    %405 = arith.addf %397, %404 : vector<4x32xf32>
    %c13_364 = arith.constant 13 : index
    %c0_365 = arith.constant 0 : index
    %c0_366 = arith.constant 0 : index
    %406 = vector.load %arg8[%c13_364, %c0_365, %c0_366] : memref<16x4x16xbf16, #tpu.memory_space<vmem>>, vector<1x4x16xbf16>
    %407 = vector.shape_cast %406 : vector<1x4x16xbf16> to vector<4x16xbf16>
    %cst_367 = arith.constant dense<0.000000e+00> : vector<4x16xf32>
    %408 = tpu.matmul %407, %300, %cst_367 {dimension_numbers = #tpu.dot_dimension_numbers<[1], [0], [0], [1], [0, 0, 1, 1], [], []>} : vector<4x16xbf16>, vector<16x16xbf16>, vector<4x16xf32> -> vector<4x16xf32>
    %409 = arith.truncf %408 : vector<4x16xf32> to vector<4x16xbf16>
    %c13_368 = arith.constant 13 : index
    %c0_369 = arith.constant 0 : index
    %c0_370 = arith.constant 0 : index
    %410 = vector.load %arg9[%c13_368, %c0_369, %c0_370] : memref<16x16x32xbf16, #tpu.memory_space<vmem>>, vector<1x16x32xbf16>
    %411 = vector.shape_cast %410 : vector<1x16x32xbf16> to vector<16x32xbf16>
    %cst_371 = arith.constant dense<0.000000e+00> : vector<4x32xf32>
    %412 = tpu.matmul %409, %411, %cst_371 {dimension_numbers = #tpu.dot_dimension_numbers<[1], [0], [0], [1], [0, 0, 1, 1], [], []>} : vector<4x16xbf16>, vector<16x32xbf16>, vector<4x32xf32> -> vector<4x32xf32>
    %413 = arith.addf %405, %412 : vector<4x32xf32>
    %c14_372 = arith.constant 14 : index
    %c0_373 = arith.constant 0 : index
    %c0_374 = arith.constant 0 : index
    %414 = vector.load %arg8[%c14_372, %c0_373, %c0_374] : memref<16x4x16xbf16, #tpu.memory_space<vmem>>, vector<1x4x16xbf16>
    %415 = vector.shape_cast %414 : vector<1x4x16xbf16> to vector<4x16xbf16>
    %cst_375 = arith.constant dense<0.000000e+00> : vector<4x16xf32>
    %416 = tpu.matmul %415, %300, %cst_375 {dimension_numbers = #tpu.dot_dimension_numbers<[1], [0], [0], [1], [0, 0, 1, 1], [], []>} : vector<4x16xbf16>, vector<16x16xbf16>, vector<4x16xf32> -> vector<4x16xf32>
    %417 = arith.truncf %416 : vector<4x16xf32> to vector<4x16xbf16>
    %c14_376 = arith.constant 14 : index
    %c0_377 = arith.constant 0 : index
    %c0_378 = arith.constant 0 : index
    %418 = vector.load %arg9[%c14_376, %c0_377, %c0_378] : memref<16x16x32xbf16, #tpu.memory_space<vmem>>, vector<1x16x32xbf16>
    %419 = vector.shape_cast %418 : vector<1x16x32xbf16> to vector<16x32xbf16>
    %cst_379 = arith.constant dense<0.000000e+00> : vector<4x32xf32>
    %420 = tpu.matmul %417, %419, %cst_379 {dimension_numbers = #tpu.dot_dimension_numbers<[1], [0], [0], [1], [0, 0, 1, 1], [], []>} : vector<4x16xbf16>, vector<16x32xbf16>, vector<4x32xf32> -> vector<4x32xf32>
    %421 = arith.addf %413, %420 : vector<4x32xf32>
    %c15_380 = arith.constant 15 : index
    %c0_381 = arith.constant 0 : index
    %c0_382 = arith.constant 0 : index
    %422 = vector.load %arg8[%c15_380, %c0_381, %c0_382] : memref<16x4x16xbf16, #tpu.memory_space<vmem>>, vector<1x4x16xbf16>
    %423 = vector.shape_cast %422 : vector<1x4x16xbf16> to vector<4x16xbf16>
    %cst_383 = arith.constant dense<0.000000e+00> : vector<4x16xf32>
    %424 = tpu.matmul %423, %300, %cst_383 {dimension_numbers = #tpu.dot_dimension_numbers<[1], [0], [0], [1], [0, 0, 1, 1], [], []>} : vector<4x16xbf16>, vector<16x16xbf16>, vector<4x16xf32> -> vector<4x16xf32>
    %425 = arith.truncf %424 : vector<4x16xf32> to vector<4x16xbf16>
    %c15_384 = arith.constant 15 : index
    %c0_385 = arith.constant 0 : index
    %c0_386 = arith.constant 0 : index
    %426 = vector.load %arg9[%c15_384, %c0_385, %c0_386] : memref<16x16x32xbf16, #tpu.memory_space<vmem>>, vector<1x16x32xbf16>
    %427 = vector.shape_cast %426 : vector<1x16x32xbf16> to vector<16x32xbf16>
    %cst_387 = arith.constant dense<0.000000e+00> : vector<4x32xf32>
    %428 = tpu.matmul %425, %427, %cst_387 {dimension_numbers = #tpu.dot_dimension_numbers<[1], [0], [0], [1], [0, 0, 1, 1], [], []>} : vector<4x16xbf16>, vector<16x32xbf16>, vector<4x32xf32> -> vector<4x32xf32>
    %429 = arith.addf %421, %428 : vector<4x32xf32>
    %cst_388 = arith.constant dense<0.000000e+00> : vector<4xf32>
    %430 = vector.multi_reduction <add>, %429, %cst_388 [1] : vector<4x32xf32> to vector<4xf32>
    %431 = vector.shape_cast %430 : vector<4xf32> to vector<4x1xf32>
    %cst_389 = arith.constant dense<0.000000e+00> : vector<1xf32>
    %432 = vector.multi_reduction <add>, %431, %cst_389 [0] : vector<4x1xf32> to vector<1xf32>
    %433 = vector.shape_cast %432 : vector<1xf32> to vector<1x1xf32>
    %cst_390 = arith.constant 7.812500e-03 : f32
    %434 = vector.broadcast %cst_390 : f32 to vector<1x1xf32>
    %435 = arith.mulf %433, %434 : vector<1x1xf32>
    %436 = vector.broadcast %435 : vector<1x1xf32> to vector<4x32xf32>
    %437 = arith.subf %429, %436 : vector<4x32xf32>
    %438 = vector.broadcast %435 : vector<1x1xf32> to vector<4x32xf32>
    %439 = arith.subf %429, %438 : vector<4x32xf32>
    %440 = arith.mulf %437, %439 : vector<4x32xf32>
    %cst_391 = arith.constant dense<0.000000e+00> : vector<4xf32>
    %441 = vector.multi_reduction <add>, %440, %cst_391 [1] : vector<4x32xf32> to vector<4xf32>
    %442 = vector.shape_cast %441 : vector<4xf32> to vector<4x1xf32>
    %cst_392 = arith.constant dense<0.000000e+00> : vector<1xf32>
    %443 = vector.multi_reduction <add>, %442, %cst_392 [0] : vector<4x1xf32> to vector<1xf32>
    %444 = vector.shape_cast %443 : vector<1xf32> to vector<1x1xf32>
    %cst_393 = arith.constant 7.812500e-03 : f32
    %445 = vector.broadcast %cst_393 : f32 to vector<1x1xf32>
    %446 = arith.mulf %444, %445 : vector<1x1xf32>
    %447 = vector.broadcast %435 : vector<1x1xf32> to vector<4x32xf32>
    %448 = arith.subf %429, %447 : vector<4x32xf32>
    %cst_394 = arith.constant 9.99999974E-6 : f32
    %449 = vector.broadcast %cst_394 : f32 to vector<1x1xf32>
    %450 = arith.addf %446, %449 : vector<1x1xf32>
    %451 = math.rsqrt %450 : vector<1x1xf32>
    %452 = vector.broadcast %451 : vector<1x1xf32> to vector<4x32xf32>
    %453 = arith.mulf %448, %452 : vector<4x32xf32>
    %c0_395 = arith.constant 0 : index
    %c0_396 = arith.constant 0 : index
    %454 = vector.load %arg10[%c0_395, %c0_396] : memref<4x32xf32, #tpu.memory_space<vmem>>, vector<4x32xf32>
    %455 = arith.mulf %453, %454 : vector<4x32xf32>
    %c0_397 = arith.constant 0 : index
    %c0_398 = arith.constant 0 : index
    %456 = vector.load %arg11[%c0_397, %c0_398] : memref<4x32xf32, #tpu.memory_space<vmem>>, vector<4x32xf32>
    %457 = arith.addf %455, %456 : vector<4x32xf32>
    %cst_399 = arith.constant 0.000000e+00 : f32
    %458 = vector.broadcast %cst_399 : f32 to vector<4x32xf32>
    %459 = arith.cmpf ogt, %457, %458 : vector<4x32xf32>
    %cst_400 = arith.constant 2.000000e-01 : f32
    %460 = vector.broadcast %cst_400 : f32 to vector<4x32xf32>
    %461 = arith.mulf %460, %457 : vector<4x32xf32>
    %462 = arith.select %459, %457, %461 : vector<4x32xi1>, vector<4x32xf32>
    %463 = arith.truncf %462 : vector<4x32xf32> to vector<4x32xbf16>
    %cst_401 = arith.constant 0.000000e+00 : f32
    %464 = vector.broadcast %cst_401 : f32 to vector<1x64xf32>
    %c0_402 = arith.constant 0 : index
    %c0_403 = arith.constant 0 : index
    %c0_404 = arith.constant 0 : index
    %465 = vector.load %arg12[%c0_402, %c0_403, %c0_404] : memref<16x1x4xbf16, #tpu.memory_space<vmem>>, vector<1x1x4xbf16>
    %466 = vector.shape_cast %465 : vector<1x1x4xbf16> to vector<1x4xbf16>
    %cst_405 = arith.constant dense<0.000000e+00> : vector<1x32xf32>
    %467 = tpu.matmul %466, %463, %cst_405 {dimension_numbers = #tpu.dot_dimension_numbers<[1], [0], [0], [1], [0, 0, 1, 1], [], []>} : vector<1x4xbf16>, vector<4x32xbf16>, vector<1x32xf32> -> vector<1x32xf32>
    %468 = arith.truncf %467 : vector<1x32xf32> to vector<1x32xbf16>
    %c0_406 = arith.constant 0 : index
    %c0_407 = arith.constant 0 : index
    %c0_408 = arith.constant 0 : index
    %469 = vector.load %arg13[%c0_406, %c0_407, %c0_408] : memref<16x32x64xbf16, #tpu.memory_space<vmem>>, vector<1x32x64xbf16>
    %470 = vector.shape_cast %469 : vector<1x32x64xbf16> to vector<32x64xbf16>
    %cst_409 = arith.constant dense<0.000000e+00> : vector<1x64xf32>
    %471 = tpu.matmul %468, %470, %cst_409 {dimension_numbers = #tpu.dot_dimension_numbers<[1], [0], [0], [1], [0, 0, 1, 1], [], []>} : vector<1x32xbf16>, vector<32x64xbf16>, vector<1x64xf32> -> vector<1x64xf32>
    %472 = arith.addf %464, %471 : vector<1x64xf32>
    %c1_410 = arith.constant 1 : index
    %c0_411 = arith.constant 0 : index
    %c0_412 = arith.constant 0 : index
    %473 = vector.load %arg12[%c1_410, %c0_411, %c0_412] : memref<16x1x4xbf16, #tpu.memory_space<vmem>>, vector<1x1x4xbf16>
    %474 = vector.shape_cast %473 : vector<1x1x4xbf16> to vector<1x4xbf16>
    %cst_413 = arith.constant dense<0.000000e+00> : vector<1x32xf32>
    %475 = tpu.matmul %474, %463, %cst_413 {dimension_numbers = #tpu.dot_dimension_numbers<[1], [0], [0], [1], [0, 0, 1, 1], [], []>} : vector<1x4xbf16>, vector<4x32xbf16>, vector<1x32xf32> -> vector<1x32xf32>
    %476 = arith.truncf %475 : vector<1x32xf32> to vector<1x32xbf16>
    %c1_414 = arith.constant 1 : index
    %c0_415 = arith.constant 0 : index
    %c0_416 = arith.constant 0 : index
    %477 = vector.load %arg13[%c1_414, %c0_415, %c0_416] : memref<16x32x64xbf16, #tpu.memory_space<vmem>>, vector<1x32x64xbf16>
    %478 = vector.shape_cast %477 : vector<1x32x64xbf16> to vector<32x64xbf16>
    %cst_417 = arith.constant dense<0.000000e+00> : vector<1x64xf32>
    %479 = tpu.matmul %476, %478, %cst_417 {dimension_numbers = #tpu.dot_dimension_numbers<[1], [0], [0], [1], [0, 0, 1, 1], [], []>} : vector<1x32xbf16>, vector<32x64xbf16>, vector<1x64xf32> -> vector<1x64xf32>
    %480 = arith.addf %472, %479 : vector<1x64xf32>
    %c2_418 = arith.constant 2 : index
    %c0_419 = arith.constant 0 : index
    %c0_420 = arith.constant 0 : index
    %481 = vector.load %arg12[%c2_418, %c0_419, %c0_420] : memref<16x1x4xbf16, #tpu.memory_space<vmem>>, vector<1x1x4xbf16>
    %482 = vector.shape_cast %481 : vector<1x1x4xbf16> to vector<1x4xbf16>
    %cst_421 = arith.constant dense<0.000000e+00> : vector<1x32xf32>
    %483 = tpu.matmul %482, %463, %cst_421 {dimension_numbers = #tpu.dot_dimension_numbers<[1], [0], [0], [1], [0, 0, 1, 1], [], []>} : vector<1x4xbf16>, vector<4x32xbf16>, vector<1x32xf32> -> vector<1x32xf32>
    %484 = arith.truncf %483 : vector<1x32xf32> to vector<1x32xbf16>
    %c2_422 = arith.constant 2 : index
    %c0_423 = arith.constant 0 : index
    %c0_424 = arith.constant 0 : index
    %485 = vector.load %arg13[%c2_422, %c0_423, %c0_424] : memref<16x32x64xbf16, #tpu.memory_space<vmem>>, vector<1x32x64xbf16>
    %486 = vector.shape_cast %485 : vector<1x32x64xbf16> to vector<32x64xbf16>
    %cst_425 = arith.constant dense<0.000000e+00> : vector<1x64xf32>
    %487 = tpu.matmul %484, %486, %cst_425 {dimension_numbers = #tpu.dot_dimension_numbers<[1], [0], [0], [1], [0, 0, 1, 1], [], []>} : vector<1x32xbf16>, vector<32x64xbf16>, vector<1x64xf32> -> vector<1x64xf32>
    %488 = arith.addf %480, %487 : vector<1x64xf32>
    %c3_426 = arith.constant 3 : index
    %c0_427 = arith.constant 0 : index
    %c0_428 = arith.constant 0 : index
    %489 = vector.load %arg12[%c3_426, %c0_427, %c0_428] : memref<16x1x4xbf16, #tpu.memory_space<vmem>>, vector<1x1x4xbf16>
    %490 = vector.shape_cast %489 : vector<1x1x4xbf16> to vector<1x4xbf16>
    %cst_429 = arith.constant dense<0.000000e+00> : vector<1x32xf32>
    %491 = tpu.matmul %490, %463, %cst_429 {dimension_numbers = #tpu.dot_dimension_numbers<[1], [0], [0], [1], [0, 0, 1, 1], [], []>} : vector<1x4xbf16>, vector<4x32xbf16>, vector<1x32xf32> -> vector<1x32xf32>
    %492 = arith.truncf %491 : vector<1x32xf32> to vector<1x32xbf16>
    %c3_430 = arith.constant 3 : index
    %c0_431 = arith.constant 0 : index
    %c0_432 = arith.constant 0 : index
    %493 = vector.load %arg13[%c3_430, %c0_431, %c0_432] : memref<16x32x64xbf16, #tpu.memory_space<vmem>>, vector<1x32x64xbf16>
    %494 = vector.shape_cast %493 : vector<1x32x64xbf16> to vector<32x64xbf16>
    %cst_433 = arith.constant dense<0.000000e+00> : vector<1x64xf32>
    %495 = tpu.matmul %492, %494, %cst_433 {dimension_numbers = #tpu.dot_dimension_numbers<[1], [0], [0], [1], [0, 0, 1, 1], [], []>} : vector<1x32xbf16>, vector<32x64xbf16>, vector<1x64xf32> -> vector<1x64xf32>
    %496 = arith.addf %488, %495 : vector<1x64xf32>
    %c4_434 = arith.constant 4 : index
    %c0_435 = arith.constant 0 : index
    %c0_436 = arith.constant 0 : index
    %497 = vector.load %arg12[%c4_434, %c0_435, %c0_436] : memref<16x1x4xbf16, #tpu.memory_space<vmem>>, vector<1x1x4xbf16>
    %498 = vector.shape_cast %497 : vector<1x1x4xbf16> to vector<1x4xbf16>
    %cst_437 = arith.constant dense<0.000000e+00> : vector<1x32xf32>
    %499 = tpu.matmul %498, %463, %cst_437 {dimension_numbers = #tpu.dot_dimension_numbers<[1], [0], [0], [1], [0, 0, 1, 1], [], []>} : vector<1x4xbf16>, vector<4x32xbf16>, vector<1x32xf32> -> vector<1x32xf32>
    %500 = arith.truncf %499 : vector<1x32xf32> to vector<1x32xbf16>
    %c4_438 = arith.constant 4 : index
    %c0_439 = arith.constant 0 : index
    %c0_440 = arith.constant 0 : index
    %501 = vector.load %arg13[%c4_438, %c0_439, %c0_440] : memref<16x32x64xbf16, #tpu.memory_space<vmem>>, vector<1x32x64xbf16>
    %502 = vector.shape_cast %501 : vector<1x32x64xbf16> to vector<32x64xbf16>
    %cst_441 = arith.constant dense<0.000000e+00> : vector<1x64xf32>
    %503 = tpu.matmul %500, %502, %cst_441 {dimension_numbers = #tpu.dot_dimension_numbers<[1], [0], [0], [1], [0, 0, 1, 1], [], []>} : vector<1x32xbf16>, vector<32x64xbf16>, vector<1x64xf32> -> vector<1x64xf32>
    %504 = arith.addf %496, %503 : vector<1x64xf32>
    %c5_442 = arith.constant 5 : index
    %c0_443 = arith.constant 0 : index
    %c0_444 = arith.constant 0 : index
    %505 = vector.load %arg12[%c5_442, %c0_443, %c0_444] : memref<16x1x4xbf16, #tpu.memory_space<vmem>>, vector<1x1x4xbf16>
    %506 = vector.shape_cast %505 : vector<1x1x4xbf16> to vector<1x4xbf16>
    %cst_445 = arith.constant dense<0.000000e+00> : vector<1x32xf32>
    %507 = tpu.matmul %506, %463, %cst_445 {dimension_numbers = #tpu.dot_dimension_numbers<[1], [0], [0], [1], [0, 0, 1, 1], [], []>} : vector<1x4xbf16>, vector<4x32xbf16>, vector<1x32xf32> -> vector<1x32xf32>
    %508 = arith.truncf %507 : vector<1x32xf32> to vector<1x32xbf16>
    %c5_446 = arith.constant 5 : index
    %c0_447 = arith.constant 0 : index
    %c0_448 = arith.constant 0 : index
    %509 = vector.load %arg13[%c5_446, %c0_447, %c0_448] : memref<16x32x64xbf16, #tpu.memory_space<vmem>>, vector<1x32x64xbf16>
    %510 = vector.shape_cast %509 : vector<1x32x64xbf16> to vector<32x64xbf16>
    %cst_449 = arith.constant dense<0.000000e+00> : vector<1x64xf32>
    %511 = tpu.matmul %508, %510, %cst_449 {dimension_numbers = #tpu.dot_dimension_numbers<[1], [0], [0], [1], [0, 0, 1, 1], [], []>} : vector<1x32xbf16>, vector<32x64xbf16>, vector<1x64xf32> -> vector<1x64xf32>
    %512 = arith.addf %504, %511 : vector<1x64xf32>
    %c6_450 = arith.constant 6 : index
    %c0_451 = arith.constant 0 : index
    %c0_452 = arith.constant 0 : index
    %513 = vector.load %arg12[%c6_450, %c0_451, %c0_452] : memref<16x1x4xbf16, #tpu.memory_space<vmem>>, vector<1x1x4xbf16>
    %514 = vector.shape_cast %513 : vector<1x1x4xbf16> to vector<1x4xbf16>
    %cst_453 = arith.constant dense<0.000000e+00> : vector<1x32xf32>
    %515 = tpu.matmul %514, %463, %cst_453 {dimension_numbers = #tpu.dot_dimension_numbers<[1], [0], [0], [1], [0, 0, 1, 1], [], []>} : vector<1x4xbf16>, vector<4x32xbf16>, vector<1x32xf32> -> vector<1x32xf32>
    %516 = arith.truncf %515 : vector<1x32xf32> to vector<1x32xbf16>
    %c6_454 = arith.constant 6 : index
    %c0_455 = arith.constant 0 : index
    %c0_456 = arith.constant 0 : index
    %517 = vector.load %arg13[%c6_454, %c0_455, %c0_456] : memref<16x32x64xbf16, #tpu.memory_space<vmem>>, vector<1x32x64xbf16>
    %518 = vector.shape_cast %517 : vector<1x32x64xbf16> to vector<32x64xbf16>
    %cst_457 = arith.constant dense<0.000000e+00> : vector<1x64xf32>
    %519 = tpu.matmul %516, %518, %cst_457 {dimension_numbers = #tpu.dot_dimension_numbers<[1], [0], [0], [1], [0, 0, 1, 1], [], []>} : vector<1x32xbf16>, vector<32x64xbf16>, vector<1x64xf32> -> vector<1x64xf32>
    %520 = arith.addf %512, %519 : vector<1x64xf32>
    %c7_458 = arith.constant 7 : index
    %c0_459 = arith.constant 0 : index
    %c0_460 = arith.constant 0 : index
    %521 = vector.load %arg12[%c7_458, %c0_459, %c0_460] : memref<16x1x4xbf16, #tpu.memory_space<vmem>>, vector<1x1x4xbf16>
    %522 = vector.shape_cast %521 : vector<1x1x4xbf16> to vector<1x4xbf16>
    %cst_461 = arith.constant dense<0.000000e+00> : vector<1x32xf32>
    %523 = tpu.matmul %522, %463, %cst_461 {dimension_numbers = #tpu.dot_dimension_numbers<[1], [0], [0], [1], [0, 0, 1, 1], [], []>} : vector<1x4xbf16>, vector<4x32xbf16>, vector<1x32xf32> -> vector<1x32xf32>
    %524 = arith.truncf %523 : vector<1x32xf32> to vector<1x32xbf16>
    %c7_462 = arith.constant 7 : index
    %c0_463 = arith.constant 0 : index
    %c0_464 = arith.constant 0 : index
    %525 = vector.load %arg13[%c7_462, %c0_463, %c0_464] : memref<16x32x64xbf16, #tpu.memory_space<vmem>>, vector<1x32x64xbf16>
    %526 = vector.shape_cast %525 : vector<1x32x64xbf16> to vector<32x64xbf16>
    %cst_465 = arith.constant dense<0.000000e+00> : vector<1x64xf32>
    %527 = tpu.matmul %524, %526, %cst_465 {dimension_numbers = #tpu.dot_dimension_numbers<[1], [0], [0], [1], [0, 0, 1, 1], [], []>} : vector<1x32xbf16>, vector<32x64xbf16>, vector<1x64xf32> -> vector<1x64xf32>
    %528 = arith.addf %520, %527 : vector<1x64xf32>
    %c8_466 = arith.constant 8 : index
    %c0_467 = arith.constant 0 : index
    %c0_468 = arith.constant 0 : index
    %529 = vector.load %arg12[%c8_466, %c0_467, %c0_468] : memref<16x1x4xbf16, #tpu.memory_space<vmem>>, vector<1x1x4xbf16>
    %530 = vector.shape_cast %529 : vector<1x1x4xbf16> to vector<1x4xbf16>
    %cst_469 = arith.constant dense<0.000000e+00> : vector<1x32xf32>
    %531 = tpu.matmul %530, %463, %cst_469 {dimension_numbers = #tpu.dot_dimension_numbers<[1], [0], [0], [1], [0, 0, 1, 1], [], []>} : vector<1x4xbf16>, vector<4x32xbf16>, vector<1x32xf32> -> vector<1x32xf32>
    %532 = arith.truncf %531 : vector<1x32xf32> to vector<1x32xbf16>
    %c8_470 = arith.constant 8 : index
    %c0_471 = arith.constant 0 : index
    %c0_472 = arith.constant 0 : index
    %533 = vector.load %arg13[%c8_470, %c0_471, %c0_472] : memref<16x32x64xbf16, #tpu.memory_space<vmem>>, vector<1x32x64xbf16>
    %534 = vector.shape_cast %533 : vector<1x32x64xbf16> to vector<32x64xbf16>
    %cst_473 = arith.constant dense<0.000000e+00> : vector<1x64xf32>
    %535 = tpu.matmul %532, %534, %cst_473 {dimension_numbers = #tpu.dot_dimension_numbers<[1], [0], [0], [1], [0, 0, 1, 1], [], []>} : vector<1x32xbf16>, vector<32x64xbf16>, vector<1x64xf32> -> vector<1x64xf32>
    %536 = arith.addf %528, %535 : vector<1x64xf32>
    %c9_474 = arith.constant 9 : index
    %c0_475 = arith.constant 0 : index
    %c0_476 = arith.constant 0 : index
    %537 = vector.load %arg12[%c9_474, %c0_475, %c0_476] : memref<16x1x4xbf16, #tpu.memory_space<vmem>>, vector<1x1x4xbf16>
    %538 = vector.shape_cast %537 : vector<1x1x4xbf16> to vector<1x4xbf16>
    %cst_477 = arith.constant dense<0.000000e+00> : vector<1x32xf32>
    %539 = tpu.matmul %538, %463, %cst_477 {dimension_numbers = #tpu.dot_dimension_numbers<[1], [0], [0], [1], [0, 0, 1, 1], [], []>} : vector<1x4xbf16>, vector<4x32xbf16>, vector<1x32xf32> -> vector<1x32xf32>
    %540 = arith.truncf %539 : vector<1x32xf32> to vector<1x32xbf16>
    %c9_478 = arith.constant 9 : index
    %c0_479 = arith.constant 0 : index
    %c0_480 = arith.constant 0 : index
    %541 = vector.load %arg13[%c9_478, %c0_479, %c0_480] : memref<16x32x64xbf16, #tpu.memory_space<vmem>>, vector<1x32x64xbf16>
    %542 = vector.shape_cast %541 : vector<1x32x64xbf16> to vector<32x64xbf16>
    %cst_481 = arith.constant dense<0.000000e+00> : vector<1x64xf32>
    %543 = tpu.matmul %540, %542, %cst_481 {dimension_numbers = #tpu.dot_dimension_numbers<[1], [0], [0], [1], [0, 0, 1, 1], [], []>} : vector<1x32xbf16>, vector<32x64xbf16>, vector<1x64xf32> -> vector<1x64xf32>
    %544 = arith.addf %536, %543 : vector<1x64xf32>
    %c10_482 = arith.constant 10 : index
    %c0_483 = arith.constant 0 : index
    %c0_484 = arith.constant 0 : index
    %545 = vector.load %arg12[%c10_482, %c0_483, %c0_484] : memref<16x1x4xbf16, #tpu.memory_space<vmem>>, vector<1x1x4xbf16>
    %546 = vector.shape_cast %545 : vector<1x1x4xbf16> to vector<1x4xbf16>
    %cst_485 = arith.constant dense<0.000000e+00> : vector<1x32xf32>
    %547 = tpu.matmul %546, %463, %cst_485 {dimension_numbers = #tpu.dot_dimension_numbers<[1], [0], [0], [1], [0, 0, 1, 1], [], []>} : vector<1x4xbf16>, vector<4x32xbf16>, vector<1x32xf32> -> vector<1x32xf32>
    %548 = arith.truncf %547 : vector<1x32xf32> to vector<1x32xbf16>
    %c10_486 = arith.constant 10 : index
    %c0_487 = arith.constant 0 : index
    %c0_488 = arith.constant 0 : index
    %549 = vector.load %arg13[%c10_486, %c0_487, %c0_488] : memref<16x32x64xbf16, #tpu.memory_space<vmem>>, vector<1x32x64xbf16>
    %550 = vector.shape_cast %549 : vector<1x32x64xbf16> to vector<32x64xbf16>
    %cst_489 = arith.constant dense<0.000000e+00> : vector<1x64xf32>
    %551 = tpu.matmul %548, %550, %cst_489 {dimension_numbers = #tpu.dot_dimension_numbers<[1], [0], [0], [1], [0, 0, 1, 1], [], []>} : vector<1x32xbf16>, vector<32x64xbf16>, vector<1x64xf32> -> vector<1x64xf32>
    %552 = arith.addf %544, %551 : vector<1x64xf32>
    %c11_490 = arith.constant 11 : index
    %c0_491 = arith.constant 0 : index
    %c0_492 = arith.constant 0 : index
    %553 = vector.load %arg12[%c11_490, %c0_491, %c0_492] : memref<16x1x4xbf16, #tpu.memory_space<vmem>>, vector<1x1x4xbf16>
    %554 = vector.shape_cast %553 : vector<1x1x4xbf16> to vector<1x4xbf16>
    %cst_493 = arith.constant dense<0.000000e+00> : vector<1x32xf32>
    %555 = tpu.matmul %554, %463, %cst_493 {dimension_numbers = #tpu.dot_dimension_numbers<[1], [0], [0], [1], [0, 0, 1, 1], [], []>} : vector<1x4xbf16>, vector<4x32xbf16>, vector<1x32xf32> -> vector<1x32xf32>
    %556 = arith.truncf %555 : vector<1x32xf32> to vector<1x32xbf16>
    %c11_494 = arith.constant 11 : index
    %c0_495 = arith.constant 0 : index
    %c0_496 = arith.constant 0 : index
    %557 = vector.load %arg13[%c11_494, %c0_495, %c0_496] : memref<16x32x64xbf16, #tpu.memory_space<vmem>>, vector<1x32x64xbf16>
    %558 = vector.shape_cast %557 : vector<1x32x64xbf16> to vector<32x64xbf16>
    %cst_497 = arith.constant dense<0.000000e+00> : vector<1x64xf32>
    %559 = tpu.matmul %556, %558, %cst_497 {dimension_numbers = #tpu.dot_dimension_numbers<[1], [0], [0], [1], [0, 0, 1, 1], [], []>} : vector<1x32xbf16>, vector<32x64xbf16>, vector<1x64xf32> -> vector<1x64xf32>
    %560 = arith.addf %552, %559 : vector<1x64xf32>
    %c12_498 = arith.constant 12 : index
    %c0_499 = arith.constant 0 : index
    %c0_500 = arith.constant 0 : index
    %561 = vector.load %arg12[%c12_498, %c0_499, %c0_500] : memref<16x1x4xbf16, #tpu.memory_space<vmem>>, vector<1x1x4xbf16>
    %562 = vector.shape_cast %561 : vector<1x1x4xbf16> to vector<1x4xbf16>
    %cst_501 = arith.constant dense<0.000000e+00> : vector<1x32xf32>
    %563 = tpu.matmul %562, %463, %cst_501 {dimension_numbers = #tpu.dot_dimension_numbers<[1], [0], [0], [1], [0, 0, 1, 1], [], []>} : vector<1x4xbf16>, vector<4x32xbf16>, vector<1x32xf32> -> vector<1x32xf32>
    %564 = arith.truncf %563 : vector<1x32xf32> to vector<1x32xbf16>
    %c12_502 = arith.constant 12 : index
    %c0_503 = arith.constant 0 : index
    %c0_504 = arith.constant 0 : index
    %565 = vector.load %arg13[%c12_502, %c0_503, %c0_504] : memref<16x32x64xbf16, #tpu.memory_space<vmem>>, vector<1x32x64xbf16>
    %566 = vector.shape_cast %565 : vector<1x32x64xbf16> to vector<32x64xbf16>
    %cst_505 = arith.constant dense<0.000000e+00> : vector<1x64xf32>
    %567 = tpu.matmul %564, %566, %cst_505 {dimension_numbers = #tpu.dot_dimension_numbers<[1], [0], [0], [1], [0, 0, 1, 1], [], []>} : vector<1x32xbf16>, vector<32x64xbf16>, vector<1x64xf32> -> vector<1x64xf32>
    %568 = arith.addf %560, %567 : vector<1x64xf32>
    %c13_506 = arith.constant 13 : index
    %c0_507 = arith.constant 0 : index
    %c0_508 = arith.constant 0 : index
    %569 = vector.load %arg12[%c13_506, %c0_507, %c0_508] : memref<16x1x4xbf16, #tpu.memory_space<vmem>>, vector<1x1x4xbf16>
    %570 = vector.shape_cast %569 : vector<1x1x4xbf16> to vector<1x4xbf16>
    %cst_509 = arith.constant dense<0.000000e+00> : vector<1x32xf32>
    %571 = tpu.matmul %570, %463, %cst_509 {dimension_numbers = #tpu.dot_dimension_numbers<[1], [0], [0], [1], [0, 0, 1, 1], [], []>} : vector<1x4xbf16>, vector<4x32xbf16>, vector<1x32xf32> -> vector<1x32xf32>
    %572 = arith.truncf %571 : vector<1x32xf32> to vector<1x32xbf16>
    %c13_510 = arith.constant 13 : index
    %c0_511 = arith.constant 0 : index
    %c0_512 = arith.constant 0 : index
    %573 = vector.load %arg13[%c13_510, %c0_511, %c0_512] : memref<16x32x64xbf16, #tpu.memory_space<vmem>>, vector<1x32x64xbf16>
    %574 = vector.shape_cast %573 : vector<1x32x64xbf16> to vector<32x64xbf16>
    %cst_513 = arith.constant dense<0.000000e+00> : vector<1x64xf32>
    %575 = tpu.matmul %572, %574, %cst_513 {dimension_numbers = #tpu.dot_dimension_numbers<[1], [0], [0], [1], [0, 0, 1, 1], [], []>} : vector<1x32xbf16>, vector<32x64xbf16>, vector<1x64xf32> -> vector<1x64xf32>
    %576 = arith.addf %568, %575 : vector<1x64xf32>
    %c14_514 = arith.constant 14 : index
    %c0_515 = arith.constant 0 : index
    %c0_516 = arith.constant 0 : index
    %577 = vector.load %arg12[%c14_514, %c0_515, %c0_516] : memref<16x1x4xbf16, #tpu.memory_space<vmem>>, vector<1x1x4xbf16>
    %578 = vector.shape_cast %577 : vector<1x1x4xbf16> to vector<1x4xbf16>
    %cst_517 = arith.constant dense<0.000000e+00> : vector<1x32xf32>
    %579 = tpu.matmul %578, %463, %cst_517 {dimension_numbers = #tpu.dot_dimension_numbers<[1], [0], [0], [1], [0, 0, 1, 1], [], []>} : vector<1x4xbf16>, vector<4x32xbf16>, vector<1x32xf32> -> vector<1x32xf32>
    %580 = arith.truncf %579 : vector<1x32xf32> to vector<1x32xbf16>
    %c14_518 = arith.constant 14 : index
    %c0_519 = arith.constant 0 : index
    %c0_520 = arith.constant 0 : index
    %581 = vector.load %arg13[%c14_518, %c0_519, %c0_520] : memref<16x32x64xbf16, #tpu.memory_space<vmem>>, vector<1x32x64xbf16>
    %582 = vector.shape_cast %581 : vector<1x32x64xbf16> to vector<32x64xbf16>
    %cst_521 = arith.constant dense<0.000000e+00> : vector<1x64xf32>
    %583 = tpu.matmul %580, %582, %cst_521 {dimension_numbers = #tpu.dot_dimension_numbers<[1], [0], [0], [1], [0, 0, 1, 1], [], []>} : vector<1x32xbf16>, vector<32x64xbf16>, vector<1x64xf32> -> vector<1x64xf32>
    %584 = arith.addf %576, %583 : vector<1x64xf32>
    %c15_522 = arith.constant 15 : index
    %c0_523 = arith.constant 0 : index
    %c0_524 = arith.constant 0 : index
    %585 = vector.load %arg12[%c15_522, %c0_523, %c0_524] : memref<16x1x4xbf16, #tpu.memory_space<vmem>>, vector<1x1x4xbf16>
    %586 = vector.shape_cast %585 : vector<1x1x4xbf16> to vector<1x4xbf16>
    %cst_525 = arith.constant dense<0.000000e+00> : vector<1x32xf32>
    %587 = tpu.matmul %586, %463, %cst_525 {dimension_numbers = #tpu.dot_dimension_numbers<[1], [0], [0], [1], [0, 0, 1, 1], [], []>} : vector<1x4xbf16>, vector<4x32xbf16>, vector<1x32xf32> -> vector<1x32xf32>
    %588 = arith.truncf %587 : vector<1x32xf32> to vector<1x32xbf16>
    %c15_526 = arith.constant 15 : index
    %c0_527 = arith.constant 0 : index
    %c0_528 = arith.constant 0 : index
    %589 = vector.load %arg13[%c15_526, %c0_527, %c0_528] : memref<16x32x64xbf16, #tpu.memory_space<vmem>>, vector<1x32x64xbf16>
    %590 = vector.shape_cast %589 : vector<1x32x64xbf16> to vector<32x64xbf16>
    %cst_529 = arith.constant dense<0.000000e+00> : vector<1x64xf32>
    %591 = tpu.matmul %588, %590, %cst_529 {dimension_numbers = #tpu.dot_dimension_numbers<[1], [0], [0], [1], [0, 0, 1, 1], [], []>} : vector<1x32xbf16>, vector<32x64xbf16>, vector<1x64xf32> -> vector<1x64xf32>
    %592 = arith.addf %584, %591 : vector<1x64xf32>
    %cst_530 = arith.constant dense<0.000000e+00> : vector<1xf32>
    %593 = vector.multi_reduction <add>, %592, %cst_530 [1] : vector<1x64xf32> to vector<1xf32>
    %594 = vector.shape_cast %593 : vector<1xf32> to vector<1x1xf32>
    %cst_531 = arith.constant dense<0.000000e+00> : vector<1xf32>
    %595 = vector.multi_reduction <add>, %594, %cst_531 [0] : vector<1x1xf32> to vector<1xf32>
    %596 = vector.shape_cast %595 : vector<1xf32> to vector<1x1xf32>
    %cst_532 = arith.constant 1.562500e-02 : f32
    %597 = vector.broadcast %cst_532 : f32 to vector<1x1xf32>
    %598 = arith.mulf %596, %597 : vector<1x1xf32>
    %599 = vector.broadcast %598 : vector<1x1xf32> to vector<1x64xf32>
    %600 = arith.subf %592, %599 : vector<1x64xf32>
    %601 = vector.broadcast %598 : vector<1x1xf32> to vector<1x64xf32>
    %602 = arith.subf %592, %601 : vector<1x64xf32>
    %603 = arith.mulf %600, %602 : vector<1x64xf32>
    %cst_533 = arith.constant dense<0.000000e+00> : vector<1xf32>
    %604 = vector.multi_reduction <add>, %603, %cst_533 [1] : vector<1x64xf32> to vector<1xf32>
    %605 = vector.shape_cast %604 : vector<1xf32> to vector<1x1xf32>
    %cst_534 = arith.constant dense<0.000000e+00> : vector<1xf32>
    %606 = vector.multi_reduction <add>, %605, %cst_534 [0] : vector<1x1xf32> to vector<1xf32>
    %607 = vector.shape_cast %606 : vector<1xf32> to vector<1x1xf32>
    %cst_535 = arith.constant 1.562500e-02 : f32
    %608 = vector.broadcast %cst_535 : f32 to vector<1x1xf32>
    %609 = arith.mulf %607, %608 : vector<1x1xf32>
    %610 = vector.broadcast %598 : vector<1x1xf32> to vector<1x64xf32>
    %611 = arith.subf %592, %610 : vector<1x64xf32>
    %cst_536 = arith.constant 9.99999974E-6 : f32
    %612 = vector.broadcast %cst_536 : f32 to vector<1x1xf32>
    %613 = arith.addf %609, %612 : vector<1x1xf32>
    %614 = math.rsqrt %613 : vector<1x1xf32>
    %615 = vector.broadcast %614 : vector<1x1xf32> to vector<1x64xf32>
    %616 = arith.mulf %611, %615 : vector<1x64xf32>
    %c0_537 = arith.constant 0 : index
    %c0_538 = arith.constant 0 : index
    %617 = vector.load %arg14[%c0_537, %c0_538] : memref<1x64xf32, #tpu.memory_space<vmem>>, vector<1x64xf32>
    %618 = arith.mulf %616, %617 : vector<1x64xf32>
    %c0_539 = arith.constant 0 : index
    %c0_540 = arith.constant 0 : index
    %619 = vector.load %arg15[%c0_539, %c0_540] : memref<1x64xf32, #tpu.memory_space<vmem>>, vector<1x64xf32>
    %620 = arith.addf %618, %619 : vector<1x64xf32>
    %cst_541 = arith.constant 0.000000e+00 : f32
    %621 = vector.broadcast %cst_541 : f32 to vector<1x64xf32>
    %622 = arith.cmpf ogt, %620, %621 : vector<1x64xf32>
    %cst_542 = arith.constant 2.000000e-01 : f32
    %623 = vector.broadcast %cst_542 : f32 to vector<1x64xf32>
    %624 = arith.mulf %623, %620 : vector<1x64xf32>
    %625 = arith.select %622, %620, %624 : vector<1x64xi1>, vector<1x64xf32>
    %cst_543 = arith.constant 0.000000e+00 : f32
    %626 = vector.broadcast %cst_543 : f32 to vector<1x6xf32>
    %627 = arith.truncf %625 : vector<1x64xf32> to vector<1x64xbf16>
    %c0_544 = arith.constant 0 : index
    %c0_545 = arith.constant 0 : index
    %c0_546 = arith.constant 0 : index
    %628 = vector.load %arg16[%c0_544, %c0_545, %c0_546] : memref<1x64x6xbf16, #tpu.memory_space<vmem>>, vector<1x64x6xbf16>
    %629 = vector.shape_cast %628 : vector<1x64x6xbf16> to vector<64x6xbf16>
    %cst_547 = arith.constant dense<0.000000e+00> : vector<1x6xf32>
    %630 = tpu.matmul %627, %629, %cst_547 {dimension_numbers = #tpu.dot_dimension_numbers<[1], [0], [0], [1], [0, 0, 1, 1], [], []>} : vector<1x64xbf16>, vector<64x6xbf16>, vector<1x6xf32> -> vector<1x6xf32>
    %631 = arith.addf %626, %630 : vector<1x6xf32>
    %c0_548 = arith.constant 0 : index
    %c0_549 = arith.constant 0 : index
    %632 = vector.load %arg17[%c0_548, %c0_549] : memref<1x6xf32, #tpu.memory_space<vmem>>, vector<1x6xf32>
    %633 = arith.addf %631, %632 : vector<1x6xf32>
    %cst_550 = arith.constant 0.000000e+00 : f32
    %634 = vector.broadcast %cst_550 : f32 to vector<1x6xf32>
    %635 = arith.subf %634, %633 : vector<1x6xf32>
    %636 = math.exp %635 : vector<1x6xf32>
    %cst_551 = arith.constant 1.000000e+00 : f32
    %637 = vector.broadcast %cst_551 : f32 to vector<1x6xf32>
    %638 = arith.addf %637, %636 : vector<1x6xf32>
    %cst_552 = arith.constant 1.000000e+00 : f32
    %639 = vector.broadcast %cst_552 : f32 to vector<1x6xf32>
    %640 = arith.divf %639, %638 : vector<1x6xf32>
    %641 = tpu.iota {dimensions = array<i32: 1>} : vector<1x6xi32>
    %c1_i32 = arith.constant 1 : i32
    %642 = vector.broadcast %c1_i32 : i32 to vector<1x6xi32>
    %643 = arith.cmpi sge, %641, %642 : vector<1x6xi32>
    %644 = arith.select %643, %640, %633 : vector<1x6xi1>, vector<1x6xf32>
    %c0_553 = arith.constant 0 : index
    %c0_554 = arith.constant 0 : index
    %c0_555 = arith.constant 0 : index
    %645 = vector.load %arg18[%c0_553, %c0_554, %c0_555] : memref<1x1x6xf32, #tpu.memory_space<vmem>>, vector<1x1x6xf32>
    %646 = vector.shape_cast %645 : vector<1x1x6xf32> to vector<1x6xf32>
    %647 = vector.shape_cast %644 : vector<1x6xf32> to vector<1x1x6xf32>
    tpu.vector_store %arg18[%c0_553, %c0_554, %c0_555], %647 {strides = array<i32>} : memref<1x1x6xf32, #tpu.memory_space<vmem>>, vector<1x1x6xf32>,
    return
  }
  func.func @transform_0(%arg0: i32) -> (i32, i32, i32) {
    %c0_i32 = arith.constant 0 : i32
    %c0_i32_0 = arith.constant 0 : i32
    %c0_i32_1 = arith.constant 0 : i32
    return %arg0, %c0_i32, %c0_i32_0 : i32, i32, i32
  }
  func.func @transform_1(%arg0: i32) -> (i32, i32, i32) {
    %c0_i32 = arith.constant 0 : i32
    %c0_i32_0 = arith.constant 0 : i32
    %c0_i32_1 = arith.constant 0 : i32
    %c0_i32_2 = arith.constant 0 : i32
    return %c0_i32, %c0_i32_0, %c0_i32_1 : i32, i32, i32
  }
  func.func @transform_2(%arg0: i32) -> (i32, i32, i32) {
    %c0_i32 = arith.constant 0 : i32
    %c0_i32_0 = arith.constant 0 : i32
    %c0_i32_1 = arith.constant 0 : i32
    %c0_i32_2 = arith.constant 0 : i32
    return %c0_i32, %c0_i32_0, %c0_i32_1 : i32, i32, i32
  }
  func.func @transform_3(%arg0: i32) -> (i32, i32, i32) {
    %c0_i32 = arith.constant 0 : i32
    %c0_i32_0 = arith.constant 0 : i32
    %c0_i32_1 = arith.constant 0 : i32
    %c0_i32_2 = arith.constant 0 : i32
    return %c0_i32, %c0_i32_0, %c0_i32_1 : i32, i32, i32
  }
  func.func @transform_4(%arg0: i32) -> (i32, i32, i32) {
    %c0_i32 = arith.constant 0 : i32
    %c0_i32_0 = arith.constant 0 : i32
    %c0_i32_1 = arith.constant 0 : i32
    %c0_i32_2 = arith.constant 0 : i32
    return %c0_i32, %c0_i32_0, %c0_i32_1 : i32, i32, i32
  }
  func.func @transform_5(%arg0: i32) -> (i32, i32) {
    %c0_i32 = arith.constant 0 : i32
    %c0_i32_0 = arith.constant 0 : i32
    %c0_i32_1 = arith.constant 0 : i32
    return %c0_i32, %c0_i32_0 : i32, i32
  }
  func.func @transform_6(%arg0: i32) -> (i32, i32) {
    %c0_i32 = arith.constant 0 : i32
    %c0_i32_0 = arith.constant 0 : i32
    %c0_i32_1 = arith.constant 0 : i32
    return %c0_i32, %c0_i32_0 : i32, i32
  }
  func.func @transform_7(%arg0: i32) -> (i32, i32, i32) {
    %c0_i32 = arith.constant 0 : i32
    %c0_i32_0 = arith.constant 0 : i32
    %c0_i32_1 = arith.constant 0 : i32
    %c0_i32_2 = arith.constant 0 : i32
    return %c0_i32, %c0_i32_0, %c0_i32_1 : i32, i32, i32
  }
  func.func @transform_8(%arg0: i32) -> (i32, i32, i32) {
    %c0_i32 = arith.constant 0 : i32
    %c0_i32_0 = arith.constant 0 : i32
    %c0_i32_1 = arith.constant 0 : i32
    %c0_i32_2 = arith.constant 0 : i32
    return %c0_i32, %c0_i32_0, %c0_i32_1 : i32, i32, i32
  }
  func.func @transform_9(%arg0: i32) -> (i32, i32) {
    %c0_i32 = arith.constant 0 : i32
    %c0_i32_0 = arith.constant 0 : i32
    %c0_i32_1 = arith.constant 0 : i32
    return %c0_i32, %c0_i32_0 : i32, i32
  }
  func.func @transform_10(%arg0: i32) -> (i32, i32) {
    %c0_i32 = arith.constant 0 : i32
    %c0_i32_0 = arith.constant 0 : i32
    %c0_i32_1 = arith.constant 0 : i32
    return %c0_i32, %c0_i32_0 : i32, i32
  }
  func.func @transform_11(%arg0: i32) -> (i32, i32, i32) {
    %c0_i32 = arith.constant 0 : i32
    %c0_i32_0 = arith.constant 0 : i32
    %c0_i32_1 = arith.constant 0 : i32
    %c0_i32_2 = arith.constant 0 : i32
    return %c0_i32, %c0_i32_0, %c0_i32_1 : i32, i32, i32
  }
  func.func @transform_12(%arg0: i32) -> (i32, i32, i32) {
    %c0_i32 = arith.constant 0 : i32
    %c0_i32_0 = arith.constant 0 : i32
    %c0_i32_1 = arith.constant 0 : i32
    %c0_i32_2 = arith.constant 0 : i32
    return %c0_i32, %c0_i32_0, %c0_i32_1 : i32, i32, i32
  }
  func.func @transform_13(%arg0: i32) -> (i32, i32) {
    %c0_i32 = arith.constant 0 : i32
    %c0_i32_0 = arith.constant 0 : i32
    %c0_i32_1 = arith.constant 0 : i32
    return %c0_i32, %c0_i32_0 : i32, i32
  }
  func.func @transform_14(%arg0: i32) -> (i32, i32) {
    %c0_i32 = arith.constant 0 : i32
    %c0_i32_0 = arith.constant 0 : i32
    %c0_i32_1 = arith.constant 0 : i32
    return %c0_i32, %c0_i32_0 : i32, i32
  }
  func.func @transform_15(%arg0: i32) -> (i32, i32, i32) {
    %c0_i32 = arith.constant 0 : i32
    %c0_i32_0 = arith.constant 0 : i32
    %c0_i32_1 = arith.constant 0 : i32
    %c0_i32_2 = arith.constant 0 : i32
    return %c0_i32, %c0_i32_0, %c0_i32_1 : i32, i32, i32
  }
  func.func @transform_16(%arg0: i32) -> (i32, i32) {
    %c0_i32 = arith.constant 0 : i32
    %c0_i32_0 = arith.constant 0 : i32
    %c0_i32_1 = arith.constant 0 : i32
    return %c0_i32, %c0_i32_0 : i32, i32
  }
  func.func @transform_17(%arg0: i32) -> (i32, i32, i32) {
    %c0_i32 = arith.constant 0 : i32
    %c0_i32_0 = arith.constant 0 : i32
    %c0_i32_1 = arith.constant 0 : i32
    return %arg0, %c0_i32, %c0_i32_0 : i32, i32, i32
  }
}

</mosaic_0001>

<bundles_post_ra>
// kernel: discriminator_forward.1
= control target key start
LH: loop header
LB: loop body
LE: loop exit
PB: predicated region body
PF: predicated region fallthrough
CT: control target
= control target key end

     0   :  { %s14080_s0 = inlined_call_operand.vmem [shape: f32[2,256,3], index: 0, kind: input, shape index: {}]   ;;  %s14081_s1 = inlined_call_operand.hbm [shape: bf16[16,64,256], index: 1, kind: input, shape index: {}]   ;;  %s14082_s2 = inlined_call_operand.vmem [shape: bf16[16,3,8], index: 2, kind: input, shape index: {}]   ;;  %s14083_s3 = inlined_call_operand.vmem [shape: bf16[16,16,64], index: 3, kind: input, shape index: {}]   ;;  %s14084_s4 = inlined_call_operand.vmem [shape: bf16[16,8,16], index: 4, kind: input, shape index: {}]   ;;  %s14085_s5 = inlined_call_operand.hbm [shape: f32[16,16], index: 5, kind: input, shape index: {}]   ;;  %s14086_s6 = inlined_call_operand.hbm [shape: f32[16,16], index: 6, kind: input, shape index: {}]   ;;  %s14087_s7 = inlined_call_operand.vmem [shape: bf16[16,4,16], index: 7, kind: input, shape index: {}]   ;;  %s14088_s8 = inlined_call_operand.vmem [shape: bf16[16,16,32], index: 8, kind: input, shape index: {}]   ;;  %s14089_s9 = inlined_call_operand.hbm [shape: f32[4,32], index: 9, kind: input, shape index: {}]   ;;  %s14090_s10 = inlined_call_operand.hbm [shape: f32[4,32], index: 10, kind: input, shape index: {}]   ;;  %s14091_s11 = inlined_call_operand.vmem [shape: bf16[16,1,4], index: 11, kind: input, shape index: {}]   ;;  %s14092_s12 = inlined_call_operand.vmem [shape: bf16[16,32,64], index: 12, kind: input, shape index: {}]   ;;  %s14093_s13 = inlined_call_operand.vmem [shape: f32[1,64], index: 13, kind: input, shape index: {}]   ;;  %s14094_s14 = inlined_call_operand.vmem [shape: f32[1,64], index: 14, kind: input, shape index: {}]   ;;  %s14095_s15 = inlined_call_operand.vmem [shape: bf16[1,64,6], index: 15, kind: input, shape index: {}]   ;;  %s14096_s16 = inlined_call_operand.hbm [shape: f32[1,6], index: 16, kind: input, shape index: {}]   ;;  %s14097_s17 = inlined_call_operand.vmem [shape: f32[2,1,6], index: 17, kind: output, shape index: {}]  }
   0x1   :  { %14100 = sst [smem:[#allocation21_spill]] %s14080_s0 }
   0x2   :  { %14101 = sst [smem:[#allocation22_spill]] %s14081_s1 }
   0x3   :  { %22 = vsyncpa [#allocation3], 0 }
   0x4   :  { %23 = vsyncpa [#allocation5], 0 }
   0x5   :  { %24 = vsyncpa [#allocation8], 0 }
   0x6   :  { %25 = vsyncpa [#allocation11], 0  ;;  %s12321_s24 = smov 0  }
   0x7 LB: > { %14102 = sst [smem:[#allocation16_spill]] %s12218_s24  ;;  %s12327_s25 = sadd.s32 4294967295, %s12218_s24   ;;  %s12218_s24 = sphi %s12321_s24, %s31_s24  }
   0x8   : > { %p9282_p0 = scmp.ge.s32.totalorder %s12218_s24, 1  ;;  %p424_p1 = scmp.lt.s32.totalorder %s12218_s24, 3 }
   0x9   : > { %p14099_p2 = scmp.eq.s32.totalorder %s12327_s25, 0  ;;  %s12220_s27 = smov [#allocation4]  }
   0xa   : > { %p12332_p3 = pnand %p9282_p0, %p424_p1  ;;  %s458_s28 = sshll.u32 %s12220_s27, 4  ;;  %s459_s28 = int_to_ptr.vmem [resolvable:$true] %s458_s28 }
   0xb   : > { %s12221_s29 = smov [#allocation7]   ;;  %s12222_s18 = smov [#allocation2]  }
   0xc   : > { %p11720_p4 = pneg %p12332_p3  ;;  %s491_s0 = sshll.u32 %s12221_s29, 4  ;;  %s12338_s0 = int_to_ptr.vmem [resolvable:$true] %s491_s0 }
   0xd   : > { %s436_s19 = sshll.u32 %s12222_s18, 4  ;;  %s12223_s1 = smov [#allocation6]   ;;  %s12346_s19 = int_to_ptr.vmem [resolvable:$true] %s436_s19 }
   0xe   : > { %p12342_p5 = pnand %p14099_p2, %p11720_p4  ;;  %s12348_s20 = sshll.u32 %s12223_s1, 4  ;;  %s472_s20 = int_to_ptr.vmem [resolvable:$true] %s12348_s20 }
   0xf   : > { %s12051_s22 = scalar_lea.vmem %s459_s28, 256  ;;  %p12059_p10 = scmp.lt.s32.totalorder %s459_s28, %s459_s28 }
  0x10   : > { %p12352_p6 = pneg %p12342_p5  ;;  %p12052_p7 = scmp.ne.s32.totalorder %s459_s28, %s12051_s22 }
  0x11   : > { %p12060_p11 = scmp.lt.s32.totalorder %s12051_s22, %s12051_s22 }
  0x12   : > { %p12054_p8 = pnand %p12052_p7, %p12352_p6 }
  0x13   : > { %p12061_p12 = por %p12060_p11, %p12059_p10 }
  0x14   : > { %p12055_p9 = pneg %p12054_p8 }
  0x16   : > { %p12062_p13 = pnand %p12061_p12, %p12055_p9 }
  0x18   : > { %12065 = shalt.err (!%p12062_p13)
}
  0x19   : > { %s12224_s23 = smov 128   ;;  %s12225_s27 = smov 8  }
  0x1a   : > { %11726 = dma.hbm_to_vmem [thread:$0]  (!%p12342_p5), %s14085_s5, 256, %s459_s28, [#allocation5], %s12224_s23, %s12224_s23, %s12225_s27  }
  0x1b   : > { %s12077_s1 = scalar_lea.vmem %s12338_s0, 64  ;;  %p12085_p7 = scmp.lt.s32.totalorder %s12338_s0, %s12338_s0 }
  0x1c   : > { %p12078_p0 = scmp.ne.s32.totalorder %s12338_s0, %s12077_s1  ;;  %p12086_p8 = scmp.lt.s32.totalorder %s12077_s1, %s12077_s1 }
  0x1e   : > { %p12080_p1 = pnand %p12078_p0, %p12352_p6  ;;  %p12087_p9 = por %p12086_p8, %p12085_p7 }
  0x20   : > { %p12081_p4 = pneg %p12080_p1 }
  0x22   : > { %p12088_p10 = pnand %p12087_p9, %p12081_p4 }
  0x24   : > { %12091 = shalt.err (!%p12088_p10)
}
  0x25   : > { %11732 = dma.hbm_to_vmem [thread:$0]  (!%p12342_p5), %s14089_s9, 64, %s12338_s0, [#allocation8]  }
  0x26   : > { %s12103_s28 = scalar_lea.vmem %s12346_s19, 16384  ;;  %p12111_p0 = scmp.lt.s32.totalorder %s12346_s19, %s12346_s19 }
  0x27   : > { %p12104_p11 = scmp.ne.s32.totalorder %s12346_s19, %s12103_s28  ;;  %p12112_p1 = scmp.lt.s32.totalorder %s12103_s28, %s12103_s28 }
  0x29   : > { %p12106_p12 = pnand %p12104_p11, %p12352_p6  ;;  %p12113_p4 = por %p12112_p1, %p12111_p0 }
  0x2b   : > { %p12107_p13 = pneg %p12106_p12 }
  0x2d   : > { %p12114_p7 = pnand %p12113_p4, %p12107_p13 }
  0x2f   : > { %12117 = shalt.err (!%p12114_p7)
}
  0x30   : > { %s14106_s0 = sld [smem:[#allocation22_spill]]  ;;  %s12129_s18 = scalar_lea.vmem %s472_s20, 256 }
  0x31   : > { %p12130_p8 = scmp.ne.s32.totalorder %s472_s20, %s12129_s18  ;;  %p12137_p11 = scmp.lt.s32.totalorder %s472_s20, %s472_s20 }
  0x32   : > { %p12138_p12 = scmp.lt.s32.totalorder %s12129_s18, %s12129_s18 }
  0x33   : > { %p12132_p9 = pnand %p12130_p8, %p12352_p6 }
  0x34   : > { %p12139_p13 = por %p12138_p12, %p12137_p11 }
  0x35   : > { %p12133_p10 = pneg %p12132_p9 }
  0x36   : > { %11723 = dma.hbm_to_vmem [thread:$0]  (!%p12342_p5), %s14106_s0, 16384, %s12346_s19, [#allocation3], %s12224_s23, %s12224_s23, %s12225_s27  }
  0x37   : > { %p12140_p0 = pnand %p12139_p13, %p12133_p10 }
  0x39   : > { %12143 = shalt.err (!%p12140_p0)
}
  0x3a   : > { %11729 = dma.hbm_to_vmem [thread:$0]  (!%p12342_p5), %s14086_s6, 256, %s472_s20, [#allocation5], %s12224_s23, %s12224_s23, %s12225_s27  }
  0x3b   : > { %s12226_s19 = smov [#allocation9]   ;;  %s12227_s24 = smov [#allocation10]  }
  0x3c   : > { %s502_s28 = sshll.u32 %s12226_s19, 4  ;;  %s528_s29 = sshll.u32 %s12227_s24, 4  ;;  %s503_s28 = int_to_ptr.vmem [resolvable:$true] %s502_s28  ;;  %s529_s29 = int_to_ptr.vmem [resolvable:$true] %s528_s29 }
  0x3d   : > { %s12155_s0 = scalar_lea.vmem %s503_s28, 64  ;;  %p12163_p8 = scmp.lt.s32.totalorder %s503_s28, %s503_s28 }
  0x3e   : > { %p12156_p1 = scmp.ne.s32.totalorder %s503_s28, %s12155_s0  ;;  %p12164_p9 = scmp.lt.s32.totalorder %s12155_s0, %s12155_s0 }
  0x40   : > { %p12158_p4 = pnand %p12156_p1, %p12352_p6  ;;  %p12165_p10 = por %p12164_p9, %p12163_p8 }
  0x42   : > { %p12159_p7 = pneg %p12158_p4 }
  0x44   : > { %p12166_p11 = pnand %p12165_p10, %p12159_p7 }
  0x46   : > { %12169 = shalt.err (!%p12166_p11)
}
  0x47   : > { %11735 = dma.hbm_to_vmem [thread:$0]  (!%p12342_p5), %s14090_s10, 64, %s503_s28, [#allocation8]  }
  0x48   : > { %s12181_s20 = scalar_lea.vmem %s529_s29, 16  ;;  %s12188_s23 = scalar_lea.vmem %s529_s29, 32 }
  0x49   : > { %p12182_p12 = scmp.ne.s32.totalorder %s529_s29, %s12181_s20  ;;  %p12189_p1 = scmp.lt.s32.totalorder %s529_s29, %s529_s29 }
  0x4a   : > { %p12190_p4 = scmp.lt.s32.totalorder %s12188_s23, %s12181_s20 }
  0x4b   : > { %p12184_p13 = pnand %p12182_p12, %p12352_p6 }
  0x4c   : > { %p12191_p2 = por %p12190_p4, %p12189_p1 }
  0x4d   : > { %p12185_p0 = pneg %p12184_p13 }
  0x4f   : > { %p12192_p8 = pnand %p12191_p2, %p12185_p0 }
  0x51   : > { %12195 = shalt.err (!%p12192_p8)
}
  0x52   : > { %11738 = dma.hbm_to_vmem [thread:$0]  (!%p12342_p5), %s14096_s16, 16, %s529_s29, [#allocation11]  }
  0x53   : > { %549 = sbr.rel (%p12332_p3) target bundleno = 8563 (0x2173), region = 88 }
  0x58   : > { %p14107_p7 = scmp.eq.s32.totalorder %s12327_s25, 0 }
  0x5a   : > { %12201 = dma.done.wait (%p14107_p7), [#allocation3], 16384   ;;  %p14108_p6 = pmov %p14107_p7 }
  0x5c   : > { %12203 = vsyncadd (%p14108_p6), [#allocation3], 4294950912  ;;  %p14109_p9 = pmov %p14108_p6 }
  0x5d   : > { %p14110_p2 = pmov %p14108_p6 }
  0x5e   : > { %12205 = dma.done.wait (%p14109_p9), [#allocation5], 512  }
  0x5f   : > { %12207 = vsyncadd (%p14110_p2), [#allocation5], 4294966784  ;;  %p14111_p10 = pmov %p14110_p2 }
  0x60   : > { %p14112_p5 = pmov %p14110_p2 }
  0x61   : > { %12209 = dma.done.wait (%p14111_p10), [#allocation8], 128  }
  0x62   : > { %12211 = vsyncadd (%p14112_p5), [#allocation8], 4294967168  ;;  %p14113_p3 = pmov %p14110_p2 }
  0x63   : > { %p14114_p11 = pmov %p14110_p2 }
  0x64   : > { %12213 = dma.done.wait (%p14113_p3), [#allocation11], 16  }
  0x65   : > { %12215 = vsyncadd (%p14114_p11), [#allocation11], 4294967280  ;;  %p619_p12 = scmp.lt.s32.totalorder %s12327_s25, 1  ;;  %s14115_s19 = sld [smem:[#allocation21_spill]]  ;;  %v11772_v27 = vld [vmem:[#allocation2 + $0x4] ss:$8 sps:$4 sm:$0xff]  }
  0x66   : > { %v11775_v31 = vld [vmem:[#allocation2 + $0x44] ss:$8 sps:$4 sm:$0xff]   ;;  %756 = vmatprep.mubr.bf16.mxu0 %v11772_v27  ;;  %v11770_v50 = vld [vmem:[#allocation2] ss:$8 sps:$4 sm:$0xff]   ;;  %v11776_v52 = vld [vmem:[#allocation2 + $0x14] ss:$8 sps:$4 sm:$0xff]  }
  0x67   : > { %s14126_s25 = smov (!%p619_p12, %s12327_s25), 1  ;;  %875 = vmatprep.mubr.bf16.mxu1 %v11775_v31  ;;  %v11773_v51 = vld [vmem:[#allocation2 + $0x40] ss:$8 sps:$4 sm:$0xff]   ;;  %v11778_v53 = vld [vmem:[#allocation2 + $0x54] ss:$8 sps:$4 sm:$0xff]   ;;  %vm927_vm0 = vcmask 1040384  }
  0x68   : > { %s9838_s26 = sshll.u32 %s14126_s25, 8  ;;  %v11780_v54 = vld [vmem:[#allocation2 + $0x10] ss:$8 sps:$4 sm:$0xff]   ;;  %v11782_v56 = vld [vmem:[#allocation2 + $0x24] ss:$8 sps:$4 sm:$0xff]   ;;  %vm928_vm1 = vcmask 1041408   ;;  %s626_s1 = scalar_lea.vmem %s14097_s17, %s14126_s25 }
  0x69   : > { %v11781_v55 = vld [vmem:[#allocation2 + $0x50] ss:$8 sps:$4 sm:$0xff]   ;;  %v11784_v57 = vld [vmem:[#allocation2 + $0x64] ss:$8 sps:$4 sm:$0xff]   ;;  %v11786_v58 = vld [vmem:[#allocation2 + $0x20] ss:$8 sps:$4 sm:$0xff]  }
  0x6a   : > { %v11787_v59 = vld [vmem:[#allocation2 + $0x60] ss:$8 sps:$4 sm:$0xff]   ;;  %v11788_v60 = vld [vmem:[#allocation2 + $0x34] ss:$8 sps:$4 sm:$0xff]   ;;  %v11792_v62 = vld [vmem:[#allocation2 + $0x30] ss:$8 sps:$4 sm:$0xff]  }
  0x6b   : > { %s12444_s28 = scalar_lea.vmem %s14115_s19, %s9838_s26  ;;  %v11790_v61 = vld [vmem:[#allocation2 + $0x74] ss:$8 sps:$4 sm:$0xff]   ;;  %v11793_v63 = vld [vmem:[#allocation2 + $0x70] ss:$8 sps:$4 sm:$0xff]   ;;  %vm914_vm2 = vcmask 23552   ;;  %vm12230_vm3 = vmmov 0  }
  0x6c   : > { %v658_v0 = vld [vmem:[%s12444_s28 + $0xf0] sm:$0xff]  ;;  %v659_v1 = vld [vmem:[%s12444_s28 + $0xf8] sm:$0xff]  ;;  %v656_v5 = vld [vmem:[%s12444_s28 + $0xe0] sm:$0xff]  ;;  %vm4026_vm12 = vcmask 523264   ;;  %vm4132_vm13 = vcmask 1043456   ;;  %vm4128_vm14 = vcmask 64512  }
  0x6d   : > { %v642_v2 = vld [vmem:[%s12444_s28 + $0x70] sm:$0xff]  ;;  %v12449_v3 = vpack.c.bf16 %v659_v1, %v658_v0  ;;  %v643_v4 = vld [vmem:[%s12444_s28 + $0x78] sm:$0xff]  ;;  %v657_v6 = vld [vmem:[%s12444_s28 + $0xe8] sm:$0xff]  ;;  %v12228_v1 = vmov 65535   ;;  %vm5680_vm15 = vcmask 130048  }
  0x6e   : > { %v12454_v7 = vpack.c.bf16 %v643_v4, %v642_v2  ;;  %v12456_v8 = vpack.c.bf16 %v657_v6, %v656_v5  ;;  %v640_v9 = vld [vmem:[%s12444_s28 + $0x60] sm:$0xff]  ;;  %v641_v10 = vld [vmem:[%s12444_s28 + $0x68] sm:$0xff]  ;;  %v654_v11 = vld [vmem:[%s12444_s28 + $0xd0] sm:$0xff]  ;;  %v929_v2 = vsel %vm927_vm0, 4294967295, %v12228_v1 }
  0x6f   : > { %9839 = vmatprep.subr.bf16.mxu0 %v12449_v3  ;;  %9879 = vmatprep.subr.bf16.mxu1 %v12449_v3  ;;  %v655_v12 = vld [vmem:[%s12444_s28 + $0xd8] sm:$0xff]  ;;  %v12466_v13 = vpack.c.bf16 %v641_v10, %v640_v9  ;;  %v638_v15 = vld [vmem:[%s12444_s28 + $0x50] sm:$0xff]  ;;  %v652_v17 = vld [vmem:[%s12444_s28 + $0xc0] sm:$0xff]  ;;  %v12546_v4 = vsel %vm928_vm1, %v929_v2, 0 }
  0x70   : > { %9840 = vmatpush3.bf16.msra.mxu0 %v12454_v7  ;;  %9880 = vmatpush3.bf16.msra.mxu1 %v12454_v7  ;;  %v12470_v14 = vpack.c.bf16 %v655_v12, %v654_v11  ;;  %v639_v16 = vld [vmem:[%s12444_s28 + $0x58] sm:$0xff]  ;;  %v653_v18 = vld [vmem:[%s12444_s28 + $0xc8] sm:$0xff]  ;;  %v636_v21 = vld [vmem:[%s12444_s28 + $0x40] sm:$0xff] }
  0x71   : > { %9841 = vmatprep.subr.bf16.mxu0 %v12456_v8  ;;  %9881 = vmatprep.subr.bf16.mxu1 %v12456_v8  ;;  %v12478_v19 = vpack.c.bf16 %v639_v16, %v638_v15  ;;  %v12482_v20 = vpack.c.bf16 %v653_v18, %v652_v17  ;;  %v637_v22 = vld [vmem:[%s12444_s28 + $0x48] sm:$0xff]  ;;  %v650_v23 = vld [vmem:[%s12444_s28 + $0xb0] sm:$0xff]  ;;  %v651_v24 = vld [vmem:[%s12444_s28 + $0xb8] sm:$0xff] }
  0x72   : > { %v634_v25 = vld [vmem:[%s12444_s28 + $0x30] sm:$0xff]  ;;  %v635_v26 = vld [vmem:[%s12444_s28 + $0x38] sm:$0xff]  ;;  %v12492_v28 = vpack.c.bf16 %v637_v22, %v636_v21  ;;  %v648_v29 = vld [vmem:[%s12444_s28 + $0xa0] sm:$0xff]  ;;  %v12497_v30 = vpack.c.bf16 %v651_v24, %v650_v23 }
  0x73   : > { %v649_v32 = vld [vmem:[%s12444_s28 + $0xa8] sm:$0xff]  ;;  %v12502_v33 = vpack.c.bf16 %v635_v26, %v634_v25  ;;  %v632_v34 = vld [vmem:[%s12444_s28 + $0x20] sm:$0xff]  ;;  %v646_v37 = vld [vmem:[%s12444_s28 + $0x90] sm:$0xff] }
  0x74   : > { %9842 = vmatpush3.bf16.msra.mxu0 %v12466_v13  ;;  %9882 = vmatpush3.bf16.msra.mxu1 %v12466_v13  ;;  %v12507_v35 = vpack.c.bf16 %v649_v32, %v648_v29  ;;  %v633_v36 = vld [vmem:[%s12444_s28 + $0x28] sm:$0xff]  ;;  %v647_v38 = vld [vmem:[%s12444_s28 + $0x98] sm:$0xff]  ;;  %v630_v39 = vld [vmem:[%s12444_s28 + $0x10] sm:$0xff] }
  0x75   : > { %9843 = vmatprep.subr.bf16.mxu0 %v12470_v14  ;;  %9883 = vmatprep.subr.bf16.mxu1 %v12470_v14  ;;  %v12515_v40 = vpack.c.bf16 %v633_v36, %v632_v34  ;;  %v631_v41 = vld [vmem:[%s12444_s28 + $0x18] sm:$0xff]  ;;  %v644_v42 = vld [vmem:[%s12444_s28 + $0x80] sm:$0xff]  ;;  %v12521_v43 = vpack.c.bf16 %v647_v38, %v646_v37  ;;  %v645_v44 = vld [vmem:[%s12444_s28 + $0x88] sm:$0xff] }
  0x76   : > { %v628_v45 = vld [vmem:[%s12444_s28] sm:$0xff]  ;;  %v629_v46 = vld [vmem:[%s12444_s28 + $0x8] sm:$0xff]  ;;  %v12528_v47 = vpack.c.bf16 %v631_v41, %v630_v39  ;;  %v12532_v48 = vpack.c.bf16 %v645_v44, %v644_v42 }
  0x77   : > { %v12536_v49 = vpack.c.bf16 %v629_v46, %v628_v45  ;;  %v9315_v0 = vld [vmem:[%s14082_s2 + $0x2] sm:$0x3]  ;;  %v793_v6 = vld [vmem:[%s14082_s2] sm:$0x3] }
  0x78   : > { %9844 = vmatpush3.bf16.msra.mxu0 %v12478_v19  ;;  %9884 = vmatpush3.bf16.msra.mxu1 %v12478_v19  ;;  %v932_v5 = vand.u32 %v9315_v0, %v12546_v4  ;;  %v1012_v9 = vand.u32 %v12546_v4, %v793_v6 }
  0x79   : > { %9845 = vmatprep.subr.bf16.mxu0 %v12482_v20  ;;  %9885 = vmatprep.subr.bf16.mxu1 %v12482_v20 }
  0x7c   : > { %9846 = vmatpush3.bf16.msra.mxu0 %v12492_v28  ;;  %9886 = vmatpush3.bf16.msra.mxu1 %v12492_v28 }
  0x7d   : > { %9847 = vmatprep.subr.bf16.mxu0 %v12497_v30  ;;  %9887 = vmatprep.subr.bf16.mxu1 %v12497_v30 }
  0x80   : > { %9848 = vmatpush3.bf16.msra.mxu0 %v12502_v33  ;;  %9888 = vmatpush3.bf16.msra.mxu1 %v12502_v33 }
  0x81   : > { %9849 = vmatprep.subr.bf16.mxu0 %v12507_v35  ;;  %9889 = vmatprep.subr.bf16.mxu1 %v12507_v35 }
  0x84   : > { %9850 = vmatpush3.bf16.msra.mxu0 %v12515_v40  ;;  %9890 = vmatpush3.bf16.msra.mxu1 %v12515_v40 }
  0x85   : > { %9851 = vmatprep.subr.bf16.mxu0 %v12521_v43  ;;  %9891 = vmatprep.subr.bf16.mxu1 %v12521_v43 }
  0x88   : > { %9852 = vmatpush3.bf16.msra.mxu0 %v12528_v47  ;;  %9892 = vmatpush3.bf16.msra.mxu1 %v12528_v47 }
  0x89   : > { %9853 = vmatprep.subr.bf16.mxu0 %v12532_v48  ;;  %9893 = vmatprep.subr.bf16.mxu1 %v12532_v48 }
  0x8c   : > { %9854 = vmatpush3.bf16.msra.mxu0 %v12536_v49  ;;  %9894 = vmatpush3.bf16.msra.mxu1 %v12536_v49 }
  0x8d   : > { %10820 = vmatprep.subr.bf16.mxu0 %v932_v5  ;;  %10830 = vmatprep.subr.bf16.mxu1 %v1012_v9 }
  0x8f   : > { %757 = vmatmul.mubr.bf16.vlgmr.msra.gmra.mxu0 %v11770_v50  ;;  %876 = vmatmul.mubr.bf16.vlgmr.msra.gmra.mxu1 %v11773_v51 }
  0x90   : > { %764 = vmatprep.mubr.bf16.mxu0 %v11776_v52  ;;  %883 = vmatprep.mubr.bf16.mxu1 %v11778_v53 }
  0x91   : > { %10821 = vmatpush3.bf16.msra.mxu0 %v932_v5  ;;  %10831 = vmatpush3.bf16.msra.mxu1 %v1012_v9 }
  0x92   : > { %9929 = vmatprep.subr.bf16.mxu0 %v12449_v3 }
  0x97   : > { %765 = vmatmul.mubr.bf16.gmra.mxu0 %v11780_v54  ;;  %884 = vmatmul.mubr.bf16.gmra.mxu1 %v11781_v55 }
  0x98   : > { %772 = vmatprep.mubr.bf16.mxu0 %v11782_v56  ;;  %891 = vmatprep.mubr.bf16.mxu1 %v11784_v57 }
  0x9f   : > { %773 = vmatmul.mubr.bf16.gmra.mxu0 %v11786_v58  ;;  %892 = vmatmul.mubr.bf16.gmra.mxu1 %v11787_v59 }
  0xa0   : > { %780 = vmatprep.mubr.bf16.mxu0 %v11788_v60  ;;  %899 = vmatprep.mubr.bf16.mxu1 %v11790_v61 }
  0xa7   : > { %781 = vmatmul.mubr.bf16.gmra.mxu0 %v11792_v62  ;;  %900 = vmatmul.mubr.bf16.gmra.mxu1 %v11793_v63 }
 0x14f   : > { %v9855_v10 = vpop.f32.mrf.mxu0  ;;  %v9895_v11 = vpop.f32.mrf.mxu1 }
 0x151   : > { %v9856_v12 = vpop.f32.mrf.mxu0  ;;  %v9896_v15 = vpop.f32.mrf.mxu1 }
 0x152   : > { %v9857_v18 = vadd.f32 %v9856_v12, %v9855_v10  ;;  %v9897_v23 = vadd.f32 %v9896_v15, %v9895_v11 }
 0x153   : > { %v9858_v16 = vpop.f32.mrf.mxu0  ;;  %v9898_v17 = vpop.f32.mrf.mxu1 }
 0x155   : > { %v9859_v21 = vpop.f32.mrf.mxu0  ;;  %v9899_v22 = vpop.f32.mrf.mxu1 }
 0x156   : > { %v9860_v24 = vadd.f32 %v9859_v21, %v9858_v16  ;;  %v9900_v25 = vadd.f32 %v9899_v22, %v9898_v17  ;;  %v11796_v21 = vld [vmem:[#allocation2 + $0x84] ss:$8 sps:$4 sm:$0xff]  }
 0x157   : > { %v9861_v26 = vpop.f32.mrf.mxu0  ;;  %v9901_v27 = vpop.f32.mrf.mxu1 }
 0x158   : > { %v789_v29 = vpack.c.bf16 %v9860_v24, %v9857_v18  ;;  %v908_v31 = vpack.c.bf16 %v9900_v25, %v9897_v23  ;;  %v11794_v24 = vld [vmem:[#allocation2 + $0x80] ss:$8 sps:$4 sm:$0xff]   ;;  %v11797_v25 = vld [vmem:[#allocation2 + $0x94] ss:$8 sps:$4 sm:$0xff]  }
 0x159   : > { %v9862_v32 = vpop.f32.mrf.mxu0  ;;  %v9902_v34 = vpop.f32.mrf.mxu1 }
 0x15a   : > { %10822 = vmatprep.mubr.msk.bf16.mxu0 %vm914_vm2, %v908_v31  ;;  %10832 = vmatprep.mubr.msk.bf16.mxu1 %vm914_vm2, %v789_v29  ;;  %v9863_v38 = vadd.f32 %v9862_v32, %v9861_v26  ;;  %v9903_v42 = vadd.f32 %v9902_v34, %v9901_v27  ;;  %v11799_v26 = vld [vmem:[#allocation2 + $0x90] ss:$8 sps:$4 sm:$0xff]   ;;  %v11800_v27 = vld [vmem:[#allocation2 + $0xa4] ss:$8 sps:$4 sm:$0xff]   ;;  %v11802_v29 = vld [vmem:[#allocation2 + $0xa0] ss:$8 sps:$4 sm:$0xff]  }
 0x15b   : > { %v9864_v36 = vpop.f32.mrf.mxu0  ;;  %v9904_v37 = vpop.f32.mrf.mxu1  ;;  %v11803_v31 = vld [vmem:[#allocation2 + $0xb4] ss:$8 sps:$4 sm:$0xff]   ;;  %v11805_v32 = vld [vmem:[#allocation2 + $0xb0] ss:$8 sps:$4 sm:$0xff]   ;;  %v9332_v34 = vld [vmem:[%s14082_s2 + $0x4] sm:$0x3] }
 0x15d   : > { %v9865_v39 = vpop.f32.mrf.mxu0  ;;  %v9905_v41 = vpop.f32.mrf.mxu1 }
 0x15e   : > { %v9866_v44 = vadd.f32 %v9865_v39, %v9864_v36  ;;  %v9906_v45 = vadd.f32 %v9905_v41, %v9904_v37  ;;  %v1212_v36 = vand.u32 %v9332_v34, %v12546_v4 }
 0x15f   : > { %v9867_v46 = vpop.f32.mrf.mxu0  ;;  %v9907_v50 = vpop.f32.mrf.mxu1 }
 0x160   : > { %v790_v51 = vpack.c.bf16 %v9866_v44, %v9863_v38  ;;  %v909_v52 = vpack.c.bf16 %v9906_v45, %v9903_v42  ;;  %10840 = vmatprep.subr.bf16.mxu1 %v1212_v36 }
 0x161   : > { %v9868_v53 = vpop.f32.mrf.mxu0  ;;  %v9908_v54 = vpop.f32.mrf.mxu1 }
 0x162   : > { %10823 = vmatmul.mubr.msk.bf16.vlgmr.msra.gmra.mxu0 %vm914_vm2, %v909_v52  ;;  %10833 = vmatmul.mubr.msk.bf16.vlgmr.msra.gmra.mxu1 %vm914_vm2, %v790_v51  ;;  %v9869_v57 = vadd.f32 %v9868_v53, %v9867_v46  ;;  %v9909_v58 = vadd.f32 %v9908_v54, %v9907_v50 }
 0x163   : > { %9930 = vmatpush3.bf16.msra.mxu0 %v12454_v7  ;;  %v9870_v55 = vpop.f32.mrf.mxu0  ;;  %v9910_v56 = vpop.f32.mrf.mxu1  ;;  %10841 = vmatpush3.bf16.msra.mxu1 %v1212_v36 }
 0x164   : > { %9931 = vmatprep.subr.bf16.mxu0 %v12456_v8  ;;  %9974 = vmatprep.subr.bf16.mxu1 %v12449_v3 }
 0x165   : > { %v9871_v59 = vpop.f32.mrf.mxu0  ;;  %v9911_v60 = vpop.f32.mrf.mxu1 }
 0x166   : > { %v9872_v61 = vadd.f32 %v9871_v59, %v9870_v55  ;;  %v9912_v62 = vadd.f32 %v9911_v60, %v9910_v56 }
 0x167   : > { %9932 = vmatpush3.bf16.msra.mxu0 %v12466_v13  ;;  %v9873_v63 = vpop.f32.mrf.mxu0  ;;  %v9913_v0 = vpop.f32.mrf.mxu1 }
 0x168   : > { %v791_v1 = vpack.c.bf16 %v9872_v61, %v9869_v57  ;;  %v910_v2 = vpack.c.bf16 %v9912_v62, %v9909_v58  ;;  %9933 = vmatprep.subr.bf16.mxu0 %v12470_v14 }
 0x169   : > { %v9874_v5 = vpop.f32.mrf.mxu0  ;;  %v9914_v6 = vpop.f32.mrf.mxu1 }
 0x16a   : > { %10826 = vmatprep.mubr.msk.bf16.mxu0 %vm914_vm2, %v910_v2  ;;  %10836 = vmatprep.mubr.msk.bf16.mxu1 %vm914_vm2, %v791_v1  ;;  %v9875_v11 = vadd.f32 %v9874_v5, %v9873_v63  ;;  %v9915_v12 = vadd.f32 %v9914_v6, %v9913_v0 }
 0x16b   : > { %9934 = vmatpush3.bf16.msra.mxu0 %v12478_v19  ;;  %v9876_v9 = vpop.f32.mrf.mxu0  ;;  %v9916_v10 = vpop.f32.mrf.mxu1 }
 0x16c   : > { %9935 = vmatprep.subr.bf16.mxu0 %v12482_v20 }
 0x16d   : > { %v9877_v15 = vpop.f32.mrf.mxu0  ;;  %v9917_v16 = vpop.f32.mrf.mxu1 }
 0x16e   : > { %v9878_v17 = vadd.f32 %v9877_v15, %v9876_v9  ;;  %v9918_v18 = vadd.f32 %v9917_v16, %v9916_v10 }
 0x16f   : > { %9936 = vmatpush3.bf16.msra.mxu0 %v12492_v28 }
 0x170   : > { %v792_v22 = vpack.c.bf16 %v9878_v17, %v9875_v11  ;;  %v911_v23 = vpack.c.bf16 %v9918_v18, %v9915_v12  ;;  %9937 = vmatprep.subr.bf16.mxu0 %v12497_v30 }
 0x172   : > { %10827 = vmatmul.mubr.msk.bf16.gmra.mxu0 %vm914_vm2, %v911_v23  ;;  %10837 = vmatmul.mubr.msk.bf16.gmra.mxu1 %vm914_vm2, %v792_v22 }
 0x173   : > { %9938 = vmatpush3.bf16.msra.mxu0 %v12502_v33  ;;  %1160 = vmatprep.mubr.bf16.mxu0 %v11796_v21 }
 0x174   : > { %9939 = vmatprep.subr.bf16.mxu0 %v12507_v35 }
 0x177   : > { %9940 = vmatpush3.bf16.msra.mxu0 %v12515_v40 }
 0x178   : > { %9941 = vmatprep.subr.bf16.mxu0 %v12521_v43 }
 0x17b   : > { %9942 = vmatpush3.bf16.msra.mxu0 %v12528_v47 }
 0x17c   : > { %9943 = vmatprep.subr.bf16.mxu0 %v12532_v48 }
 0x17f   : > { %9944 = vmatpush3.bf16.msra.mxu0 %v12536_v49 }
 0x182   : > { %1161 = vmatmul.mubr.bf16.vlgmr.msra.gmra.mxu0 %v11794_v24 }
 0x183   : > { %1168 = vmatprep.mubr.bf16.mxu0 %v11797_v25 }
 0x18a   : > { %1169 = vmatmul.mubr.bf16.gmra.mxu0 %v11799_v26 }
 0x18b   : > { %1176 = vmatprep.mubr.bf16.mxu0 %v11800_v27 }
 0x192   : > { %1177 = vmatmul.mubr.bf16.gmra.mxu0 %v11802_v29 }
 0x193   : > { %1184 = vmatprep.mubr.bf16.mxu0 %v11803_v31 }
 0x19a   : > { %1185 = vmatmul.mubr.bf16.gmra.mxu0 %v11805_v32 }
 0x222   : > { %v10824_v37 = vpop.f32.mrf.mxu0  ;;  %v10834_v38 = vpop.f32.mrf.mxu1 }
 0x223   : > { %v12582_v39 = vadd.f32 %v10834_v38, %v10824_v37  ;;  %v11808_v38 = vld [vmem:[#allocation2 + $0xc4] ss:$8 sps:$4 sm:$0xff]  }
 0x224   : > { %v968_v41 = vpop.f32.mrf.mxu0  ;;  %v1048_v42 = vpop.f32.mrf.mxu1 }
 0x225   : > { %v12584_v44 = vadd.f32 %v1048_v42, %v968_v41  ;;  %v11806_v42 = vld [vmem:[#allocation2 + $0xc0] ss:$8 sps:$4 sm:$0xff]  }
 0x226   : > { %v10825_v45 = vpop.f32.mrf.mxu0  ;;  %v10835_v46 = vpop.f32.mrf.mxu1 }
 0x227   : > { %v12586_v50 = vadd.f32 %v10835_v46, %v10825_v45  ;;  %v11809_v45 = vld [vmem:[#allocation2 + $0xd4] ss:$8 sps:$4 sm:$0xff]   ;;  %v11811_v46 = vld [vmem:[#allocation2 + $0xd0] ss:$8 sps:$4 sm:$0xff]  }
 0x228   : > { %v12588_v51 = vpop.f32.mrf.mxu0  ;;  %v12590_v52 = vpop.f32.mrf.mxu1 }
 0x232   : > { %v10828_v53 = vpop.f32.mrf.mxu0  ;;  %v10838_v54 = vpop.f32.mrf.mxu1 }
 0x233   : > { %v12592_v55 = vadd.f32 %v10838_v54, %v10828_v53  ;;  %v11812_v53 = vld [vmem:[#allocation2 + $0xe4] ss:$8 sps:$4 sm:$0xff]   ;;  %v11814_v54 = vld [vmem:[#allocation2 + $0xe0] ss:$8 sps:$4 sm:$0xff]  }
 0x234   : > { %v984_v56 = vpop.f32.mrf.mxu0  ;;  %v1064_v57 = vpop.f32.mrf.mxu1 }
 0x235   : > { %v12594_v58 = vadd.f32 %v1064_v57, %v984_v56  ;;  %v11815_v56 = vld [vmem:[#allocation2 + $0xf4] ss:$8 sps:$4 sm:$0xff]   ;;  %v11817_v57 = vld [vmem:[#allocation2 + $0xf0] ss:$8 sps:$4 sm:$0xff]  }
 0x236   : > { %v10829_v59 = vpop.f32.mrf.mxu0  ;;  %v10839_v60 = vpop.f32.mrf.mxu1 }
 0x237   : > { %v12596_v61 = vadd.f32 %v10839_v60, %v10829_v59  ;;  %v11820_v59 = vld [vmem:[#allocation2 + $0x104] ss:$8 sps:$4 sm:$0xff]   ;;  %v11818_v60 = vld [vmem:[#allocation2 + $0x100] ss:$8 sps:$4 sm:$0xff]  }
 0x238   : > { %v12598_v62 = vpop.f32.mrf.mxu0 }
 0x242   : > { %v9945_v63 = vpop.f32.mrf.mxu0 }
 0x244   : > { %v9946_v0 = vpop.f32.mrf.mxu0 }
 0x245   : > { %v9947_v5 = vadd.f32 %v9946_v0, %v9945_v63  ;;  %v11821_v63 = vld [vmem:[#allocation2 + $0x114] ss:$8 sps:$4 sm:$0xff]   ;;  %v11823_v0 = vld [vmem:[#allocation2 + $0x110] ss:$8 sps:$4 sm:$0xff]  }
 0x246   : > { %v9948_v1 = vpop.f32.mrf.mxu0 }
 0x248   : > { %v9949_v2 = vpop.f32.mrf.mxu0 }
 0x249   : > { %v9950_v6 = vadd.f32 %v9949_v2, %v9948_v1  ;;  %v11824_v1 = vld [vmem:[#allocation2 + $0x124] ss:$8 sps:$4 sm:$0xff]   ;;  %v11826_v2 = vld [vmem:[#allocation2 + $0x120] ss:$8 sps:$4 sm:$0xff]  }
 0x24a   : > { %v9951_v9 = vpop.f32.mrf.mxu0 }
 0x24b   : > { %v1193_v10 = vpack.c.bf16 %v9950_v6, %v9947_v5  ;;  %v11827_v5 = vld [vmem:[#allocation2 + $0x134] ss:$8 sps:$4 sm:$0xff]   ;;  %v11829_v6 = vld [vmem:[#allocation2 + $0x130] ss:$8 sps:$4 sm:$0xff]  }
 0x24c   : > { %v9952_v11 = vpop.f32.mrf.mxu0 }
 0x24d   : > { %10842 = vmatprep.mubr.msk.bf16.mxu1 %vm914_vm2, %v1193_v10  ;;  %v9953_v16 = vadd.f32 %v9952_v11, %v9951_v9  ;;  %v9345_v9 = vld [vmem:[%s14082_s2 + $0x6] sm:$0x3]  ;;  %v9358_v11 = vld [vmem:[%s14082_s2 + $0x8] sm:$0x3] }
 0x24e   : > { %v9954_v12 = vpop.f32.mrf.mxu0  ;;  %v1420_v10 = vand.u32 %v9345_v9, %v12546_v4 }
 0x250   : > { %v9955_v15 = vpop.f32.mrf.mxu0  ;;  %10850 = vmatprep.subr.bf16.mxu0 %v1420_v10 }
 0x251   : > { %v9956_v17 = vadd.f32 %v9955_v15, %v9954_v12  ;;  %10851 = vmatpush3.bf16.msra.mxu0 %v1420_v10  ;;  %v1628_v12 = vand.u32 %v9358_v11, %v12546_v4  ;;  %v12643_v15 = vpop.f32.mrf.mxu1 }
 0x252   : > { %v9957_v18 = vpop.f32.mrf.mxu0 }
 0x253   : > { %v1194_v21 = vpack.c.bf16 %v9956_v17, %v9953_v16  ;;  %10860 = vmatprep.subr.bf16.mxu0 %v1628_v12 }
 0x254   : > { %v9958_v22 = vpop.f32.mrf.mxu0 }
 0x255   : > { %10843 = vmatmul.mubr.msk.bf16.vlgmr.msra.gmra.mxu1 %vm914_vm2, %v1194_v21  ;;  %v9959_v24 = vadd.f32 %v9958_v22, %v9957_v18 }
 0x256   : > { %9975 = vmatpush3.bf16.msra.mxu1 %v12454_v7  ;;  %v9960_v23 = vpop.f32.mrf.mxu0 }
 0x257   : > { %9976 = vmatprep.subr.bf16.mxu1 %v12456_v8 }
 0x258   : > { %v9961_v25 = vpop.f32.mrf.mxu0 }
 0x259   : > { %v9962_v26 = vadd.f32 %v9961_v25, %v9960_v23 }
 0x25a   : > { %9977 = vmatpush3.bf16.msra.mxu1 %v12466_v13  ;;  %v9963_v27 = vpop.f32.mrf.mxu0 }
 0x25b   : > { %v1195_v29 = vpack.c.bf16 %v9962_v26, %v9959_v24  ;;  %9978 = vmatprep.subr.bf16.mxu1 %v12470_v14 }
 0x25c   : > { %v9964_v31 = vpop.f32.mrf.mxu0 }
 0x25d   : > { %10846 = vmatprep.mubr.msk.bf16.mxu1 %vm914_vm2, %v1195_v29  ;;  %v9965_v34 = vadd.f32 %v9964_v31, %v9963_v27 }
 0x25e   : > { %9979 = vmatpush3.bf16.msra.mxu1 %v12478_v19  ;;  %v9966_v32 = vpop.f32.mrf.mxu0 }
 0x25f   : > { %9980 = vmatprep.subr.bf16.mxu1 %v12482_v20 }
 0x260   : > { %v9967_v36 = vpop.f32.mrf.mxu0 }
 0x261   : > { %v9968_v37 = vadd.f32 %v9967_v36, %v9966_v32 }
 0x262   : > { %9981 = vmatpush3.bf16.msra.mxu1 %v12492_v28 }
 0x263   : > { %v1196_v41 = vpack.c.bf16 %v9968_v37, %v9965_v34  ;;  %9982 = vmatprep.subr.bf16.mxu1 %v12497_v30 }
 0x265   : > { %10847 = vmatmul.mubr.msk.bf16.gmra.mxu1 %vm914_vm2, %v1196_v41 }
 0x266   : > { %9983 = vmatpush3.bf16.msra.mxu1 %v12502_v33  ;;  %1368 = vmatprep.mubr.bf16.mxu1 %v11808_v38 }
 0x267   : > { %9984 = vmatprep.subr.bf16.mxu1 %v12507_v35 }
 0x26a   : > { %9985 = vmatpush3.bf16.msra.mxu1 %v12515_v40 }
 0x26b   : > { %9986 = vmatprep.subr.bf16.mxu1 %v12521_v43 }
 0x26e   : > { %9987 = vmatpush3.bf16.msra.mxu1 %v12528_v47 }
 0x26f   : > { %9988 = vmatprep.subr.bf16.mxu1 %v12532_v48 }
 0x272   : > { %9989 = vmatpush3.bf16.msra.mxu1 %v12536_v49 }
 0x273   : > { %10019 = vmatprep.subr.bf16.mxu1 %v12449_v3 }
 0x275   : > { %1369 = vmatmul.mubr.bf16.vlgmr.msra.gmra.mxu1 %v11806_v42 }
 0x276   : > { %10020 = vmatpush3.bf16.msra.mxu1 %v12454_v7  ;;  %1376 = vmatprep.mubr.bf16.mxu1 %v11809_v45 }
 0x277   : > { %10021 = vmatprep.subr.bf16.mxu1 %v12456_v8 }
 0x27a   : > { %10022 = vmatpush3.bf16.msra.mxu1 %v12466_v13 }
 0x27b   : > { %10023 = vmatprep.subr.bf16.mxu1 %v12470_v14 }
 0x27d   : > { %1377 = vmatmul.mubr.bf16.gmra.mxu1 %v11811_v46 }
 0x27e   : > { %10024 = vmatpush3.bf16.msra.mxu1 %v12478_v19  ;;  %1384 = vmatprep.mubr.bf16.mxu1 %v11812_v53 }
 0x27f   : > { %10025 = vmatprep.subr.bf16.mxu1 %v12482_v20 }
 0x282   : > { %10026 = vmatpush3.bf16.msra.mxu1 %v12492_v28 }
 0x283   : > { %10027 = vmatprep.subr.bf16.mxu1 %v12497_v30 }
 0x285   : > { %1385 = vmatmul.mubr.bf16.gmra.mxu1 %v11814_v54 }
 0x286   : > { %10028 = vmatpush3.bf16.msra.mxu1 %v12502_v33  ;;  %1392 = vmatprep.mubr.bf16.mxu1 %v11815_v56 }
 0x287   : > { %10029 = vmatprep.subr.bf16.mxu1 %v12507_v35 }
 0x28a   : > { %10030 = vmatpush3.bf16.msra.mxu1 %v12515_v40 }
 0x28b   : > { %10031 = vmatprep.subr.bf16.mxu1 %v12521_v43 }
 0x28d   : > { %1393 = vmatmul.mubr.bf16.gmra.mxu1 %v11817_v57 }
 0x28e   : > { %10032 = vmatpush3.bf16.msra.mxu1 %v12528_v47  ;;  %1576 = vmatprep.mubr.bf16.mxu1 %v11820_v59 }
 0x28f   : > { %10033 = vmatprep.subr.bf16.mxu1 %v12532_v48 }
 0x292   : > { %10034 = vmatpush3.bf16.msra.mxu1 %v12536_v49 }
 0x295   : > { %1577 = vmatmul.mubr.bf16.vlgmr.msra.gmra.mxu1 %v11818_v60 }
 0x296   : > { %1584 = vmatprep.mubr.bf16.mxu1 %v11821_v63 }
 0x29d   : > { %1585 = vmatmul.mubr.bf16.gmra.mxu1 %v11823_v0 }
 0x29e   : > { %1592 = vmatprep.mubr.bf16.mxu1 %v11824_v1 }
 0x2a5   : > { %1593 = vmatmul.mubr.bf16.gmra.mxu1 %v11826_v2 }
 0x2a6   : > { %1600 = vmatprep.mubr.bf16.mxu1 %v11827_v5 }
 0x2ad   : > { %1601 = vmatmul.mubr.bf16.gmra.mxu1 %v11829_v6 }
 0x315   : > { %v10844_v16 = vpop.f32.mrf.mxu1 }
 0x316   : > { %v12646_v17 = vadd.f32 %v10844_v16, %v12582_v39 }
 0x317   : > { %v1248_v18 = vpop.f32.mrf.mxu1 }
 0x318   : > { %v12649_v21 = vadd.f32 %v1248_v18, %v12584_v44 }
 0x319   : > { %v10845_v22 = vpop.f32.mrf.mxu1 }
 0x31a   : > { %v12652_v23 = vadd.f32 %v10845_v22, %v12586_v50 }
 0x31b   : > { %v12654_v24 = vpop.f32.mrf.mxu1 }
 0x325   : > { %v10848_v25 = vpop.f32.mrf.mxu1 }
 0x326   : > { %v12657_v26 = vadd.f32 %v10848_v25, %v12592_v55 }
 0x327   : > { %v1264_v27 = vpop.f32.mrf.mxu1 }
 0x328   : > { %v12660_v29 = vadd.f32 %v1264_v27, %v12594_v58 }
 0x329   : > { %v10849_v39 = vpop.f32.mrf.mxu1 }
 0x32a   : > { %v12663_v31 = vadd.f32 %v10849_v39, %v12596_v61 }
 0x32b   : > { %v12665_v44 = vpop.f32.mrf.mxu1 }
 0x335   : > { %v9990_v32 = vpop.f32.mrf.mxu1 }
 0x337   : > { %v9991_v34 = vpop.f32.mrf.mxu1 }
 0x338   : > { %v9992_v37 = vadd.f32 %v9991_v34, %v9990_v32 }
 0x339   : > { %v9993_v50 = vpop.f32.mrf.mxu1 }
 0x33b   : > { %v9994_v36 = vpop.f32.mrf.mxu1 }
 0x33c   : > { %v9995_v38 = vadd.f32 %v9994_v36, %v9993_v50 }
 0x33d   : > { %v9996_v41 = vpop.f32.mrf.mxu1 }
 0x33e   : > { %v1401_v42 = vpack.c.bf16 %v9995_v38, %v9992_v37 }
 0x33f   : > { %v9997_v55 = vpop.f32.mrf.mxu1 }
 0x340   : > { %10852 = vmatprep.mubr.msk.bf16.mxu0 %vm914_vm2, %v1401_v42  ;;  %v9998_v46 = vadd.f32 %v9997_v55, %v9996_v41 }
 0x341   : > { %v9999_v45 = vpop.f32.mrf.mxu1 }
 0x343   : > { %v10000_v58 = vpop.f32.mrf.mxu1 }
 0x344   : > { %v10001_v53 = vadd.f32 %v10000_v58, %v9999_v45 }
 0x345   : > { %v10002_v54 = vpop.f32.mrf.mxu1 }
 0x346   : > { %v1402_v61 = vpack.c.bf16 %v10001_v53, %v9998_v46 }
 0x347   : > { %v10003_v56 = vpop.f32.mrf.mxu1 }
 0x348   : > { %10853 = vmatmul.mubr.msk.bf16.vlgmr.msra.gmra.mxu0 %vm914_vm2, %v1402_v61  ;;  %v10004_v60 = vadd.f32 %v10003_v56, %v10002_v54 }
 0x349   : > { %v10005_v57 = vpop.f32.mrf.mxu1  ;;  %10861 = vmatpush3.bf16.msra.mxu0 %v1628_v12 }
 0x34a   : > { %10064 = vmatprep.subr.bf16.mxu0 %v12449_v3 }
 0x34b   : > { %v10006_v59 = vpop.f32.mrf.mxu1 }
 0x34c   : > { %v10007_v63 = vadd.f32 %v10006_v59, %v10005_v57 }
 0x34d   : > { %v10008_v0 = vpop.f32.mrf.mxu1 }
 0x34e   : > { %v1403_v1 = vpack.c.bf16 %v10007_v63, %v10004_v60 }
 0x34f   : > { %v10009_v2 = vpop.f32.mrf.mxu1 }
 0x350   : > { %10856 = vmatprep.mubr.msk.bf16.mxu0 %vm914_vm2, %v1403_v1  ;;  %v10010_v9 = vadd.f32 %v10009_v2, %v10008_v0  ;;  %v11832_v0 = vld [vmem:[#allocation2 + $0x144] ss:$8 sps:$4 sm:$0xff]   ;;  %v11830_v2 = vld [vmem:[#allocation2 + $0x140] ss:$8 sps:$4 sm:$0xff]  }
 0x351   : > { %v10011_v5 = vpop.f32.mrf.mxu1 }
 0x353   : > { %v10012_v6 = vpop.f32.mrf.mxu1 }
 0x354   : > { %v10013_v10 = vadd.f32 %v10012_v6, %v10011_v5  ;;  %v11833_v5 = vld [vmem:[#allocation2 + $0x154] ss:$8 sps:$4 sm:$0xff]   ;;  %v11835_v6 = vld [vmem:[#allocation2 + $0x150] ss:$8 sps:$4 sm:$0xff]  }
 0x355   : > { %v10035_v11 = vpop.f32.mrf.mxu1 }
 0x356   : > { %v1404_v16 = vpack.c.bf16 %v10013_v10, %v10010_v9  ;;  %v11836_v9 = vld [vmem:[#allocation2 + $0x164] ss:$8 sps:$4 sm:$0xff]   ;;  %v11838_v10 = vld [vmem:[#allocation2 + $0x160] ss:$8 sps:$4 sm:$0xff]  }
 0x357   : > { %v10036_v18 = vpop.f32.mrf.mxu1 }
 0x358   : > { %10857 = vmatmul.mubr.msk.bf16.gmra.mxu0 %vm914_vm2, %v1404_v16  ;;  %v10037_v25 = vadd.f32 %v10036_v18, %v10035_v11  ;;  %v11839_v11 = vld [vmem:[#allocation2 + $0x174] ss:$8 sps:$4 sm:$0xff]   ;;  %v11841_v16 = vld [vmem:[#allocation2 + $0x170] ss:$8 sps:$4 sm:$0xff]   ;;  %v11844_v18 = vld [vmem:[#allocation2 + $0x184] ss:$8 sps:$4 sm:$0xff]  }
 0x359   : > { %v10038_v12 = vpop.f32.mrf.mxu1 }
 0x35b   : > { %v10039_v22 = vpop.f32.mrf.mxu1 }
 0x35c   : > { %v10040_v27 = vadd.f32 %v10039_v22, %v10038_v12  ;;  %v11842_v12 = vld [vmem:[#allocation2 + $0x180] ss:$8 sps:$4 sm:$0xff]   ;;  %v11845_v22 = vld [vmem:[#allocation2 + $0x194] ss:$8 sps:$4 sm:$0xff]  }
 0x35d   : > { %v10041_v39 = vpop.f32.mrf.mxu1 }
 0x35e   : > { %v1609_v32 = vpack.c.bf16 %v10040_v27, %v10037_v25  ;;  %v11847_v25 = vld [vmem:[#allocation2 + $0x190] ss:$8 sps:$4 sm:$0xff]   ;;  %v11848_v27 = vld [vmem:[#allocation2 + $0x1a4] ss:$8 sps:$4 sm:$0xff]  }
 0x35f   : > { %v10042_v34 = vpop.f32.mrf.mxu1 }
 0x360   : > { %10862 = vmatprep.mubr.msk.bf16.mxu0 %vm914_vm2, %v1609_v32  ;;  %v10043_v37 = vadd.f32 %v10042_v34, %v10041_v39  ;;  %v11850_v39 = vld [vmem:[#allocation2 + $0x1a0] ss:$8 sps:$4 sm:$0xff]   ;;  %v11851_v32 = vld [vmem:[#allocation2 + $0x1b4] ss:$8 sps:$4 sm:$0xff]   ;;  %v11853_v34 = vld [vmem:[#allocation2 + $0x1b0] ss:$8 sps:$4 sm:$0xff]  }
 0x361   : > { %v10044_v50 = vpop.f32.mrf.mxu1 }
 0x363   : > { %v10045_v36 = vpop.f32.mrf.mxu1 }
 0x364   : > { %v10046_v38 = vadd.f32 %v10045_v36, %v10044_v50  ;;  %v9371_v50 = vld [vmem:[%s14082_s2 + $0xa] sm:$0x3] }
 0x365   : > { %v10047_v41 = vpop.f32.mrf.mxu1  ;;  %v1836_v36 = vand.u32 %v9371_v50, %v12546_v4 }
 0x366   : > { %v1610_v42 = vpack.c.bf16 %v10046_v38, %v10043_v37  ;;  %v9384_v37 = vld [vmem:[%s14082_s2 + $0xc] sm:$0x3] }
 0x367   : > { %v10048_v55 = vpop.f32.mrf.mxu1  ;;  %10870 = vmatprep.subr.bf16.mxu1 %v1836_v36  ;;  %v2044_v38 = vand.u32 %v9384_v37, %v12546_v4 }
 0x368   : > { %10863 = vmatmul.mubr.msk.bf16.vlgmr.msra.gmra.mxu0 %vm914_vm2, %v1610_v42  ;;  %v10049_v58 = vadd.f32 %v10048_v55, %v10047_v41  ;;  %10871 = vmatpush3.bf16.msra.mxu1 %v1836_v36 }
 0x369   : > { %10065 = vmatpush3.bf16.msra.mxu0 %v12454_v7  ;;  %v10050_v45 = vpop.f32.mrf.mxu1  ;;  %10880 = vmatprep.subr.bf16.mxu1 %v2044_v38 }
 0x36a   : > { %10066 = vmatprep.subr.bf16.mxu0 %v12456_v8 }
 0x36b   : > { %v10051_v46 = vpop.f32.mrf.mxu1 }
 0x36c   : > { %v10052_v53 = vadd.f32 %v10051_v46, %v10050_v45 }
 0x36d   : > { %10067 = vmatpush3.bf16.msra.mxu0 %v12466_v13  ;;  %v10053_v54 = vpop.f32.mrf.mxu1 }
 0x36e   : > { %v1611_v61 = vpack.c.bf16 %v10052_v53, %v10049_v58  ;;  %10068 = vmatprep.subr.bf16.mxu0 %v12470_v14 }
 0x36f   : > { %v10054_v56 = vpop.f32.mrf.mxu1 }
 0x370   : > { %10866 = vmatprep.mubr.msk.bf16.mxu0 %vm914_vm2, %v1611_v61  ;;  %v10055_v59 = vadd.f32 %v10054_v56, %v10053_v54 }
 0x371   : > { %10069 = vmatpush3.bf16.msra.mxu0 %v12478_v19  ;;  %v10056_v57 = vpop.f32.mrf.mxu1 }
 0x372   : > { %10070 = vmatprep.subr.bf16.mxu0 %v12482_v20 }
 0x373   : > { %v10057_v60 = vpop.f32.mrf.mxu1 }
 0x374   : > { %v10058_v63 = vadd.f32 %v10057_v60, %v10056_v57 }
 0x375   : > { %10071 = vmatpush3.bf16.msra.mxu0 %v12492_v28 }
 0x376   : > { %v1612_v1 = vpack.c.bf16 %v10058_v63, %v10055_v59  ;;  %10072 = vmatprep.subr.bf16.mxu0 %v12497_v30 }
 0x378   : > { %10867 = vmatmul.mubr.msk.bf16.gmra.mxu0 %vm914_vm2, %v1612_v1 }
 0x379   : > { %10073 = vmatpush3.bf16.msra.mxu0 %v12502_v33  ;;  %1784 = vmatprep.mubr.bf16.mxu0 %v11832_v0 }
 0x37a   : > { %10074 = vmatprep.subr.bf16.mxu0 %v12507_v35 }
 0x37d   : > { %10075 = vmatpush3.bf16.msra.mxu0 %v12515_v40 }
 0x37e   : > { %10076 = vmatprep.subr.bf16.mxu0 %v12521_v43 }
 0x381   : > { %10077 = vmatpush3.bf16.msra.mxu0 %v12528_v47 }
 0x382   : > { %10078 = vmatprep.subr.bf16.mxu0 %v12532_v48 }
 0x385   : > { %10079 = vmatpush3.bf16.msra.mxu0 %v12536_v49 }
 0x386   : > { %10109 = vmatprep.subr.bf16.mxu0 %v12449_v3 }
 0x388   : > { %1785 = vmatmul.mubr.bf16.vlgmr.msra.gmra.mxu0 %v11830_v2 }
 0x389   : > { %10110 = vmatpush3.bf16.msra.mxu0 %v12454_v7  ;;  %1792 = vmatprep.mubr.bf16.mxu0 %v11833_v5 }
 0x38a   : > { %10111 = vmatprep.subr.bf16.mxu0 %v12456_v8 }
 0x38d   : > { %10112 = vmatpush3.bf16.msra.mxu0 %v12466_v13 }
 0x38e   : > { %10113 = vmatprep.subr.bf16.mxu0 %v12470_v14 }
 0x390   : > { %1793 = vmatmul.mubr.bf16.gmra.mxu0 %v11835_v6 }
 0x391   : > { %10114 = vmatpush3.bf16.msra.mxu0 %v12478_v19  ;;  %1800 = vmatprep.mubr.bf16.mxu0 %v11836_v9 }
 0x392   : > { %10115 = vmatprep.subr.bf16.mxu0 %v12482_v20 }
 0x395   : > { %10116 = vmatpush3.bf16.msra.mxu0 %v12492_v28 }
 0x396   : > { %10117 = vmatprep.subr.bf16.mxu0 %v12497_v30 }
 0x398   : > { %1801 = vmatmul.mubr.bf16.gmra.mxu0 %v11838_v10 }
 0x399   : > { %10118 = vmatpush3.bf16.msra.mxu0 %v12502_v33  ;;  %1808 = vmatprep.mubr.bf16.mxu0 %v11839_v11 }
 0x39a   : > { %10119 = vmatprep.subr.bf16.mxu0 %v12507_v35 }
 0x39d   : > { %10120 = vmatpush3.bf16.msra.mxu0 %v12515_v40 }
 0x39e   : > { %10121 = vmatprep.subr.bf16.mxu0 %v12521_v43 }
 0x3a0   : > { %1809 = vmatmul.mubr.bf16.gmra.mxu0 %v11841_v16 }
 0x3a1   : > { %10122 = vmatpush3.bf16.msra.mxu0 %v12528_v47  ;;  %1992 = vmatprep.mubr.bf16.mxu0 %v11844_v18 }
 0x3a2   : > { %10123 = vmatprep.subr.bf16.mxu0 %v12532_v48 }
 0x3a5   : > { %10124 = vmatpush3.bf16.msra.mxu0 %v12536_v49 }
 0x3a8   : > { %1993 = vmatmul.mubr.bf16.vlgmr.msra.gmra.mxu0 %v11842_v12 }
 0x3a9   : > { %2000 = vmatprep.mubr.bf16.mxu0 %v11845_v22 }
 0x3b0   : > { %2001 = vmatmul.mubr.bf16.gmra.mxu0 %v11847_v25 }
 0x3b1   : > { %2008 = vmatprep.mubr.bf16.mxu0 %v11848_v27 }
 0x3b8   : > { %2009 = vmatmul.mubr.bf16.gmra.mxu0 %v11850_v39 }
 0x3b9   : > { %2016 = vmatprep.mubr.bf16.mxu0 %v11851_v32 }
 0x3c0   : > { %2017 = vmatmul.mubr.bf16.gmra.mxu0 %v11853_v34 }
 0x408   : > { %v10854_v41 = vpop.f32.mrf.mxu0 }
 0x409   : > { %v1489_v42 = vadd.f32 %v10854_v41, %v12646_v17 }
 0x40a   : > { %v1456_v55 = vpop.f32.mrf.mxu0 }
 0x40b   : > { %v1487_v45 = vadd.f32 %v1456_v55, %v12649_v21 }
 0x40c   : > { %v10855_v58 = vpop.f32.mrf.mxu0 }
 0x40d   : > { %v1490_v46 = vadd.f32 %v10855_v58, %v12652_v23 }
 0x40e   : > { %v12718_v53 = vpop.f32.mrf.mxu0 }
 0x418   : > { %v10858_v54 = vpop.f32.mrf.mxu0 }
 0x419   : > { %v1493_v61 = vadd.f32 %v10858_v54, %v12657_v26 }
 0x41a   : > { %v1472_v56 = vpop.f32.mrf.mxu0 }
 0x41b   : > { %v1491_v57 = vadd.f32 %v1472_v56, %v12660_v29 }
 0x41c   : > { %v10859_v59 = vpop.f32.mrf.mxu0 }
 0x41d   : > { %v1494_v60 = vadd.f32 %v10859_v59, %v12663_v31 }
 0x41e   : > { %v12723_v63 = vpop.f32.mrf.mxu0 }
 0x428   : > { %v10864_v17 = vpop.f32.mrf.mxu0 }
 0x429   : > { %v12725_v0 = vadd.f32 %v10864_v17, %v1489_v42 }
 0x42a   : > { %v1664_v21 = vpop.f32.mrf.mxu0 }
 0x42b   : > { %v12727_v1 = vadd.f32 %v1664_v21, %v1487_v45 }
 0x42c   : > { %v10865_v23 = vpop.f32.mrf.mxu0 }
 0x42d   : > { %v12729_v2 = vadd.f32 %v10865_v23, %v1490_v46 }
 0x42e   : > { %v12731_v5 = vpop.f32.mrf.mxu0 }
 0x438   : > { %v10868_v26 = vpop.f32.mrf.mxu0 }
 0x439   : > { %v12733_v6 = vadd.f32 %v10868_v26, %v1493_v61 }
 0x43a   : > { %v1680_v29 = vpop.f32.mrf.mxu0 }
 0x43b   : > { %v12735_v9 = vadd.f32 %v1680_v29, %v1491_v57 }
 0x43c   : > { %v10869_v31 = vpop.f32.mrf.mxu0 }
 0x43d   : > { %v12737_v10 = vadd.f32 %v10869_v31, %v1494_v60 }
 0x43e   : > { %v12739_v11 = vpop.f32.mrf.mxu0 }
 0x448   : > { %v10080_v16 = vpop.f32.mrf.mxu0 }
 0x44a   : > { %v10081_v18 = vpop.f32.mrf.mxu0 }
 0x44b   : > { %v10082_v25 = vadd.f32 %v10081_v18, %v10080_v16 }
 0x44c   : > { %v10083_v12 = vpop.f32.mrf.mxu0 }
 0x44e   : > { %v10084_v22 = vpop.f32.mrf.mxu0 }
 0x44f   : > { %v10085_v27 = vadd.f32 %v10084_v22, %v10083_v12 }
 0x450   : > { %v10086_v39 = vpop.f32.mrf.mxu0 }
 0x451   : > { %v1817_v32 = vpack.c.bf16 %v10085_v27, %v10082_v25 }
 0x452   : > { %v10087_v34 = vpop.f32.mrf.mxu0 }
 0x453   : > { %10872 = vmatprep.mubr.msk.bf16.mxu1 %vm914_vm2, %v1817_v32  ;;  %v10088_v37 = vadd.f32 %v10087_v34, %v10086_v39 }
 0x454   : > { %v10089_v50 = vpop.f32.mrf.mxu0 }
 0x456   : > { %v10090_v36 = vpop.f32.mrf.mxu0 }
 0x457   : > { %v10091_v41 = vadd.f32 %v10090_v36, %v10089_v50 }
 0x458   : > { %v10092_v42 = vpop.f32.mrf.mxu0 }
 0x459   : > { %v1818_v55 = vpack.c.bf16 %v10091_v41, %v10088_v37 }
 0x45a   : > { %v10093_v45 = vpop.f32.mrf.mxu0 }
 0x45b   : > { %10873 = vmatmul.mubr.msk.bf16.vlgmr.msra.gmra.mxu1 %vm914_vm2, %v1818_v55  ;;  %v10094_v54 = vadd.f32 %v10093_v45, %v10092_v42 }
 0x45c   : > { %v10095_v58 = vpop.f32.mrf.mxu0  ;;  %10881 = vmatpush3.bf16.msra.mxu1 %v2044_v38 }
 0x45d   : > { %10154 = vmatprep.subr.bf16.mxu1 %v12449_v3 }
 0x45e   : > { %v10096_v46 = vpop.f32.mrf.mxu0 }
 0x45f   : > { %v10097_v61 = vadd.f32 %v10096_v46, %v10095_v58 }
 0x460   : > { %v10098_v56 = vpop.f32.mrf.mxu0 }
 0x461   : > { %v1819_v57 = vpack.c.bf16 %v10097_v61, %v10094_v54 }
 0x462   : > { %v10099_v59 = vpop.f32.mrf.mxu0 }
 0x463   : > { %10876 = vmatprep.mubr.msk.bf16.mxu1 %vm914_vm2, %v1819_v57  ;;  %v10100_v21 = vadd.f32 %v10099_v59, %v10098_v56 }
 0x464   : > { %v10101_v60 = vpop.f32.mrf.mxu0 }
 0x466   : > { %v10102_v17 = vpop.f32.mrf.mxu0 }
 0x467   : > { %v10103_v23 = vadd.f32 %v10102_v17, %v10101_v60  ;;  %v11856_v17 = vld [vmem:[#allocation2 + $0x1c4] ss:$8 sps:$4 sm:$0xff]  }
 0x468   : > { %v10125_v26 = vpop.f32.mrf.mxu0 }
 0x469   : > { %v1820_v29 = vpack.c.bf16 %v10103_v23, %v10100_v21  ;;  %v11854_v23 = vld [vmem:[#allocation2 + $0x1c0] ss:$8 sps:$4 sm:$0xff]  }
 0x46a   : > { %v10126_v31 = vpop.f32.mrf.mxu0 }
 0x46b   : > { %10877 = vmatmul.mubr.msk.bf16.gmra.mxu1 %vm914_vm2, %v1820_v29  ;;  %v10127_v18 = vadd.f32 %v10126_v31, %v10125_v26  ;;  %v11857_v26 = vld [vmem:[#allocation2 + $0x1d4] ss:$8 sps:$4 sm:$0xff]   ;;  %v11859_v29 = vld [vmem:[#allocation2 + $0x1d0] ss:$8 sps:$4 sm:$0xff]   ;;  %v11860_v31 = vld [vmem:[#allocation2 + $0x1e4] ss:$8 sps:$4 sm:$0xff]  }
 0x46c   : > { %v10128_v38 = vpop.f32.mrf.mxu0 }
 0x46e   : > { %v10129_v16 = vpop.f32.mrf.mxu0 }
 0x46f   : > { %v10130_v12 = vadd.f32 %v10129_v16, %v10128_v38  ;;  %v11862_v38 = vld [vmem:[#allocation2 + $0x1e0] ss:$8 sps:$4 sm:$0xff]   ;;  %v11863_v16 = vld [vmem:[#allocation2 + $0x1f4] ss:$8 sps:$4 sm:$0xff]  }
 0x470   : > { %v10131_v22 = vpop.f32.mrf.mxu0 }
 0x471   : > { %v2025_v25 = vpack.c.bf16 %v10130_v12, %v10127_v18  ;;  %v11865_v18 = vld [vmem:[#allocation2 + $0x1f0] ss:$8 sps:$4 sm:$0xff]   ;;  %v11868_v12 = vld [vmem:[#allocation2 + $0x204] ss:$8 sps:$4 sm:$0xff]  }
 0x472   : > { %v10132_v27 = vpop.f32.mrf.mxu0 }
 0x473   : > { %10882 = vmatprep.mubr.msk.bf16.mxu1 %vm914_vm2, %v2025_v25  ;;  %v10133_v34 = vadd.f32 %v10132_v27, %v10131_v22  ;;  %v11866_v22 = vld [vmem:[#allocation2 + $0x200] ss:$8 sps:$4 sm:$0xff]   ;;  %v11869_v25 = vld [vmem:[#allocation2 + $0x214] ss:$8 sps:$4 sm:$0xff]   ;;  %v11871_v27 = vld [vmem:[#allocation2 + $0x210] ss:$8 sps:$4 sm:$0xff]  }
 0x474   : > { %v10134_v39 = vpop.f32.mrf.mxu0 }
 0x476   : > { %v10135_v32 = vpop.f32.mrf.mxu0 }
 0x477   : > { %v10136_v50 = vadd.f32 %v10135_v32, %v10134_v39  ;;  %v11872_v39 = vld [vmem:[#allocation2 + $0x224] ss:$8 sps:$4 sm:$0xff]   ;;  %v11874_v32 = vld [vmem:[#allocation2 + $0x220] ss:$8 sps:$4 sm:$0xff]  }
 0x478   : > { %v10137_v36 = vpop.f32.mrf.mxu0 }
 0x479   : > { %v2026_v37 = vpack.c.bf16 %v10136_v50, %v10133_v34  ;;  %v11875_v34 = vld [vmem:[#allocation2 + $0x234] ss:$8 sps:$4 sm:$0xff]   ;;  %v11877_v50 = vld [vmem:[#allocation2 + $0x230] ss:$8 sps:$4 sm:$0xff]  }
 0x47a   : > { %v10138_v41 = vpop.f32.mrf.mxu0 }
 0x47b   : > { %10883 = vmatmul.mubr.msk.bf16.vlgmr.msra.gmra.mxu1 %vm914_vm2, %v2026_v37  ;;  %v10139_v55 = vadd.f32 %v10138_v41, %v10137_v36  ;;  %v9397_v36 = vld [vmem:[%s14082_s2 + $0xe] sm:$0x3]  ;;  %v9410_v41 = vld [vmem:[%s14082_s2 + $0x10] sm:$0x3] }
 0x47c   : > { %10155 = vmatpush3.bf16.msra.mxu1 %v12454_v7  ;;  %v10140_v42 = vpop.f32.mrf.mxu0  ;;  %v2252_v37 = vand.u32 %v9397_v36, %v12546_v4 }
 0x47d   : > { %10156 = vmatprep.subr.bf16.mxu1 %v12456_v8 }
 0x47e   : > { %v10141_v45 = vpop.f32.mrf.mxu0  ;;  %10890 = vmatprep.subr.bf16.mxu0 %v2252_v37 }
 0x47f   : > { %v10142_v58 = vadd.f32 %v10141_v45, %v10140_v42  ;;  %10891 = vmatpush3.bf16.msra.mxu0 %v2252_v37  ;;  %v2460_v42 = vand.u32 %v9410_v41, %v12546_v4 }
 0x480   : > { %10157 = vmatpush3.bf16.msra.mxu1 %v12466_v13  ;;  %v10143_v46 = vpop.f32.mrf.mxu0 }
 0x481   : > { %v2027_v54 = vpack.c.bf16 %v10142_v58, %v10139_v55  ;;  %10158 = vmatprep.subr.bf16.mxu1 %v12470_v14  ;;  %10900 = vmatprep.subr.bf16.mxu0 %v2460_v42 }
 0x482   : > { %v10144_v61 = vpop.f32.mrf.mxu0 }
 0x483   : > { %10886 = vmatprep.mubr.msk.bf16.mxu1 %vm914_vm2, %v2027_v54  ;;  %v10145_v57 = vadd.f32 %v10144_v61, %v10143_v46 }
 0x484   : > { %10159 = vmatpush3.bf16.msra.mxu1 %v12478_v19  ;;  %v10146_v56 = vpop.f32.mrf.mxu0 }
 0x485   : > { %10160 = vmatprep.subr.bf16.mxu1 %v12482_v20 }
 0x486   : > { %v10147_v59 = vpop.f32.mrf.mxu0 }
 0x487   : > { %v10148_v60 = vadd.f32 %v10147_v59, %v10146_v56 }
 0x488   : > { %10161 = vmatpush3.bf16.msra.mxu1 %v12492_v28 }
 0x489   : > { %v2028_v21 = vpack.c.bf16 %v10148_v60, %v10145_v57  ;;  %10162 = vmatprep.subr.bf16.mxu1 %v12497_v30 }
 0x48b   : > { %10887 = vmatmul.mubr.msk.bf16.gmra.mxu1 %vm914_vm2, %v2028_v21 }
 0x48c   : > { %10163 = vmatpush3.bf16.msra.mxu1 %v12502_v33  ;;  %2200 = vmatprep.mubr.bf16.mxu1 %v11856_v17 }
 0x48d   : > { %10164 = vmatprep.subr.bf16.mxu1 %v12507_v35 }
 0x490   : > { %10165 = vmatpush3.bf16.msra.mxu1 %v12515_v40 }
 0x491   : > { %10166 = vmatprep.subr.bf16.mxu1 %v12521_v43 }
 0x494   : > { %10167 = vmatpush3.bf16.msra.mxu1 %v12528_v47 }
 0x495   : > { %10168 = vmatprep.subr.bf16.mxu1 %v12532_v48 }
 0x498   : > { %10169 = vmatpush3.bf16.msra.mxu1 %v12536_v49 }
 0x499   : > { %10199 = vmatprep.subr.bf16.mxu1 %v12449_v3 }
 0x49b   : > { %2201 = vmatmul.mubr.bf16.vlgmr.msra.gmra.mxu1 %v11854_v23 }
 0x49c   : > { %10200 = vmatpush3.bf16.msra.mxu1 %v12454_v7  ;;  %2208 = vmatprep.mubr.bf16.mxu1 %v11857_v26 }
 0x49d   : > { %10201 = vmatprep.subr.bf16.mxu1 %v12456_v8 }
 0x4a0   : > { %10202 = vmatpush3.bf16.msra.mxu1 %v12466_v13 }
 0x4a1   : > { %10203 = vmatprep.subr.bf16.mxu1 %v12470_v14 }
 0x4a3   : > { %2209 = vmatmul.mubr.bf16.gmra.mxu1 %v11859_v29 }
 0x4a4   : > { %10204 = vmatpush3.bf16.msra.mxu1 %v12478_v19  ;;  %2216 = vmatprep.mubr.bf16.mxu1 %v11860_v31 }
 0x4a5   : > { %10205 = vmatprep.subr.bf16.mxu1 %v12482_v20 }
 0x4a8   : > { %10206 = vmatpush3.bf16.msra.mxu1 %v12492_v28 }
 0x4a9   : > { %10207 = vmatprep.subr.bf16.mxu1 %v12497_v30 }
 0x4ab   : > { %2217 = vmatmul.mubr.bf16.gmra.mxu1 %v11862_v38 }
 0x4ac   : > { %10208 = vmatpush3.bf16.msra.mxu1 %v12502_v33  ;;  %2224 = vmatprep.mubr.bf16.mxu1 %v11863_v16 }
 0x4ad   : > { %10209 = vmatprep.subr.bf16.mxu1 %v12507_v35 }
 0x4b0   : > { %10210 = vmatpush3.bf16.msra.mxu1 %v12515_v40 }
 0x4b1   : > { %10211 = vmatprep.subr.bf16.mxu1 %v12521_v43 }
 0x4b3   : > { %2225 = vmatmul.mubr.bf16.gmra.mxu1 %v11865_v18 }
 0x4b4   : > { %10212 = vmatpush3.bf16.msra.mxu1 %v12528_v47  ;;  %2408 = vmatprep.mubr.bf16.mxu1 %v11868_v12 }
 0x4b5   : > { %10213 = vmatprep.subr.bf16.mxu1 %v12532_v48 }
 0x4b8   : > { %10214 = vmatpush3.bf16.msra.mxu1 %v12536_v49 }
 0x4bb   : > { %2409 = vmatmul.mubr.bf16.vlgmr.msra.gmra.mxu1 %v11866_v22 }
 0x4bc   : > { %2416 = vmatprep.mubr.bf16.mxu1 %v11869_v25 }
 0x4c3   : > { %2417 = vmatmul.mubr.bf16.gmra.mxu1 %v11871_v27 }
 0x4c4   : > { %2424 = vmatprep.mubr.bf16.mxu1 %v11872_v39 }
 0x4cb   : > { %2425 = vmatmul.mubr.bf16.gmra.mxu1 %v11874_v32 }
 0x4cc   : > { %2432 = vmatprep.mubr.bf16.mxu1 %v11875_v34 }
 0x4d3   : > { %2433 = vmatmul.mubr.bf16.gmra.mxu1 %v11877_v50 }
 0x51b   : > { %v10874_v55 = vpop.f32.mrf.mxu1 }
 0x51c   : > { %v1905_v45 = vadd.f32 %v10874_v55, %v12725_v0 }
 0x51d   : > { %v1872_v58 = vpop.f32.mrf.mxu1 }
 0x51e   : > { %v1903_v46 = vadd.f32 %v1872_v58, %v12727_v1 }
 0x51f   : > { %v10875_v54 = vpop.f32.mrf.mxu1 }
 0x520   : > { %v1906_v61 = vadd.f32 %v10875_v54, %v12729_v2 }
 0x521   : > { %v12792_v56 = vpop.f32.mrf.mxu1 }
 0x52b   : > { %v10878_v57 = vpop.f32.mrf.mxu1 }
 0x52c   : > { %v1909_v59 = vadd.f32 %v10878_v57, %v12733_v6 }
 0x52d   : > { %v1888_v60 = vpop.f32.mrf.mxu1 }
 0x52e   : > { %v1907_v17 = vadd.f32 %v1888_v60, %v12735_v9 }
 0x52f   : > { %v10879_v21 = vpop.f32.mrf.mxu1 }
 0x530   : > { %v1910_v23 = vadd.f32 %v10879_v21, %v12737_v10 }
 0x531   : > { %v12797_v26 = vpop.f32.mrf.mxu1 }
 0x53b   : > { %v10884_v0 = vpop.f32.mrf.mxu1 }
 0x53c   : > { %v12799_v29 = vadd.f32 %v10884_v0, %v1905_v45 }
 0x53d   : > { %v2080_v1 = vpop.f32.mrf.mxu1 }
 0x53e   : > { %v12801_v31 = vadd.f32 %v2080_v1, %v1903_v46 }
 0x53f   : > { %v10885_v2 = vpop.f32.mrf.mxu1 }
 0x540   : > { %v12803_v38 = vadd.f32 %v10885_v2, %v1906_v61 }
 0x541   : > { %v12805_v16 = vpop.f32.mrf.mxu1 }
 0x54b   : > { %v10888_v6 = vpop.f32.mrf.mxu1 }
 0x54c   : > { %v12807_v18 = vadd.f32 %v10888_v6, %v1909_v59 }
 0x54d   : > { %v2096_v9 = vpop.f32.mrf.mxu1 }
 0x54e   : > { %v12809_v12 = vadd.f32 %v2096_v9, %v1907_v17 }
 0x54f   : > { %v10889_v10 = vpop.f32.mrf.mxu1 }
 0x550   : > { %v12811_v22 = vadd.f32 %v10889_v10, %v1910_v23 }
 0x551   : > { %v12813_v25 = vpop.f32.mrf.mxu1 }
 0x55b   : > { %v10170_v27 = vpop.f32.mrf.mxu1 }
 0x55d   : > { %v10171_v39 = vpop.f32.mrf.mxu1 }
 0x55e   : > { %v10172_v50 = vadd.f32 %v10171_v39, %v10170_v27 }
 0x55f   : > { %v10173_v32 = vpop.f32.mrf.mxu1 }
 0x561   : > { %v10174_v34 = vpop.f32.mrf.mxu1 }
 0x562   : > { %v10175_v36 = vadd.f32 %v10174_v34, %v10173_v32 }
 0x563   : > { %v10176_v37 = vpop.f32.mrf.mxu1 }
 0x564   : > { %v2233_v41 = vpack.c.bf16 %v10175_v36, %v10172_v50 }
 0x565   : > { %v10177_v55 = vpop.f32.mrf.mxu1 }
 0x566   : > { %10892 = vmatprep.mubr.msk.bf16.mxu0 %vm914_vm2, %v2233_v41  ;;  %v10178_v46 = vadd.f32 %v10177_v55, %v10176_v37 }
 0x567   : > { %v10179_v45 = vpop.f32.mrf.mxu1 }
 0x569   : > { %v10180_v58 = vpop.f32.mrf.mxu1 }
 0x56a   : > { %v10181_v54 = vadd.f32 %v10180_v58, %v10179_v45 }
 0x56b   : > { %v10182_v61 = vpop.f32.mrf.mxu1 }
 0x56c   : > { %v2234_v57 = vpack.c.bf16 %v10181_v54, %v10178_v46 }
 0x56d   : > { %v10183_v59 = vpop.f32.mrf.mxu1 }
 0x56e   : > { %10893 = vmatmul.mubr.msk.bf16.vlgmr.msra.gmra.mxu0 %vm914_vm2, %v2234_v57  ;;  %v10184_v21 = vadd.f32 %v10183_v59, %v10182_v61 }
 0x56f   : > { %v10185_v60 = vpop.f32.mrf.mxu1  ;;  %10901 = vmatpush3.bf16.msra.mxu0 %v2460_v42 }
 0x570   : > { %10244 = vmatprep.subr.bf16.mxu0 %v12449_v3 }
 0x571   : > { %v10186_v17 = vpop.f32.mrf.mxu1 }
 0x572   : > { %v10187_v23 = vadd.f32 %v10186_v17, %v10185_v60 }
 0x573   : > { %v10188_v0 = vpop.f32.mrf.mxu1 }
 0x574   : > { %v2235_v1 = vpack.c.bf16 %v10187_v23, %v10184_v21 }
 0x575   : > { %v10189_v2 = vpop.f32.mrf.mxu1 }
 0x576   : > { %10896 = vmatprep.mubr.msk.bf16.mxu0 %vm914_vm2, %v2235_v1  ;;  %v10190_v10 = vadd.f32 %v10189_v2, %v10188_v0 }
 0x577   : > { %v10191_v6 = vpop.f32.mrf.mxu1 }
 0x579   : > { %v10192_v9 = vpop.f32.mrf.mxu1 }
 0x57a   : > { %v10193_v27 = vadd.f32 %v10192_v9, %v10191_v6 }
 0x57b   : > { %v10215_v39 = vpop.f32.mrf.mxu1 }
 0x57c   : > { %v2236_v32 = vpack.c.bf16 %v10193_v27, %v10190_v10 }
 0x57d   : > { %v10216_v34 = vpop.f32.mrf.mxu1 }
 0x57e   : > { %10897 = vmatmul.mubr.msk.bf16.gmra.mxu0 %vm914_vm2, %v2236_v32  ;;  %v10217_v36 = vadd.f32 %v10216_v34, %v10215_v39  ;;  %v11880_v32 = vld [vmem:[#allocation2 + $0x244] ss:$8 sps:$4 sm:$0xff]  }
 0x57f   : > { %v10218_v42 = vpop.f32.mrf.mxu1 }
 0x581   : > { %v10219_v50 = vpop.f32.mrf.mxu1 }
 0x582   : > { %v10220_v37 = vadd.f32 %v10219_v50, %v10218_v42  ;;  %v11878_v42 = vld [vmem:[#allocation2 + $0x240] ss:$8 sps:$4 sm:$0xff]   ;;  %v11881_v50 = vld [vmem:[#allocation2 + $0x254] ss:$8 sps:$4 sm:$0xff]  }
 0x583   : > { %v10221_v41 = vpop.f32.mrf.mxu1 }
 0x584   : > { %v2441_v55 = vpack.c.bf16 %v10220_v37, %v10217_v36  ;;  %v11883_v36 = vld [vmem:[#allocation2 + $0x250] ss:$8 sps:$4 sm:$0xff]   ;;  %v11886_v37 = vld [vmem:[#allocation2 + $0x264] ss:$8 sps:$4 sm:$0xff]  }
 0x585   : > { %v10222_v45 = vpop.f32.mrf.mxu1 }
 0x586   : > { %10902 = vmatprep.mubr.msk.bf16.mxu0 %vm914_vm2, %v2441_v55  ;;  %v10223_v54 = vadd.f32 %v10222_v45, %v10221_v41  ;;  %v11884_v41 = vld [vmem:[#allocation2 + $0x260] ss:$8 sps:$4 sm:$0xff]   ;;  %v11889_v55 = vld [vmem:[#allocation2 + $0x274] ss:$8 sps:$4 sm:$0xff]   ;;  %v11887_v45 = vld [vmem:[#allocation2 + $0x270] ss:$8 sps:$4 sm:$0xff]  }
 0x587   : > { %v10224_v58 = vpop.f32.mrf.mxu1 }
 0x589   : > { %v10225_v46 = vpop.f32.mrf.mxu1 }
 0x58a   : > { %v10226_v61 = vadd.f32 %v10225_v46, %v10224_v58  ;;  %v11892_v58 = vld [vmem:[#allocation2 + $0x284] ss:$8 sps:$4 sm:$0xff]   ;;  %v11890_v46 = vld [vmem:[#allocation2 + $0x280] ss:$8 sps:$4 sm:$0xff]  }
 0x58b   : > { %v10227_v57 = vpop.f32.mrf.mxu1 }
 0x58c   : > { %v2442_v59 = vpack.c.bf16 %v10226_v61, %v10223_v54  ;;  %v11895_v54 = vld [vmem:[#allocation2 + $0x294] ss:$8 sps:$4 sm:$0xff]   ;;  %v11893_v61 = vld [vmem:[#allocation2 + $0x290] ss:$8 sps:$4 sm:$0xff]  }
 0x58d   : > { %v10228_v60 = vpop.f32.mrf.mxu1 }
 0x58e   : > { %10903 = vmatmul.mubr.msk.bf16.vlgmr.msra.gmra.mxu0 %vm914_vm2, %v2442_v59  ;;  %v10229_v21 = vadd.f32 %v10228_v60, %v10227_v57  ;;  %v11898_v57 = vld [vmem:[#allocation2 + $0x2a4] ss:$8 sps:$4 sm:$0xff]   ;;  %v11896_v59 = vld [vmem:[#allocation2 + $0x2a0] ss:$8 sps:$4 sm:$0xff]   ;;  %v11901_v60 = vld [vmem:[#allocation2 + $0x2b4] ss:$8 sps:$4 sm:$0xff]  }
 0x58f   : > { %10245 = vmatpush3.bf16.msra.mxu0 %v12454_v7  ;;  %v10230_v17 = vpop.f32.mrf.mxu1 }
 0x590   : > { %10246 = vmatprep.subr.bf16.mxu0 %v12456_v8 }
 0x591   : > { %v10231_v23 = vpop.f32.mrf.mxu1 }
 0x592   : > { %v10232_v0 = vadd.f32 %v10231_v23, %v10230_v17  ;;  %v11899_v17 = vld [vmem:[#allocation2 + $0x2b0] ss:$8 sps:$4 sm:$0xff]  }
 0x593   : > { %10247 = vmatpush3.bf16.msra.mxu0 %v12466_v13  ;;  %v10233_v1 = vpop.f32.mrf.mxu1 }
 0x594   : > { %v2443_v2 = vpack.c.bf16 %v10232_v0, %v10229_v21  ;;  %10248 = vmatprep.subr.bf16.mxu0 %v12470_v14  ;;  %v9423_v21 = vld [vmem:[%s14082_s2 + $0x12] sm:$0x3]  ;;  %v9436_v0 = vld [vmem:[%s14082_s2 + $0x14] sm:$0x3] }
 0x595   : > { %v10234_v6 = vpop.f32.mrf.mxu1  ;;  %v2668_v23 = vand.u32 %v9423_v21, %v12546_v4 }
 0x596   : > { %10906 = vmatprep.mubr.msk.bf16.mxu0 %vm914_vm2, %v2443_v2  ;;  %v10235_v10 = vadd.f32 %v10234_v6, %v10233_v1  ;;  %v2876_v1 = vand.u32 %v9436_v0, %v12546_v4 }
 0x597   : > { %10249 = vmatpush3.bf16.msra.mxu0 %v12478_v19  ;;  %v10236_v9 = vpop.f32.mrf.mxu1  ;;  %10910 = vmatprep.subr.bf16.mxu1 %v2668_v23 }
 0x598   : > { %10250 = vmatprep.subr.bf16.mxu0 %v12482_v20  ;;  %10911 = vmatpush3.bf16.msra.mxu1 %v2668_v23 }
 0x599   : > { %v10237_v27 = vpop.f32.mrf.mxu1  ;;  %10920 = vmatprep.subr.bf16.mxu1 %v2876_v1 }
 0x59a   : > { %v10238_v39 = vadd.f32 %v10237_v27, %v10236_v9 }
 0x59b   : > { %10251 = vmatpush3.bf16.msra.mxu0 %v12492_v28 }
 0x59c   : > { %v2444_v34 = vpack.c.bf16 %v10238_v39, %v10235_v10  ;;  %10252 = vmatprep.subr.bf16.mxu0 %v12497_v30 }
 0x59e   : > { %10907 = vmatmul.mubr.msk.bf16.gmra.mxu0 %vm914_vm2, %v2444_v34 }
 0x59f   : > { %10253 = vmatpush3.bf16.msra.mxu0 %v12502_v33  ;;  %2616 = vmatprep.mubr.bf16.mxu0 %v11880_v32 }
 0x5a0   : > { %10254 = vmatprep.subr.bf16.mxu0 %v12507_v35 }
 0x5a3   : > { %10255 = vmatpush3.bf16.msra.mxu0 %v12515_v40 }
 0x5a4   : > { %10256 = vmatprep.subr.bf16.mxu0 %v12521_v43 }
 0x5a7   : > { %10257 = vmatpush3.bf16.msra.mxu0 %v12528_v47 }
 0x5a8   : > { %10258 = vmatprep.subr.bf16.mxu0 %v12532_v48 }
 0x5ab   : > { %10259 = vmatpush3.bf16.msra.mxu0 %v12536_v49 }
 0x5ac   : > { %10289 = vmatprep.subr.bf16.mxu0 %v12449_v3 }
 0x5ae   : > { %2617 = vmatmul.mubr.bf16.vlgmr.msra.gmra.mxu0 %v11878_v42 }
 0x5af   : > { %10290 = vmatpush3.bf16.msra.mxu0 %v12454_v7  ;;  %2624 = vmatprep.mubr.bf16.mxu0 %v11881_v50 }
 0x5b0   : > { %10291 = vmatprep.subr.bf16.mxu0 %v12456_v8 }
 0x5b3   : > { %10292 = vmatpush3.bf16.msra.mxu0 %v12466_v13 }
 0x5b4   : > { %10293 = vmatprep.subr.bf16.mxu0 %v12470_v14 }
 0x5b6   : > { %2625 = vmatmul.mubr.bf16.gmra.mxu0 %v11883_v36 }
 0x5b7   : > { %10294 = vmatpush3.bf16.msra.mxu0 %v12478_v19  ;;  %2632 = vmatprep.mubr.bf16.mxu0 %v11886_v37 }
 0x5b8   : > { %10295 = vmatprep.subr.bf16.mxu0 %v12482_v20 }
 0x5bb   : > { %10296 = vmatpush3.bf16.msra.mxu0 %v12492_v28 }
 0x5bc   : > { %10297 = vmatprep.subr.bf16.mxu0 %v12497_v30 }
 0x5be   : > { %2633 = vmatmul.mubr.bf16.gmra.mxu0 %v11884_v41 }
 0x5bf   : > { %10298 = vmatpush3.bf16.msra.mxu0 %v12502_v33  ;;  %2640 = vmatprep.mubr.bf16.mxu0 %v11889_v55 }
 0x5c0   : > { %10299 = vmatprep.subr.bf16.mxu0 %v12507_v35 }
 0x5c3   : > { %10300 = vmatpush3.bf16.msra.mxu0 %v12515_v40 }
 0x5c4   : > { %10301 = vmatprep.subr.bf16.mxu0 %v12521_v43 }
 0x5c6   : > { %2641 = vmatmul.mubr.bf16.gmra.mxu0 %v11887_v45 }
 0x5c7   : > { %10302 = vmatpush3.bf16.msra.mxu0 %v12528_v47  ;;  %2824 = vmatprep.mubr.bf16.mxu0 %v11892_v58 }
 0x5c8   : > { %10303 = vmatprep.subr.bf16.mxu0 %v12532_v48 }
 0x5cb   : > { %10304 = vmatpush3.bf16.msra.mxu0 %v12536_v49 }
 0x5ce   : > { %2825 = vmatmul.mubr.bf16.vlgmr.msra.gmra.mxu0 %v11890_v46 }
 0x5cf   : > { %2832 = vmatprep.mubr.bf16.mxu0 %v11895_v54 }
 0x5d6   : > { %2833 = vmatmul.mubr.bf16.gmra.mxu0 %v11893_v61 }
 0x5d7   : > { %2840 = vmatprep.mubr.bf16.mxu0 %v11898_v57 }
 0x5de   : > { %2841 = vmatmul.mubr.bf16.gmra.mxu0 %v11896_v59 }
 0x5df   : > { %2848 = vmatprep.mubr.bf16.mxu0 %v11901_v60 }
 0x5e6   : > { %2849 = vmatmul.mubr.bf16.gmra.mxu0 %v11899_v17 }
 0x62e   : > { %v10894_v2 = vpop.f32.mrf.mxu0 }
 0x62f   : > { %v2321_v6 = vadd.f32 %v10894_v2, %v12799_v29 }
 0x630   : > { %v2288_v9 = vpop.f32.mrf.mxu0 }
 0x631   : > { %v2319_v10 = vadd.f32 %v2288_v9, %v12801_v31 }
 0x632   : > { %v10895_v27 = vpop.f32.mrf.mxu0 }
 0x633   : > { %v2322_v39 = vadd.f32 %v10895_v27, %v12803_v38 }
 0x634   : > { %v12866_v32 = vpop.f32.mrf.mxu0 }
 0x63e   : > { %v10898_v34 = vpop.f32.mrf.mxu0 }
 0x63f   : > { %v2325_v42 = vadd.f32 %v10898_v34, %v12807_v18 }
 0x640   : > { %v2304_v50 = vpop.f32.mrf.mxu0 }
 0x641   : > { %v2323_v36 = vadd.f32 %v2304_v50, %v12809_v12 }
 0x642   : > { %v10899_v37 = vpop.f32.mrf.mxu0 }
 0x643   : > { %v2326_v41 = vadd.f32 %v10899_v37, %v12811_v22 }
 0x644   : > { %v12871_v55 = vpop.f32.mrf.mxu0 }
 0x64e   : > { %v10904_v29 = vpop.f32.mrf.mxu0 }
 0x64f   : > { %v12873_v45 = vadd.f32 %v10904_v29, %v2321_v6 }
 0x650   : > { %v2496_v31 = vpop.f32.mrf.mxu0 }
 0x651   : > { %v12875_v58 = vadd.f32 %v2496_v31, %v2319_v10 }
 0x652   : > { %v10905_v38 = vpop.f32.mrf.mxu0 }
 0x653   : > { %v12877_v46 = vadd.f32 %v10905_v38, %v2322_v39 }
 0x654   : > { %v12879_v54 = vpop.f32.mrf.mxu0 }
 0x65e   : > { %v10908_v18 = vpop.f32.mrf.mxu0 }
 0x65f   : > { %v12881_v61 = vadd.f32 %v10908_v18, %v2325_v42 }
 0x660   : > { %v2512_v12 = vpop.f32.mrf.mxu0 }
 0x661   : > { %v12883_v57 = vadd.f32 %v2512_v12, %v2323_v36 }
 0x662   : > { %v10909_v22 = vpop.f32.mrf.mxu0 }
 0x663   : > { %v12885_v59 = vadd.f32 %v10909_v22, %v2326_v41 }
 0x664   : > { %v12887_v60 = vpop.f32.mrf.mxu0 }
 0x66e   : > { %v10260_v17 = vpop.f32.mrf.mxu0 }
 0x670   : > { %v10261_v21 = vpop.f32.mrf.mxu0 }
 0x671   : > { %v10262_v2 = vadd.f32 %v10261_v21, %v10260_v17 }
 0x672   : > { %v10263_v23 = vpop.f32.mrf.mxu0 }
 0x674   : > { %v10264_v0 = vpop.f32.mrf.mxu0 }
 0x675   : > { %v10265_v6 = vadd.f32 %v10264_v0, %v10263_v23 }
 0x676   : > { %v10266_v9 = vpop.f32.mrf.mxu0 }
 0x677   : > { %v2649_v10 = vpack.c.bf16 %v10265_v6, %v10262_v2 }
 0x678   : > { %v10267_v27 = vpop.f32.mrf.mxu0 }
 0x679   : > { %10912 = vmatprep.mubr.msk.bf16.mxu1 %vm914_vm2, %v2649_v10  ;;  %v10268_v42 = vadd.f32 %v10267_v27, %v10266_v9 }
 0x67a   : > { %v10269_v39 = vpop.f32.mrf.mxu0 }
 0x67c   : > { %v10270_v34 = vpop.f32.mrf.mxu0 }
 0x67d   : > { %v10271_v50 = vadd.f32 %v10270_v34, %v10269_v39 }
 0x67e   : > { %v10272_v36 = vpop.f32.mrf.mxu0 }
 0x67f   : > { %v2650_v37 = vpack.c.bf16 %v10271_v50, %v10268_v42 }
 0x680   : > { %v10273_v41 = vpop.f32.mrf.mxu0 }
 0x681   : > { %10913 = vmatmul.mubr.msk.bf16.vlgmr.msra.gmra.mxu1 %vm914_vm2, %v2650_v37  ;;  %v10274_v38 = vadd.f32 %v10273_v41, %v10272_v36 }
 0x682   : > { %v10275_v29 = vpop.f32.mrf.mxu0  ;;  %10921 = vmatpush3.bf16.msra.mxu1 %v2876_v1 }
 0x683   : > { %10334 = vmatprep.subr.bf16.mxu1 %v12449_v3 }
 0x684   : > { %v10276_v31 = vpop.f32.mrf.mxu0 }
 0x685   : > { %v10277_v18 = vadd.f32 %v10276_v31, %v10275_v29 }
 0x686   : > { %v10278_v12 = vpop.f32.mrf.mxu0 }
 0x687   : > { %v2651_v22 = vpack.c.bf16 %v10277_v18, %v10274_v38 }
 0x688   : > { %v10279_v17 = vpop.f32.mrf.mxu0 }
 0x689   : > { %10916 = vmatprep.mubr.msk.bf16.mxu1 %vm914_vm2, %v2651_v22  ;;  %v10280_v0 = vadd.f32 %v10279_v17, %v10278_v12 }
 0x68a   : > { %v10281_v21 = vpop.f32.mrf.mxu0 }
 0x68c   : > { %v10282_v23 = vpop.f32.mrf.mxu0 }
 0x68d   : > { %v10283_v2 = vadd.f32 %v10282_v23, %v10281_v21 }
 0x68e   : > { %v10305_v6 = vpop.f32.mrf.mxu0 }
 0x68f   : > { %v2652_v9 = vpack.c.bf16 %v10283_v2, %v10280_v0 }
 0x690   : > { %v10306_v10 = vpop.f32.mrf.mxu0 }
 0x691   : > { %10917 = vmatmul.mubr.msk.bf16.gmra.mxu1 %vm914_vm2, %v2652_v9  ;;  %v10307_v39 = vadd.f32 %v10306_v10, %v10305_v6 }
 0x692   : > { %v10308_v1 = vpop.f32.mrf.mxu0 }
 0x694   : > { %v10309_v27 = vpop.f32.mrf.mxu0 }
 0x695   : > { %v10310_v34 = vadd.f32 %v10309_v27, %v10308_v1 }
 0x696   : > { %v10311_v42 = vpop.f32.mrf.mxu0 }
 0x697   : > { %v2857_v50 = vpack.c.bf16 %v10310_v34, %v10307_v39  ;;  %v11904_v39 = vld [vmem:[#allocation2 + $0x2c4] ss:$8 sps:$4 sm:$0xff]  }
 0x698   : > { %v10312_v36 = vpop.f32.mrf.mxu0 }
 0x699   : > { %10922 = vmatprep.mubr.msk.bf16.mxu1 %vm914_vm2, %v2857_v50  ;;  %v10313_v29 = vadd.f32 %v10312_v36, %v10311_v42  ;;  %v11902_v42 = vld [vmem:[#allocation2 + $0x2c0] ss:$8 sps:$4 sm:$0xff]   ;;  %v11907_v50 = vld [vmem:[#allocation2 + $0x2d4] ss:$8 sps:$4 sm:$0xff]   ;;  %v11905_v36 = vld [vmem:[#allocation2 + $0x2d0] ss:$8 sps:$4 sm:$0xff]  }
 0x69a   : > { %v10314_v37 = vpop.f32.mrf.mxu0 }
 0x69c   : > { %v10315_v41 = vpop.f32.mrf.mxu0 }
 0x69d   : > { %v10316_v31 = vadd.f32 %v10315_v41, %v10314_v37  ;;  %v11910_v37 = vld [vmem:[#allocation2 + $0x2e4] ss:$8 sps:$4 sm:$0xff]   ;;  %v11908_v41 = vld [vmem:[#allocation2 + $0x2e0] ss:$8 sps:$4 sm:$0xff]  }
 0x69e   : > { %v10317_v38 = vpop.f32.mrf.mxu0 }
 0x69f   : > { %v2858_v18 = vpack.c.bf16 %v10316_v31, %v10313_v29  ;;  %v11913_v29 = vld [vmem:[#allocation2 + $0x2f4] ss:$8 sps:$4 sm:$0xff]   ;;  %v11911_v31 = vld [vmem:[#allocation2 + $0x2f0] ss:$8 sps:$4 sm:$0xff]  }
 0x6a0   : > { %v10318_v12 = vpop.f32.mrf.mxu0 }
 0x6a1   : > { %10923 = vmatmul.mubr.msk.bf16.vlgmr.msra.gmra.mxu1 %vm914_vm2, %v2858_v18  ;;  %v10319_v17 = vadd.f32 %v10318_v12, %v10317_v38  ;;  %v11916_v38 = vld [vmem:[#allocation2 + $0x304] ss:$8 sps:$4 sm:$0xff]   ;;  %v11914_v18 = vld [vmem:[#allocation2 + $0x300] ss:$8 sps:$4 sm:$0xff]   ;;  %v11919_v12 = vld [vmem:[#allocation2 + $0x314] ss:$8 sps:$4 sm:$0xff]  }
 0x6a2   : > { %10335 = vmatpush3.bf16.msra.mxu1 %v12454_v7  ;;  %v10320_v22 = vpop.f32.mrf.mxu0 }
 0x6a3   : > { %10336 = vmatprep.subr.bf16.mxu1 %v12456_v8 }
 0x6a4   : > { %v10321_v21 = vpop.f32.mrf.mxu0 }
 0x6a5   : > { %v10322_v23 = vadd.f32 %v10321_v21, %v10320_v22  ;;  %v11917_v22 = vld [vmem:[#allocation2 + $0x310] ss:$8 sps:$4 sm:$0xff]   ;;  %v11920_v21 = vld [vmem:[#allocation2 + $0x320] ss:$8 sps:$4 sm:$0xff]  }
 0x6a6   : > { %10337 = vmatpush3.bf16.msra.mxu1 %v12466_v13  ;;  %v10323_v0 = vpop.f32.mrf.mxu0 }
 0x6a7   : > { %v2859_v2 = vpack.c.bf16 %v10322_v23, %v10319_v17  ;;  %10338 = vmatprep.subr.bf16.mxu1 %v12470_v14  ;;  %v11922_v17 = vld [vmem:[#allocation2 + $0x324] ss:$8 sps:$4 sm:$0xff]   ;;  %v11925_v23 = vld [vmem:[#allocation2 + $0x334] ss:$8 sps:$4 sm:$0xff]  }
 0x6a8   : > { %v10324_v6 = vpop.f32.mrf.mxu0 }
 0x6a9   : > { %10926 = vmatprep.mubr.msk.bf16.mxu1 %vm914_vm2, %v2859_v2  ;;  %v10325_v10 = vadd.f32 %v10324_v6, %v10323_v0  ;;  %v11923_v0 = vld [vmem:[#allocation2 + $0x330] ss:$8 sps:$4 sm:$0xff]   ;;  %v9449_v2 = vld [vmem:[%s14082_s2 + $0x16] sm:$0x3] }
 0x6aa   : > { %10339 = vmatpush3.bf16.msra.mxu1 %v12478_v19  ;;  %v10326_v9 = vpop.f32.mrf.mxu0  ;;  %v3084_v6 = vand.u32 %v9449_v2, %v12546_v4 }
 0x6ab   : > { %10340 = vmatprep.subr.bf16.mxu1 %v12482_v20 }
 0x6ac   : > { %v10327_v1 = vpop.f32.mrf.mxu0  ;;  %10930 = vmatprep.subr.bf16.mxu0 %v3084_v6 }
 0x6ad   : > { %v10328_v27 = vadd.f32 %v10327_v1, %v10326_v9  ;;  %10931 = vmatpush3.bf16.msra.mxu0 %v3084_v6  ;;  %v9462_v9 = vld [vmem:[%s14082_s2 + $0x18] sm:$0x3] }
 0x6ae   : > { %10341 = vmatpush3.bf16.msra.mxu1 %v12492_v28 }
 0x6af   : > { %v2860_v34 = vpack.c.bf16 %v10328_v27, %v10325_v10  ;;  %10342 = vmatprep.subr.bf16.mxu1 %v12497_v30  ;;  %v3292_v10 = vand.u32 %v9462_v9, %v12546_v4 }
 0x6b1   : > { %10927 = vmatmul.mubr.msk.bf16.gmra.mxu1 %vm914_vm2, %v2860_v34  ;;  %10940 = vmatprep.subr.bf16.mxu0 %v3292_v10 }
 0x6b2   : > { %10343 = vmatpush3.bf16.msra.mxu1 %v12502_v33  ;;  %3032 = vmatprep.mubr.bf16.mxu1 %v11904_v39 }
 0x6b3   : > { %10344 = vmatprep.subr.bf16.mxu1 %v12507_v35 }
 0x6b6   : > { %10345 = vmatpush3.bf16.msra.mxu1 %v12515_v40 }
 0x6b7   : > { %10346 = vmatprep.subr.bf16.mxu1 %v12521_v43 }
 0x6ba   : > { %10347 = vmatpush3.bf16.msra.mxu1 %v12528_v47 }
 0x6bb   : > { %10348 = vmatprep.subr.bf16.mxu1 %v12532_v48 }
 0x6be   : > { %10349 = vmatpush3.bf16.msra.mxu1 %v12536_v49 }
 0x6bf   : > { %10379 = vmatprep.subr.bf16.mxu1 %v12449_v3 }
 0x6c1   : > { %3033 = vmatmul.mubr.bf16.vlgmr.msra.gmra.mxu1 %v11902_v42 }
 0x6c2   : > { %10380 = vmatpush3.bf16.msra.mxu1 %v12454_v7  ;;  %3040 = vmatprep.mubr.bf16.mxu1 %v11907_v50 }
 0x6c3   : > { %10381 = vmatprep.subr.bf16.mxu1 %v12456_v8 }
 0x6c6   : > { %10382 = vmatpush3.bf16.msra.mxu1 %v12466_v13 }
 0x6c7   : > { %10383 = vmatprep.subr.bf16.mxu1 %v12470_v14 }
 0x6c9   : > { %3041 = vmatmul.mubr.bf16.gmra.mxu1 %v11905_v36 }
 0x6ca   : > { %10384 = vmatpush3.bf16.msra.mxu1 %v12478_v19  ;;  %3048 = vmatprep.mubr.bf16.mxu1 %v11910_v37 }
 0x6cb   : > { %10385 = vmatprep.subr.bf16.mxu1 %v12482_v20 }
 0x6ce   : > { %10386 = vmatpush3.bf16.msra.mxu1 %v12492_v28 }
 0x6cf   : > { %10387 = vmatprep.subr.bf16.mxu1 %v12497_v30 }
 0x6d1   : > { %3049 = vmatmul.mubr.bf16.gmra.mxu1 %v11908_v41 }
 0x6d2   : > { %10388 = vmatpush3.bf16.msra.mxu1 %v12502_v33  ;;  %3056 = vmatprep.mubr.bf16.mxu1 %v11913_v29 }
 0x6d3   : > { %10389 = vmatprep.subr.bf16.mxu1 %v12507_v35 }
 0x6d6   : > { %10390 = vmatpush3.bf16.msra.mxu1 %v12515_v40 }
 0x6d7   : > { %10391 = vmatprep.subr.bf16.mxu1 %v12521_v43 }
 0x6d9   : > { %3057 = vmatmul.mubr.bf16.gmra.mxu1 %v11911_v31 }
 0x6da   : > { %10392 = vmatpush3.bf16.msra.mxu1 %v12528_v47  ;;  %3240 = vmatprep.mubr.bf16.mxu1 %v11916_v38 }
 0x6db   : > { %10393 = vmatprep.subr.bf16.mxu1 %v12532_v48 }
 0x6de   : > { %10394 = vmatpush3.bf16.msra.mxu1 %v12536_v49 }
 0x6e1   : > { %3241 = vmatmul.mubr.bf16.vlgmr.msra.gmra.mxu1 %v11914_v18 }
 0x6e2   : > { %3248 = vmatprep.mubr.bf16.mxu1 %v11919_v12 }
 0x6e9   : > { %3249 = vmatmul.mubr.bf16.gmra.mxu1 %v11917_v22 }
 0x6ea   : > { %3256 = vmatprep.mubr.bf16.mxu1 %v11922_v17 }
 0x6f1   : > { %3257 = vmatmul.mubr.bf16.gmra.mxu1 %v11920_v21 }
 0x6f2   : > { %3264 = vmatprep.mubr.bf16.mxu1 %v11925_v23 }
 0x6f9   : > { %3265 = vmatmul.mubr.bf16.gmra.mxu1 %v11923_v0 }
 0x741   : > { %v10914_v1 = vpop.f32.mrf.mxu1 }
 0x742   : > { %v2737_v27 = vadd.f32 %v10914_v1, %v12873_v45 }
 0x743   : > { %v2704_v39 = vpop.f32.mrf.mxu1 }
 0x744   : > { %v2735_v34 = vadd.f32 %v2704_v39, %v12875_v58 }
 0x745   : > { %v10915_v42 = vpop.f32.mrf.mxu1 }
 0x746   : > { %v2738_v50 = vadd.f32 %v10915_v42, %v12877_v46 }
 0x747   : > { %v12940_v36 = vpop.f32.mrf.mxu1 }
 0x751   : > { %v10918_v37 = vpop.f32.mrf.mxu1 }
 0x752   : > { %v2741_v41 = vadd.f32 %v10918_v37, %v12881_v61 }
 0x753   : > { %v2720_v29 = vpop.f32.mrf.mxu1 }
 0x754   : > { %v2739_v31 = vadd.f32 %v2720_v29, %v12883_v57 }
 0x755   : > { %v10919_v38 = vpop.f32.mrf.mxu1 }
 0x756   : > { %v2742_v18 = vadd.f32 %v10919_v38, %v12885_v59 }
 0x757   : > { %v12945_v12 = vpop.f32.mrf.mxu1 }
 0x761   : > { %v10924_v45 = vpop.f32.mrf.mxu1 }
 0x762   : > { %v12947_v22 = vadd.f32 %v10924_v45, %v2737_v27 }
 0x763   : > { %v2912_v58 = vpop.f32.mrf.mxu1 }
 0x764   : > { %v12949_v17 = vadd.f32 %v2912_v58, %v2735_v34 }
 0x765   : > { %v10925_v46 = vpop.f32.mrf.mxu1 }
 0x766   : > { %v12951_v21 = vadd.f32 %v10925_v46, %v2738_v50 }
 0x767   : > { %v12953_v23 = vpop.f32.mrf.mxu1 }
 0x768   : > { %14116 = vst [vmem:[#allocation17_spill] sm:$0xff] %v12953_v23 }
 0x771   : > { %v10928_v61 = vpop.f32.mrf.mxu1 }
 0x772   : > { %v12955_v0 = vadd.f32 %v10928_v61, %v2741_v41 }
 0x773   : > { %v2928_v57 = vpop.f32.mrf.mxu1 }
 0x774   : > { %v12957_v2 = vadd.f32 %v2928_v57, %v2739_v31 }
 0x775   : > { %v10929_v59 = vpop.f32.mrf.mxu1 }
 0x776   : > { %v12959_v6 = vadd.f32 %v10929_v59, %v2742_v18 }
 0x777   : > { %v12961_v9 = vpop.f32.mrf.mxu1 }
 0x781   : > { %v10350_v1 = vpop.f32.mrf.mxu1 }
 0x783   : > { %v10351_v27 = vpop.f32.mrf.mxu1 }
 0x784   : > { %v10352_v42 = vadd.f32 %v10351_v27, %v10350_v1 }
 0x785   : > { %v10353_v39 = vpop.f32.mrf.mxu1 }
 0x787   : > { %v10354_v34 = vpop.f32.mrf.mxu1 }
 0x788   : > { %v10355_v50 = vadd.f32 %v10354_v34, %v10353_v39 }
 0x789   : > { %v10356_v37 = vpop.f32.mrf.mxu1 }
 0x78a   : > { %v3065_v29 = vpack.c.bf16 %v10355_v50, %v10352_v42 }
 0x78b   : > { %v10357_v38 = vpop.f32.mrf.mxu1 }
 0x78c   : > { %10932 = vmatprep.mubr.msk.bf16.mxu0 %vm914_vm2, %v3065_v29  ;;  %v10358_v31 = vadd.f32 %v10357_v38, %v10356_v37 }
 0x78d   : > { %v10359_v41 = vpop.f32.mrf.mxu1 }
 0x78f   : > { %v10360_v45 = vpop.f32.mrf.mxu1 }
 0x790   : > { %v10361_v58 = vadd.f32 %v10360_v45, %v10359_v41 }
 0x791   : > { %v10362_v46 = vpop.f32.mrf.mxu1 }
 0x792   : > { %v3066_v18 = vpack.c.bf16 %v10361_v58, %v10358_v31 }
 0x793   : > { %v10363_v61 = vpop.f32.mrf.mxu1 }
 0x794   : > { %10933 = vmatmul.mubr.msk.bf16.vlgmr.msra.gmra.mxu0 %vm914_vm2, %v3066_v18  ;;  %v10364_v1 = vadd.f32 %v10363_v61, %v10362_v46 }
 0x795   : > { %v10365_v57 = vpop.f32.mrf.mxu1  ;;  %10941 = vmatpush3.bf16.msra.mxu0 %v3292_v10 }
 0x796   : > { %10424 = vmatprep.subr.bf16.mxu0 %v12449_v3 }
 0x797   : > { %v10366_v59 = vpop.f32.mrf.mxu1 }
 0x798   : > { %v10367_v27 = vadd.f32 %v10366_v59, %v10365_v57 }
 0x799   : > { %v10368_v39 = vpop.f32.mrf.mxu1 }
 0x79a   : > { %v3067_v34 = vpack.c.bf16 %v10367_v27, %v10364_v1 }
 0x79b   : > { %v10369_v42 = vpop.f32.mrf.mxu1 }
 0x79c   : > { %10936 = vmatprep.mubr.msk.bf16.mxu0 %vm914_vm2, %v3067_v34  ;;  %v10370_v29 = vadd.f32 %v10369_v42, %v10368_v39 }
 0x79d   : > { %v10371_v50 = vpop.f32.mrf.mxu1 }
 0x79f   : > { %v10372_v37 = vpop.f32.mrf.mxu1 }
 0x7a0   : > { %v10373_v38 = vadd.f32 %v10372_v37, %v10371_v50 }
 0x7a1   : > { %v10395_v41 = vpop.f32.mrf.mxu1 }
 0x7a2   : > { %v3068_v45 = vpack.c.bf16 %v10373_v38, %v10370_v29 }
 0x7a3   : > { %v10396_v31 = vpop.f32.mrf.mxu1 }
 0x7a4   : > { %10937 = vmatmul.mubr.msk.bf16.gmra.mxu0 %vm914_vm2, %v3068_v45  ;;  %v10397_v18 = vadd.f32 %v10396_v31, %v10395_v41 }
 0x7a5   : > { %v10398_v10 = vpop.f32.mrf.mxu1 }
 0x7a7   : > { %v10399_v58 = vpop.f32.mrf.mxu1 }
 0x7a8   : > { %v10400_v23 = vadd.f32 %v10399_v58, %v10398_v10 }
 0x7a9   : > { %v10401_v46 = vpop.f32.mrf.mxu1 }
 0x7aa   : > { %v3273_v61 = vpack.c.bf16 %v10400_v23, %v10397_v18 }
 0x7ab   : > { %v10402_v57 = vpop.f32.mrf.mxu1 }
 0x7ac   : > { %10942 = vmatprep.mubr.msk.bf16.mxu0 %vm914_vm2, %v3273_v61  ;;  %v10403_v27 = vadd.f32 %v10402_v57, %v10401_v46  ;;  %v11928_v61 = vld [vmem:[#allocation2 + $0x344] ss:$8 sps:$4 sm:$0xff]  }
 0x7ad   : > { %v10404_v59 = vpop.f32.mrf.mxu1 }
 0x7af   : > { %v10405_v1 = vpop.f32.mrf.mxu1 }
 0x7b0   : > { %v10406_v34 = vadd.f32 %v10405_v1, %v10404_v59  ;;  %v11926_v59 = vld [vmem:[#allocation2 + $0x340] ss:$8 sps:$4 sm:$0xff]   ;;  %v11931_v1 = vld [vmem:[#allocation2 + $0x354] ss:$8 sps:$4 sm:$0xff]  }
 0x7b1   : > { %v10407_v39 = vpop.f32.mrf.mxu1 }
 0x7b2   : > { %v3274_v42 = vpack.c.bf16 %v10406_v34, %v10403_v27  ;;  %v11929_v27 = vld [vmem:[#allocation2 + $0x350] ss:$8 sps:$4 sm:$0xff]   ;;  %v11934_v34 = vld [vmem:[#allocation2 + $0x364] ss:$8 sps:$4 sm:$0xff]  }
 0x7b3   : > { %v10408_v50 = vpop.f32.mrf.mxu1 }
 0x7b4   : > { %10943 = vmatmul.mubr.msk.bf16.vlgmr.msra.gmra.mxu0 %vm914_vm2, %v3274_v42  ;;  %v10409_v29 = vadd.f32 %v10408_v50, %v10407_v39  ;;  %v11932_v39 = vld [vmem:[#allocation2 + $0x360] ss:$8 sps:$4 sm:$0xff]   ;;  %v11937_v42 = vld [vmem:[#allocation2 + $0x374] ss:$8 sps:$4 sm:$0xff]   ;;  %v11935_v50 = vld [vmem:[#allocation2 + $0x370] ss:$8 sps:$4 sm:$0xff]  }
 0x7b5   : > { %10425 = vmatpush3.bf16.msra.mxu0 %v12454_v7  ;;  %v10410_v37 = vpop.f32.mrf.mxu1 }
 0x7b6   : > { %10426 = vmatprep.subr.bf16.mxu0 %v12456_v8 }
 0x7b7   : > { %v10411_v38 = vpop.f32.mrf.mxu1 }
 0x7b8   : > { %v10412_v23 = vadd.f32 %v10411_v38, %v10410_v37  ;;  %v11940_v37 = vld [vmem:[#allocation2 + $0x384] ss:$8 sps:$4 sm:$0xff]   ;;  %v11943_v38 = vld [vmem:[#allocation2 + $0x394] ss:$8 sps:$4 sm:$0xff]  }
 0x7b9   : > { %10427 = vmatpush3.bf16.msra.mxu0 %v12466_v13  ;;  %v10413_v41 = vpop.f32.mrf.mxu1 }
 0x7ba   : > { %v3275_v45 = vpack.c.bf16 %v10412_v23, %v10409_v29  ;;  %10428 = vmatprep.subr.bf16.mxu0 %v12470_v14  ;;  %v11938_v29 = vld [vmem:[#allocation2 + $0x380] ss:$8 sps:$4 sm:$0xff]   ;;  %v11941_v23 = vld [vmem:[#allocation2 + $0x390] ss:$8 sps:$4 sm:$0xff]  }
 0x7bb   : > { %v10414_v31 = vpop.f32.mrf.mxu1 }
 0x7bc   : > { %10946 = vmatprep.mubr.msk.bf16.mxu0 %vm914_vm2, %v3275_v45  ;;  %v10415_v58 = vadd.f32 %v10414_v31, %v10413_v41  ;;  %v11946_v41 = vld [vmem:[#allocation2 + $0x3a4] ss:$8 sps:$4 sm:$0xff]   ;;  %v11944_v45 = vld [vmem:[#allocation2 + $0x3a0] ss:$8 sps:$4 sm:$0xff]   ;;  %v11949_v31 = vld [vmem:[#allocation2 + $0x3b4] ss:$8 sps:$4 sm:$0xff]  }
 0x7bd   : > { %10429 = vmatpush3.bf16.msra.mxu0 %v12478_v19  ;;  %v10416_v10 = vpop.f32.mrf.mxu1 }
 0x7be   : > { %10430 = vmatprep.subr.bf16.mxu0 %v12482_v20 }
 0x7bf   : > { %v10417_v18 = vpop.f32.mrf.mxu1 }
 0x7c0   : > { %v10418_v46 = vadd.f32 %v10417_v18, %v10416_v10  ;;  %v11947_v10 = vld [vmem:[#allocation2 + $0x3b0] ss:$8 sps:$4 sm:$0xff]  }
 0x7c1   : > { %10431 = vmatpush3.bf16.msra.mxu0 %v12492_v28 }
 0x7c2   : > { %v3276_v57 = vpack.c.bf16 %v10418_v46, %v10415_v58  ;;  %10432 = vmatprep.subr.bf16.mxu0 %v12497_v30  ;;  %v9475_v58 = vld [vmem:[%s14082_s2 + $0x1a] sm:$0x3]  ;;  %v9488_v46 = vld [vmem:[%s14082_s2 + $0x1c] sm:$0x3] }
 0x7c3   : > { %v3500_v18 = vand.u32 %v9475_v58, %v12546_v4 }
 0x7c4   : > { %10947 = vmatmul.mubr.msk.bf16.gmra.mxu0 %vm914_vm2, %v3276_v57 }
 0x7c5   : > { %10433 = vmatpush3.bf16.msra.mxu0 %v12502_v33  ;;  %3448 = vmatprep.mubr.bf16.mxu0 %v11928_v61  ;;  %v3708_v61 = vand.u32 %v9488_v46, %v12546_v4 }
 0x7c6   : > { %10434 = vmatprep.subr.bf16.mxu0 %v12507_v35  ;;  %10950 = vmatprep.subr.bf16.mxu1 %v3500_v18 }
 0x7c7   : > { %10951 = vmatpush3.bf16.msra.mxu1 %v3500_v18 }
 0x7c8   : > { %10960 = vmatprep.subr.bf16.mxu1 %v3708_v61 }
 0x7c9   : > { %10435 = vmatpush3.bf16.msra.mxu0 %v12515_v40 }
 0x7ca   : > { %10436 = vmatprep.subr.bf16.mxu0 %v12521_v43 }
 0x7cd   : > { %10437 = vmatpush3.bf16.msra.mxu0 %v12528_v47 }
 0x7ce   : > { %10438 = vmatprep.subr.bf16.mxu0 %v12532_v48 }
 0x7d1   : > { %10439 = vmatpush3.bf16.msra.mxu0 %v12536_v49 }
 0x7d2   : > { %10469 = vmatprep.subr.bf16.mxu0 %v12449_v3 }
 0x7d4   : > { %3449 = vmatmul.mubr.bf16.vlgmr.msra.gmra.mxu0 %v11926_v59 }
 0x7d5   : > { %10470 = vmatpush3.bf16.msra.mxu0 %v12454_v7  ;;  %3456 = vmatprep.mubr.bf16.mxu0 %v11931_v1 }
 0x7d6   : > { %10471 = vmatprep.subr.bf16.mxu0 %v12456_v8 }
 0x7d9   : > { %10472 = vmatpush3.bf16.msra.mxu0 %v12466_v13 }
 0x7da   : > { %10473 = vmatprep.subr.bf16.mxu0 %v12470_v14 }
 0x7dc   : > { %3457 = vmatmul.mubr.bf16.gmra.mxu0 %v11929_v27 }
 0x7dd   : > { %10474 = vmatpush3.bf16.msra.mxu0 %v12478_v19  ;;  %3464 = vmatprep.mubr.bf16.mxu0 %v11934_v34 }
 0x7de   : > { %10475 = vmatprep.subr.bf16.mxu0 %v12482_v20 }
 0x7e1   : > { %10476 = vmatpush3.bf16.msra.mxu0 %v12492_v28 }
 0x7e2   : > { %10477 = vmatprep.subr.bf16.mxu0 %v12497_v30 }
 0x7e4   : > { %3465 = vmatmul.mubr.bf16.gmra.mxu0 %v11932_v39 }
 0x7e5   : > { %10478 = vmatpush3.bf16.msra.mxu0 %v12502_v33  ;;  %3472 = vmatprep.mubr.bf16.mxu0 %v11937_v42 }
 0x7e6   : > { %10479 = vmatprep.subr.bf16.mxu0 %v12507_v35 }
 0x7e9   : > { %10480 = vmatpush3.bf16.msra.mxu0 %v12515_v40 }
 0x7ea   : > { %10481 = vmatprep.subr.bf16.mxu0 %v12521_v43 }
 0x7ec   : > { %3473 = vmatmul.mubr.bf16.gmra.mxu0 %v11935_v50 }
 0x7ed   : > { %10482 = vmatpush3.bf16.msra.mxu0 %v12528_v47  ;;  %3656 = vmatprep.mubr.bf16.mxu0 %v11940_v37 }
 0x7ee   : > { %10483 = vmatprep.subr.bf16.mxu0 %v12532_v48 }
 0x7f1   : > { %10484 = vmatpush3.bf16.msra.mxu0 %v12536_v49 }
 0x7f4   : > { %3657 = vmatmul.mubr.bf16.vlgmr.msra.gmra.mxu0 %v11938_v29 }
 0x7f5   : > { %3664 = vmatprep.mubr.bf16.mxu0 %v11943_v38 }
 0x7fc   : > { %3665 = vmatmul.mubr.bf16.gmra.mxu0 %v11941_v23 }
 0x7fd   : > { %3672 = vmatprep.mubr.bf16.mxu0 %v11946_v41 }
 0x804   : > { %3673 = vmatmul.mubr.bf16.gmra.mxu0 %v11944_v45 }
 0x805   : > { %3680 = vmatprep.mubr.bf16.mxu0 %v11949_v31 }
 0x80c   : > { %3681 = vmatmul.mubr.bf16.gmra.mxu0 %v11947_v10 }
 0x854   : > { %v10934_v57 = vpop.f32.mrf.mxu0 }
 0x855   : > { %v3153_v59 = vadd.f32 %v10934_v57, %v12947_v22 }
 0x856   : > { %v3120_v1 = vpop.f32.mrf.mxu0 }
 0x857   : > { %v3151_v27 = vadd.f32 %v3120_v1, %v12949_v17 }
 0x858   : > { %v10935_v34 = vpop.f32.mrf.mxu0 }
 0x859   : > { %v3154_v39 = vadd.f32 %v10935_v34, %v12951_v21 }
 0x85a   : > { %v13014_v42 = vpop.f32.mrf.mxu0 }
 0x85b   : > { %14117 = vst [vmem:[#allocation18_spill] sm:$0xff] %v13014_v42 }
 0x864   : > { %v10938_v50 = vpop.f32.mrf.mxu0 }
 0x865   : > { %v3157_v37 = vadd.f32 %v10938_v50, %v12955_v0 }
 0x866   : > { %v3136_v29 = vpop.f32.mrf.mxu0 }
 0x867   : > { %v3155_v38 = vadd.f32 %v3136_v29, %v12957_v2 }
 0x868   : > { %v10939_v23 = vpop.f32.mrf.mxu0 }
 0x869   : > { %v3158_v41 = vadd.f32 %v10939_v23, %v12959_v6 }
 0x86a   : > { %v13019_v45 = vpop.f32.mrf.mxu0 }
 0x874   : > { %v10944_v22 = vpop.f32.mrf.mxu0 }
 0x875   : > { %v13021_v31 = vadd.f32 %v10944_v22, %v3153_v59 }
 0x876   : > { %v3328_v17 = vpop.f32.mrf.mxu0 }
 0x877   : > { %v13023_v10 = vadd.f32 %v3328_v17, %v3151_v27 }
 0x878   : > { %v10945_v21 = vpop.f32.mrf.mxu0 }
 0x879   : > { %v13025_v58 = vadd.f32 %v10945_v21, %v3154_v39 }
 0x87a   : > { %v13027_v18 = vpop.f32.mrf.mxu0 }
 0x87b   : > { %14118 = vst [vmem:[#allocation19_spill] sm:$0xff] %v13027_v18 }
 0x884   : > { %v10948_v0 = vpop.f32.mrf.mxu0 }
 0x885   : > { %v13029_v46 = vadd.f32 %v10948_v0, %v3157_v37 }
 0x886   : > { %v3344_v2 = vpop.f32.mrf.mxu0 }
 0x887   : > { %v13031_v57 = vadd.f32 %v3344_v2, %v3155_v38 }
 0x888   : > { %v10949_v6 = vpop.f32.mrf.mxu0 }
 0x889   : > { %v13033_v1 = vadd.f32 %v10949_v6, %v3158_v41 }
 0x88a   : > { %v13035_v34 = vpop.f32.mrf.mxu0 }
 0x88b   : > { %14119 = vst [vmem:[#allocation20_spill] sm:$0xff] %v13035_v34 }
 0x894   : > { %v10440_v59 = vpop.f32.mrf.mxu0 }
 0x896   : > { %v10441_v50 = vpop.f32.mrf.mxu0 }
 0x897   : > { %v10442_v23 = vadd.f32 %v10441_v50, %v10440_v59 }
 0x898   : > { %v10443_v27 = vpop.f32.mrf.mxu0 }
 0x89a   : > { %v10444_v29 = vpop.f32.mrf.mxu0 }
 0x89b   : > { %v10445_v39 = vadd.f32 %v10444_v29, %v10443_v27 }
 0x89c   : > { %v10446_v22 = vpop.f32.mrf.mxu0 }
 0x89d   : > { %v3481_v17 = vpack.c.bf16 %v10445_v39, %v10442_v23 }
 0x89e   : > { %v10447_v21 = vpop.f32.mrf.mxu0 }
 0x89f   : > { %10952 = vmatprep.mubr.msk.bf16.mxu1 %vm914_vm2, %v3481_v17  ;;  %v10448_v38 = vadd.f32 %v10447_v21, %v10446_v22 }
 0x8a0   : > { %v10449_v37 = vpop.f32.mrf.mxu0 }
 0x8a2   : > { %v10450_v0 = vpop.f32.mrf.mxu0 }
 0x8a3   : > { %v10451_v2 = vadd.f32 %v10450_v0, %v10449_v37 }
 0x8a4   : > { %v10452_v18 = vpop.f32.mrf.mxu0 }
 0x8a5   : > { %v3482_v41 = vpack.c.bf16 %v10451_v2, %v10448_v38 }
 0x8a6   : > { %v10453_v6 = vpop.f32.mrf.mxu0 }
 0x8a7   : > { %10953 = vmatmul.mubr.msk.bf16.vlgmr.msra.gmra.mxu1 %vm914_vm2, %v3482_v41  ;;  %v10454_v50 = vadd.f32 %v10453_v6, %v10452_v18 }
 0x8a8   : > { %v10455_v42 = vpop.f32.mrf.mxu0  ;;  %10961 = vmatpush3.bf16.msra.mxu1 %v3708_v61 }
 0x8a9   : > { %10514 = vmatprep.subr.bf16.mxu1 %v12449_v3 }
 0x8aa   : > { %v10456_v59 = vpop.f32.mrf.mxu0 }
 0x8ab   : > { %v10457_v27 = vadd.f32 %v10456_v59, %v10455_v42 }
 0x8ac   : > { %v10458_v29 = vpop.f32.mrf.mxu0 }
 0x8ad   : > { %v3483_v23 = vpack.c.bf16 %v10457_v27, %v10454_v50 }
 0x8ae   : > { %v10459_v39 = vpop.f32.mrf.mxu0 }
 0x8af   : > { %10956 = vmatprep.mubr.msk.bf16.mxu1 %vm914_vm2, %v3483_v23  ;;  %v10460_v21 = vadd.f32 %v10459_v39, %v10458_v29 }
 0x8b0   : > { %v10461_v17 = vpop.f32.mrf.mxu0 }
 0x8b2   : > { %v10462_v22 = vpop.f32.mrf.mxu0 }
 0x8b3   : > { %v10463_v37 = vadd.f32 %v10462_v22, %v10461_v17 }
 0x8b4   : > { %v10485_v0 = vpop.f32.mrf.mxu0 }
 0x8b5   : > { %v3484_v38 = vpack.c.bf16 %v10463_v37, %v10460_v21 }
 0x8b6   : > { %v10486_v2 = vpop.f32.mrf.mxu0 }
 0x8b7   : > { %10957 = vmatmul.mubr.msk.bf16.gmra.mxu1 %vm914_vm2, %v3484_v38  ;;  %v10487_v3 = vadd.f32 %v10486_v2, %v10485_v0 }
 0x8b8   : > { %v10488_v61 = vpop.f32.mrf.mxu0 }
 0x8ba   : > { %v10489_v41 = vpop.f32.mrf.mxu0 }
 0x8bb   : > { %v10490_v34 = vadd.f32 %v10489_v41, %v10488_v61 }
 0x8bc   : > { %v10491_v18 = vpop.f32.mrf.mxu0 }
 0x8bd   : > { %v3689_v42 = vpack.c.bf16 %v10490_v34, %v10487_v3 }
 0x8be   : > { %v10492_v6 = vpop.f32.mrf.mxu0 }
 0x8bf   : > { %10962 = vmatprep.mubr.msk.bf16.mxu1 %vm914_vm2, %v3689_v42  ;;  %v10493_v27 = vadd.f32 %v10492_v6, %v10491_v18 }
 0x8c0   : > { %v10494_v59 = vpop.f32.mrf.mxu0 }
 0x8c2   : > { %v10495_v50 = vpop.f32.mrf.mxu0 }
 0x8c3   : > { %v10496_v23 = vadd.f32 %v10495_v50, %v10494_v59 }
 0x8c4   : > { %v10497_v29 = vpop.f32.mrf.mxu0 }
 0x8c5   : > { %v3690_v39 = vpack.c.bf16 %v10496_v23, %v10493_v27 }
 0x8c6   : > { %v10498_v17 = vpop.f32.mrf.mxu0 }
 0x8c7   : > { %10963 = vmatmul.mubr.msk.bf16.vlgmr.msra.gmra.mxu1 %vm914_vm2, %v3690_v39  ;;  %v10499_v21 = vadd.f32 %v10498_v17, %v10497_v29 }
 0x8c8   : > { %10515 = vmatpush3.bf16.msra.mxu1 %v12454_v7  ;;  %v10500_v22 = vpop.f32.mrf.mxu0 }
 0x8c9   : > { %10516 = vmatprep.subr.bf16.mxu1 %v12456_v8  ;;  %v11952_v8 = vld [vmem:[#allocation2 + $0x3c4] ss:$8 sps:$4 sm:$0xff]  }
 0x8ca   : > { %v10501_v37 = vpop.f32.mrf.mxu0 }
 0x8cb   : > { %v10502_v34 = vadd.f32 %v10501_v37, %v10500_v22 }
 0x8cc   : > { %10517 = vmatpush3.bf16.msra.mxu1 %v12466_v13  ;;  %v10503_v0 = vpop.f32.mrf.mxu0  ;;  %v11950_v13 = vld [vmem:[#allocation2 + $0x3c0] ss:$8 sps:$4 sm:$0xff]  }
 0x8cd   : > { %v3691_v38 = vpack.c.bf16 %v10502_v34, %v10499_v21  ;;  %10518 = vmatprep.subr.bf16.mxu1 %v12470_v14  ;;  %v11955_v14 = vld [vmem:[#allocation2 + $0x3d4] ss:$8 sps:$4 sm:$0xff]  }
 0x8ce   : > { %v10504_v2 = vpop.f32.mrf.mxu0 }
 0x8cf   : > { %10966 = vmatprep.mubr.msk.bf16.mxu1 %vm914_vm2, %v3691_v38  ;;  %v10505_v41 = vadd.f32 %v10504_v2, %v10503_v0 }
 0x8d0   : > { %10519 = vmatpush3.bf16.msra.mxu1 %v12478_v19  ;;  %v10506_v61 = vpop.f32.mrf.mxu0  ;;  %v11953_v19 = vld [vmem:[#allocation2 + $0x3d0] ss:$8 sps:$4 sm:$0xff]  }
 0x8d1   : > { %10520 = vmatprep.subr.bf16.mxu1 %v12482_v20  ;;  %v11958_v20 = vld [vmem:[#allocation2 + $0x3e4] ss:$8 sps:$4 sm:$0xff]  }
 0x8d2   : > { %v10507_v7 = vpop.f32.mrf.mxu0 }
 0x8d3   : > { %v10508_v3 = vadd.f32 %v10507_v7, %v10506_v61 }
 0x8d4   : > { %10521 = vmatpush3.bf16.msra.mxu1 %v12492_v28  ;;  %v11956_v28 = vld [vmem:[#allocation2 + $0x3e0] ss:$8 sps:$4 sm:$0xff]  }
 0x8d5   : > { %v3692_v18 = vpack.c.bf16 %v10508_v3, %v10505_v41  ;;  %10522 = vmatprep.subr.bf16.mxu1 %v12497_v30  ;;  %v11961_v30 = vld [vmem:[#allocation2 + $0x3f4] ss:$8 sps:$4 sm:$0xff]  }
 0x8d7   : > { %10967 = vmatmul.mubr.msk.bf16.gmra.mxu1 %vm914_vm2, %v3692_v18 }
 0x8d8   : > { %10523 = vmatpush3.bf16.msra.mxu1 %v12502_v33  ;;  %3864 = vmatprep.mubr.bf16.mxu1 %v11952_v8  ;;  %v11959_v33 = vld [vmem:[#allocation2 + $0x3f0] ss:$8 sps:$4 sm:$0xff]  }
 0x8d9   : > { %10524 = vmatprep.subr.bf16.mxu1 %v12507_v35  ;;  %v9501_v35 = vld [vmem:[%s14082_s2 + $0x1e] sm:$0x3] }
 0x8dc   : > { %10525 = vmatpush3.bf16.msra.mxu1 %v12515_v40  ;;  %v3916_v40 = vand.u32 %v9501_v35, %v12546_v4 }
 0x8dd   : > { %10526 = vmatprep.subr.bf16.mxu1 %v12521_v43 }
 0x8de   : > { %10970 = vmatprep.subr.bf16.mxu0 %v3916_v40 }
 0x8df   : > { %10971 = vmatpush3.bf16.msra.mxu0 %v3916_v40 }
 0x8e0   : > { %10527 = vmatpush3.bf16.msra.mxu1 %v12528_v47 }
 0x8e1   : > { %10528 = vmatprep.subr.bf16.mxu1 %v12532_v48 }
 0x8e4   : > { %10529 = vmatpush3.bf16.msra.mxu1 %v12536_v49 }
 0x8e7   : > { %3865 = vmatmul.mubr.bf16.vlgmr.msra.gmra.mxu1 %v11950_v13 }
 0x8e8   : > { %3872 = vmatprep.mubr.bf16.mxu1 %v11955_v14 }
 0x8ef   : > { %3873 = vmatmul.mubr.bf16.gmra.mxu1 %v11953_v19 }
 0x8f0   : > { %3880 = vmatprep.mubr.bf16.mxu1 %v11958_v20 }
 0x8f7   : > { %3881 = vmatmul.mubr.bf16.gmra.mxu1 %v11956_v28 }
 0x8f8   : > { %3888 = vmatprep.mubr.bf16.mxu1 %v11961_v30 }
 0x8ff   : > { %3889 = vmatmul.mubr.bf16.gmra.mxu1 %v11959_v33 }
 0x967   : > { %v10954_v43 = vpop.f32.mrf.mxu1 }
 0x968   : > { %v3569_v47 = vadd.f32 %v10954_v43, %v13021_v31 }
 0x969   : > { %v3536_v48 = vpop.f32.mrf.mxu1 }
 0x96a   : > { %v3567_v49 = vadd.f32 %v3536_v48, %v13023_v10 }
 0x96b   : > { %v10955_v42 = vpop.f32.mrf.mxu1 }
 0x96c   : > { %v3570_v6 = vadd.f32 %v10955_v42, %v13025_v58 }
 0x96d   : > { %v13068_v59 = vpop.f32.mrf.mxu1 }
 0x977   : > { %v10958_v50 = vpop.f32.mrf.mxu1 }
 0x978   : > { %v3573_v27 = vadd.f32 %v10958_v50, %v13029_v46 }
 0x979   : > { %v3552_v23 = vpop.f32.mrf.mxu1 }
 0x97a   : > { %v3571_v29 = vadd.f32 %v3552_v23, %v13031_v57 }
 0x97b   : > { %v10959_v4 = vpop.f32.mrf.mxu1 }
 0x97c   : > { %v3574_v39 = vadd.f32 %v10959_v4, %v13033_v1 }
 0x97d   : > { %v13073_v17 = vpop.f32.mrf.mxu1 }
 0x987   : > { %v10964_v31 = vpop.f32.mrf.mxu1 }
 0x988   : > { %v3777_v22 = vadd.f32 %v10964_v31, %v3569_v47 }
 0x989   : > { %v3744_v21 = vpop.f32.mrf.mxu1 }
 0x98a   : > { %v13075_v10 = vadd.f32 %v3744_v21, %v3567_v49 }
 0x98b   : > { %v10965_v37 = vpop.f32.mrf.mxu1 }
 0x98c   : > { %v3778_v58 = vadd.f32 %v10965_v37, %v3570_v6  ;;  %v12229_v37 = vmov 0.0  }
 0x98d   : > { %v13077_v34 = vpop.f32.mrf.mxu1  ;;  %10980 = vmatprep.subr.bf16.mxu0 %v12229_v37  ;;  %10992 = vmatprep.subr.bf16.mxu1 %v12229_v37 }
 0x98e   : > { %11000 = vmatprep.mubr.msk.bf16.mxu1 %vm12230_vm3, %v12229_v37 }
 0x997   : > { %v10968_v0 = vpop.f32.mrf.mxu1 }
 0x998   : > { %v13079_v38 = vadd.f32 %v10968_v0, %v3573_v27  ;;  %v1068_v0 = vadd.f32 %v12643_v15, %v12598_v62 }
 0x999   : > { %v3760_v46 = vpop.f32.mrf.mxu1 }
 0x99a   : > { %v13081_v2 = vadd.f32 %v3760_v46, %v3571_v29  ;;  %v1284_v46 = vadd.f32 %v12665_v44, %v1068_v0 }
 0x99b   : > { %v10969_v57 = vpop.f32.mrf.mxu1 }
 0x99c   : > { %v13083_v61 = vadd.f32 %v10969_v57, %v3574_v39  ;;  %v1052_v57 = vadd.f32 %v12590_v52, %v12588_v51 }
 0x99d   : > { %v13085_v1 = vpop.f32.mrf.mxu1 }
 0x9a7   : > { %v10530_v41 = vpop.f32.mrf.mxu1 }
 0x9a9   : > { %v10531_v7 = vpop.f32.mrf.mxu1 }
 0x9aa   : > { %v10532_v18 = vadd.f32 %v10531_v7, %v10530_v41  ;;  %v1492_v41 = vadd.f32 %v12723_v63, %v1284_v46  ;;  %v1280_v7 = vadd.f32 %v12654_v24, %v1052_v57 }
 0x9ab   : > { %v10533_v3 = vpop.f32.mrf.mxu1 }
 0x9ad   : > { %v10534_v8 = vpop.f32.mrf.mxu1 }
 0x9ae   : > { %v10535_v13 = vadd.f32 %v10534_v8, %v10533_v3  ;;  %v1700_v8 = vadd.f32 %v12739_v11, %v1492_v41 }
 0x9af   : > { %v10536_v14 = vpop.f32.mrf.mxu1 }
 0x9b0   : > { %v3897_v19 = vpack.c.bf16 %v10535_v13, %v10532_v18  ;;  %v1488_v13 = vadd.f32 %v12718_v53, %v1280_v7 }
 0x9b1   : > { %v10537_v20 = vpop.f32.mrf.mxu1 }
 0x9b2   : > { %10972 = vmatprep.mubr.msk.bf16.mxu0 %vm914_vm2, %v3897_v19  ;;  %v10538_v33 = vadd.f32 %v10537_v20, %v10536_v14  ;;  %v1908_v19 = vadd.f32 %v12797_v26, %v1700_v8  ;;  %v1696_v62 = vadd.f32 %v12731_v5, %v1488_v13  ;;  %v11963_v8 = vld [vmem:[%s14083_s3] sm:$0xff]  }
 0x9b3   : > { %v10539_v28 = vpop.f32.mrf.mxu1  ;;  %v9512_v13 = vld [vmem:[%s14084_s4 + $0x4] sm:$0xf] }
 0x9b4   : > { %v2116_v44 = vadd.f32 %v12813_v25, %v1908_v19  ;;  %v1904_v52 = vadd.f32 %v12792_v56, %v1696_v62 }
 0x9b5   : > { %v10540_v30 = vpop.f32.mrf.mxu1 }
 0x9b6   : > { %v10541_v35 = vadd.f32 %v10540_v30, %v10539_v28  ;;  %v2324_v24 = vadd.f32 %v12871_v55, %v2116_v44  ;;  %v2112_v11 = vadd.f32 %v12805_v16, %v1904_v52  ;;  %v14120_v16 = vld [vmem:[#allocation17_spill] sm:$0xff] }
 0x9b7   : > { %v10542_v40 = vpop.f32.mrf.mxu1 }
 0x9b8   : > { %v3898_v43 = vpack.c.bf16 %v10541_v35, %v10538_v33  ;;  %v2532_v53 = vadd.f32 %v12887_v60, %v2324_v24  ;;  %v2320_v5 = vadd.f32 %v12866_v32, %v2112_v11 }
 0x9b9   : > { %v10543_v47 = vpop.f32.mrf.mxu1 }
 0x9ba   : > { %10973 = vmatmul.mubr.msk.bf16.vlgmr.msra.gmra.mxu0 %vm914_vm2, %v3898_v43  ;;  %v10544_v42 = vadd.f32 %v10543_v47, %v10542_v40  ;;  %v2740_v25 = vadd.f32 %v12945_v12, %v2532_v53  ;;  %v14121_v40 = vld [vmem:[#allocation20_spill] sm:$0xff]  ;;  %v14122_v47 = vld [vmem:[#allocation18_spill] sm:$0xff] }
 0x9bb   : > { %v10545_v48 = vpop.f32.mrf.mxu1 }
 0x9bc   : > { %v2948_v56 = vadd.f32 %v12961_v9, %v2740_v25 }
 0x9bd   : > { %v10546_v49 = vpop.f32.mrf.mxu1 }
 0x9be   : > { %v10547_v6 = vadd.f32 %v10546_v49, %v10545_v48  ;;  %v3156_v33 = vadd.f32 %v13019_v45, %v2948_v56 }
 0x9bf   : > { %v10548_v50 = vpop.f32.mrf.mxu1 }
 0x9c0   : > { %v3899_v27 = vpack.c.bf16 %v10547_v6, %v10544_v42  ;;  %v3364_v43 = vadd.f32 %v14121_v40, %v3156_v33  ;;  %v11965_v33 = vld [vmem:[%s14083_s3 + $0x18] sm:$0xff]  }
 0x9c1   : > { %v10549_v23 = vpop.f32.mrf.mxu1 }
 0x9c2   : > { %10976 = vmatprep.mubr.msk.bf16.mxu0 %vm914_vm2, %v3899_v27  ;;  %v10550_v39 = vadd.f32 %v10549_v23, %v10548_v50  ;;  %v3572_v12 = vadd.f32 %v13073_v17, %v3364_v43 }
 0x9c3   : > { %v10551_v29 = vpop.f32.mrf.mxu1 }
 0x9c5   : > { %v10552_v4 = vpop.f32.mrf.mxu1 }
 0x9c6   : > { %v10553_v31 = vadd.f32 %v10552_v4, %v10551_v29 }
 0x9c8   : > { %v3900_v21 = vpack.c.bf16 %v10553_v31, %v10550_v39 }
 0x9ca   : > { %10977 = vmatmul.mubr.msk.bf16.gmra.mxu0 %vm914_vm2, %v3900_v21 }
 0x9cb   : > { %10988 = vmatprep.mubr.msk.bf16.mxu0 %vm12230_vm3, %v12229_v37 }
 0xa7a   : > { %v10974_v3 = vpop.f32.mrf.mxu0 }
 0xa7b   : > { %v3985_v18 = vadd.f32 %v10974_v3, %v3777_v22  ;;  %v11962_v3 = vld [vmem:[%s14083_s3 + $0x8] sm:$0xff]  }
 0xa7c   : > { %v3952_v14 = vpop.f32.mrf.mxu0 }
 0xa7d   : > { %v4001_v20 = vmul.f32 0.2, %v3985_v18  ;;  %vm3993_vm4 = vcmp.gt.f32.partialorder %v3985_v18, 0.0 }
 0xa7e   : > { %v10975_v15 = vpop.f32.mrf.mxu0 }
 0xa7f   : > { %v3986_v51 = vadd.f32 %v10975_v15, %v3778_v58  ;;  %v4009_v22 = vsel %vm3993_vm4, %v3985_v18, %v4001_v20  ;;  %v2528_v58 = vadd.f32 %v12879_v54, %v2320_v5  ;;  %v14123_v54 = vld [vmem:[#allocation19_spill] sm:$0xff]  ;;  %v11964_v18 = vld [vmem:[%s14083_s3 + $0x10] sm:$0xff]   ;;  %vm7312_vm4 = vcmask 257024  }
 0xa80   : > { %v3955_v30 = vpop.f32.mrf.mxu0  ;;  %v4072_v20 = vld [vmem:[%s14084_s4] sm:$0xf] }
 0xa81   : > { %vm3994_vm5 = vcmp.gt.f32.partialorder %v3986_v51, 0.0  ;;  %v4002_v63 = vmul.f32 0.2, %v3986_v51  ;;  %v2736_v55 = vadd.f32 %v12940_v36, %v2528_v58  ;;  %v3780_v36 = vadd.f32 %v13085_v1, %v3572_v12 }
 0xa83   : > { %v4010_v26 = vsel %vm3994_vm5, %v3986_v51, %v4002_v63  ;;  %v2944_v35 = vadd.f32 %v14120_v16, %v2736_v55  ;;  %v4181_v63 = vsel %vm4132_vm13, %v4072_v20, 0  ;;  %v9525_v16 = vld [vmem:[%s14084_s4 + $0xc] sm:$0xf] }
 0xa84   : > { %v13114_v28 = vpack.c.bf16 %v4010_v26, %v4009_v22  ;;  %v9519_v22 = vld [vmem:[%s14084_s4 + $0x8] sm:$0xf] }
 0xa85   : > { %v3152_v48 = vadd.f32 %v14122_v47, %v2944_v35  ;;  %v4283_v5 = vsel %vm4132_vm13, %v9519_v22, 0  ;;  %v4387_v35 = vsel %vm4132_vm13, %v9525_v16, 0 }
 0xa87   : > { %v3360_v42 = vadd.f32 %v14123_v54, %v3152_v48 }
 0xa89   : > { %v3568_v27 = vadd.f32 %v13068_v59, %v3360_v42  ;;  %v3983_v59 = vadd.f32 %v3952_v14, %v13075_v10  ;;  %v4134_v14 = vsel %vm4132_vm13, %v9512_v13, 0  ;;  %v11967_v13 = vld [vmem:[%s14083_s3 + $0x28] sm:$0xff]  }
 0xa8a   : > { %v10978_v60 = vpop.f32.mrf.mxu0 }
 0xa8b   : > { %v3989_v32 = vadd.f32 %v10978_v60, %v13079_v38  ;;  %v3776_v4 = vadd.f32 %v13077_v34, %v3568_v27  ;;  %v3999_v57 = vmul.f32 0.2, %v3983_v59  ;;  %vm3991_vm11 = vcmp.gt.f32.partialorder %v3983_v59, 0.0 }
 0xa8c   : > { %v3968_v49 = vpop.f32.mrf.mxu0 }
 0xa8d   : > { %v4005_v9 = vmul.f32 0.2, %v3989_v32  ;;  %vm3997_vm6 = vcmp.gt.f32.partialorder %v3989_v32, 0.0  ;;  %v3987_v45 = vadd.f32 %v3968_v49, %v13081_v2  ;;  %v3984_v0 = vadd.f32 %v3955_v30, %v3776_v4 }
 0xa8e   : > { %v10979_v6 = vpop.f32.mrf.mxu0  ;;  %v4007_v41 = vsel %vm3991_vm11, %v3983_v59, %v3999_v57 }
 0xa8f   : > { %v3990_v50 = vadd.f32 %v10979_v6, %v13083_v61  ;;  %v4013_v17 = vsel %vm3997_vm6, %v3989_v32, %v4005_v9  ;;  %v4003_v39 = vmul.f32 0.2, %v3987_v45  ;;  %vm3995_vm9 = vcmp.gt.f32.partialorder %v3987_v45, 0.0 }
 0xa90   : > { %v3971_v23 = vpop.f32.mrf.mxu0  ;;  %v4000_v46 = vmul.f32 0.2, %v3984_v0  ;;  %vm3992_vm10 = vcmp.gt.f32.partialorder %v3984_v0, 0.0  ;;  %vm7349_vm6 = vcmask 31744  }
 0xa91   : > { %vm3998_vm7 = vcmp.gt.f32.partialorder %v3990_v50, 0.0  ;;  %v4006_v38 = vmul.f32 0.2, %v3990_v50  ;;  %v3988_v29 = vadd.f32 %v3971_v23, %v3780_v36  ;;  %v4011_v61 = vsel %vm3995_vm9, %v3987_v45, %v4003_v39  ;;  %v11966_v39 = vld [vmem:[%s14083_s3 + $0x20] sm:$0xff]  }
 0xa92   : > { %v4008_v10 = vsel %vm3992_vm10, %v3984_v0, %v4000_v46  ;;  %vm9171_vm9 = vcmask 40960  }
 0xa93   : > { %v4014_v31 = vsel %vm3998_vm7, %v3990_v50, %v4006_v38  ;;  %vm3996_vm8 = vcmp.gt.f32.partialorder %v3988_v29, 0.0  ;;  %v4004_v21 = vmul.f32 0.2, %v3988_v29  ;;  %v13149_v7 = vpack.c.bf16 %v4008_v10, %v4007_v41 }
 0xa94   : > { %v13132_v1 = vpack.c.bf16 %v4014_v31, %v4013_v17  ;;  %v9531_v31 = vld [vmem:[%s14084_s4 + $0x10] sm:$0xf] }
 0xa95   : > { %v4012_v2 = vsel %vm3996_vm8, %v3988_v29, %v4004_v21  ;;  %v4491_v21 = vsel %vm4132_vm13, %v9531_v31, 0 }
 0xa96   : > { %10981 = vmatpush3.bf16.msra.mxu0 %v13132_v1  ;;  %10993 = vmatpush3.bf16.msra.mxu1 %v13132_v1  ;;  %v13139_v34 = vpack.c.bf16 %v4012_v2, %v4011_v61 }
 0xa97   : > { %10982 = vmatprep.subr.bf16.mxu0 %v12229_v37  ;;  %10994 = vmatprep.subr.bf16.mxu1 %v12229_v37 }
 0xa9a   : > { %10983 = vmatpush3.bf16.msra.mxu0 %v13139_v34  ;;  %10995 = vmatpush3.bf16.msra.mxu1 %v13139_v34 }
 0xa9b   : > { %10984 = vmatprep.subr.bf16.mxu0 %v12229_v37  ;;  %10996 = vmatprep.subr.bf16.mxu1 %v12229_v37 }
 0xa9e   : > { %10985 = vmatpush3.bf16.msra.mxu0 %v13114_v28  ;;  %10997 = vmatpush3.bf16.msra.mxu1 %v13114_v28 }
 0xa9f   : > { %10986 = vmatprep.subr.bf16.mxu0 %v12229_v37  ;;  %10998 = vmatprep.subr.bf16.mxu1 %v12229_v37 }
 0xaa2   : > { %10987 = vmatpush3.bf16.msra.mxu0 %v13149_v7  ;;  %10999 = vmatpush3.bf16.msra.mxu1 %v13149_v7 }
 0xaa3   : > { %11016 = vmatprep.subr.bf16.mxu0 %v12229_v37  ;;  %11004 = vmatprep.subr.bf16.mxu1 %v12229_v37 }
 0xaa5   : > { %11001 = vmatmul.mubr.msk.bf16.vlgmr.msra.gmra.mxu1 %vm4026_vm12, %v11962_v3  ;;  %10989 = vmatmul.mubr.msk.bf16.vlgmr.msra.gmra.mxu0 %vm4026_vm12, %v11963_v8 }
 0xaa6   : > { %11017 = vmatpush3.bf16.msra.mxu0 %v13132_v1  ;;  %11024 = vmatprep.mubr.msk.bf16.mxu0 %vm12230_vm3, %v12229_v37 }
 0xaa7   : > { %11018 = vmatprep.subr.bf16.mxu0 %v12229_v37  ;;  %11006 = vmatprep.mubr.msk.bf16.mxu1 %vm12230_vm3, %v12229_v37 }
 0xaa8   : > { %11005 = vmatpush3.bf16.msra.mxu1 %v4134_v14  ;;  %v9537_v14 = vld [vmem:[%s14084_s4 + $0x14] sm:$0xf] }
 0xaa9   : > { %11010 = vmatprep.subr.bf16.mxu1 %v12229_v37 }
 0xaaa   : > { %11019 = vmatpush3.bf16.msra.mxu0 %v13139_v34 }
 0xaab   : > { %11020 = vmatprep.subr.bf16.mxu0 %v12229_v37 }
 0xaae   : > { %11021 = vmatpush3.bf16.msra.mxu0 %v13114_v28 }
 0xaaf   : > { %11022 = vmatprep.subr.bf16.mxu0 %v12229_v37 }
 0xab2   : > { %11023 = vmatpush3.bf16.msra.mxu0 %v13149_v7 }
 0xab3   : > { %11046 = vmatprep.subr.bf16.mxu0 %v12229_v37 }
 0xab5   : > { %11025 = vmatmul.mubr.msk.bf16.vlgmr.msra.gmra.mxu0 %vm4026_vm12, %v11964_v18 }
 0xab6   : > { %11048 = vmatprep.mubr.msk.bf16.mxu0 %vm12230_vm3, %v12229_v37  ;;  %11047 = vmatpush3.bf16.msra.mxu0 %v4387_v35 }
 0xab7   : > { %11052 = vmatprep.subr.bf16.mxu0 %v12229_v37 }
 0xb65   : > { %v4118_v19 = vpop.f32.mrf.mxu1  ;;  %v4064_v62 = vpop.f32.mrf.mxu0 }
 0xb67   : > { %v11002_v15 = vpop.f32.mrf.mxu1  ;;  %v10990_v44 = vpop.f32.mrf.mxu0 }
 0xb69   : > { %v4121_v51 = vpop.f32.mrf.mxu1  ;;  %v4067_v52 = vpop.f32.mrf.mxu0 }
 0xb6a   : > { %v4125_v24 = vpack.c.bf16 %v4121_v51, %v4118_v19  ;;  %v4071_v26 = vpack.c.bf16 %v4067_v52, %v4064_v62  ;;  %v4595_v19 = vsel %vm4132_vm13, %v9537_v14, 0 }
 0xb6b   : > { %v11003_v11 = vpop.f32.mrf.mxu1  ;;  %v10991_v53 = vpop.f32.mrf.mxu0 }
 0xb6c   : > { %11007 = vmatmul.mubr.msk.bf16.vlgmr.msra.gmra.mxu1 %vm4128_vm14, %v4125_v24 }
 0xb6d   : > { %11011 = vmatpush3.bf16.msra.mxu1 %v4181_v63  ;;  %11012 = vmatprep.mubr.msk.bf16.mxu1 %vm12230_vm3, %v12229_v37 }
 0xb6e   : > { %11028 = vmatprep.subr.bf16.mxu1 %v12229_v37 }
 0xb74   : > { %11013 = vmatmul.mubr.msk.bf16.vlgmr.msra.gmra.mxu1 %vm4128_vm14, %v4071_v26  ;;  %v11968_v26 = vld [vmem:[%s14083_s3 + $0x30] sm:$0xff]  }
 0xb75   : > { %v4269_v25 = vpop.f32.mrf.mxu0  ;;  %11029 = vmatpush3.bf16.msra.mxu1 %v4283_v5  ;;  %11030 = vmatprep.mubr.msk.bf16.mxu1 %vm12230_vm3, %v12229_v37  ;;  %v9543_v5 = vld [vmem:[%s14084_s4 + $0x18] sm:$0xf] }
 0xb76   : > { %11034 = vmatprep.subr.bf16.mxu1 %v12229_v37 }
 0xb77   : > { %v11026_v58 = vpop.f32.mrf.mxu0 }
 0xb79   : > { %v4272_v56 = vpop.f32.mrf.mxu0 }
 0xb7a   : > { %v4276_v55 = vpack.c.bf16 %v4272_v56, %v4269_v25  ;;  %v4699_v25 = vsel %vm4132_vm13, %v9543_v5, 0 }
 0xb7b   : > { %v11027_v30 = vpop.f32.mrf.mxu0 }
 0xb7c   : > { %11031 = vmatmul.mubr.msk.bf16.vlgmr.msra.gmra.mxu1 %vm4128_vm14, %v4276_v55 }
 0xb7d   : > { %11035 = vmatpush3.bf16.msra.mxu1 %v13132_v1  ;;  %11042 = vmatprep.mubr.msk.bf16.mxu1 %vm12230_vm3, %v12229_v37 }
 0xb7e   : > { %11036 = vmatprep.subr.bf16.mxu1 %v12229_v37 }
 0xb81   : > { %11037 = vmatpush3.bf16.msra.mxu1 %v13139_v34 }
 0xb82   : > { %11038 = vmatprep.subr.bf16.mxu1 %v12229_v37 }
 0xb85   : > { %11039 = vmatpush3.bf16.msra.mxu1 %v13114_v28 }
 0xb86   : > { %11040 = vmatprep.subr.bf16.mxu1 %v12229_v37 }
 0xb89   : > { %11041 = vmatpush3.bf16.msra.mxu1 %v13149_v7 }
 0xb8a   : > { %11064 = vmatprep.subr.bf16.mxu1 %v12229_v37 }
 0xb8c   : > { %11043 = vmatmul.mubr.msk.bf16.vlgmr.msra.gmra.mxu1 %vm4026_vm12, %v11965_v33 }
 0xb8d   : > { %11066 = vmatprep.mubr.msk.bf16.mxu1 %vm12230_vm3, %v12229_v37  ;;  %11065 = vmatpush3.bf16.msra.mxu1 %v4491_v21 }
 0xb8e   : > { %11070 = vmatprep.subr.bf16.mxu1 %v12229_v37 }
 0xc2c   : > { %v4170_v60 = vpop.f32.mrf.mxu1 }
 0xc2e   : > { %v11008_v40 = vpop.f32.mrf.mxu1 }
 0xc30   : > { %v4173_v43 = vpop.f32.mrf.mxu1 }
 0xc32   : > { %v11009_v32 = vpop.f32.mrf.mxu1 }
 0xc34   : > { %v4217_v47 = vpop.f32.mrf.mxu1 }
 0xc35   : > { %v4218_v48 = vadd.f32 %v4217_v47, %v4170_v60  ;;  %v11969_v47 = vld [vmem:[%s14083_s3 + $0x38] sm:$0xff]  }
 0xc36   : > { %v11014_v49 = vpop.f32.mrf.mxu1 }
 0xc38   : > { %v4220_v12 = vpop.f32.mrf.mxu1 }
 0xc39   : > { %v4221_v54 = vadd.f32 %v4220_v12, %v4173_v43 }
 0xc3a   : > { %v11015_v42 = vpop.f32.mrf.mxu1 }
 0xc3c   : > { %v4319_v9 = vpop.f32.mrf.mxu1 }
 0xc3d   : > { %v4326_v6 = vadd.f32 %v4319_v9, %v4218_v48  ;;  %v9549_v48 = vld [vmem:[%s14084_s4 + $0x1c] sm:$0xf] }
 0xc3e   : > { %v11032_v36 = vpop.f32.mrf.mxu1  ;;  %v4803_v49 = vsel %vm4132_vm13, %v9549_v48, 0 }
 0xc40   : > { %v4322_v45 = vpop.f32.mrf.mxu1 }
 0xc41   : > { %v4327_v50 = vadd.f32 %v4322_v45, %v4221_v54 }
 0xc42   : > { %v11033_v27 = vpop.f32.mrf.mxu1 }
 0xc4c   : > { %v4373_v23 = vpop.f32.mrf.mxu1 }
 0xc4e   : > { %v11044_v38 = vpop.f32.mrf.mxu1 }
 0xc50   : > { %v4376_v29 = vpop.f32.mrf.mxu1 }
 0xc51   : > { %v4380_v4 = vpack.c.bf16 %v4376_v29, %v4373_v23  ;;  %v11970_v29 = vld [vmem:[%s14083_s3 + $0x40] sm:$0xff]  }
 0xc52   : > { %v11045_v17 = vpop.f32.mrf.mxu1 }
 0xc53   : > { %11049 = vmatmul.mubr.msk.bf16.vlgmr.msra.gmra.mxu0 %vm4128_vm14, %v4380_v4  ;;  %v9555_v4 = vld [vmem:[%s14084_s4 + $0x20] sm:$0xf] }
 0xc54   : > { %11053 = vmatpush3.bf16.msra.mxu0 %v13132_v1  ;;  %11060 = vmatprep.mubr.msk.bf16.mxu0 %vm12230_vm3, %v12229_v37  ;;  %v4907_v17 = vsel %vm4132_vm13, %v9555_v4, 0 }
 0xc55   : > { %11054 = vmatprep.subr.bf16.mxu0 %v12229_v37 }
 0xc58   : > { %11055 = vmatpush3.bf16.msra.mxu0 %v13139_v34 }
 0xc59   : > { %11056 = vmatprep.subr.bf16.mxu0 %v12229_v37 }
 0xc5c   : > { %11057 = vmatpush3.bf16.msra.mxu0 %v13114_v28 }
 0xc5d   : > { %11058 = vmatprep.subr.bf16.mxu0 %v12229_v37 }
 0xc60   : > { %11059 = vmatpush3.bf16.msra.mxu0 %v13149_v7 }
 0xc61   : > { %11082 = vmatprep.subr.bf16.mxu0 %v12229_v37 }
 0xc63   : > { %11061 = vmatmul.mubr.msk.bf16.vlgmr.msra.gmra.mxu0 %vm4026_vm12, %v11966_v39 }
 0xc64   : > { %11084 = vmatprep.mubr.msk.bf16.mxu0 %vm12230_vm3, %v12229_v37  ;;  %11083 = vmatpush3.bf16.msra.mxu0 %v4595_v19 }
 0xc65   : > { %11088 = vmatprep.subr.bf16.mxu0 %v12229_v37 }
 0xd13   : > { %v4423_v0 = vpop.f32.mrf.mxu0 }
 0xd14   : > { %v4430_v2 = vadd.f32 %v4423_v0, %v4326_v6 }
 0xd15   : > { %v11050_v59 = vpop.f32.mrf.mxu0 }
 0xd17   : > { %v4426_v61 = vpop.f32.mrf.mxu0 }
 0xd18   : > { %v4431_v46 = vadd.f32 %v4426_v61, %v4327_v50 }
 0xd19   : > { %v11051_v57 = vpop.f32.mrf.mxu0 }
 0xd23   : > { %v4477_v10 = vpop.f32.mrf.mxu0 }
 0xd25   : > { %v11062_v41 = vpop.f32.mrf.mxu0 }
 0xd27   : > { %v4480_v3 = vpop.f32.mrf.mxu0 }
 0xd28   : > { %v4484_v8 = vpack.c.bf16 %v4480_v3, %v4477_v10  ;;  %v11971_v3 = vld [vmem:[%s14083_s3 + $0x48] sm:$0xff]  }
 0xd29   : > { %v11063_v18 = vpop.f32.mrf.mxu0 }
 0xd2a   : > { %11067 = vmatmul.mubr.msk.bf16.vlgmr.msra.gmra.mxu1 %vm4128_vm14, %v4484_v8  ;;  %v9561_v8 = vld [vmem:[%s14084_s4 + $0x24] sm:$0xf] }
 0xd2b   : > { %11071 = vmatpush3.bf16.msra.mxu1 %v13132_v1  ;;  %11078 = vmatprep.mubr.msk.bf16.mxu1 %vm12230_vm3, %v12229_v37  ;;  %v5011_v18 = vsel %vm4132_vm13, %v9561_v8, 0 }
 0xd2c   : > { %11072 = vmatprep.subr.bf16.mxu1 %v12229_v37 }
 0xd2f   : > { %11073 = vmatpush3.bf16.msra.mxu1 %v13139_v34 }
 0xd30   : > { %11074 = vmatprep.subr.bf16.mxu1 %v12229_v37 }
 0xd33   : > { %11075 = vmatpush3.bf16.msra.mxu1 %v13114_v28 }
 0xd34   : > { %11076 = vmatprep.subr.bf16.mxu1 %v12229_v37 }
 0xd37   : > { %11077 = vmatpush3.bf16.msra.mxu1 %v13149_v7 }
 0xd38   : > { %11100 = vmatprep.subr.bf16.mxu1 %v12229_v37 }
 0xd3a   : > { %11079 = vmatmul.mubr.msk.bf16.vlgmr.msra.gmra.mxu1 %vm4026_vm12, %v11967_v13 }
 0xd3b   : > { %11102 = vmatprep.mubr.msk.bf16.mxu1 %vm12230_vm3, %v12229_v37  ;;  %11101 = vmatpush3.bf16.msra.mxu1 %v4699_v25 }
 0xd3c   : > { %11106 = vmatprep.subr.bf16.mxu1 %v12229_v37 }
 0xdea   : > { %v4527_v62 = vpop.f32.mrf.mxu1 }
 0xdeb   : > { %v4534_v15 = vadd.f32 %v4527_v62, %v4430_v2 }
 0xdec   : > { %v11068_v44 = vpop.f32.mrf.mxu1 }
 0xdee   : > { %v4530_v20 = vpop.f32.mrf.mxu1 }
 0xdef   : > { %v4535_v51 = vadd.f32 %v4530_v20, %v4431_v46 }
 0xdf0   : > { %v11069_v52 = vpop.f32.mrf.mxu1 }
 0xdfa   : > { %v4581_v24 = vpop.f32.mrf.mxu1 }
 0xdfc   : > { %v11080_v63 = vpop.f32.mrf.mxu1 }
 0xdfe   : > { %v4584_v11 = vpop.f32.mrf.mxu1 }
 0xdff   : > { %v4588_v53 = vpack.c.bf16 %v4584_v11, %v4581_v24  ;;  %v11972_v11 = vld [vmem:[%s14083_s3 + $0x50] sm:$0xff]  }
 0xe00   : > { %v11081_v22 = vpop.f32.mrf.mxu1 }
 0xe01   : > { %11085 = vmatmul.mubr.msk.bf16.vlgmr.msra.gmra.mxu0 %vm4128_vm14, %v4588_v53  ;;  %v9567_v53 = vld [vmem:[%s14084_s4 + $0x28] sm:$0xf] }
 0xe02   : > { %11089 = vmatpush3.bf16.msra.mxu0 %v13132_v1  ;;  %11096 = vmatprep.mubr.msk.bf16.mxu0 %vm12230_vm3, %v12229_v37  ;;  %v5115_v22 = vsel %vm4132_vm13, %v9567_v53, 0 }
 0xe03   : > { %11090 = vmatprep.subr.bf16.mxu0 %v12229_v37 }
 0xe06   : > { %11091 = vmatpush3.bf16.msra.mxu0 %v13139_v34 }
 0xe07   : > { %11092 = vmatprep.subr.bf16.mxu0 %v12229_v37 }
 0xe0a   : > { %11093 = vmatpush3.bf16.msra.mxu0 %v13114_v28 }
 0xe0b   : > { %11094 = vmatprep.subr.bf16.mxu0 %v12229_v37 }
 0xe0e   : > { %11095 = vmatpush3.bf16.msra.mxu0 %v13149_v7 }
 0xe0f   : > { %11118 = vmatprep.subr.bf16.mxu0 %v12229_v37 }
 0xe11   : > { %11097 = vmatmul.mubr.msk.bf16.vlgmr.msra.gmra.mxu0 %vm4026_vm12, %v11968_v26 }
 0xe12   : > { %11120 = vmatprep.mubr.msk.bf16.mxu0 %vm12230_vm3, %v12229_v37  ;;  %11119 = vmatpush3.bf16.msra.mxu0 %v4803_v49 }
 0xe13   : > { %11124 = vmatprep.subr.bf16.mxu0 %v12229_v37 }
 0xec1   : > { %v4631_v58 = vpop.f32.mrf.mxu0 }
 0xec2   : > { %v4638_v56 = vadd.f32 %v4631_v58, %v4534_v15 }
 0xec3   : > { %v11086_v55 = vpop.f32.mrf.mxu0 }
 0xec5   : > { %v4634_v30 = vpop.f32.mrf.mxu0 }
 0xec6   : > { %v4639_v33 = vadd.f32 %v4634_v30, %v4535_v51 }
 0xec7   : > { %v11087_v16 = vpop.f32.mrf.mxu0 }
 0xed1   : > { %v4685_v35 = vpop.f32.mrf.mxu0 }
 0xed3   : > { %v11098_v60 = vpop.f32.mrf.mxu0 }
 0xed5   : > { %v4688_v40 = vpop.f32.mrf.mxu0 }
 0xed6   : > { %v4692_v43 = vpack.c.bf16 %v4688_v40, %v4685_v35  ;;  %v11973_v40 = vld [vmem:[%s14083_s3 + $0x58] sm:$0xff]  }
 0xed7   : > { %v11099_v32 = vpop.f32.mrf.mxu0 }
 0xed8   : > { %11103 = vmatmul.mubr.msk.bf16.vlgmr.msra.gmra.mxu1 %vm4128_vm14, %v4692_v43  ;;  %v9573_v43 = vld [vmem:[%s14084_s4 + $0x2c] sm:$0xf] }
 0xed9   : > { %11107 = vmatpush3.bf16.msra.mxu1 %v13132_v1  ;;  %11114 = vmatprep.mubr.msk.bf16.mxu1 %vm12230_vm3, %v12229_v37  ;;  %v5219_v32 = vsel %vm4132_vm13, %v9573_v43, 0 }
 0xeda   : > { %11108 = vmatprep.subr.bf16.mxu1 %v12229_v37 }
 0xedd   : > { %11109 = vmatpush3.bf16.msra.mxu1 %v13139_v34 }
 0xede   : > { %11110 = vmatprep.subr.bf16.mxu1 %v12229_v37 }
 0xee1   : > { %11111 = vmatpush3.bf16.msra.mxu1 %v13114_v28 }
 0xee2   : > { %11112 = vmatprep.subr.bf16.mxu1 %v12229_v37 }
 0xee5   : > { %11113 = vmatpush3.bf16.msra.mxu1 %v13149_v7 }
 0xee6   : > { %11136 = vmatprep.subr.bf16.mxu1 %v12229_v37 }
 0xee8   : > { %11115 = vmatmul.mubr.msk.bf16.vlgmr.msra.gmra.mxu1 %vm4026_vm12, %v11969_v47 }
 0xee9   : > { %11138 = vmatprep.mubr.msk.bf16.mxu1 %vm12230_vm3, %v12229_v37  ;;  %11137 = vmatpush3.bf16.msra.mxu1 %v4907_v17 }
 0xeea   : > { %11142 = vmatprep.subr.bf16.mxu1 %v12229_v37 }
 0xf98   : > { %v4735_v12 = vpop.f32.mrf.mxu1 }
 0xf99   : > { %v4742_v54 = vadd.f32 %v4735_v12, %v4638_v56 }
 0xf9a   : > { %v11104_v42 = vpop.f32.mrf.mxu1 }
 0xf9c   : > { %v4738_v9 = vpop.f32.mrf.mxu1 }
 0xf9d   : > { %v4743_v6 = vadd.f32 %v4738_v9, %v4639_v33 }
 0xf9e   : > { %v11105_v36 = vpop.f32.mrf.mxu1 }
 0xfa8   : > { %v4789_v45 = vpop.f32.mrf.mxu1 }
 0xfaa   : > { %v11116_v50 = vpop.f32.mrf.mxu1 }
 0xfac   : > { %v4792_v27 = vpop.f32.mrf.mxu1 }
 0xfad   : > { %v4796_v23 = vpack.c.bf16 %v4792_v27, %v4789_v45  ;;  %v11974_v27 = vld [vmem:[%s14083_s3 + $0x60] sm:$0xff]  }
 0xfae   : > { %v11117_v38 = vpop.f32.mrf.mxu1 }
 0xfaf   : > { %11121 = vmatmul.mubr.msk.bf16.vlgmr.msra.gmra.mxu0 %vm4128_vm14, %v4796_v23  ;;  %v9579_v23 = vld [vmem:[%s14084_s4 + $0x30] sm:$0xf] }
 0xfb0   : > { %11125 = vmatpush3.bf16.msra.mxu0 %v13132_v1  ;;  %11132 = vmatprep.mubr.msk.bf16.mxu0 %vm12230_vm3, %v12229_v37  ;;  %v5323_v38 = vsel %vm4132_vm13, %v9579_v23, 0 }
 0xfb1   : > { %11126 = vmatprep.subr.bf16.mxu0 %v12229_v37 }
 0xfb4   : > { %11127 = vmatpush3.bf16.msra.mxu0 %v13139_v34 }
 0xfb5   : > { %11128 = vmatprep.subr.bf16.mxu0 %v12229_v37 }
 0xfb8   : > { %11129 = vmatpush3.bf16.msra.mxu0 %v13114_v28 }
 0xfb9   : > { %11130 = vmatprep.subr.bf16.mxu0 %v12229_v37 }
 0xfbc   : > { %11131 = vmatpush3.bf16.msra.mxu0 %v13149_v7 }
 0xfbd   : > { %11154 = vmatprep.subr.bf16.mxu0 %v12229_v37 }
 0xfbf   : > { %11133 = vmatmul.mubr.msk.bf16.vlgmr.msra.gmra.mxu0 %vm4026_vm12, %v11970_v29 }
 0xfc0   : > { %11156 = vmatprep.mubr.msk.bf16.mxu0 %vm12230_vm3, %v12229_v37  ;;  %11155 = vmatpush3.bf16.msra.mxu0 %v5011_v18 }
 0xfc1   : > { %11160 = vmatprep.subr.bf16.mxu0 %v12229_v37 }
0x106f   : > { %v4839_v39 = vpop.f32.mrf.mxu0 }
0x1070   : > { %v4846_v31 = vadd.f32 %v4839_v39, %v4742_v54 }
0x1071   : > { %v11122_v21 = vpop.f32.mrf.mxu0 }
0x1073   : > { %v4842_v0 = vpop.f32.mrf.mxu0 }
0x1074   : > { %v4847_v2 = vadd.f32 %v4842_v0, %v4743_v6 }
0x1075   : > { %v11123_v59 = vpop.f32.mrf.mxu0 }
0x107f   : > { %v4893_v61 = vpop.f32.mrf.mxu0 }
0x1081   : > { %v11134_v46 = vpop.f32.mrf.mxu0 }
0x1083   : > { %v4896_v57 = vpop.f32.mrf.mxu0 }
0x1084   : > { %v4900_v10 = vpack.c.bf16 %v4896_v57, %v4893_v61  ;;  %v11975_v57 = vld [vmem:[%s14083_s3 + $0x68] sm:$0xff]  }
0x1085   : > { %v11135_v41 = vpop.f32.mrf.mxu0 }
0x1086   : > { %11139 = vmatmul.mubr.msk.bf16.vlgmr.msra.gmra.mxu1 %vm4128_vm14, %v4900_v10  ;;  %v9585_v10 = vld [vmem:[%s14084_s4 + $0x34] sm:$0xf] }
0x1087   : > { %11143 = vmatpush3.bf16.msra.mxu1 %v13132_v1  ;;  %11150 = vmatprep.mubr.msk.bf16.mxu1 %vm12230_vm3, %v12229_v37  ;;  %v5427_v41 = vsel %vm4132_vm13, %v9585_v10, 0 }
0x1088   : > { %11144 = vmatprep.subr.bf16.mxu1 %v12229_v37 }
0x108b   : > { %11145 = vmatpush3.bf16.msra.mxu1 %v13139_v34 }
0x108c   : > { %11146 = vmatprep.subr.bf16.mxu1 %v12229_v37 }
0x108f   : > { %11147 = vmatpush3.bf16.msra.mxu1 %v13114_v28 }
0x1090   : > { %11148 = vmatprep.subr.bf16.mxu1 %v12229_v37 }
0x1093   : > { %11149 = vmatpush3.bf16.msra.mxu1 %v13149_v7 }
0x1094   : > { %11172 = vmatprep.subr.bf16.mxu1 %v12229_v37 }
0x1096   : > { %11151 = vmatmul.mubr.msk.bf16.vlgmr.msra.gmra.mxu1 %vm4026_vm12, %v11971_v3 }
0x1097   : > { %11174 = vmatprep.mubr.msk.bf16.mxu1 %vm12230_vm3, %v12229_v37  ;;  %11173 = vmatpush3.bf16.msra.mxu1 %v5115_v22 }
0x1098   : > { %11178 = vmatprep.subr.bf16.mxu1 %v12229_v37 }
0x1146   : > { %v4943_v13 = vpop.f32.mrf.mxu1 }
0x1147   : > { %v4950_v14 = vadd.f32 %v4943_v13, %v4846_v31 }
0x1148   : > { %v11140_v19 = vpop.f32.mrf.mxu1 }
0x114a   : > { %v4946_v62 = vpop.f32.mrf.mxu1 }
0x114b   : > { %v4951_v15 = vadd.f32 %v4946_v62, %v4847_v2 }
0x114c   : > { %v11141_v44 = vpop.f32.mrf.mxu1 }
0x1156   : > { %v4997_v20 = vpop.f32.mrf.mxu1 }
0x1158   : > { %v11152_v51 = vpop.f32.mrf.mxu1 }
0x115a   : > { %v5000_v52 = vpop.f32.mrf.mxu1 }
0x115b   : > { %v5004_v24 = vpack.c.bf16 %v5000_v52, %v4997_v20  ;;  %v11976_v52 = vld [vmem:[%s14083_s3 + $0x70] sm:$0xff]  }
0x115c   : > { %v11153_v63 = vpop.f32.mrf.mxu1 }
0x115d   : > { %11157 = vmatmul.mubr.msk.bf16.vlgmr.msra.gmra.mxu0 %vm4128_vm14, %v5004_v24  ;;  %v9591_v24 = vld [vmem:[%s14084_s4 + $0x38] sm:$0xf] }
0x115e   : > { %11161 = vmatpush3.bf16.msra.mxu0 %v13132_v1  ;;  %11168 = vmatprep.mubr.msk.bf16.mxu0 %vm12230_vm3, %v12229_v37  ;;  %v5531_v63 = vsel %vm4132_vm13, %v9591_v24, 0  ;;  %v5717_v24 = vld [vmem:[#allocation4] sm:$0xff] }
0x115f   : > { %11162 = vmatprep.subr.bf16.mxu0 %v12229_v37 }
0x1162   : > { %11163 = vmatpush3.bf16.msra.mxu0 %v13139_v34 }
0x1163   : > { %11164 = vmatprep.subr.bf16.mxu0 %v12229_v37 }
0x1166   : > { %11165 = vmatpush3.bf16.msra.mxu0 %v13114_v28 }
0x1167   : > { %11166 = vmatprep.subr.bf16.mxu0 %v12229_v37 }
0x116a   : > { %11167 = vmatpush3.bf16.msra.mxu0 %v13149_v7 }
0x116b   : > { %11190 = vmatprep.subr.bf16.mxu0 %v12229_v37 }
0x116d   : > { %11169 = vmatmul.mubr.msk.bf16.vlgmr.msra.gmra.mxu0 %vm4026_vm12, %v11972_v11 }
0x116e   : > { %11192 = vmatprep.mubr.msk.bf16.mxu0 %vm12230_vm3, %v12229_v37  ;;  %11191 = vmatpush3.bf16.msra.mxu0 %v5219_v32 }
0x116f   : > { %11196 = vmatprep.subr.bf16.mxu0 %v12229_v37 }
0x121d   : > { %v5047_v26 = vpop.f32.mrf.mxu0 }
0x121e   : > { %v5054_v5 = vadd.f32 %v5047_v26, %v4950_v14 }
0x121f   : > { %v11158_v25 = vpop.f32.mrf.mxu0 }
0x1221   : > { %v5050_v58 = vpop.f32.mrf.mxu0 }
0x1222   : > { %v5055_v56 = vadd.f32 %v5050_v58, %v4951_v15 }
0x1223   : > { %v11159_v55 = vpop.f32.mrf.mxu0 }
0x122d   : > { %v5101_v30 = vpop.f32.mrf.mxu0 }
0x122f   : > { %v11170_v33 = vpop.f32.mrf.mxu0 }
0x1231   : > { %v5104_v16 = vpop.f32.mrf.mxu0 }
0x1232   : > { %v5108_v35 = vpack.c.bf16 %v5104_v16, %v5101_v30  ;;  %v11977_v16 = vld [vmem:[%s14083_s3 + $0x78] sm:$0xff]  }
0x1233   : > { %v11171_v60 = vpop.f32.mrf.mxu0 }
0x1234   : > { %11175 = vmatmul.mubr.msk.bf16.vlgmr.msra.gmra.mxu1 %vm4128_vm14, %v5108_v35 }
0x1235   : > { %11179 = vmatpush3.bf16.msra.mxu1 %v13132_v1  ;;  %11186 = vmatprep.mubr.msk.bf16.mxu1 %vm12230_vm3, %v12229_v37 }
0x1236   : > { %11180 = vmatprep.subr.bf16.mxu1 %v12229_v37 }
0x1239   : > { %11181 = vmatpush3.bf16.msra.mxu1 %v13139_v34 }
0x123a   : > { %11182 = vmatprep.subr.bf16.mxu1 %v12229_v37 }
0x123d   : > { %11183 = vmatpush3.bf16.msra.mxu1 %v13114_v28 }
0x123e   : > { %11184 = vmatprep.subr.bf16.mxu1 %v12229_v37 }
0x1241   : > { %11185 = vmatpush3.bf16.msra.mxu1 %v13149_v7 }
0x1242   : > { %11208 = vmatprep.subr.bf16.mxu1 %v12229_v37 }
0x1244   : > { %11187 = vmatmul.mubr.msk.bf16.vlgmr.msra.gmra.mxu1 %vm4026_vm12, %v11973_v40 }
0x1245   : > { %11210 = vmatprep.mubr.msk.bf16.mxu1 %vm12230_vm3, %v12229_v37  ;;  %11209 = vmatpush3.bf16.msra.mxu1 %v5323_v38 }
0x1246   : > { %11214 = vmatprep.subr.bf16.mxu1 %v12229_v37 }
0x12f4   : > { %v5151_v47 = vpop.f32.mrf.mxu1 }
0x12f5   : > { %v5158_v48 = vadd.f32 %v5151_v47, %v5054_v5 }
0x12f6   : > { %v11176_v49 = vpop.f32.mrf.mxu1 }
0x12f8   : > { %v5154_v12 = vpop.f32.mrf.mxu1 }
0x12f9   : > { %v5159_v54 = vadd.f32 %v5154_v12, %v5055_v56 }
0x12fa   : > { %v11177_v42 = vpop.f32.mrf.mxu1 }
0x1304   : > { %v5205_v9 = vpop.f32.mrf.mxu1 }
0x1306   : > { %v11188_v6 = vpop.f32.mrf.mxu1 }
0x1308   : > { %v5208_v36 = vpop.f32.mrf.mxu1 }
0x1309   : > { %v5212_v45 = vpack.c.bf16 %v5208_v36, %v5205_v9 }
0x130a   : > { %v11189_v50 = vpop.f32.mrf.mxu1 }
0x130b   : > { %11193 = vmatmul.mubr.msk.bf16.vlgmr.msra.gmra.mxu0 %vm4128_vm14, %v5212_v45 }
0x130c   : > { %11197 = vmatpush3.bf16.msra.mxu0 %v13132_v1  ;;  %11204 = vmatprep.mubr.msk.bf16.mxu0 %vm12230_vm3, %v12229_v37 }
0x130d   : > { %11198 = vmatprep.subr.bf16.mxu0 %v12229_v37 }
0x1310   : > { %11199 = vmatpush3.bf16.msra.mxu0 %v13139_v34 }
0x1311   : > { %11200 = vmatprep.subr.bf16.mxu0 %v12229_v37 }
0x1314   : > { %11201 = vmatpush3.bf16.msra.mxu0 %v13114_v28 }
0x1315   : > { %11202 = vmatprep.subr.bf16.mxu0 %v12229_v37 }
0x1318   : > { %11203 = vmatpush3.bf16.msra.mxu0 %v13149_v7 }
0x1319   : > { %11226 = vmatprep.subr.bf16.mxu0 %v12229_v37 }
0x131b   : > { %11205 = vmatmul.mubr.msk.bf16.vlgmr.msra.gmra.mxu0 %vm4026_vm12, %v11974_v27 }
0x131c   : > { %11228 = vmatprep.mubr.msk.bf16.mxu0 %vm12230_vm3, %v12229_v37  ;;  %11227 = vmatpush3.bf16.msra.mxu0 %v5427_v41 }
0x131d   : > { %11232 = vmatprep.subr.bf16.mxu0 %v12229_v37 }
0x13cb   : > { %v5255_v29 = vpop.f32.mrf.mxu0 }
0x13cc   : > { %v5262_v4 = vadd.f32 %v5255_v29, %v5158_v48 }
0x13cd   : > { %v11194_v17 = vpop.f32.mrf.mxu0 }
0x13cf   : > { %v5258_v39 = vpop.f32.mrf.mxu0 }
0x13d0   : > { %v5263_v31 = vadd.f32 %v5258_v39, %v5159_v54 }
0x13d1   : > { %v11195_v21 = vpop.f32.mrf.mxu0 }
0x13db   : > { %v5309_v0 = vpop.f32.mrf.mxu0 }
0x13dd   : > { %v11206_v2 = vpop.f32.mrf.mxu0 }
0x13df   : > { %v5312_v59 = vpop.f32.mrf.mxu0 }
0x13e0   : > { %v5316_v61 = vpack.c.bf16 %v5312_v59, %v5309_v0 }
0x13e1   : > { %v11207_v46 = vpop.f32.mrf.mxu0 }
0x13e2   : > { %11211 = vmatmul.mubr.msk.bf16.vlgmr.msra.gmra.mxu1 %vm4128_vm14, %v5316_v61 }
0x13e3   : > { %11215 = vmatpush3.bf16.msra.mxu1 %v13132_v1  ;;  %11222 = vmatprep.mubr.msk.bf16.mxu1 %vm12230_vm3, %v12229_v37 }
0x13e4   : > { %11216 = vmatprep.subr.bf16.mxu1 %v12229_v37 }
0x13e7   : > { %11217 = vmatpush3.bf16.msra.mxu1 %v13139_v34 }
0x13e8   : > { %11218 = vmatprep.subr.bf16.mxu1 %v12229_v37 }
0x13eb   : > { %11219 = vmatpush3.bf16.msra.mxu1 %v13114_v28 }
0x13ec   : > { %11220 = vmatprep.subr.bf16.mxu1 %v12229_v37 }
0x13ef   : > { %11221 = vmatpush3.bf16.msra.mxu1 %v13149_v7 }
0x13f0   : > { %11244 = vmatprep.subr.bf16.mxu1 %v12229_v37 }
0x13f2   : > { %11223 = vmatmul.mubr.msk.bf16.vlgmr.msra.gmra.mxu1 %vm4026_vm12, %v11975_v57 }
0x13f3   : > { %11246 = vmatprep.mubr.msk.bf16.mxu1 %vm12230_vm3, %v12229_v37  ;;  %11245 = vmatpush3.bf16.msra.mxu1 %v5531_v63  ;;  %v5718_v63 = vld [vmem:[#allocation4 + $0x8] sm:$0xff] }
0x13f4   : > { %11250 = vmatprep.subr.bf16.mxu1 %v12229_v37 }
0x14a2   : > { %v5359_v3 = vpop.f32.mrf.mxu1 }
0x14a3   : > { %v5366_v8 = vadd.f32 %v5359_v3, %v5262_v4 }
0x14a4   : > { %v11212_v18 = vpop.f32.mrf.mxu1 }
0x14a6   : > { %v5362_v13 = vpop.f32.mrf.mxu1 }
0x14a7   : > { %v5367_v14 = vadd.f32 %v5362_v13, %v5263_v31 }
0x14a8   : > { %v11213_v19 = vpop.f32.mrf.mxu1 }
0x14b2   : > { %v5413_v62 = vpop.f32.mrf.mxu1 }
0x14b4   : > { %v11224_v15 = vpop.f32.mrf.mxu1 }
0x14b6   : > { %v5416_v44 = vpop.f32.mrf.mxu1 }
0x14b7   : > { %v5420_v20 = vpack.c.bf16 %v5416_v44, %v5413_v62 }
0x14b8   : > { %v11225_v51 = vpop.f32.mrf.mxu1 }
0x14b9   : > { %11229 = vmatmul.mubr.msk.bf16.vlgmr.msra.gmra.mxu0 %vm4128_vm14, %v5420_v20 }
0x14ba   : > { %11233 = vmatpush3.bf16.msra.mxu0 %v13132_v1  ;;  %11240 = vmatprep.mubr.msk.bf16.mxu0 %vm12230_vm3, %v12229_v37 }
0x14bb   : > { %11234 = vmatprep.subr.bf16.mxu0 %v12229_v37 }
0x14be   : > { %11235 = vmatpush3.bf16.msra.mxu0 %v13139_v34 }
0x14bf   : > { %11236 = vmatprep.subr.bf16.mxu0 %v12229_v37 }
0x14c2   : > { %11237 = vmatpush3.bf16.msra.mxu0 %v13114_v28 }
0x14c3   : > { %11238 = vmatprep.subr.bf16.mxu0 %v12229_v37 }
0x14c6   : > { %11239 = vmatpush3.bf16.msra.mxu0 %v13149_v7 }
0x14c7   : > { %11262 = vmatprep.subr.bf16.mxu0 %v12229_v37 }
0x14c9   : > { %11241 = vmatmul.mubr.msk.bf16.vlgmr.msra.gmra.mxu0 %vm4026_vm12, %v11976_v52 }
0x14ca   : > { %11264 = vmatprep.mubr.msk.bf16.mxu0 %vm12230_vm3, %v12229_v37 }
0x1579   : > { %v5463_v11 = vpop.f32.mrf.mxu0 }
0x157a   : > { %v5470_v53 = vadd.f32 %v5463_v11, %v5366_v8 }
0x157b   : > { %v11230_v22 = vpop.f32.mrf.mxu0 }
0x157c   : > { %v5721_v22 = vld [vmem:[#allocation6] sm:$0xff] }
0x157d   : > { %v5466_v26 = vpop.f32.mrf.mxu0 }
0x157e   : > { %v5471_v5 = vadd.f32 %v5466_v26, %v5367_v14  ;;  %v5722_v26 = vld [vmem:[#allocation6 + $0x8] sm:$0xff] }
0x157f   : > { %v11231_v25 = vpop.f32.mrf.mxu0 }
0x1589   : > { %v5517_v58 = vpop.f32.mrf.mxu0 }
0x158b   : > { %v11242_v56 = vpop.f32.mrf.mxu0 }
0x158d   : > { %v5520_v55 = vpop.f32.mrf.mxu0 }
0x158e   : > { %v5524_v30 = vpack.c.bf16 %v5520_v55, %v5517_v58 }
0x158f   : > { %v11243_v33 = vpop.f32.mrf.mxu0 }
0x1590   : > { %11247 = vmatmul.mubr.msk.bf16.vlgmr.msra.gmra.mxu1 %vm4128_vm14, %v5524_v30 }
0x1591   : > { %11251 = vmatpush3.bf16.msra.mxu1 %v13132_v1  ;;  %11258 = vmatprep.mubr.msk.bf16.mxu1 %vm12230_vm3, %v12229_v37  ;;  %v9597_v1 = vld [vmem:[%s14084_s4 + $0x3c] sm:$0xf] }
0x1592   : > { %11252 = vmatprep.subr.bf16.mxu1 %v12229_v37 }
0x1595   : > { %11253 = vmatpush3.bf16.msra.mxu1 %v13139_v34 }
0x1596   : > { %11254 = vmatprep.subr.bf16.mxu1 %v12229_v37 }
0x1599   : > { %11255 = vmatpush3.bf16.msra.mxu1 %v13114_v28  ;;  %v5635_v28 = vsel %vm4132_vm13, %v9597_v1, 0 }
0x159a   : > { %11256 = vmatprep.subr.bf16.mxu1 %v12229_v37  ;;  %11263 = vmatpush3.bf16.msra.mxu0 %v5635_v28  ;;  %v9600_v28 = vld [vmem:[%s14087_s7 + $0x2] sm:$0x3] }
0x159b   : > { %11268 = vmatprep.subr.bf16.mxu0 %v12229_v37 }
0x159d   : > { %11257 = vmatpush3.bf16.msra.mxu1 %v13149_v7 }
0x159e   : > { %11274 = vmatprep.subr.bf16.mxu1 %v12229_v37 }
0x15a0   : > { %11259 = vmatmul.mubr.msk.bf16.vlgmr.msra.gmra.mxu1 %vm4026_vm12, %v11977_v16 }
0x15a1   : > { %11276 = vmatprep.mubr.msk.bf16.mxu1 %vm12230_vm3, %v12229_v37 }
0x1650   : > { %v5567_v34 = vpop.f32.mrf.mxu1 }
0x1651   : > { %v5574_v35 = vadd.f32 %v5567_v34, %v5470_v53  ;;  %v5732_v34 = vld [vmem:[%s14087_s7] sm:$0x3] }
0x1652   : > { %v11248_v60 = vpop.f32.mrf.mxu1 }
0x1653   : > { %v11979_v60 = vld [vmem:[%s14088_s8] sm:$0xff]  }
0x1654   : > { %v5570_v7 = vpop.f32.mrf.mxu1 }
0x1655   : > { %v5575_v40 = vadd.f32 %v5570_v7, %v5471_v5 }
0x1656   : > { %v11249_v43 = vpop.f32.mrf.mxu1 }
0x1660   : > { %v5621_v32 = vpop.f32.mrf.mxu1 }
0x1662   : > { %v11260_v47 = vpop.f32.mrf.mxu1 }
0x1664   : > { %v5624_v48 = vpop.f32.mrf.mxu1 }
0x1665   : > { %v5628_v49 = vpack.c.bf16 %v5624_v48, %v5621_v32 }
0x1666   : > { %v11261_v12 = vpop.f32.mrf.mxu1 }
0x1667   : > { %11265 = vmatmul.mubr.msk.bf16.vlgmr.msra.gmra.mxu0 %vm4128_vm14, %v5628_v49 }
0x1668   : > { %11270 = vmatprep.mubr.msk.bf16.mxu0 %vm12230_vm3, %v12229_v37 }
0x1727   : > { %v5671_v54 = vpop.f32.mrf.mxu0 }
0x1728   : > { %v5678_v42 = vadd.f32 %v5671_v54, %v5574_v35  ;;  %v11978_v35 = vld [vmem:[%s14088_s8 + $0x8] sm:$0xff]  }
0x1729   : > { %v11266_v9 = vpop.f32.mrf.mxu0 }
0x172a   : > { %v5681_v6 = vsel %vm5680_vm15, %v5678_v42, 0.0  ;;  %v9608_v9 = vld [vmem:[%s14087_s7 + $0x4] sm:$0x3] }
0x172b   : > { %5682 = vadd.xlane.f32.xlu0 %v5681_v6  ;;  %v5674_v36 = vpop.f32.mrf.mxu0  ;;  %v9614_v6 = vld [vmem:[%s14087_s7 + $0x6] sm:$0x3] }
0x172c   : > { %v5679_v45 = vadd.f32 %v5674_v36, %v5575_v40  ;;  %v9620_v36 = vld [vmem:[%s14087_s7 + $0x8] sm:$0x3] }
0x172d   : > { %v11267_v50 = vpop.f32.mrf.mxu0 }
0x172e   : > { %v5684_v27 = vsel %vm5680_vm15, %v5679_v45, 0.0  ;;  %v9632_v50 = vld [vmem:[%s14087_s7 + $0xc] sm:$0x3] }
0x172f   : > { %5685 = vadd.xlane.f32.xlu0 %v5684_v27  ;;  %v9638_v27 = vld [vmem:[%s14087_s7 + $0xe] sm:$0x3] }
0x17b4   : > { %v5683_v23 = vpop.xlane.xlu0 %5682 }
0x17b8   : > { %v5686_v38 = vpop.xlane.xlu0 %5685 }
0x17b9   : > { %v5687_v29 = vadd.f32 %v5686_v38, %v5683_v23  ;;  %v9644_v23 = vld [vmem:[%s14087_s7 + $0x10] sm:$0x3]  ;;  %v9650_v38 = vld [vmem:[%s14087_s7 + $0x12] sm:$0x3] }
0x17bb   : > { %v5688_v4 = vrot.slane %v5687_v29, 4 }
0x17bd   : > { %v5689_v17 = vadd.f32 %v5688_v4, %v5687_v29  ;;  %v9656_v29 = vld [vmem:[%s14087_s7 + $0x14] sm:$0x3] }
0x17be   : > { %v11980_v4 = vld [vmem:[%s14088_s8 + $0x10] sm:$0xff]  }
0x17bf   : > { %v5690_v39 = vrot.slane %v5689_v17, 2 }
0x17c1   : > { %v5691_v31 = vadd.f32 %v5690_v39, %v5689_v17  ;;  %v9662_v17 = vld [vmem:[%s14087_s7 + $0x16] sm:$0x3]  ;;  %v9668_v39 = vld [vmem:[%s14087_s7 + $0x18] sm:$0x3] }
0x17c3   : > { %v5692_v21 = vrot.slane %v5691_v31, 1 }
0x17c5   : > { %v5693_v0 = vadd.f32 %v5692_v21, %v5691_v31  ;;  %v9674_v31 = vld [vmem:[%s14087_s7 + $0x1a] sm:$0x3]  ;;  %v9680_v21 = vld [vmem:[%s14087_s7 + $0x1c] sm:$0x3] }
0x17c7   : > { %v5694_v2 = vmul.f32 0.00390625, %v5693_v0  ;;  %v9686_v0 = vld [vmem:[%s14087_s7 + $0x1e] sm:$0x3] }
0x17c9   : > { %v5695_v59 = vsub.f32 %v5678_v42, %v5694_v2  ;;  %v5696_v61 = vsub.f32 %v5679_v45, %v5694_v2  ;;  %v9626_v45 = vld [vmem:[%s14087_s7 + $0xa] sm:$0x3] }
0x17cb   : > { %v5697_v46 = vmul.f32 %v5695_v59, %v5695_v59  ;;  %v5698_v10 = vmul.f32 %v5696_v61, %v5696_v61 }
0x17cd   : > { %v5699_v57 = vsel %vm5680_vm15, %v5697_v46, 0.0  ;;  %v5702_v41 = vsel %vm5680_vm15, %v5698_v10, 0.0 }
0x17ce   : > { %5700 = vadd.xlane.f32.xlu1 %v5699_v57 }
0x17d2   : > { %5703 = vadd.xlane.f32.xlu1 %v5702_v41 }
0x1857   : > { %v5701_v3 = vpop.xlane.xlu1 %5700 }
0x185b   : > { %v5704_v8 = vpop.xlane.xlu1 %5703 }
0x185c   : > { %v5705_v18 = vadd.f32 %v5704_v8, %v5701_v3 }
0x185e   : > { %v5706_v13 = vrot.slane %v5705_v18, 4 }
0x1860   : > { %v5707_v14 = vadd.f32 %v5706_v13, %v5705_v18  ;;  %v11981_v13 = vld [vmem:[%s14088_s8 + $0x18] sm:$0xff]  }
0x1862   : > { %v5708_v19 = vrot.slane %v5707_v14, 2 }
0x1864   : > { %v5709_v62 = vadd.f32 %v5708_v19, %v5707_v14 }
0x1866   : > { %v5710_v15 = vrot.slane %v5709_v62, 1 }
0x1868   : > { %v5711_v44 = vadd.f32 %v5710_v15, %v5709_v62 }
0x186a   : > { %v5712_v20 = vmul.f32 0.00390625, %v5711_v44 }
0x186c   : > { %v5713_v51 = vadd.f32 1e-05, %v5712_v20  ;;  %v11982_v20 = vld [vmem:[%s14088_s8 + $0x20] sm:$0xff]  }
0x186e   : > { %12030 = vrsqrt.f32 %v5713_v51 }
0x187b   : > { %v12031_v52 = vpop.eup %12030 }
0x187c   : > { %v5715_v11 = vmul.f32 %v12031_v52, %v5695_v59  ;;  %v5716_v53 = vmul.f32 %v12031_v52, %v5696_v61 }
0x187e   : > { %v5719_v5 = vmul.f32 %v5717_v24, %v5715_v11  ;;  %v5720_v25 = vmul.f32 %v5718_v63, %v5716_v53  ;;  %v11983_v53 = vld [vmem:[%s14088_s8 + $0x28] sm:$0xff]  }
0x1880   : > { %v5723_v58 = vadd.f32 %v5721_v22, %v5719_v5  ;;  %v5724_v56 = vadd.f32 %v5722_v26, %v5720_v25 }
0x1882   : > { %vm5725_vm0 = vcmp.gt.f32.partialorder %v5723_v58, 0.0  ;;  %vm5726_vm2 = vcmp.gt.f32.partialorder %v5724_v56, 0.0  ;;  %v5727_v55 = vmul.f32 0.2, %v5723_v58  ;;  %v5728_v30 = vmul.f32 0.2, %v5724_v56 }
0x1884   : > { %v5729_v33 = vsel %vm5725_vm0, %v5723_v58, %v5727_v55  ;;  %v5730_v16 = vsel %vm5726_vm2, %v5724_v56, %v5728_v30  ;;  %v11984_v56 = vld [vmem:[%s14088_s8 + $0x30] sm:$0xff]  }
0x1885   : > { %v13495_v1 = vpack.c.bf16 %v5730_v16, %v5729_v33 }
0x1887   : > { %11269 = vmatpush3.bf16.msra.mxu0 %v13495_v1  ;;  %11275 = vmatpush3.bf16.msra.mxu1 %v13495_v1 }
0x1888   : > { %11280 = vmatprep.subr.bf16.mxu0 %v12229_v37  ;;  %11286 = vmatprep.subr.bf16.mxu1 %v12229_v37 }
0x188a   : > { %11277 = vmatmul.mubr.msk.bf16.vlgmr.msra.gmra.mxu1 %vm5680_vm15, %v9600_v28  ;;  %11271 = vmatmul.mubr.msk.bf16.vlgmr.msra.gmra.mxu0 %vm5680_vm15, %v5732_v34  ;;  %v11985_v28 = vld [vmem:[%s14088_s8 + $0x38] sm:$0xff]  }
0x188b   : > { %11281 = vmatpush3.bf16.msra.mxu0 %v11978_v35  ;;  %11282 = vmatprep.mubr.msk.bf16.mxu0 %vm12230_vm3, %v12229_v37 }
0x188c   : > { %11292 = vmatprep.subr.bf16.mxu0 %v12229_v37  ;;  %11288 = vmatprep.mubr.msk.bf16.mxu1 %vm12230_vm3, %v12229_v37 }
0x188d   : > { %11287 = vmatpush3.bf16.msra.mxu1 %v11979_v60 }
0x188e   : > { %11298 = vmatprep.subr.bf16.mxu1 %v12229_v37 }
0x194a   : > { %v5818_v7 = vpop.f32.mrf.mxu1  ;;  %v5770_v40 = vpop.f32.mrf.mxu0 }
0x194b   : > { %v5824_v43 = vpack.c.bf16 %v5818_v7, %v5818_v7  ;;  %v5776_v32 = vpack.c.bf16 %v5770_v40, %v5770_v40 }
0x194c   : > { %v11278_v47 = vpop.f32.mrf.mxu1  ;;  %v11272_v48 = vpop.f32.mrf.mxu0 }
0x194d   : > { %11283 = vmatmul.mubr.msk.bf16.vlgmr.msra.gmra.mxu0 %vm5680_vm15, %v5824_v43  ;;  %11289 = vmatmul.mubr.msk.bf16.vlgmr.msra.gmra.mxu1 %vm5680_vm15, %v5776_v32  ;;  %v11986_v43 = vld [vmem:[%s14088_s8 + $0x40] sm:$0xff]  }
0x194e   : > { %11293 = vmatpush3.bf16.msra.mxu0 %v13495_v1  ;;  %v5821_v49 = vpop.f32.mrf.mxu1  ;;  %11294 = vmatprep.mubr.msk.bf16.mxu0 %vm12230_vm3, %v12229_v37  ;;  %v5773_v12 = vpop.f32.mrf.mxu0 }
0x194f   : > { %11304 = vmatprep.subr.bf16.mxu0 %v12229_v37  ;;  %11300 = vmatprep.mubr.msk.bf16.mxu1 %vm12230_vm3, %v12229_v37 }
0x1950   : > { %v11279_v54 = vpop.f32.mrf.mxu1  ;;  %v11273_v42 = vpop.f32.mrf.mxu0  ;;  %11299 = vmatpush3.bf16.msra.mxu1 %v11980_v4 }
0x1951   : > { %11310 = vmatprep.subr.bf16.mxu1 %v12229_v37  ;;  %v11987_v54 = vld [vmem:[%s14088_s8 + $0x48] sm:$0xff]  }
0x1955   : > { %11295 = vmatmul.mubr.msk.bf16.vlgmr.msra.gmra.mxu0 %vm5680_vm15, %v9608_v9 }
0x1956   : > { %11305 = vmatpush3.bf16.msra.mxu0 %v13495_v1  ;;  %11306 = vmatprep.mubr.msk.bf16.mxu0 %vm12230_vm3, %v12229_v37 }
0x1957   : > { %11316 = vmatprep.subr.bf16.mxu0 %v12229_v37 }
0x195d   : > { %11307 = vmatmul.mubr.msk.bf16.vlgmr.msra.gmra.mxu0 %vm5680_vm15, %v9614_v6 }
0x195e   : > { %11317 = vmatpush3.bf16.msra.mxu0 %v13495_v1  ;;  %11318 = vmatprep.mubr.msk.bf16.mxu0 %vm12230_vm3, %v12229_v37 }
0x195f   : > { %11328 = vmatprep.subr.bf16.mxu0 %v12229_v37 }
0x1965   : > { %11319 = vmatmul.mubr.msk.bf16.vlgmr.msra.gmra.mxu0 %vm5680_vm15, %v9620_v36 }
0x1966   : > { %11329 = vmatpush3.bf16.msra.mxu0 %v13495_v1  ;;  %11330 = vmatprep.mubr.msk.bf16.mxu0 %vm12230_vm3, %v12229_v37 }
0x1967   : > { %11340 = vmatprep.subr.bf16.mxu0 %v12229_v37 }
0x196d   : > { %11331 = vmatmul.mubr.msk.bf16.vlgmr.msra.gmra.mxu0 %vm5680_vm15, %v9626_v45 }
0x196e   : > { %11341 = vmatpush3.bf16.msra.mxu0 %v13495_v1  ;;  %11342 = vmatprep.mubr.msk.bf16.mxu0 %vm12230_vm3, %v12229_v37 }
0x196f   : > { %11352 = vmatprep.subr.bf16.mxu0 %v12229_v37 }
0x1975   : > { %11343 = vmatmul.mubr.msk.bf16.vlgmr.msra.gmra.mxu0 %vm5680_vm15, %v9632_v50  ;;  %v11988_v50 = vld [vmem:[%s14088_s8 + $0x50] sm:$0xff]  }
0x1976   : > { %11353 = vmatpush3.bf16.msra.mxu0 %v13495_v1  ;;  %11354 = vmatprep.mubr.msk.bf16.mxu0 %vm12230_vm3, %v12229_v37 }
0x1977   : > { %11364 = vmatprep.subr.bf16.mxu0 %v12229_v37 }
0x197d   : > { %11355 = vmatmul.mubr.msk.bf16.vlgmr.msra.gmra.mxu0 %vm5680_vm15, %v9638_v27 }
0x197e   : > { %11365 = vmatpush3.bf16.msra.mxu0 %v13495_v1  ;;  %11366 = vmatprep.mubr.msk.bf16.mxu0 %vm12230_vm3, %v12229_v37 }
0x197f   : > { %11376 = vmatprep.subr.bf16.mxu0 %v12229_v37 }
0x1985   : > { %11367 = vmatmul.mubr.msk.bf16.vlgmr.msra.gmra.mxu0 %vm5680_vm15, %v9644_v23 }
0x1986   : > { %11377 = vmatpush3.bf16.msra.mxu0 %v13495_v1  ;;  %11378 = vmatprep.mubr.msk.bf16.mxu0 %vm12230_vm3, %v12229_v37 }
0x1987   : > { %11388 = vmatprep.subr.bf16.mxu0 %v12229_v37 }
0x198d   : > { %11379 = vmatmul.mubr.msk.bf16.vlgmr.msra.gmra.mxu0 %vm5680_vm15, %v9650_v38 }
0x198e   : > { %11389 = vmatpush3.bf16.msra.mxu0 %v13495_v1  ;;  %11390 = vmatprep.mubr.msk.bf16.mxu0 %vm12230_vm3, %v12229_v37 }
0x198f   : > { %11400 = vmatprep.subr.bf16.mxu0 %v12229_v37 }
0x1995   : > { %11391 = vmatmul.mubr.msk.bf16.vlgmr.msra.gmra.mxu0 %vm5680_vm15, %v9656_v29 }
0x1996   : > { %11401 = vmatpush3.bf16.msra.mxu0 %v13495_v1  ;;  %11402 = vmatprep.mubr.msk.bf16.mxu0 %vm12230_vm3, %v12229_v37 }
0x1997   : > { %11412 = vmatprep.subr.bf16.mxu0 %v12229_v37 }
0x199d   : > { %11403 = vmatmul.mubr.msk.bf16.vlgmr.msra.gmra.mxu0 %vm5680_vm15, %v9662_v17  ;;  %v11989_v17 = vld [vmem:[%s14088_s8 + $0x58] sm:$0xff]  }
0x199e   : > { %11413 = vmatpush3.bf16.msra.mxu0 %v13495_v1  ;;  %11414 = vmatprep.mubr.msk.bf16.mxu0 %vm12230_vm3, %v12229_v37 }
0x199f   : > { %11424 = vmatprep.subr.bf16.mxu0 %v12229_v37 }
0x19a5   : > { %11415 = vmatmul.mubr.msk.bf16.vlgmr.msra.gmra.mxu0 %vm5680_vm15, %v9668_v39 }
0x19a6   : > { %11425 = vmatpush3.bf16.msra.mxu0 %v13495_v1  ;;  %11426 = vmatprep.mubr.msk.bf16.mxu0 %vm12230_vm3, %v12229_v37 }
0x19a7   : > { %11436 = vmatprep.subr.bf16.mxu0 %v12229_v37 }
0x19ad   : > { %11427 = vmatmul.mubr.msk.bf16.vlgmr.msra.gmra.mxu0 %vm5680_vm15, %v9674_v31 }
0x19ae   : > { %11437 = vmatpush3.bf16.msra.mxu0 %v13495_v1  ;;  %11438 = vmatprep.mubr.msk.bf16.mxu0 %vm12230_vm3, %v12229_v37 }
0x19af   : > { %11448 = vmatprep.subr.bf16.mxu0 %v12229_v37 }
0x19b5   : > { %11439 = vmatmul.mubr.msk.bf16.vlgmr.msra.gmra.mxu0 %vm5680_vm15, %v9680_v21 }
0x19b6   : > { %11449 = vmatpush3.bf16.msra.mxu0 %v13495_v1  ;;  %11450 = vmatprep.mubr.msk.bf16.mxu0 %vm12230_vm3, %v12229_v37 }
0x19b7   : > { %11460 = vmatprep.subr.bf16.mxu0 %v12229_v37 }
0x19bd   : > { %11451 = vmatmul.mubr.msk.bf16.vlgmr.msra.gmra.mxu0 %vm5680_vm15, %v9686_v0 }
0x19be   : > { %11462 = vmatprep.mubr.msk.bf16.mxu0 %vm12230_vm3, %v12229_v37 }
0x1a0d   : > { %v5871_v2 = vpop.f32.mrf.mxu0  ;;  %v5920_v59 = vpop.f32.mrf.mxu1 }
0x1a0e   : > { %v13643_v61 = vadd.f32 %v5920_v59, %v5871_v2  ;;  %v11990_v59 = vld [vmem:[%s14088_s8 + $0x60] sm:$0xff]  }
0x1a0f   : > { %v11284_v46 = vpop.f32.mrf.mxu0  ;;  %v11290_v57 = vpop.f32.mrf.mxu1 }
0x1a11   : > { %v5874_v10 = vpop.f32.mrf.mxu0  ;;  %v5923_v41 = vpop.f32.mrf.mxu1 }
0x1a13   : > { %v11285_v3 = vpop.f32.mrf.mxu0  ;;  %v11291_v8 = vpop.f32.mrf.mxu1 }
0x1a14   : > { %v11991_v8 = vld [vmem:[%s14088_s8 + $0x68] sm:$0xff]  }
0x1a15   : > { %v5965_v18 = vpop.f32.mrf.mxu0 }
0x1a16   : > { %v5971_v14 = vpack.c.bf16 %v5965_v18, %v5965_v18 }
0x1a17   : > { %v11296_v19 = vpop.f32.mrf.mxu0 }
0x1a18   : > { %11301 = vmatmul.mubr.msk.bf16.vlgmr.msra.gmra.mxu1 %vm5680_vm15, %v5971_v14 }
0x1a19   : > { %v5968_v62 = vpop.f32.mrf.mxu0  ;;  %11311 = vmatpush3.bf16.msra.mxu1 %v11981_v13  ;;  %11312 = vmatprep.mubr.msk.bf16.mxu1 %vm12230_vm3, %v12229_v37 }
0x1a1a   : > { %11322 = vmatprep.subr.bf16.mxu1 %v12229_v37 }
0x1a1b   : > { %v11297_v15 = vpop.f32.mrf.mxu0 }
0x1a1c   : > { %v11992_v15 = vld [vmem:[%s14088_s8 + $0x70] sm:$0xff]  }
0x1a1d   : > { %v6064_v44 = vpop.f32.mrf.mxu0 }
0x1a1e   : > { %v6070_v51 = vpack.c.bf16 %v6064_v44, %v6064_v44 }
0x1a1f   : > { %v11308_v52 = vpop.f32.mrf.mxu0 }
0x1a20   : > { %11313 = vmatmul.mubr.msk.bf16.vlgmr.msra.gmra.mxu1 %vm5680_vm15, %v6070_v51 }
0x1a21   : > { %v6067_v24 = vpop.f32.mrf.mxu0  ;;  %11323 = vmatpush3.bf16.msra.mxu1 %v11982_v20  ;;  %11324 = vmatprep.mubr.msk.bf16.mxu1 %vm12230_vm3, %v12229_v37 }
0x1a22   : > { %11334 = vmatprep.subr.bf16.mxu1 %v12229_v37 }
0x1a23   : > { %v11309_v63 = vpop.f32.mrf.mxu0 }
0x1a24   : > { %v11993_v63 = vld [vmem:[%s14088_s8 + $0x78] sm:$0xff]  }
0x1a25   : > { %v6163_v11 = vpop.f32.mrf.mxu0 }
0x1a26   : > { %v6169_v22 = vpack.c.bf16 %v6163_v11, %v6163_v11 }
0x1a27   : > { %v11320_v26 = vpop.f32.mrf.mxu0 }
0x1a28   : > { %11325 = vmatmul.mubr.msk.bf16.vlgmr.msra.gmra.mxu1 %vm5680_vm15, %v6169_v22 }
0x1a29   : > { %v6166_v5 = vpop.f32.mrf.mxu0  ;;  %11335 = vmatpush3.bf16.msra.mxu1 %v11983_v53  ;;  %11336 = vmatprep.mubr.msk.bf16.mxu1 %vm12230_vm3, %v12229_v37 }
0x1a2a   : > { %11346 = vmatprep.subr.bf16.mxu1 %v12229_v37 }
0x1a2b   : > { %v11321_v25 = vpop.f32.mrf.mxu0 }
0x1a2d   : > { %v6262_v58 = vpop.f32.mrf.mxu0 }
0x1a2e   : > { %v6268_v55 = vpack.c.bf16 %v6262_v58, %v6262_v58 }
0x1a2f   : > { %v11332_v30 = vpop.f32.mrf.mxu0 }
0x1a30   : > { %11337 = vmatmul.mubr.msk.bf16.vlgmr.msra.gmra.mxu1 %vm5680_vm15, %v6268_v55 }
0x1a31   : > { %v6265_v33 = vpop.f32.mrf.mxu0  ;;  %11347 = vmatpush3.bf16.msra.mxu1 %v11984_v56  ;;  %11348 = vmatprep.mubr.msk.bf16.mxu1 %vm12230_vm3, %v12229_v37 }
0x1a32   : > { %11358 = vmatprep.subr.bf16.mxu1 %v12229_v37 }
0x1a33   : > { %v11333_v16 = vpop.f32.mrf.mxu0 }
0x1a35   : > { %v6361_v1 = vpop.f32.mrf.mxu0 }
0x1a36   : > { %v6367_v34 = vpack.c.bf16 %v6361_v1, %v6361_v1 }
0x1a37   : > { %v11344_v35 = vpop.f32.mrf.mxu0 }
0x1a38   : > { %11349 = vmatmul.mubr.msk.bf16.vlgmr.msra.gmra.mxu1 %vm5680_vm15, %v6367_v34 }
0x1a39   : > { %v6364_v60 = vpop.f32.mrf.mxu0  ;;  %11359 = vmatpush3.bf16.msra.mxu1 %v11985_v28  ;;  %11360 = vmatprep.mubr.msk.bf16.mxu1 %vm12230_vm3, %v12229_v37 }
0x1a3a   : > { %11370 = vmatprep.subr.bf16.mxu1 %v12229_v37 }
0x1a3b   : > { %v11345_v7 = vpop.f32.mrf.mxu0 }
0x1a3d   : > { %v6460_v40 = vpop.f32.mrf.mxu0 }
0x1a3e   : > { %v6466_v32 = vpack.c.bf16 %v6460_v40, %v6460_v40 }
0x1a3f   : > { %v11356_v47 = vpop.f32.mrf.mxu0 }
0x1a40   : > { %11361 = vmatmul.mubr.msk.bf16.vlgmr.msra.gmra.mxu1 %vm5680_vm15, %v6466_v32 }
0x1a41   : > { %v6463_v48 = vpop.f32.mrf.mxu0  ;;  %11371 = vmatpush3.bf16.msra.mxu1 %v11986_v43  ;;  %11372 = vmatprep.mubr.msk.bf16.mxu1 %vm12230_vm3, %v12229_v37 }
0x1a42   : > { %11382 = vmatprep.subr.bf16.mxu1 %v12229_v37 }
0x1a43   : > { %v11357_v49 = vpop.f32.mrf.mxu0 }
0x1a45   : > { %v6559_v12 = vpop.f32.mrf.mxu0 }
0x1a46   : > { %v6565_v42 = vpack.c.bf16 %v6559_v12, %v6559_v12 }
0x1a47   : > { %v11368_v9 = vpop.f32.mrf.mxu0 }
0x1a48   : > { %11373 = vmatmul.mubr.msk.bf16.vlgmr.msra.gmra.mxu1 %vm5680_vm15, %v6565_v42 }
0x1a49   : > { %v6562_v6 = vpop.f32.mrf.mxu0  ;;  %11383 = vmatpush3.bf16.msra.mxu1 %v11987_v54  ;;  %11384 = vmatprep.mubr.msk.bf16.mxu1 %vm12230_vm3, %v12229_v37 }
0x1a4a   : > { %11394 = vmatprep.subr.bf16.mxu1 %v12229_v37 }
0x1a4b   : > { %v11369_v36 = vpop.f32.mrf.mxu0 }
0x1a4d   : > { %v6658_v45 = vpop.f32.mrf.mxu0 }
0x1a4e   : > { %v6664_v27 = vpack.c.bf16 %v6658_v45, %v6658_v45 }
0x1a4f   : > { %v11380_v23 = vpop.f32.mrf.mxu0 }
0x1a50   : > { %11385 = vmatmul.mubr.msk.bf16.vlgmr.msra.gmra.mxu1 %vm5680_vm15, %v6664_v27 }
0x1a51   : > { %v6661_v38 = vpop.f32.mrf.mxu0  ;;  %11395 = vmatpush3.bf16.msra.mxu1 %v11988_v50  ;;  %11396 = vmatprep.mubr.msk.bf16.mxu1 %vm12230_vm3, %v12229_v37 }
0x1a52   : > { %11406 = vmatprep.subr.bf16.mxu1 %v12229_v37 }
0x1a53   : > { %v11381_v29 = vpop.f32.mrf.mxu0 }
0x1a55   : > { %v6757_v4 = vpop.f32.mrf.mxu0 }
0x1a56   : > { %v6763_v39 = vpack.c.bf16 %v6757_v4, %v6757_v4 }
0x1a57   : > { %v11392_v31 = vpop.f32.mrf.mxu0 }
0x1a58   : > { %11397 = vmatmul.mubr.msk.bf16.vlgmr.msra.gmra.mxu1 %vm5680_vm15, %v6763_v39 }
0x1a59   : > { %v6760_v21 = vpop.f32.mrf.mxu0  ;;  %11407 = vmatpush3.bf16.msra.mxu1 %v11989_v17  ;;  %11408 = vmatprep.mubr.msk.bf16.mxu1 %vm12230_vm3, %v12229_v37 }
0x1a5a   : > { %11418 = vmatprep.subr.bf16.mxu1 %v12229_v37 }
0x1a5b   : > { %v11393_v0 = vpop.f32.mrf.mxu0 }
0x1a5d   : > { %v6856_v2 = vpop.f32.mrf.mxu0 }
0x1a5e   : > { %v6862_v46 = vpack.c.bf16 %v6856_v2, %v6856_v2 }
0x1a5f   : > { %v11404_v57 = vpop.f32.mrf.mxu0 }
0x1a60   : > { %11409 = vmatmul.mubr.msk.bf16.vlgmr.msra.gmra.mxu1 %vm5680_vm15, %v6862_v46 }
0x1a61   : > { %v6859_v10 = vpop.f32.mrf.mxu0  ;;  %11419 = vmatpush3.bf16.msra.mxu1 %v11990_v59  ;;  %11420 = vmatprep.mubr.msk.bf16.mxu1 %vm12230_vm3, %v12229_v37 }
0x1a62   : > { %11430 = vmatprep.subr.bf16.mxu1 %v12229_v37 }
0x1a63   : > { %v11405_v41 = vpop.f32.mrf.mxu0 }
0x1a65   : > { %v6955_v3 = vpop.f32.mrf.mxu0 }
0x1a66   : > { %v6961_v18 = vpack.c.bf16 %v6955_v3, %v6955_v3 }
0x1a67   : > { %v11416_v13 = vpop.f32.mrf.mxu0 }
0x1a68   : > { %11421 = vmatmul.mubr.msk.bf16.vlgmr.msra.gmra.mxu1 %vm5680_vm15, %v6961_v18 }
0x1a69   : > { %v6958_v14 = vpop.f32.mrf.mxu0  ;;  %11431 = vmatpush3.bf16.msra.mxu1 %v11991_v8  ;;  %11432 = vmatprep.mubr.msk.bf16.mxu1 %vm12230_vm3, %v12229_v37 }
0x1a6a   : > { %11442 = vmatprep.subr.bf16.mxu1 %v12229_v37 }
0x1a6b   : > { %v11417_v19 = vpop.f32.mrf.mxu0 }
0x1a6d   : > { %v7054_v62 = vpop.f32.mrf.mxu0 }
0x1a6e   : > { %v7060_v44 = vpack.c.bf16 %v7054_v62, %v7054_v62 }
0x1a6f   : > { %v11428_v20 = vpop.f32.mrf.mxu0 }
0x1a70   : > { %11433 = vmatmul.mubr.msk.bf16.vlgmr.msra.gmra.mxu1 %vm5680_vm15, %v7060_v44 }
0x1a71   : > { %v7057_v51 = vpop.f32.mrf.mxu0  ;;  %11443 = vmatpush3.bf16.msra.mxu1 %v11992_v15  ;;  %11444 = vmatprep.mubr.msk.bf16.mxu1 %vm12230_vm3, %v12229_v37 }
0x1a72   : > { %11454 = vmatprep.subr.bf16.mxu1 %v12229_v37 }
0x1a73   : > { %v11429_v52 = vpop.f32.mrf.mxu0 }
0x1a75   : > { %v7153_v24 = vpop.f32.mrf.mxu0 }
0x1a76   : > { %v7159_v11 = vpack.c.bf16 %v7153_v24, %v7153_v24 }
0x1a77   : > { %v11440_v53 = vpop.f32.mrf.mxu0 }
0x1a78   : > { %11445 = vmatmul.mubr.msk.bf16.vlgmr.msra.gmra.mxu1 %vm5680_vm15, %v7159_v11 }
0x1a79   : > { %v7156_v22 = vpop.f32.mrf.mxu0  ;;  %11455 = vmatpush3.bf16.msra.mxu1 %v11993_v63  ;;  %11456 = vmatprep.mubr.msk.bf16.mxu1 %vm12230_vm3, %v12229_v37 }
0x1a7a   : > { %11466 = vmatprep.subr.bf16.mxu1 %v12229_v37 }
0x1a7b   : > { %v11441_v26 = vpop.f32.mrf.mxu0 }
0x1a7d   : > { %v7252_v5 = vpop.f32.mrf.mxu0 }
0x1a7e   : > { %v7258_v25 = vpack.c.bf16 %v7252_v5, %v7252_v5 }
0x1a7f   : > { %v11452_v58 = vpop.f32.mrf.mxu0 }
0x1a80   : > { %11457 = vmatmul.mubr.msk.bf16.vlgmr.msra.gmra.mxu1 %vm5680_vm15, %v7258_v25 }
0x1a81   : > { %v7255_v56 = vpop.f32.mrf.mxu0  ;;  %11468 = vmatprep.mubr.msk.bf16.mxu1 %vm12230_vm3, %v12229_v37 }
0x1a83   : > { %v11453_v55 = vpop.f32.mrf.mxu0 }
0x1ad8   : > { %v6018_v30 = vpop.f32.mrf.mxu1 }
0x1ad9   : > { %v6024_v33 = vadd.f32 %v6018_v30, %v13643_v61 }
0x1ada   : > { %v11302_v16 = vpop.f32.mrf.mxu1 }
0x1adc   : > { %v6021_v1 = vpop.f32.mrf.mxu1 }
0x1ade   : > { %v11303_v28 = vpop.f32.mrf.mxu1 }
0x1ae0   : > { %v6117_v34 = vpop.f32.mrf.mxu1 }
0x1ae1   : > { %v6123_v35 = vadd.f32 %v6117_v34, %v6024_v33 }
0x1ae2   : > { %v11314_v60 = vpop.f32.mrf.mxu1 }
0x1ae4   : > { %v6120_v7 = vpop.f32.mrf.mxu1 }
0x1ae6   : > { %v11315_v40 = vpop.f32.mrf.mxu1 }
0x1ae8   : > { %v6216_v43 = vpop.f32.mrf.mxu1 }
0x1ae9   : > { %v6222_v32 = vadd.f32 %v6216_v43, %v6123_v35 }
0x1aea   : > { %v11326_v47 = vpop.f32.mrf.mxu1 }
0x1aec   : > { %v6219_v48 = vpop.f32.mrf.mxu1 }
0x1aee   : > { %v11327_v49 = vpop.f32.mrf.mxu1 }
0x1af0   : > { %v6315_v12 = vpop.f32.mrf.mxu1 }
0x1af1   : > { %v6321_v62 = vadd.f32 %v6315_v12, %v6222_v32 }
0x1af2   : > { %v11338_v54 = vpop.f32.mrf.mxu1 }
0x1af4   : > { %v6318_v42 = vpop.f32.mrf.mxu1 }
0x1af6   : > { %v11339_v9 = vpop.f32.mrf.mxu1 }
0x1af8   : > { %v6414_v6 = vpop.f32.mrf.mxu1 }
0x1af9   : > { %v6420_v44 = vadd.f32 %v6414_v6, %v6321_v62 }
0x1afa   : > { %v11350_v36 = vpop.f32.mrf.mxu1 }
0x1afc   : > { %v6417_v61 = vpop.f32.mrf.mxu1 }
0x1afe   : > { %v11351_v45 = vpop.f32.mrf.mxu1 }
0x1b00   : > { %v6513_v50 = vpop.f32.mrf.mxu1 }
0x1b01   : > { %v6519_v51 = vadd.f32 %v6513_v50, %v6420_v44 }
0x1b02   : > { %v11362_v27 = vpop.f32.mrf.mxu1 }
0x1b04   : > { %v6516_v23 = vpop.f32.mrf.mxu1 }
0x1b06   : > { %v11363_v38 = vpop.f32.mrf.mxu1 }
0x1b08   : > { %v6612_v29 = vpop.f32.mrf.mxu1 }
0x1b09   : > { %v6618_v24 = vadd.f32 %v6612_v29, %v6519_v51 }
0x1b0a   : > { %v11374_v4 = vpop.f32.mrf.mxu1 }
0x1b0c   : > { %v6615_v17 = vpop.f32.mrf.mxu1 }
0x1b0e   : > { %v11375_v39 = vpop.f32.mrf.mxu1 }
0x1b10   : > { %v6711_v31 = vpop.f32.mrf.mxu1 }
0x1b11   : > { %v6717_v11 = vadd.f32 %v6711_v31, %v6618_v24  ;;  %v7340_v31 = vld [vmem:[#allocation7] sm:$0xf] }
0x1b12   : > { %v11386_v21 = vpop.f32.mrf.mxu1 }
0x1b14   : > { %v6714_v0 = vpop.f32.mrf.mxu1 }
0x1b15   : > { %v7342_v0 = vld [vmem:[#allocation9] sm:$0xf] }
0x1b16   : > { %v11387_v2 = vpop.f32.mrf.mxu1 }
0x1b18   : > { %v6810_v59 = vpop.f32.mrf.mxu1 }
0x1b19   : > { %v6816_v22 = vadd.f32 %v6810_v59, %v6717_v11 }
0x1b1a   : > { %v11398_v46 = vpop.f32.mrf.mxu1 }
0x1b1c   : > { %v6813_v57 = vpop.f32.mrf.mxu1 }
0x1b1e   : > { %v11399_v10 = vpop.f32.mrf.mxu1 }
0x1b20   : > { %v6909_v41 = vpop.f32.mrf.mxu1 }
0x1b21   : > { %v6915_v5 = vadd.f32 %v6909_v41, %v6816_v22  ;;  %v9705_v22 = vld [vmem:[%s14091_s11 + $0x2] sm:$0x1] }
0x1b22   : > { %v11410_v3 = vpop.f32.mrf.mxu1 }
0x1b23   : > { %v9693_v3 = vld [vmem:[%s14091_s11 + $0x1] sm:$0x1] }
0x1b24   : > { %v6912_v8 = vpop.f32.mrf.mxu1 }
0x1b25   : > { %v7348_v8 = vld [vmem:[%s14091_s11] sm:$0x1] }
0x1b26   : > { %v11411_v18 = vpop.f32.mrf.mxu1 }
0x1b27   : > { %v11994_v18 = vld [vmem:[%s14092_s12 + $0x18] sm:$0xff]  }
0x1b28   : > { %v7008_v13 = vpop.f32.mrf.mxu1 }
0x1b29   : > { %v7014_v58 = vadd.f32 %v7008_v13, %v6915_v5  ;;  %v11995_v13 = vld [vmem:[%s14092_s12 + $0x10] sm:$0xff]   ;;  %v9723_v5 = vld [vmem:[%s14091_s11 + $0x4] sm:$0x1] }
0x1b2a   : > { %v11422_v14 = vpop.f32.mrf.mxu1 }
0x1b2b   : > { %v11996_v14 = vld [vmem:[%s14092_s12 + $0x8] sm:$0xff]  }
0x1b2c   : > { %v7011_v19 = vpop.f32.mrf.mxu1 }
0x1b2d   : > { %v11997_v19 = vld [vmem:[%s14092_s12] sm:$0xff]  }
0x1b2e   : > { %v11423_v15 = vpop.f32.mrf.mxu1 }
0x1b30   : > { %v7107_v20 = vpop.f32.mrf.mxu1 }
0x1b31   : > { %v7113_v55 = vadd.f32 %v7107_v20, %v7014_v58  ;;  %v9741_v58 = vld [vmem:[%s14091_s11 + $0x6] sm:$0x1] }
0x1b32   : > { %v11434_v52 = vpop.f32.mrf.mxu1 }
0x1b34   : > { %v7110_v63 = vpop.f32.mrf.mxu1 }
0x1b36   : > { %v11435_v53 = vpop.f32.mrf.mxu1 }
0x1b38   : > { %v7206_v26 = vpop.f32.mrf.mxu1 }
0x1b39   : > { %v7212_v33 = vadd.f32 %v7206_v26, %v7113_v55  ;;  %v9714_v26 = vld [vmem:[%s14091_s11 + $0x3] sm:$0x1]  ;;  %v9759_v55 = vld [vmem:[%s14091_s11 + $0x8] sm:$0x1] }
0x1b3a   : > { %v11446_v25 = vpop.f32.mrf.mxu1 }
0x1b3b   : > { %v9732_v25 = vld [vmem:[%s14091_s11 + $0x5] sm:$0x1] }
0x1b3c   : > { %v7209_v56 = vpop.f32.mrf.mxu1 }
0x1b3d   : > { %v9750_v56 = vld [vmem:[%s14091_s11 + $0x7] sm:$0x1] }
0x1b3e   : > { %v11447_v30 = vpop.f32.mrf.mxu1 }
0x1b3f   : > { %v9768_v30 = vld [vmem:[%s14091_s11 + $0x9] sm:$0x1] }
0x1b40   : > { %v7305_v16 = vpop.f32.mrf.mxu1 }
0x1b41   : > { %v7311_v1 = vadd.f32 %v7305_v16, %v7212_v33  ;;  %v11998_v33 = vld [vmem:[%s14092_s12 + $0x28] sm:$0xff]  }
0x1b42   : > { %v11458_v28 = vpop.f32.mrf.mxu1  ;;  %v9777_v16 = vld [vmem:[%s14091_s11 + $0xa] sm:$0x1] }
0x1b43   : > { %v7313_v34 = vsel %vm7312_vm4, %v7311_v1, 0.0  ;;  %v9786_v28 = vld [vmem:[%s14091_s11 + $0xb] sm:$0x1] }
0x1b44   : > { %7314 = vadd.xlane.f32.xlu0 %v7313_v34  ;;  %v7308_v35 = vpop.f32.mrf.mxu1  ;;  %v9795_v34 = vld [vmem:[%s14091_s11 + $0xc] sm:$0x1] }
0x1b45   : > { %v9804_v35 = vld [vmem:[%s14091_s11 + $0xd] sm:$0x1] }
0x1b46   : > { %v11459_v60 = vpop.f32.mrf.mxu1 }
0x1b47   : > { %v9813_v60 = vld [vmem:[%s14091_s11 + $0xe] sm:$0x1] }
0x1bcd   : > { %v7315_v7 = vpop.xlane.xlu0 %7314 }
0x1bce   : > { %v7316_v40 = vsel %vm4132_vm13, %v7315_v7, 0.0  ;;  %v9822_v7 = vld [vmem:[%s14091_s11 + $0xf] sm:$0x1] }
0x1bcf   : > { %v7317_v43 = vrot.slane %v7316_v40, 4 }
0x1bd1   : > { %v7318_v32 = vadd.f32 %v7317_v43, %v7316_v40 }
0x1bd3   : > { %v7319_v47 = vrot.slane %v7318_v32, 2 }
0x1bd5   : > { %v7320_v48 = vadd.f32 %v7319_v47, %v7318_v32 }
0x1bd7   : > { %v7321_v49 = vrot.slane %v7320_v48, 1 }
0x1bd9   : > { %v7322_v12 = vadd.f32 %v7321_v49, %v7320_v48 }
0x1bdb   : > { %v7323_v54 = vmul.f32 0.0078125, %v7322_v12 }
0x1bdd   : > { %v7324_v42 = vsub.f32 %v7311_v1, %v7323_v54  ;;  %v11999_v1 = vld [vmem:[%s14092_s12 + $0x20] sm:$0xff]  }
0x1bdf   : > { %v7325_v9 = vmul.f32 %v7324_v42, %v7324_v42 }
0x1be1   : > { %v7326_v6 = vsel %vm7312_vm4, %v7325_v9, 0.0 }
0x1be2   : > { %7327 = vadd.xlane.f32.xlu1 %v7326_v6  ;;  %v12000_v6 = vld [vmem:[%s14092_s12 + $0x38] sm:$0xff]  }
0x1c6b   : > { %v7328_v36 = vpop.xlane.xlu1 %7327 }
0x1c6c   : > { %v7329_v61 = vsel %vm4132_vm13, %v7328_v36, 0.0 }
0x1c6d   : > { %v7330_v45 = vrot.slane %v7329_v61, 4 }
0x1c6f   : > { %v7331_v50 = vadd.f32 %v7330_v45, %v7329_v61 }
0x1c71   : > { %v7332_v27 = vrot.slane %v7331_v50, 2 }
0x1c73   : > { %v7333_v23 = vadd.f32 %v7332_v27, %v7331_v50  ;;  %v12001_v50 = vld [vmem:[%s14092_s12 + $0x30] sm:$0xff]  }
0x1c75   : > { %v7334_v38 = vrot.slane %v7333_v23, 1 }
0x1c77   : > { %v7335_v29 = vadd.f32 %v7334_v38, %v7333_v23  ;;  %v12002_v38 = vld [vmem:[%s14092_s12 + $0x48] sm:$0xff]  }
0x1c79   : > { %v7336_v4 = vmul.f32 0.0078125, %v7335_v29 }
0x1c7b   : > { %v7337_v17 = vadd.f32 1e-05, %v7336_v4 }
0x1c7d   : > { %12032 = vrsqrt.f32 %v7337_v17 }
0x1c8a   : > { %v12033_v39 = vpop.eup %12032 }
0x1c8b   : > { %v7339_v21 = vmul.f32 %v12033_v39, %v7324_v42  ;;  %v12003_v39 = vld [vmem:[%s14092_s12 + $0x40] sm:$0xff]  }
0x1c8d   : > { %v7341_v2 = vmul.f32 %v7340_v31, %v7339_v21 }
0x1c8f   : > { %v7343_v59 = vadd.f32 %v7342_v0, %v7341_v2  ;;  %v12004_v0 = vld [vmem:[%s14092_s12 + $0x58] sm:$0xff]  }
0x1c91   : > { %vm7344_vm5 = vcmp.gt.f32.partialorder %v7343_v59, 0.0  ;;  %v7345_v46 = vmul.f32 0.2, %v7343_v59 }
0x1c93   : > { %v7346_v57 = vsel %vm7344_vm5, %v7343_v59, %v7345_v46 }
0x1c94   : > { %v7347_v10 = vpack.c.bf16 %v7346_v57, %v7346_v57  ;;  %v12005_v57 = vld [vmem:[%s14092_s12 + $0x50] sm:$0xff]  }
0x1c96   : > { %v13745_v41 = vsel %vm928_vm1, %v7347_v10, 0  ;;  %vm7464_vm1 = vcmask 261120  }
0x1c97   : > { %11461 = vmatpush3.bf16.msra.mxu0 %v13745_v41  ;;  %11467 = vmatpush3.bf16.msra.mxu1 %v13745_v41 }
0x1c98   : > { %11472 = vmatprep.subr.bf16.mxu0 %v12229_v37  ;;  %11480 = vmatprep.subr.bf16.mxu1 %v12229_v37 }
0x1c9a   : > { %11469 = vmatmul.mubr.msk.bf16.vlgmr.msra.gmra.mxu1 %vm7349_vm6, %v9693_v3  ;;  %11463 = vmatmul.mubr.msk.bf16.vlgmr.msra.gmra.mxu0 %vm7349_vm6, %v7348_v8  ;;  %v12006_v3 = vld [vmem:[%s14092_s12 + $0x68] sm:$0xff]  }
0x1c9b   : > { %11473 = vmatpush3.bf16.msra.mxu0 %v11994_v18  ;;  %11476 = vmatprep.mubr.msk.bf16.mxu0 %vm12230_vm3, %v12229_v37 }
0x1c9c   : > { %11474 = vmatprep.subr.bf16.mxu0 %v12229_v37  ;;  %11484 = vmatprep.mubr.msk.bf16.mxu1 %vm12230_vm3, %v12229_v37 }
0x1c9d   : > { %11481 = vmatpush3.bf16.msra.mxu1 %v11996_v14  ;;  %v12007_v14 = vld [vmem:[%s14092_s12 + $0x60] sm:$0xff]  }
0x1c9e   : > { %11482 = vmatprep.subr.bf16.mxu1 %v12229_v37 }
0x1c9f   : > { %11475 = vmatpush3.bf16.msra.mxu0 %v11995_v13 }
0x1ca0   : > { %11488 = vmatprep.subr.bf16.mxu0 %v12229_v37 }
0x1ca1   : > { %11483 = vmatpush3.bf16.msra.mxu1 %v11997_v19 }
0x1ca2   : > { %11494 = vmatprep.subr.bf16.mxu1 %v12229_v37 }
0x1d5a   : > { %v7440_v62 = vpop.f32.mrf.mxu1  ;;  %v7390_v15 = vpop.f32.mrf.mxu0 }
0x1d5b   : > { %v7446_v44 = vpack.c.bf16 %v7440_v62, %v7440_v62  ;;  %v7396_v20 = vpack.c.bf16 %v7390_v15, %v7390_v15  ;;  %v12008_v15 = vld [vmem:[%s14092_s12 + $0x78] sm:$0xff]  }
0x1d5c   : > { %v11470_v51 = vpop.f32.mrf.mxu1  ;;  %v11464_v52 = vpop.f32.mrf.mxu0 }
0x1d5d   : > { %11477 = vmatmul.mubr.msk.bf16.vlgmr.msra.gmra.mxu0 %vm7464_vm1, %v7446_v44  ;;  %11485 = vmatmul.mubr.msk.bf16.vlgmr.msra.gmra.mxu1 %vm7464_vm1, %v7396_v20  ;;  %v12009_v52 = vld [vmem:[%s14092_s12 + $0x70] sm:$0xff]  }
0x1d5e   : > { %11489 = vmatpush3.bf16.msra.mxu0 %v13745_v41  ;;  %11490 = vmatprep.mubr.msk.bf16.mxu0 %vm12230_vm3, %v12229_v37  ;;  %v7443_v24 = vpop.f32.mrf.mxu1  ;;  %v7393_v63 = vpop.f32.mrf.mxu0 }
0x1d5f   : > { %11502 = vmatprep.subr.bf16.mxu0 %v12229_v37  ;;  %11498 = vmatprep.mubr.msk.bf16.mxu1 %vm12230_vm3, %v12229_v37 }
0x1d60   : > { %v11471_v11 = vpop.f32.mrf.mxu1  ;;  %v11465_v53 = vpop.f32.mrf.mxu0  ;;  %11495 = vmatpush3.bf16.msra.mxu1 %v11998_v33 }
0x1d61   : > { %11496 = vmatprep.subr.bf16.mxu1 %v12229_v37  ;;  %v12010_v11 = vld [vmem:[%s14092_s12 + $0x88] sm:$0xff]  }
0x1d64   : > { %11497 = vmatpush3.bf16.msra.mxu1 %v11999_v1 }
0x1d65   : > { %11491 = vmatmul.mubr.msk.bf16.vlgmr.msra.gmra.mxu0 %vm7349_vm6, %v9705_v22  ;;  %11508 = vmatprep.subr.bf16.mxu1 %v12229_v37 }
0x1d66   : > { %11503 = vmatpush3.bf16.msra.mxu0 %v13745_v41  ;;  %11504 = vmatprep.mubr.msk.bf16.mxu0 %vm12230_vm3, %v12229_v37 }
0x1d67   : > { %11516 = vmatprep.subr.bf16.mxu0 %v12229_v37 }
0x1d6d   : > { %11505 = vmatmul.mubr.msk.bf16.vlgmr.msra.gmra.mxu0 %vm7349_vm6, %v9714_v26 }
0x1d6e   : > { %11517 = vmatpush3.bf16.msra.mxu0 %v13745_v41  ;;  %11518 = vmatprep.mubr.msk.bf16.mxu0 %vm12230_vm3, %v12229_v37 }
0x1d6f   : > { %11530 = vmatprep.subr.bf16.mxu0 %v12229_v37 }
0x1d75   : > { %11519 = vmatmul.mubr.msk.bf16.vlgmr.msra.gmra.mxu0 %vm7349_vm6, %v9723_v5  ;;  %v12011_v5 = vld [vmem:[%s14092_s12 + $0x80] sm:$0xff]  }
0x1d76   : > { %11531 = vmatpush3.bf16.msra.mxu0 %v13745_v41  ;;  %11532 = vmatprep.mubr.msk.bf16.mxu0 %vm12230_vm3, %v12229_v37 }
0x1d77   : > { %11544 = vmatprep.subr.bf16.mxu0 %v12229_v37 }
0x1d7d   : > { %11533 = vmatmul.mubr.msk.bf16.vlgmr.msra.gmra.mxu0 %vm7349_vm6, %v9732_v25 }
0x1d7e   : > { %11545 = vmatpush3.bf16.msra.mxu0 %v13745_v41  ;;  %11546 = vmatprep.mubr.msk.bf16.mxu0 %vm12230_vm3, %v12229_v37 }
0x1d7f   : > { %11558 = vmatprep.subr.bf16.mxu0 %v12229_v37 }
0x1d85   : > { %11547 = vmatmul.mubr.msk.bf16.vlgmr.msra.gmra.mxu0 %vm7349_vm6, %v9741_v58 }
0x1d86   : > { %11559 = vmatpush3.bf16.msra.mxu0 %v13745_v41  ;;  %11560 = vmatprep.mubr.msk.bf16.mxu0 %vm12230_vm3, %v12229_v37 }
0x1d87   : > { %11572 = vmatprep.subr.bf16.mxu0 %v12229_v37 }
0x1d8d   : > { %11561 = vmatmul.mubr.msk.bf16.vlgmr.msra.gmra.mxu0 %vm7349_vm6, %v9750_v56  ;;  %v12012_v56 = vld [vmem:[%s14092_s12 + $0x98] sm:$0xff]  }
0x1d8e   : > { %11573 = vmatpush3.bf16.msra.mxu0 %v13745_v41  ;;  %11574 = vmatprep.mubr.msk.bf16.mxu0 %vm12230_vm3, %v12229_v37 }
0x1d8f   : > { %11586 = vmatprep.subr.bf16.mxu0 %v12229_v37 }
0x1d95   : > { %11575 = vmatmul.mubr.msk.bf16.vlgmr.msra.gmra.mxu0 %vm7349_vm6, %v9759_v55 }
0x1d96   : > { %11587 = vmatpush3.bf16.msra.mxu0 %v13745_v41  ;;  %11588 = vmatprep.mubr.msk.bf16.mxu0 %vm12230_vm3, %v12229_v37 }
0x1d97   : > { %11600 = vmatprep.subr.bf16.mxu0 %v12229_v37 }
0x1d9d   : > { %11589 = vmatmul.mubr.msk.bf16.vlgmr.msra.gmra.mxu0 %vm7349_vm6, %v9768_v30 }
0x1d9e   : > { %11601 = vmatpush3.bf16.msra.mxu0 %v13745_v41  ;;  %11602 = vmatprep.mubr.msk.bf16.mxu0 %vm12230_vm3, %v12229_v37 }
0x1d9f   : > { %11614 = vmatprep.subr.bf16.mxu0 %v12229_v37 }
0x1da5   : > { %11603 = vmatmul.mubr.msk.bf16.vlgmr.msra.gmra.mxu0 %vm7349_vm6, %v9777_v16  ;;  %v12013_v16 = vld [vmem:[%s14092_s12 + $0x90] sm:$0xff]  }
0x1da6   : > { %11615 = vmatpush3.bf16.msra.mxu0 %v13745_v41  ;;  %11616 = vmatprep.mubr.msk.bf16.mxu0 %vm12230_vm3, %v12229_v37 }
0x1da7   : > { %11628 = vmatprep.subr.bf16.mxu0 %v12229_v37 }
0x1dad   : > { %11617 = vmatmul.mubr.msk.bf16.vlgmr.msra.gmra.mxu0 %vm7349_vm6, %v9786_v28 }
0x1dae   : > { %11629 = vmatpush3.bf16.msra.mxu0 %v13745_v41  ;;  %11630 = vmatprep.mubr.msk.bf16.mxu0 %vm12230_vm3, %v12229_v37 }
0x1daf   : > { %11642 = vmatprep.subr.bf16.mxu0 %v12229_v37 }
0x1db5   : > { %11631 = vmatmul.mubr.msk.bf16.vlgmr.msra.gmra.mxu0 %vm7349_vm6, %v9795_v34  ;;  %v12014_v34 = vld [vmem:[%s14092_s12 + $0xa8] sm:$0xff]  }
0x1db6   : > { %11643 = vmatpush3.bf16.msra.mxu0 %v13745_v41  ;;  %11644 = vmatprep.mubr.msk.bf16.mxu0 %vm12230_vm3, %v12229_v37 }
0x1db7   : > { %11656 = vmatprep.subr.bf16.mxu0 %v12229_v37 }
0x1dbd   : > { %11645 = vmatmul.mubr.msk.bf16.vlgmr.msra.gmra.mxu0 %vm7349_vm6, %v9804_v35 }
0x1dbe   : > { %11657 = vmatpush3.bf16.msra.mxu0 %v13745_v41  ;;  %11658 = vmatprep.mubr.msk.bf16.mxu0 %vm12230_vm3, %v12229_v37 }
0x1dbf   : > { %11670 = vmatprep.subr.bf16.mxu0 %v12229_v37 }
0x1dc5   : > { %11659 = vmatmul.mubr.msk.bf16.vlgmr.msra.gmra.mxu0 %vm7349_vm6, %v9813_v60 }
0x1dc6   : > { %11671 = vmatpush3.bf16.msra.mxu0 %v13745_v41  ;;  %11672 = vmatprep.mubr.msk.bf16.mxu0 %vm12230_vm3, %v12229_v37 }
0x1dc7   : > { %11684 = vmatprep.subr.bf16.mxu0 %v12229_v37 }
0x1dcd   : > { %11673 = vmatmul.mubr.msk.bf16.vlgmr.msra.gmra.mxu0 %vm7349_vm6, %v9822_v7 }
0x1dce   : > { %11692 = vmatprep.mubr.msk.bf16.mxu0 %vm12230_vm3, %v12229_v37 }
0x1e1d   : > { %v7502_v40 = vpop.f32.mrf.mxu0  ;;  %v7557_v43 = vpop.f32.mrf.mxu1 }
0x1e1e   : > { %v13905_v32 = vadd.f32 %v7557_v43, %v7502_v40  ;;  %v12015_v40 = vld [vmem:[%s14092_s12 + $0xa0] sm:$0xff]  }
0x1e1f   : > { %v11478_v47 = vpop.f32.mrf.mxu0  ;;  %v11486_v48 = vpop.f32.mrf.mxu1 }
0x1e20   : > { %v12016_v48 = vld [vmem:[%s14092_s12 + $0xb8] sm:$0xff]  }
0x1e21   : > { %v7505_v49 = vpop.f32.mrf.mxu0  ;;  %v7560_v12 = vpop.f32.mrf.mxu1 }
0x1e23   : > { %v11479_v54 = vpop.f32.mrf.mxu0  ;;  %v11487_v42 = vpop.f32.mrf.mxu1 }
0x1e24   : > { %v12017_v42 = vld [vmem:[%s14092_s12 + $0xb0] sm:$0xff]  }
0x1e25   : > { %v7602_v9 = vpop.f32.mrf.mxu0 }
0x1e26   : > { %v7608_v36 = vpack.c.bf16 %v7602_v9, %v7602_v9 }
0x1e27   : > { %v11492_v61 = vpop.f32.mrf.mxu0 }
0x1e28   : > { %11499 = vmatmul.mubr.msk.bf16.vlgmr.msra.gmra.mxu1 %vm7464_vm1, %v7608_v36  ;;  %v12018_v36 = vld [vmem:[%s14092_s12 + $0xc8] sm:$0xff]  }
0x1e29   : > { %v7605_v45 = vpop.f32.mrf.mxu0  ;;  %11509 = vmatpush3.bf16.msra.mxu1 %v12000_v6  ;;  %11512 = vmatprep.mubr.msk.bf16.mxu1 %vm12230_vm3, %v12229_v37 }
0x1e2a   : > { %11510 = vmatprep.subr.bf16.mxu1 %v12229_v37 }
0x1e2b   : > { %v11493_v27 = vpop.f32.mrf.mxu0 }
0x1e2c   : > { %v12019_v27 = vld [vmem:[%s14092_s12 + $0xc0] sm:$0xff]  }
0x1e2d   : > { %v7709_v23 = vpop.f32.mrf.mxu0  ;;  %11511 = vmatpush3.bf16.msra.mxu1 %v12001_v50 }
0x1e2e   : > { %v7715_v29 = vpack.c.bf16 %v7709_v23, %v7709_v23  ;;  %11522 = vmatprep.subr.bf16.mxu1 %v12229_v37 }
0x1e2f   : > { %v11506_v4 = vpop.f32.mrf.mxu0 }
0x1e30   : > { %11513 = vmatmul.mubr.msk.bf16.vlgmr.msra.gmra.mxu1 %vm7464_vm1, %v7715_v29  ;;  %v12020_v29 = vld [vmem:[%s14092_s12 + $0xd8] sm:$0xff]  }
0x1e31   : > { %v7712_v17 = vpop.f32.mrf.mxu0  ;;  %11523 = vmatpush3.bf16.msra.mxu1 %v12002_v38  ;;  %11526 = vmatprep.mubr.msk.bf16.mxu1 %vm12230_vm3, %v12229_v37 }
0x1e32   : > { %11524 = vmatprep.subr.bf16.mxu1 %v12229_v37 }
0x1e33   : > { %v11507_v31 = vpop.f32.mrf.mxu0 }
0x1e34   : > { %v12021_v31 = vld [vmem:[%s14092_s12 + $0xd0] sm:$0xff]  }
0x1e35   : > { %v7816_v21 = vpop.f32.mrf.mxu0  ;;  %11525 = vmatpush3.bf16.msra.mxu1 %v12003_v39 }
0x1e36   : > { %v7822_v2 = vpack.c.bf16 %v7816_v21, %v7816_v21  ;;  %11536 = vmatprep.subr.bf16.mxu1 %v12229_v37 }
0x1e37   : > { %v11520_v59 = vpop.f32.mrf.mxu0 }
0x1e38   : > { %11527 = vmatmul.mubr.msk.bf16.vlgmr.msra.gmra.mxu1 %vm7464_vm1, %v7822_v2  ;;  %v12022_v2 = vld [vmem:[%s14092_s12 + $0xe8] sm:$0xff]  }
0x1e39   : > { %v7819_v46 = vpop.f32.mrf.mxu0  ;;  %11537 = vmatpush3.bf16.msra.mxu1 %v12004_v0  ;;  %11540 = vmatprep.mubr.msk.bf16.mxu1 %vm12230_vm3, %v12229_v37 }
0x1e3a   : > { %11538 = vmatprep.subr.bf16.mxu1 %v12229_v37 }
0x1e3b   : > { %v11521_v10 = vpop.f32.mrf.mxu0 }
0x1e3c   : > { %v12023_v10 = vld [vmem:[%s14092_s12 + $0xe0] sm:$0xff]  }
0x1e3d   : > { %v7923_v41 = vpop.f32.mrf.mxu0  ;;  %11539 = vmatpush3.bf16.msra.mxu1 %v12005_v57 }
0x1e3e   : > { %v7929_v8 = vpack.c.bf16 %v7923_v41, %v7923_v41  ;;  %11550 = vmatprep.subr.bf16.mxu1 %v12229_v37 }
0x1e3f   : > { %v11534_v18 = vpop.f32.mrf.mxu0 }
0x1e40   : > { %11541 = vmatmul.mubr.msk.bf16.vlgmr.msra.gmra.mxu1 %vm7464_vm1, %v7929_v8  ;;  %v12024_v8 = vld [vmem:[%s14092_s12 + $0xf8] sm:$0xff]  }
0x1e41   : > { %v7926_v13 = vpop.f32.mrf.mxu0  ;;  %11551 = vmatpush3.bf16.msra.mxu1 %v12006_v3  ;;  %11554 = vmatprep.mubr.msk.bf16.mxu1 %vm12230_vm3, %v12229_v37 }
0x1e42   : > { %11552 = vmatprep.subr.bf16.mxu1 %v12229_v37 }
0x1e43   : > { %v11535_v19 = vpop.f32.mrf.mxu0 }
0x1e44   : > { %v12025_v19 = vld [vmem:[%s14092_s12 + $0xf0] sm:$0xff]  }
0x1e45   : > { %v8030_v62 = vpop.f32.mrf.mxu0  ;;  %11553 = vmatpush3.bf16.msra.mxu1 %v12007_v14 }
0x1e46   : > { %v8036_v44 = vpack.c.bf16 %v8030_v62, %v8030_v62  ;;  %11564 = vmatprep.subr.bf16.mxu1 %v12229_v37 }
0x1e47   : > { %v11548_v20 = vpop.f32.mrf.mxu0 }
0x1e48   : > { %11555 = vmatmul.mubr.msk.bf16.vlgmr.msra.gmra.mxu1 %vm7464_vm1, %v8036_v44 }
0x1e49   : > { %v8033_v51 = vpop.f32.mrf.mxu0  ;;  %11565 = vmatpush3.bf16.msra.mxu1 %v12008_v15  ;;  %11568 = vmatprep.mubr.msk.bf16.mxu1 %vm12230_vm3, %v12229_v37 }
0x1e4a   : > { %11566 = vmatprep.subr.bf16.mxu1 %v12229_v37 }
0x1e4b   : > { %v11549_v24 = vpop.f32.mrf.mxu0 }
0x1e4d   : > { %v8137_v63 = vpop.f32.mrf.mxu0  ;;  %11567 = vmatpush3.bf16.msra.mxu1 %v12009_v52 }
0x1e4e   : > { %v8143_v53 = vpack.c.bf16 %v8137_v63, %v8137_v63  ;;  %11578 = vmatprep.subr.bf16.mxu1 %v12229_v37 }
0x1e4f   : > { %v11562_v22 = vpop.f32.mrf.mxu0 }
0x1e50   : > { %11569 = vmatmul.mubr.msk.bf16.vlgmr.msra.gmra.mxu1 %vm7464_vm1, %v8143_v53 }
0x1e51   : > { %v8140_v26 = vpop.f32.mrf.mxu0  ;;  %11579 = vmatpush3.bf16.msra.mxu1 %v12010_v11  ;;  %11582 = vmatprep.mubr.msk.bf16.mxu1 %vm12230_vm3, %v12229_v37 }
0x1e52   : > { %11580 = vmatprep.subr.bf16.mxu1 %v12229_v37 }
0x1e53   : > { %v11563_v25 = vpop.f32.mrf.mxu0 }
0x1e55   : > { %v8244_v58 = vpop.f32.mrf.mxu0  ;;  %11581 = vmatpush3.bf16.msra.mxu1 %v12011_v5 }
0x1e56   : > { %v8250_v55 = vpack.c.bf16 %v8244_v58, %v8244_v58  ;;  %11592 = vmatprep.subr.bf16.mxu1 %v12229_v37 }
0x1e57   : > { %v11576_v30 = vpop.f32.mrf.mxu0 }
0x1e58   : > { %11583 = vmatmul.mubr.msk.bf16.vlgmr.msra.gmra.mxu1 %vm7464_vm1, %v8250_v55 }
0x1e59   : > { %v8247_v33 = vpop.f32.mrf.mxu0  ;;  %11593 = vmatpush3.bf16.msra.mxu1 %v12012_v56  ;;  %11596 = vmatprep.mubr.msk.bf16.mxu1 %vm12230_vm3, %v12229_v37 }
0x1e5a   : > { %11594 = vmatprep.subr.bf16.mxu1 %v12229_v37 }
0x1e5b   : > { %v11577_v1 = vpop.f32.mrf.mxu0 }
0x1e5d   : > { %v8351_v28 = vpop.f32.mrf.mxu0  ;;  %11595 = vmatpush3.bf16.msra.mxu1 %v12013_v16 }
0x1e5e   : > { %v8357_v35 = vpack.c.bf16 %v8351_v28, %v8351_v28  ;;  %11606 = vmatprep.subr.bf16.mxu1 %v12229_v37 }
0x1e5f   : > { %v11590_v60 = vpop.f32.mrf.mxu0 }
0x1e60   : > { %11597 = vmatmul.mubr.msk.bf16.vlgmr.msra.gmra.mxu1 %vm7464_vm1, %v8357_v35 }
0x1e61   : > { %v8354_v7 = vpop.f32.mrf.mxu0  ;;  %11607 = vmatpush3.bf16.msra.mxu1 %v12014_v34  ;;  %11610 = vmatprep.mubr.msk.bf16.mxu1 %vm12230_vm3, %v12229_v37 }
0x1e62   : > { %11608 = vmatprep.subr.bf16.mxu1 %v12229_v37 }
0x1e63   : > { %v11591_v43 = vpop.f32.mrf.mxu0 }
0x1e65   : > { %v8458_v47 = vpop.f32.mrf.mxu0  ;;  %11609 = vmatpush3.bf16.msra.mxu1 %v12015_v40 }
0x1e66   : > { %v8464_v49 = vpack.c.bf16 %v8458_v47, %v8458_v47  ;;  %11620 = vmatprep.subr.bf16.mxu1 %v12229_v37 }
0x1e67   : > { %v11604_v12 = vpop.f32.mrf.mxu0 }
0x1e68   : > { %11611 = vmatmul.mubr.msk.bf16.vlgmr.msra.gmra.mxu1 %vm7464_vm1, %v8464_v49 }
0x1e69   : > { %v8461_v54 = vpop.f32.mrf.mxu0  ;;  %11621 = vmatpush3.bf16.msra.mxu1 %v12016_v48  ;;  %11624 = vmatprep.mubr.msk.bf16.mxu1 %vm12230_vm3, %v12229_v37 }
0x1e6a   : > { %11622 = vmatprep.subr.bf16.mxu1 %v12229_v37 }
0x1e6b   : > { %v11605_v9 = vpop.f32.mrf.mxu0 }
0x1e6d   : > { %v8565_v6 = vpop.f32.mrf.mxu0  ;;  %11623 = vmatpush3.bf16.msra.mxu1 %v12017_v42 }
0x1e6e   : > { %v8571_v61 = vpack.c.bf16 %v8565_v6, %v8565_v6  ;;  %11634 = vmatprep.subr.bf16.mxu1 %v12229_v37 }
0x1e6f   : > { %v11618_v45 = vpop.f32.mrf.mxu0 }
0x1e70   : > { %11625 = vmatmul.mubr.msk.bf16.vlgmr.msra.gmra.mxu1 %vm7464_vm1, %v8571_v61 }
0x1e71   : > { %v8568_v50 = vpop.f32.mrf.mxu0  ;;  %11635 = vmatpush3.bf16.msra.mxu1 %v12018_v36  ;;  %11638 = vmatprep.mubr.msk.bf16.mxu1 %vm12230_vm3, %v12229_v37 }
0x1e72   : > { %11636 = vmatprep.subr.bf16.mxu1 %v12229_v37 }
0x1e73   : > { %v11619_v23 = vpop.f32.mrf.mxu0 }
0x1e75   : > { %v8672_v38 = vpop.f32.mrf.mxu0  ;;  %11637 = vmatpush3.bf16.msra.mxu1 %v12019_v27 }
0x1e76   : > { %v8678_v4 = vpack.c.bf16 %v8672_v38, %v8672_v38  ;;  %11648 = vmatprep.subr.bf16.mxu1 %v12229_v37 }
0x1e77   : > { %v11632_v17 = vpop.f32.mrf.mxu0 }
0x1e78   : > { %11639 = vmatmul.mubr.msk.bf16.vlgmr.msra.gmra.mxu1 %vm7464_vm1, %v8678_v4 }
0x1e79   : > { %v8675_v39 = vpop.f32.mrf.mxu0  ;;  %11649 = vmatpush3.bf16.msra.mxu1 %v12020_v29  ;;  %11652 = vmatprep.mubr.msk.bf16.mxu1 %vm12230_vm3, %v12229_v37 }
0x1e7a   : > { %11650 = vmatprep.subr.bf16.mxu1 %v12229_v37 }
0x1e7b   : > { %v11633_v21 = vpop.f32.mrf.mxu0 }
0x1e7d   : > { %v8779_v0 = vpop.f32.mrf.mxu0  ;;  %11651 = vmatpush3.bf16.msra.mxu1 %v12021_v31 }
0x1e7e   : > { %v8785_v59 = vpack.c.bf16 %v8779_v0, %v8779_v0  ;;  %11662 = vmatprep.subr.bf16.mxu1 %v12229_v37 }
0x1e7f   : > { %v11646_v46 = vpop.f32.mrf.mxu0 }
0x1e80   : > { %11653 = vmatmul.mubr.msk.bf16.vlgmr.msra.gmra.mxu1 %vm7464_vm1, %v8785_v59 }
0x1e81   : > { %v8782_v57 = vpop.f32.mrf.mxu0  ;;  %11663 = vmatpush3.bf16.msra.mxu1 %v12022_v2  ;;  %11666 = vmatprep.mubr.msk.bf16.mxu1 %vm12230_vm3, %v12229_v37 }
0x1e82   : > { %11664 = vmatprep.subr.bf16.mxu1 %v12229_v37 }
0x1e83   : > { %v11647_v41 = vpop.f32.mrf.mxu0 }
0x1e85   : > { %v8886_v3 = vpop.f32.mrf.mxu0  ;;  %11665 = vmatpush3.bf16.msra.mxu1 %v12023_v10 }
0x1e86   : > { %v8892_v18 = vpack.c.bf16 %v8886_v3, %v8886_v3  ;;  %11676 = vmatprep.subr.bf16.mxu1 %v12229_v37 }
0x1e87   : > { %v11660_v13 = vpop.f32.mrf.mxu0 }
0x1e88   : > { %11667 = vmatmul.mubr.msk.bf16.vlgmr.msra.gmra.mxu1 %vm7464_vm1, %v8892_v18 }
0x1e89   : > { %v8889_v14 = vpop.f32.mrf.mxu0  ;;  %11677 = vmatpush3.bf16.msra.mxu1 %v12024_v8  ;;  %11680 = vmatprep.mubr.msk.bf16.mxu1 %vm12230_vm3, %v12229_v37  ;;  %vm9061_vm3 = vcmask 516096  }
0x1e8a   : > { %11678 = vmatprep.subr.bf16.mxu1 %v12229_v37 }
0x1e8b   : > { %v11661_v62 = vpop.f32.mrf.mxu0 }
0x1e8d   : > { %v8993_v15 = vpop.f32.mrf.mxu0  ;;  %11679 = vmatpush3.bf16.msra.mxu1 %v12025_v19 }
0x1e8e   : > { %v8999_v44 = vpack.c.bf16 %v8993_v15, %v8993_v15 }
0x1e8f   : > { %v11674_v20 = vpop.f32.mrf.mxu0 }
0x1e90   : > { %11681 = vmatmul.mubr.msk.bf16.vlgmr.msra.gmra.mxu1 %vm7464_vm1, %v8999_v44 }
0x1e91   : > { %v8996_v51 = vpop.f32.mrf.mxu0 }
0x1e93   : > { %v11675_v52 = vpop.f32.mrf.mxu0 }
0x1ee8   : > { %v7663_v24 = vpop.f32.mrf.mxu1 }
0x1ee9   : > { %v7669_v63 = vadd.f32 %v7663_v24, %v13905_v32 }
0x1eea   : > { %v11500_v11 = vpop.f32.mrf.mxu1 }
0x1eec   : > { %v7666_v53 = vpop.f32.mrf.mxu1 }
0x1eee   : > { %v11501_v22 = vpop.f32.mrf.mxu1 }
0x1ef0   : > { %v7770_v26 = vpop.f32.mrf.mxu1 }
0x1ef1   : > { %v7776_v5 = vadd.f32 %v7770_v26, %v7669_v63 }
0x1ef2   : > { %v11514_v25 = vpop.f32.mrf.mxu1 }
0x1ef4   : > { %v7773_v58 = vpop.f32.mrf.mxu1 }
0x1ef6   : > { %v11515_v56 = vpop.f32.mrf.mxu1 }
0x1ef8   : > { %v7877_v55 = vpop.f32.mrf.mxu1 }
0x1ef9   : > { %v7883_v30 = vadd.f32 %v7877_v55, %v7776_v5 }
0x1efa   : > { %v11528_v33 = vpop.f32.mrf.mxu1 }
0x1efc   : > { %v7880_v16 = vpop.f32.mrf.mxu1 }
0x1efd   : > { %v12026_v16 = vld [vmem:[%s14095_s15 + $0x18] sm:$0xff]  }
0x1efe   : > { %v11529_v1 = vpop.f32.mrf.mxu1  ;;  %11685 = vmatpush3.bf16.msra.mxu0 %v12026_v16 }
0x1eff   : > { %11686 = vmatprep.subr.bf16.mxu0 %v12229_v37  ;;  %v12027_v1 = vld [vmem:[%s14095_s15 + $0x10] sm:$0xff]  }
0x1f00   : > { %v7984_v28 = vpop.f32.mrf.mxu1 }
0x1f01   : > { %v7990_v59 = vadd.f32 %v7984_v28, %v7883_v30  ;;  %v12028_v28 = vld [vmem:[%s14095_s15 + $0x8] sm:$0xff]  }
0x1f02   : > { %v11542_v34 = vpop.f32.mrf.mxu1  ;;  %11687 = vmatpush3.bf16.msra.mxu0 %v12027_v1 }
0x1f03   : > { %11688 = vmatprep.subr.bf16.mxu0 %v12229_v37  ;;  %v12029_v34 = vld [vmem:[%s14095_s15] sm:$0xff]  }
0x1f04   : > { %v7987_v35 = vpop.f32.mrf.mxu1 }
0x1f06   : > { %v11543_v60 = vpop.f32.mrf.mxu1  ;;  %11689 = vmatpush3.bf16.msra.mxu0 %v12028_v28 }
0x1f07   : > { %11690 = vmatprep.subr.bf16.mxu0 %v12229_v37 }
0x1f08   : > { %v8091_v7 = vpop.f32.mrf.mxu1 }
0x1f09   : > { %v8097_v57 = vadd.f32 %v8091_v7, %v7990_v59 }
0x1f0a   : > { %v11556_v40 = vpop.f32.mrf.mxu1  ;;  %11691 = vmatpush3.bf16.msra.mxu0 %v12029_v34 }
0x1f0c   : > { %v8094_v32 = vpop.f32.mrf.mxu1 }
0x1f0d   : > { %v9077_v32 = vld [vmem:[%s14093_s13] sm:$0x1] }
0x1f0e   : > { %v11557_v43 = vpop.f32.mrf.mxu1 }
0x1f10   : > { %v8198_v47 = vpop.f32.mrf.mxu1 }
0x1f11   : > { %v8204_v41 = vadd.f32 %v8198_v47, %v8097_v57  ;;  %v9079_v47 = vld [vmem:[%s14094_s14] sm:$0x1] }
0x1f12   : > { %v11570_v48 = vpop.f32.mrf.mxu1 }
0x1f14   : > { %v8201_v49 = vpop.f32.mrf.mxu1 }
0x1f16   : > { %v11571_v12 = vpop.f32.mrf.mxu1 }
0x1f18   : > { %v8305_v54 = vpop.f32.mrf.mxu1 }
0x1f19   : > { %v8311_v8 = vadd.f32 %v8305_v54, %v8204_v41 }
0x1f1a   : > { %v11584_v42 = vpop.f32.mrf.mxu1 }
0x1f1b   : > { %v9093_v42 = vld [vmem:[#allocation10] sm:$0x1] }
0x1f1c   : > { %v8308_v9 = vpop.f32.mrf.mxu1 }
0x1f1e   : > { %v11585_v6 = vpop.f32.mrf.mxu1 }
0x1f20   : > { %v8412_v36 = vpop.f32.mrf.mxu1 }
0x1f21   : > { %v8418_v13 = vadd.f32 %v8412_v36, %v8311_v8 }
0x1f22   : > { %v11598_v61 = vpop.f32.mrf.mxu1 }
0x1f24   : > { %v8415_v45 = vpop.f32.mrf.mxu1 }
0x1f26   : > { %v11599_v50 = vpop.f32.mrf.mxu1 }
0x1f28   : > { %v8519_v27 = vpop.f32.mrf.mxu1 }
0x1f29   : > { %v8525_v19 = vadd.f32 %v8519_v27, %v8418_v13 }
0x1f2a   : > { %v11612_v23 = vpop.f32.mrf.mxu1 }
0x1f2c   : > { %v8522_v38 = vpop.f32.mrf.mxu1 }
0x1f2e   : > { %v11613_v29 = vpop.f32.mrf.mxu1 }
0x1f2f   : > { %v9167_v29 = vlaneseq }
0x1f30   : > { %v8626_v4 = vpop.f32.mrf.mxu1 }
0x1f31   : > { %v8632_v15 = vadd.f32 %v8626_v4, %v8525_v19  ;;  %v9168_v4 = vand.u32 127, %v9167_v29 }
0x1f32   : > { %v11626_v17 = vpop.f32.mrf.mxu1 }
0x1f33   : > { %vm9169_vm8 = vcmp.ge.s32.totalorder %v9168_v4, 1 }
0x1f34   : > { %v8629_v39 = vpop.f32.mrf.mxu1 }
0x1f36   : > { %v11627_v31 = vpop.f32.mrf.mxu1 }
0x1f38   : > { %v8733_v21 = vpop.f32.mrf.mxu1 }
0x1f39   : > { %v8739_v20 = vadd.f32 %v8733_v21, %v8632_v15 }
0x1f3a   : > { %v11640_v0 = vpop.f32.mrf.mxu1 }
0x1f3c   : > { %v8736_v2 = vpop.f32.mrf.mxu1 }
0x1f3e   : > { %v11641_v46 = vpop.f32.mrf.mxu1 }
0x1f40   : > { %v8840_v10 = vpop.f32.mrf.mxu1 }
0x1f41   : > { %v8846_v52 = vadd.f32 %v8840_v10, %v8739_v20 }
0x1f42   : > { %v11654_v3 = vpop.f32.mrf.mxu1 }
0x1f44   : > { %v8843_v18 = vpop.f32.mrf.mxu1 }
0x1f46   : > { %v11655_v14 = vpop.f32.mrf.mxu1 }
0x1f48   : > { %v8947_v62 = vpop.f32.mrf.mxu1 }
0x1f49   : > { %v8953_v63 = vadd.f32 %v8947_v62, %v8846_v52 }
0x1f4a   : > { %v11668_v44 = vpop.f32.mrf.mxu1 }
0x1f4c   : > { %v8950_v51 = vpop.f32.mrf.mxu1 }
0x1f4e   : > { %v11669_v24 = vpop.f32.mrf.mxu1 }
0x1f50   : > { %v9054_v11 = vpop.f32.mrf.mxu1 }
0x1f51   : > { %v9060_v53 = vadd.f32 %v9054_v11, %v8953_v63 }
0x1f52   : > { %v11682_v22 = vpop.f32.mrf.mxu1 }
0x1f53   : > { %v9062_v26 = vsel %vm9061_vm3, %v9060_v53, 0.0 }
0x1f54   : > { %9063 = vadd.xlane.f32.xlu0 %v9062_v26  ;;  %v9057_v5 = vpop.f32.mrf.mxu1 }
0x1f56   : > { %v11683_v25 = vpop.f32.mrf.mxu1 }
0x1fdd   : > { %v9064_v58 = vpop.xlane.xlu0 %9063 }
0x1fde   : > { %v9066_v56 = vmul.f32 0.015625, %v9064_v58 }
0x1fe0   : > { %v9067_v55 = vsub.f32 %v9060_v53, %v9066_v56 }
0x1fe2   : > { %v9068_v30 = vmul.f32 %v9067_v55, %v9067_v55 }
0x1fe4   : > { %v9069_v33 = vsel %vm9061_vm3, %v9068_v30, 0.0 }
0x1fe5   : > { %9070 = vadd.xlane.f32.xlu1 %v9069_v33 }
0x206e   : > { %v9071_v35 = vpop.xlane.xlu1 %9070 }
0x206f   : > { %v9073_v60 = vmul.f32 0.015625, %v9071_v35 }
0x2071   : > { %v9074_v7 = vadd.f32 1e-05, %v9073_v60 }
0x2073   : > { %12034 = vrsqrt.f32 %v9074_v7 }
0x2080   : > { %v12035_v40 = vpop.eup %12034 }
0x2081   : > { %v9076_v43 = vmul.f32 %v12035_v40, %v9067_v55 }
0x2083   : > { %v9078_v48 = vmul.f32 %v9077_v32, %v9076_v43 }
0x2085   : > { %v9080_v49 = vadd.f32 %v9079_v47, %v9078_v48 }
0x2087   : > { %vm9081_vm7 = vcmp.gt.f32.partialorder %v9080_v49, 0.0  ;;  %v9082_v12 = vmul.f32 0.2, %v9080_v49 }
0x2089   : > { %v9083_v37 = vsel %vm9081_vm7, %v9080_v49, %v9082_v12 }
0x208a   : > { %v9084_v54 = vpack.c.bf16 %v9083_v37, %v9083_v37 }
0x208c   : > { %11693 = vmatmul.mubr.msk.bf16.vlgmr.msra.gmra.mxu0 %vm4026_vm12, %v9084_v54 }
0x214c   : > { %v9155_v9 = vpop.f32.mrf.mxu0 }
0x214d   : > { %v9156_v6 = vadd.f32 %v9155_v9, %v9093_v42 }
0x214e   : > { %v11694_v36 = vpop.f32.mrf.mxu0 }
0x214f   : > { %v9161_v61 = vsub.f32 0.0, %v9156_v6 }
0x2150   : > { %v9158_v45 = vpop.f32.mrf.mxu0 }
0x2151   : > { %v9162_v50 = vmul.f32 1.442695, %v9161_v61 }
0x2152   : > { %v11695_v27 = vpop.f32.mrf.mxu0 }
0x2153   : > { %12036 = vpow2.f32 %v9162_v50 }
0x2160   : > { %v12037_v23 = vpop.eup %12036 }
0x2161   : > { %v9164_v38 = vadd.f32 1.0, %v12037_v23 }
0x2163   : > { %12038 = vrcp.f32 %v9164_v38 }
0x2170   : > { %v12039_v17 = vpop.eup %12038 }
0x2171   : > { %v9170_v39 = vsel %vm9169_vm8, %v12039_v17, %v9156_v6 }
0x2172   : > { %9172 = vst.msk [vmem:[%s626_s1] sm:$0x1] %vm9171_vm9, %v9170_v39 }
0x2173 PF: > { %s14124_s20 = sld [smem:[#allocation16_spill]] }
0x2179   : > { %s31_s24 = sadd.s32 1, %s14124_s20  }
0x217a   : > { %p28_p13 = scmp.ge.s32.totalorder %s31_s24, 4  }
0x217c   :  { %30 = sbr.rel (!%p28_p13) target bundleno = 7 (0x7), region = 263 }
0x2181   :  { %9190 = vsyncpa [#allocation3], 1 }
0x2182   :  { %9192 = vsyncpa [#allocation3 + $0x1], 1 }
0x2183   :  { %9193 = vsyncpa [#allocation5], 1 }
0x2184   :  { %9194 = vsyncpa [#allocation8], 1 }
0x2185   :  { %9195 = vsyncpa [#allocation11], 1 }

</bundles_post_ra>
